<compile_context>
chip_gen: v7x
topology: tpu7x:2x2x1
jax: 0.10.0
libtpu: 0.0.40
codegen_flags: <defaults>
</compile_context>

<pallas_src>
import functools
import math

import jax
import jax.numpy as jnp
from jax.experimental import pallas as pl
from jax.experimental.pallas import tpu as pltpu


# ----------------------------------------------------------------------------
# helpers
# ----------------------------------------------------------------------------
def _round_up(x, m):
    return ((x + m - 1) // m) * m


def _pick_sublane_tile(dim, max_tile=256):
    """(tile, padded_dim) for a sublane-major (second-to-last) dimension."""
    d = _round_up(dim, 16)               # bf16 sublane-friendly
    if d <= max_tile:
        return d, d
    t = max_tile
    while t >= 64:                       # prefer a no-padding divisor tile
        if d % t == 0:
            return t, d
        t -= 16
    return max_tile, _round_up(dim, max_tile)


def _pick_lane_tile(dim, max_tile):
    """(tile, padded_dim) for a lane-major (last) dimension."""
    d = _round_up(dim, 128)
    if d <= max_tile:
        return d, d
    t = max_tile
    while t >= 256:                      # prefer a no-padding divisor tile
        if d % t == 0:
            return t, d
        t -= 128
    return max_tile, _round_up(dim, max_tile)


# ----------------------------------------------------------------------------
# Pallas kernel: tiled matmul + bias + optional ReLU, fp32 accumulation
# ----------------------------------------------------------------------------
def _mm_bias_kernel(x_ref, w_ref, b_ref, o_ref, acc_ref, *, relu):
    k = pl.program_id(2)

    @pl.when(k == 0)
    def _init():
        acc_ref[...] = jnp.zeros_like(acc_ref)

    acc_ref[...] += jnp.dot(x_ref[...], w_ref[...],
                            preferred_element_type=jnp.float32)

    @pl.when(k == pl.num_programs(2) - 1)
    def _finalize():
        out = acc_ref[...] + b_ref[...]          # (1, tn) broadcasts over tm
        if relu:
            out = jnp.maximum(out, 0.0)
        o_ref[...] = out.astype(o_ref.dtype)


def pallas_linear(x, w, b, relu=False, out_dtype=jnp.float32,
                  tm_max=256, tn_max=256, tk_max=512):
    """x: (M, K) @ w: (K, N) + b: (N,) -> (M, N), tiled & pipelined on the MXU.

    Inputs are cast to bf16 (MXU native) with fp32 accumulation in VMEM.
    Dims are zero-padded to tile multiples and the result is sliced back, so
    pad columns never leak into downstream softmax/argmax.
    """
    M, K = x.shape
    Kw, N = w.shape
    assert K == Kw

    tm, Mp = _pick_sublane_tile(M, tm_max)
    tk, Kp = _pick_lane_tile(K, tk_max)
    tn, Np = _pick_lane_tile(N, tn_max)

    xp = x.astype(jnp.bfloat16)
    wp = w.astype(jnp.bfloat16)
    if (Mp, Kp) != (M, K):
        xp = jnp.pad(xp, ((0, Mp - M), (0, Kp - K)))
    if (Kp, Np) != (K, N):
        wp = jnp.pad(wp, ((0, Kp - K), (0, Np - N)))
    bp = b.astype(jnp.float32)
    if Np != N:
        bp = jnp.pad(bp, (0, Np - N))
    bp = bp.reshape(1, Np)

    out_bytes = Mp * Np * jnp.dtype(out_dtype).itemsize
    grid = (Mp // tm, Np // tn, Kp // tk)

    out = pl.pallas_call(
        functools.partial(_mm_bias_kernel, relu=relu),
        out_shape=jax.ShapeDtypeStruct((Mp, Np), out_dtype),
        grid=grid,
        in_specs=[
            pl.BlockSpec((tm, tk), lambda i, j, k: (i, k)),
            pl.BlockSpec((tk, tn), lambda i, j, k: (k, j)),
            pl.BlockSpec((1, tn), lambda i, j, k: (0, j)),
        ],
        out_specs=pl.BlockSpec((tm, tn), lambda i, j, k: (i, j)),
        scratch_shapes=[pltpu.VMEM((tm, tn), jnp.float32)],
        compiler_params=pltpu.CompilerParams(
            dimension_semantics=("parallel", "parallel", "arbitrary")),
        cost_estimate=pl.CostEstimate(
            flops=2 * Mp * Np * Kp,
            transcendentals=0,
            bytes_accessed=Mp * Kp * 2 + Kp * Np * 2 + Np * 4 + out_bytes),
    )(xp, wp, bp)

    if (Mp, Np) != (M, N):
        out = out[:M, :N]
    return out


# ----------------------------------------------------------------------------
# Pallas kernel: generic fused MLP chain
#   x -> (matmul + bias [+ ReLU]) * L   in ONE launch, activations stay in
#   VMEM between layers; tiled only over the row dimension.
# Used for both the RoI head (fc6 -> fc7 -> [cls|bbox]) and the RPN head
# (3x3 conv as im2col matmul -> fused [cls|reg] 1x1 conv).
# ----------------------------------------------------------------------------
def _fused_mlp_kernel(*refs, relus):
    x_ref = refs[0]
    o_ref = refs[-1]
    n_layers = len(relus)
    h = x_ref[...].astype(jnp.bfloat16)
    for li in range(n_layers):
        w = refs[1 + 2 * li][...]
        b = refs[2 + 2 * li][...]
        h = jnp.dot(h, w, preferred_element_type=jnp.float32) + b
        if relus[li]:
            h = jnp.maximum(h, 0.0)
        if li + 1 < n_layers:
            h = h.astype(jnp.bfloat16)
    o_ref[...] = h.astype(o_ref.dtype)


def pallas_fused_mlp(x, layers, out_dtype=jnp.float32, tm_max=256):
    """x: (P, K); layers: list of (w: (Kin, Kout), b: (Kout,), relu: bool).

    All feature dims are zero-padded to lane (128) multiples (zero bias / zero
    weight pads keep padded columns exactly zero through the chain), rows to
    sublane multiples.  Output sliced back to (P, N_last).
    """
    P, K = x.shape
    dims = [K] + [w.shape[1] for (w, _, _) in layers]
    dpads = [_round_up(d, 128) for d in dims]
    tm, Pp = _pick_sublane_tile(P, tm_max)

    xp = x.astype(jnp.bfloat16)
    if (Pp, dpads[0]) != (P, K):
        xp = jnp.pad(xp, ((0, Pp - P), (0, dpads[0] - K)))

    ops = [xp]
    in_specs = [pl.BlockSpec((tm, dpads[0]), lambda i: (i, 0))]
    relus = []
    weight_bytes = 0
    flops = 0
    for li, (w, b, relu) in enumerate(layers):
        kin, kout = w.shape
        kip, kop = dpads[li], dpads[li + 1]
        wp = jnp.pad(w.astype(jnp.bfloat16), ((0, kip - kin), (0, kop - kout)))
        bp = jnp.pad(b.astype(jnp.float32), (0, kop - kout)).reshape(1, kop)
        ops += [wp, bp]
        in_specs += [pl.BlockSpec((kip, kop), lambda i: (0, 0)),
                     pl.BlockSpec((1, kop), lambda i: (0, 0))]
        relus.append(relu)
        weight_bytes += kip * kop * 2 + kop * 4
        flops += 2 * Pp * kip * kop

    Np = dpads[-1]
    out = pl.pallas_call(
        functools.partial(_fused_mlp_kernel, relus=tuple(relus)),
        out_shape=jax.ShapeDtypeStruct((Pp, Np), out_dtype),
        grid=(Pp // tm,),
        in_specs=in_specs,
        out_specs=pl.BlockSpec((tm, Np), lambda i: (i, 0)),
        compiler_params=pltpu.CompilerParams(
            dimension_semantics=("parallel",)),
        cost_estimate=pl.CostEstimate(
            flops=flops,
            transcendentals=0,
            bytes_accessed=Pp * dpads[0] * 2 + weight_bytes
            + Pp * Np * jnp.dtype(out_dtype).itemsize),
    )(*ops)
    return out[:P, :dims[-1]]


# ----------------------------------------------------------------------------
# Conv = im2col (glue) + Pallas matmul
# ----------------------------------------------------------------------------
def _im2col(x, kh, kw, stride, pad):
    """x: (B, H, W, C) NHWC -> patches (B*Ho*Wo, kh*kw*C)."""
    # TODO(synk): im2col still materializes the kh*kw-duplicated patches in
    # HBM; streaming the 3x3 window shift as a grid axis of the matmul would
    # remove the duplication for the mem-bound backbone/FPN convs.
    B, H, W, C = x.shape
    if pad:
        x = jnp.pad(x, ((0, 0), (pad, pad), (pad, pad), (0, 0)))
    Ho = (H + 2 * pad - kh) // stride + 1
    Wo = (W + 2 * pad - kw) // stride + 1
    cols = []
    for i in range(kh):
        for j in range(kw):
            cols.append(x[:, i:i + stride * Ho:stride,
                          j:j + stride * Wo:stride, :])
    patches = jnp.concatenate(cols, axis=-1)          # (B, Ho, Wo, kh*kw*C)
    return patches.reshape(B * Ho * Wo, kh * kw * C), (B, Ho, Wo)


def conv2d(x, w, b, stride=1, pad=0, relu=False, out_dtype=jnp.bfloat16):
    """x: (B, H, W, Cin) NHWC, w: (kh, kw, Cin, Cout), b: (Cout,)."""
    kh, kw, cin, cout = w.shape
    patches, (B, Ho, Wo) = _im2col(x, kh, kw, stride, pad)
    out = pallas_linear(patches, w.reshape(kh * kw * cin, cout), b,
                        relu=relu, out_dtype=out_dtype)
    return out.reshape(B, Ho, Wo, cout)


def _upsample2x(x):
    """Nearest-neighbor x2 upsample as one broadcast+reshape (no double repeat)."""
    B, H, W, C = x.shape
    x = jnp.broadcast_to(x[:, :, None, :, None, :], (B, H, 2, W, 2, C))
    return x.reshape(B, 2 * H, 2 * W, C)


# ----------------------------------------------------------------------------
# Deterministic parameter init
# ----------------------------------------------------------------------------
def _init_conv(key, kh, kw, cin, cout):
    fan_in = kh * kw * cin
    w = jax.random.normal(key, (kh, kw, cin, cout), jnp.float32) / math.sqrt(fan_in)
    b = jnp.zeros((cout,), jnp.float32)
    return w, b


def _init_fc(key, cin, cout):
    w = jax.random.normal(key, (cin, cout), jnp.float32) / math.sqrt(cin)
    b = jnp.zeros((cout,), jnp.float32)
    return w, b


# ----------------------------------------------------------------------------
# Faster R-CNN (synthetic, inference path)
# ----------------------------------------------------------------------------
class FasterRCNNPallas:
    # TODO(synk): ResNet-50 pretrained backbone replaced with a 5-stage strided
    # conv stack producing the same /4,/8,/16,/32 multi-scale feature pyramid;
    # channel widths scaled down ([256,512,1024,2048] -> [32,64,128,256],
    # FPN out 256 -> 64, RoI-head hidden 1024 -> 256) for the small-shape run.

    def __init__(self, num_classes, key, min_size=800, max_size=1333):
        self.num_classes = num_classes
        self.min_size = min_size
        self.max_size = max_size

        self.backbone_ch = [16, 32, 64, 128, 256]   # stem + 4 stages
        self.fpn_in = [32, 64, 128, 256]
        self.fpn_out = 64
        self.num_anchors = 3                        # 3 aspect ratios per level
        self.roi_out_size = 7
        self.rep_size = 256

        keys = iter(jax.random.split(key, 64))
        p = {}
        # backbone
        cin = 3
        for si, cout in enumerate(self.backbone_ch):
            p[f"bb{si}"] = _init_conv(next(keys), 3, 3, cin, cout)
            cin = cout
        # FPN lateral 1x1 and output 3x3 convs
        for li, c in enumerate(self.fpn_in):
            p[f"fpn_lat{li}"] = _init_conv(next(keys), 1, 1, c, self.fpn_out)
            p[f"fpn_out{li}"] = _init_conv(next(keys), 3, 3, self.fpn_out, self.fpn_out)
        # RPN head
        p["rpn_conv"] = _init_conv(next(keys), 3, 3, self.fpn_out, self.fpn_out)
        p["rpn_cls"] = _init_conv(next(keys), 1, 1, self.fpn_out, self.num_anchors)
        p["rpn_reg"] = _init_conv(next(keys), 1, 1, self.fpn_out, self.num_anchors * 4)
        # RoI head (two FC + predictors)
        roi_in = self.roi_out_size * self.roi_out_size * self.fpn_out
        p["fc6"] = _init_fc(next(keys), roi_in, self.rep_size)
        p["fc7"] = _init_fc(next(keys), self.rep_size, self.rep_size)
        p["cls_score"] = _init_fc(next(keys), self.rep_size, num_classes)
        p["bbox_pred"] = _init_fc(next(keys), self.rep_size, num_classes * 4)
        self.p = p

        # jit the whole forward so XLA can schedule the im2col / transpose /
        # upsample glue around the Pallas custom calls (cost_estimate hints),
        # and fold all weight casts / zero-pads at compile time.
        self._forward = jax.jit(self._forward_impl)

    # -- backbone -------------------------------------------------------------
    def _backbone(self, x):
        feats = []
        for si in range(len(self.backbone_ch)):
            w, b = self.p[f"bb{si}"]
            x = conv2d(x, w, b, stride=2, pad=1, relu=True)
            if si >= 1:                       # C2..C5 at strides /4,/8,/16,/32
                feats.append(x)
        return feats

    # -- FPN ------------------------------------------------------------------
    def _fpn(self, feats):
        lats = []
        for li, f in enumerate(feats):
            w, b = self.p[f"fpn_lat{li}"]
            lats.append(conv2d(f, w, b, stride=1, pad=0, relu=False))
        # top-down pathway with fused nearest-neighbor x2 upsample + add
        tds = [None] * len(lats)
        tds[-1] = lats[-1]
        for li in range(len(lats) - 2, -1, -1):
            tds[li] = lats[li] + _upsample2x(tds[li + 1])
        outs = []
        for li, t in enumerate(tds):
            w, b = self.p[f"fpn_out{li}"]
            outs.append(conv2d(t, w, b, stride=1, pad=1, relu=False))
        return outs

    # -- RPN ------------------------------------------------------------------
    def _rpn(self, fpn_feats, image_size):
        # Batch all FPN levels into one big (sum_l B*Hl*Wl, K) matrix so the
        # shared rpn_conv / cls / reg weights run as ONE fused Pallas kernel
        # (3x3 conv -> ReLU -> fused 1x1 cls+reg) instead of 12 separate convs;
        # the intermediate RPN feature map never touches HBM.
        patches_all, shapes = [], []
        for f in fpn_feats:
            patches, shp = _im2col(f, 3, 3, 1, 1)
            patches_all.append(patches)
            shapes.append(shp)
        x = jnp.concatenate(patches_all, axis=0)

        w, b = self.p["rpn_conv"]
        wc, bc = self.p["rpn_cls"]
        wr, br = self.p["rpn_reg"]
        w_fused = jnp.concatenate(
            [wc.reshape(self.fpn_out, -1), wr.reshape(self.fpn_out, -1)], axis=1)
        b_fused = jnp.concatenate([bc, br], axis=0)
        cr = pallas_fused_mlp(
            x,
            layers=[
                (w.reshape(-1, self.fpn_out), b, True),   # rpn_conv + ReLU
                (w_fused, b_fused, False),                # fused cls | reg
            ],
            out_dtype=jnp.float32,
        )

        objectness, bbox_deltas = [], []
        off = 0
        na = self.num_anchors
        for (B, Ho, Wo) in shapes:
            n = B * Ho * Wo
            blk = cr[off:off + n]
            objectness.append(blk[:, :na].reshape(B, Ho, Wo, na))
            bbox_deltas.append(blk[:, na:na + 4 * na].reshape(B, Ho, Wo, 4 * na))
            off += n

        # TODO(synk): anchor generation, box decoding, top-k selection and NMS
        # are data-dependent control flow with no clean Pallas equivalent; use
        # a fixed, static proposal set (full image + 4 quadrants per image).
        B = fpn_feats[0].shape[0]
        H, W = image_size
        per_img = [
            (0, 0, W, H),
            (0, 0, W // 2, H // 2),
            (W // 2, 0, W, H // 2),
            (0, H // 2, W // 2, H),
            (W // 2, H // 2, W, H),
        ]
        proposals = [per_img for _ in range(B)]
        return proposals, objectness, bbox_deltas

    # -- RoI head -------------------------------------------------------------
    def _roi_head(self, fpn_feats, proposals):
        # TODO(synk): MultiScaleRoIAlign (bilinear sampling, level assignment)
        # simplified to a static crop of the stride-4 FPN level + resize.
        p2 = fpn_feats[0]                      # (B, H/4, W/4, C), stride 4
        stride = 4
        pooled = []
        for bi, boxes in enumerate(proposals):
            for (x1, y1, x2, y2) in boxes:
                fx1, fy1 = x1 // stride, y1 // stride
                fx2, fy2 = x2 // stride, y2 // stride
                crop = p2[bi, fy1:fy2, fx1:fx2, :].astype(jnp.float32)
                pooled.append(
                    jax.image.resize(
                        crop,
                        (self.roi_out_size, self.roi_out_size, self.fpn_out),
                        method="bilinear",
                    )
                )
        pooled = jnp.stack(pooled, axis=0)                       # (P, 7, 7, C)
        x = pooled.reshape(pooled.shape[0], -1)                  # (P, 7*7*C)

        # fc6 -> fc7 -> [cls_score | bbox_pred] fused into one Pallas kernel;
        # the hidden activations stay in VMEM.
        w6, b6 = self.p["fc6"]
        w7, b7 = self.p["fc7"]
        wc, bc = self.p["cls_score"]
        wr, br = self.p["bbox_pred"]
        wh = jnp.concatenate([wc, wr], axis=1)        # (256, num_cls*5)
        bh = jnp.concatenate([bc, br], axis=0)
        out = pallas_fused_mlp(
            x,
            layers=[(w6, b6, True), (w7, b7, True), (wh, bh, False)],
            out_dtype=jnp.float32,
        )

        nc = self.num_classes
        class_logits = out[:, :nc]                    # (P, num_cls)
        box_regression = out[:, nc:nc * 5]            # (P, num_cls*4)
        return class_logits, box_regression

    # -- forward (inference) --------------------------------------------------
    def _forward_impl(self, images):
        # images: (B, 3, H, W) NCHW, as in PyTorch
        original_image_sizes = [(int(images.shape[-2]), int(images.shape[-1]))
                                for _ in range(images.shape[0])]
        x = jnp.transpose(images, (0, 2, 3, 1)).astype(jnp.float32)  # -> NHWC

        feats = self._backbone(x)
        fpn_feats = self._fpn(feats)
        proposals, objectness, bbox_deltas = self._rpn(
            fpn_feats, original_image_sizes[0]
        )
        class_logits, box_regression = self._roi_head(fpn_feats, proposals)

        # Post-processing (inference): softmax scores, predicted labels.
        # TODO(synk): per-class box decoding + NMS omitted (no Pallas equivalent
        # for dynamic suppression loops); raw proposal boxes are returned.
        probs = jax.nn.softmax(class_logits, axis=-1)
        fg = probs[:, 1:]
        scores = jnp.max(fg, axis=-1)
        labels = jnp.argmax(fg, axis=-1) + 1

        B = images.shape[0]
        per_img = len(proposals[0])
        boxes_all = jnp.asarray(
            [b for img_boxes in proposals for b in img_boxes], jnp.float32
        )
        detections = []
        for bi in range(B):
            sl = slice(bi * per_img, (bi + 1) * per_img)
            detections.append(
                {
                    "boxes": boxes_all[sl],
                    "scores": scores[sl],
                    "labels": labels[sl],
                    "class_logits": class_logits[sl],
                    "box_regression": box_regression[sl],
                }
            )
        return detections

    def __call__(self, images):
        return self._forward(images)


# ----------------------------------------------------------------------------
if __name__ == "__main__":
    key = jax.random.PRNGKey(0)
    k_img, k_param = jax.random.split(key)

    # small synthetic input: batch=2, RGB, 64x64 (NCHW, like the torch module)
    images = jax.random.normal(k_img, (2, 3, 64, 64), jnp.float32)

    model = FasterRCNNPallas(num_classes=5, key=k_param)
    detections = model(images)
    jax.block_until_ready(detections)

    print("KERNEL_OK")
</pallas_src>

<mosaic_0001>
module attributes {stable_mosaic.version = 11 : i64} {
  func.func @_mm_bias_kernel(%arg0: i32, %arg1: i32, %arg2: i32, %arg3: memref<256x128xbf16, #tpu.memory_space<vmem>>, %arg4: memref<128x128xbf16, #tpu.memory_space<vmem>>, %arg5: memref<1x128xf32, #tpu.memory_space<vmem>>, %arg6: memref<256x128xbf16, #tpu.memory_space<vmem>>, %arg7: memref<256x128xf32, #tpu.memory_space<vmem>>) attributes {dimension_semantics = [#tpu.dimension_semantics<parallel>, #tpu.dimension_semantics<parallel>, #tpu.dimension_semantics<arbitrary>], iteration_bounds = array<i64: 8, 1, 1>, scalar_prefetch = 0 : i64, scratch_operands = 1 : i64, tpu.core_type = #tpu.core_type<tc>, window_params = [{transform_indices = @transform_0, window_bounds = array<i64: 256, 128>}, {transform_indices = @transform_1, window_bounds = array<i64: 128, 128>}, {transform_indices = @transform_2, window_bounds = array<i64: 1, 128>}, {transform_indices = @transform_3, window_bounds = array<i64: 256, 128>}]} {
    %c0_i32 = arith.constant 0 : i32
    %0 = arith.cmpi eq, %arg2, %c0_i32 : i32
    %1 = arith.extui %0 : i1 to i32
    %c0_i32_0 = arith.constant 0 : i32
    %2 = arith.cmpi ne, %1, %c0_i32_0 : i32
    scf.if %2 {
      %cst_10 = arith.constant 0.000000e+00 : f32
      %12 = vector.broadcast %cst_10 : f32 to vector<256x128xf32>
      %c0_11 = arith.constant 0 : index
      %c0_12 = arith.constant 0 : index
      %13 = vector.load %arg7[%c0_11, %c0_12] : memref<256x128xf32, #tpu.memory_space<vmem>>, vector<256x128xf32>
      tpu.vector_store %arg7[%c0_11, %c0_12], %12 {strides = array<i32>} : memref<256x128xf32, #tpu.memory_space<vmem>>, vector<256x128xf32>,
    } else {
    }
    %c0 = arith.constant 0 : index
    %c0_1 = arith.constant 0 : index
    %3 = vector.load %arg7[%c0, %c0_1] : memref<256x128xf32, #tpu.memory_space<vmem>>, vector<256x128xf32>
    %c0_2 = arith.constant 0 : index
    %c0_3 = arith.constant 0 : index
    %4 = vector.load %arg3[%c0_2, %c0_3] : memref<256x128xbf16, #tpu.memory_space<vmem>>, vector<256x128xbf16>
    %c0_4 = arith.constant 0 : index
    %c0_5 = arith.constant 0 : index
    %5 = vector.load %arg4[%c0_4, %c0_5] : memref<128x128xbf16, #tpu.memory_space<vmem>>, vector<128x128xbf16>
    %cst = arith.constant dense<0.000000e+00> : vector<256x128xf32>
    %6 = tpu.matmul %4, %5, %cst {dimension_numbers = #tpu.dot_dimension_numbers<[1], [0], [0], [1], [0, 0, 1, 1], [], []>} : vector<256x128xbf16>, vector<128x128xbf16>, vector<256x128xf32> -> vector<256x128xf32>
    %7 = arith.addf %3, %6 : vector<256x128xf32>
    %c0_6 = arith.constant 0 : index
    %c0_7 = arith.constant 0 : index
    %8 = vector.load %arg7[%c0_6, %c0_7] : memref<256x128xf32, #tpu.memory_space<vmem>>, vector<256x128xf32>
    tpu.vector_store %arg7[%c0_6, %c0_7], %7 {strides = array<i32>} : memref<256x128xf32, #tpu.memory_space<vmem>>, vector<256x128xf32>,
    %c0_i32_8 = arith.constant 0 : i32
    %9 = arith.cmpi eq, %arg2, %c0_i32_8 : i32
    %10 = arith.extui %9 : i1 to i32
    %c0_i32_9 = arith.constant 0 : i32
    %11 = arith.cmpi ne, %10, %c0_i32_9 : i32
    scf.if %11 {
      %c0_10 = arith.constant 0 : index
      %c0_11 = arith.constant 0 : index
      %12 = vector.load %arg7[%c0_10, %c0_11] : memref<256x128xf32, #tpu.memory_space<vmem>>, vector<256x128xf32>
      %c0_12 = arith.constant 0 : index
      %c0_13 = arith.constant 0 : index
      %13 = vector.load %arg5[%c0_12, %c0_13] : memref<1x128xf32, #tpu.memory_space<vmem>>, vector<1x128xf32>
      %14 = vector.broadcast %13 : vector<1x128xf32> to vector<256x128xf32>
      %15 = arith.addf %12, %14 : vector<256x128xf32>
      %cst_14 = arith.constant 0.000000e+00 : f32
      %16 = vector.broadcast %cst_14 : f32 to vector<256x128xf32>
      %17 = arith.maximumf %15, %16 : vector<256x128xf32>
      %18 = arith.truncf %17 : vector<256x128xf32> to vector<256x128xbf16>
      %c0_15 = arith.constant 0 : index
      %c0_16 = arith.constant 0 : index
      %19 = vector.load %arg6[%c0_15, %c0_16] : memref<256x128xbf16, #tpu.memory_space<vmem>>, vector<256x128xbf16>
      tpu.vector_store %arg6[%c0_15, %c0_16], %18 {strides = array<i32>} : memref<256x128xbf16, #tpu.memory_space<vmem>>, vector<256x128xbf16>,
    } else {
    }
    return
  }
  func.func @transform_0(%arg0: i32, %arg1: i32, %arg2: i32) -> (i32, i32) {
    %c0_i32 = arith.constant 0 : i32
    return %arg0, %arg2 : i32, i32
  }
  func.func @transform_1(%arg0: i32, %arg1: i32, %arg2: i32) -> (i32, i32) {
    %c0_i32 = arith.constant 0 : i32
    return %arg2, %arg1 : i32, i32
  }
  func.func @transform_2(%arg0: i32, %arg1: i32, %arg2: i32) -> (i32, i32) {
    %c0_i32 = arith.constant 0 : i32
    %c0_i32_0 = arith.constant 0 : i32
    return %c0_i32, %arg1 : i32, i32
  }
  func.func @transform_3(%arg0: i32, %arg1: i32, %arg2: i32) -> (i32, i32) {
    %c0_i32 = arith.constant 0 : i32
    return %arg0, %arg1 : i32, i32
  }
}

module attributes {stable_mosaic.version = 11 : i64} {
  func.func @_mm_bias_kernel(%arg0: i32, %arg1: i32, %arg2: i32, %arg3: memref<256x256xbf16, #tpu.memory_space<vmem>>, %arg4: memref<256x128xbf16, #tpu.memory_space<vmem>>, %arg5: memref<1x128xf32, #tpu.memory_space<vmem>>, %arg6: memref<256x128xbf16, #tpu.memory_space<vmem>>, %arg7: memref<256x128xf32, #tpu.memory_space<vmem>>) attributes {dimension_semantics = [#tpu.dimension_semantics<parallel>, #tpu.dimension_semantics<parallel>, #tpu.dimension_semantics<arbitrary>], iteration_bounds = array<i64: 2, 1, 1>, scalar_prefetch = 0 : i64, scratch_operands = 1 : i64, tpu.core_type = #tpu.core_type<tc>, window_params = [{transform_indices = @transform_0, window_bounds = array<i64: 256, 256>}, {transform_indices = @transform_1, window_bounds = array<i64: 256, 128>}, {transform_indices = @transform_2, window_bounds = array<i64: 1, 128>}, {transform_indices = @transform_3, window_bounds = array<i64: 256, 128>}]} {
    %c0_i32 = arith.constant 0 : i32
    %0 = arith.cmpi eq, %arg2, %c0_i32 : i32
    %1 = arith.extui %0 : i1 to i32
    %c0_i32_0 = arith.constant 0 : i32
    %2 = arith.cmpi ne, %1, %c0_i32_0 : i32
    scf.if %2 {
      %cst_10 = arith.constant 0.000000e+00 : f32
      %12 = vector.broadcast %cst_10 : f32 to vector<256x128xf32>
      %c0_11 = arith.constant 0 : index
      %c0_12 = arith.constant 0 : index
      %13 = vector.load %arg7[%c0_11, %c0_12] : memref<256x128xf32, #tpu.memory_space<vmem>>, vector<256x128xf32>
      tpu.vector_store %arg7[%c0_11, %c0_12], %12 {strides = array<i32>} : memref<256x128xf32, #tpu.memory_space<vmem>>, vector<256x128xf32>,
    } else {
    }
    %c0 = arith.constant 0 : index
    %c0_1 = arith.constant 0 : index
    %3 = vector.load %arg7[%c0, %c0_1] : memref<256x128xf32, #tpu.memory_space<vmem>>, vector<256x128xf32>
    %c0_2 = arith.constant 0 : index
    %c0_3 = arith.constant 0 : index
    %4 = vector.load %arg3[%c0_2, %c0_3] : memref<256x256xbf16, #tpu.memory_space<vmem>>, vector<256x256xbf16>
    %c0_4 = arith.constant 0 : index
    %c0_5 = arith.constant 0 : index
    %5 = vector.load %arg4[%c0_4, %c0_5] : memref<256x128xbf16, #tpu.memory_space<vmem>>, vector<256x128xbf16>
    %cst = arith.constant dense<0.000000e+00> : vector<256x128xf32>
    %6 = tpu.matmul %4, %5, %cst {dimension_numbers = #tpu.dot_dimension_numbers<[1], [0], [0], [1], [0, 0, 1, 1], [], []>} : vector<256x256xbf16>, vector<256x128xbf16>, vector<256x128xf32> -> vector<256x128xf32>
    %7 = arith.addf %3, %6 : vector<256x128xf32>
    %c0_6 = arith.constant 0 : index
    %c0_7 = arith.constant 0 : index
    %8 = vector.load %arg7[%c0_6, %c0_7] : memref<256x128xf32, #tpu.memory_space<vmem>>, vector<256x128xf32>
    tpu.vector_store %arg7[%c0_6, %c0_7], %7 {strides = array<i32>} : memref<256x128xf32, #tpu.memory_space<vmem>>, vector<256x128xf32>,
    %c0_i32_8 = arith.constant 0 : i32
    %9 = arith.cmpi eq, %arg2, %c0_i32_8 : i32
    %10 = arith.extui %9 : i1 to i32
    %c0_i32_9 = arith.constant 0 : i32
    %11 = arith.cmpi ne, %10, %c0_i32_9 : i32
    scf.if %11 {
      %c0_10 = arith.constant 0 : index
      %c0_11 = arith.constant 0 : index
      %12 = vector.load %arg7[%c0_10, %c0_11] : memref<256x128xf32, #tpu.memory_space<vmem>>, vector<256x128xf32>
      %c0_12 = arith.constant 0 : index
      %c0_13 = arith.constant 0 : index
      %13 = vector.load %arg5[%c0_12, %c0_13] : memref<1x128xf32, #tpu.memory_space<vmem>>, vector<1x128xf32>
      %14 = vector.broadcast %13 : vector<1x128xf32> to vector<256x128xf32>
      %15 = arith.addf %12, %14 : vector<256x128xf32>
      %cst_14 = arith.constant 0.000000e+00 : f32
      %16 = vector.broadcast %cst_14 : f32 to vector<256x128xf32>
      %17 = arith.maximumf %15, %16 : vector<256x128xf32>
      %18 = arith.truncf %17 : vector<256x128xf32> to vector<256x128xbf16>
      %c0_15 = arith.constant 0 : index
      %c0_16 = arith.constant 0 : index
      %19 = vector.load %arg6[%c0_15, %c0_16] : memref<256x128xbf16, #tpu.memory_space<vmem>>, vector<256x128xbf16>
      tpu.vector_store %arg6[%c0_15, %c0_16], %18 {strides = array<i32>} : memref<256x128xbf16, #tpu.memory_space<vmem>>, vector<256x128xbf16>,
    } else {
    }
    return
  }
  func.func @transform_0(%arg0: i32, %arg1: i32, %arg2: i32) -> (i32, i32) {
    %c0_i32 = arith.constant 0 : i32
    return %arg0, %arg2 : i32, i32
  }
  func.func @transform_1(%arg0: i32, %arg1: i32, %arg2: i32) -> (i32, i32) {
    %c0_i32 = arith.constant 0 : i32
    return %arg2, %arg1 : i32, i32
  }
  func.func @transform_2(%arg0: i32, %arg1: i32, %arg2: i32) -> (i32, i32) {
    %c0_i32 = arith.constant 0 : i32
    %c0_i32_0 = arith.constant 0 : i32
    return %c0_i32, %arg1 : i32, i32
  }
  func.func @transform_3(%arg0: i32, %arg1: i32, %arg2: i32) -> (i32, i32) {
    %c0_i32 = arith.constant 0 : i32
    return %arg0, %arg1 : i32, i32
  }
}

module attributes {stable_mosaic.version = 11 : i64} {
  func.func @_mm_bias_kernel(%arg0: i32, %arg1: i32, %arg2: i32, %arg3: memref<128x384xbf16, #tpu.memory_space<vmem>>, %arg4: memref<384x128xbf16, #tpu.memory_space<vmem>>, %arg5: memref<1x128xf32, #tpu.memory_space<vmem>>, %arg6: memref<128x128xbf16, #tpu.memory_space<vmem>>, %arg7: memref<128x128xf32, #tpu.memory_space<vmem>>) attributes {dimension_semantics = [#tpu.dimension_semantics<parallel>, #tpu.dimension_semantics<parallel>, #tpu.dimension_semantics<arbitrary>], iteration_bounds = array<i64: 1, 1, 1>, scalar_prefetch = 0 : i64, scratch_operands = 1 : i64, tpu.core_type = #tpu.core_type<tc>, window_params = [{transform_indices = @transform_0, window_bounds = array<i64: 128, 384>}, {transform_indices = @transform_1, window_bounds = array<i64: 384, 128>}, {transform_indices = @transform_2, window_bounds = array<i64: 1, 128>}, {transform_indices = @transform_3, window_bounds = array<i64: 128, 128>}]} {
    %c0_i32 = arith.constant 0 : i32
    %0 = arith.cmpi eq, %arg2, %c0_i32 : i32
    %1 = arith.extui %0 : i1 to i32
    %c0_i32_0 = arith.constant 0 : i32
    %2 = arith.cmpi ne, %1, %c0_i32_0 : i32
    scf.if %2 {
      %cst_10 = arith.constant 0.000000e+00 : f32
      %12 = vector.broadcast %cst_10 : f32 to vector<128x128xf32>
      %c0_11 = arith.constant 0 : index
      %c0_12 = arith.constant 0 : index
      %13 = vector.load %arg7[%c0_11, %c0_12] : memref<128x128xf32, #tpu.memory_space<vmem>>, vector<128x128xf32>
      tpu.vector_store %arg7[%c0_11, %c0_12], %12 {strides = array<i32>} : memref<128x128xf32, #tpu.memory_space<vmem>>, vector<128x128xf32>,
    } else {
    }
    %c0 = arith.constant 0 : index
    %c0_1 = arith.constant 0 : index
    %3 = vector.load %arg7[%c0, %c0_1] : memref<128x128xf32, #tpu.memory_space<vmem>>, vector<128x128xf32>
    %c0_2 = arith.constant 0 : index
    %c0_3 = arith.constant 0 : index
    %4 = vector.load %arg3[%c0_2, %c0_3] : memref<128x384xbf16, #tpu.memory_space<vmem>>, vector<128x384xbf16>
    %c0_4 = arith.constant 0 : index
    %c0_5 = arith.constant 0 : index
    %5 = vector.load %arg4[%c0_4, %c0_5] : memref<384x128xbf16, #tpu.memory_space<vmem>>, vector<384x128xbf16>
    %cst = arith.constant dense<0.000000e+00> : vector<128x128xf32>
    %6 = tpu.matmul %4, %5, %cst {dimension_numbers = #tpu.dot_dimension_numbers<[1], [0], [0], [1], [0, 0, 1, 1], [], []>} : vector<128x384xbf16>, vector<384x128xbf16>, vector<128x128xf32> -> vector<128x128xf32>
    %7 = arith.addf %3, %6 : vector<128x128xf32>
    %c0_6 = arith.constant 0 : index
    %c0_7 = arith.constant 0 : index
    %8 = vector.load %arg7[%c0_6, %c0_7] : memref<128x128xf32, #tpu.memory_space<vmem>>, vector<128x128xf32>
    tpu.vector_store %arg7[%c0_6, %c0_7], %7 {strides = array<i32>} : memref<128x128xf32, #tpu.memory_space<vmem>>, vector<128x128xf32>,
    %c0_i32_8 = arith.constant 0 : i32
    %9 = arith.cmpi eq, %arg2, %c0_i32_8 : i32
    %10 = arith.extui %9 : i1 to i32
    %c0_i32_9 = arith.constant 0 : i32
    %11 = arith.cmpi ne, %10, %c0_i32_9 : i32
    scf.if %11 {
      %c0_10 = arith.constant 0 : index
      %c0_11 = arith.constant 0 : index
      %12 = vector.load %arg7[%c0_10, %c0_11] : memref<128x128xf32, #tpu.memory_space<vmem>>, vector<128x128xf32>
      %c0_12 = arith.constant 0 : index
      %c0_13 = arith.constant 0 : index
      %13 = vector.load %arg5[%c0_12, %c0_13] : memref<1x128xf32, #tpu.memory_space<vmem>>, vector<1x128xf32>
      %14 = vector.broadcast %13 : vector<1x128xf32> to vector<128x128xf32>
      %15 = arith.addf %12, %14 : vector<128x128xf32>
      %cst_14 = arith.constant 0.000000e+00 : f32
      %16 = vector.broadcast %cst_14 : f32 to vector<128x128xf32>
      %17 = arith.maximumf %15, %16 : vector<128x128xf32>
      %18 = arith.truncf %17 : vector<128x128xf32> to vector<128x128xbf16>
      %c0_15 = arith.constant 0 : index
      %c0_16 = arith.constant 0 : index
      %19 = vector.load %arg6[%c0_15, %c0_16] : memref<128x128xbf16, #tpu.memory_space<vmem>>, vector<128x128xbf16>
      tpu.vector_store %arg6[%c0_15, %c0_16], %18 {strides = array<i32>} : memref<128x128xbf16, #tpu.memory_space<vmem>>, vector<128x128xbf16>,
    } else {
    }
    return
  }
  func.func @transform_0(%arg0: i32, %arg1: i32, %arg2: i32) -> (i32, i32) {
    %c0_i32 = arith.constant 0 : i32
    return %arg0, %arg2 : i32, i32
  }
  func.func @transform_1(%arg0: i32, %arg1: i32, %arg2: i32) -> (i32, i32) {
    %c0_i32 = arith.constant 0 : i32
    return %arg2, %arg1 : i32, i32
  }
  func.func @transform_2(%arg0: i32, %arg1: i32, %arg2: i32) -> (i32, i32) {
    %c0_i32 = arith.constant 0 : i32
    %c0_i32_0 = arith.constant 0 : i32
    return %c0_i32, %arg1 : i32, i32
  }
  func.func @transform_3(%arg0: i32, %arg1: i32, %arg2: i32) -> (i32, i32) {
    %c0_i32 = arith.constant 0 : i32
    return %arg0, %arg1 : i32, i32
  }
}

module attributes {stable_mosaic.version = 11 : i64} {
  func.func @_mm_bias_kernel(%arg0: i32, %arg1: i32, %arg2: i32, %arg3: memref<32x512xbf16, #tpu.memory_space<vmem>>, %arg4: memref<512x128xbf16, #tpu.memory_space<vmem>>, %arg5: memref<1x128xf32, #tpu.memory_space<vmem>>, %arg6: memref<32x128xbf16, #tpu.memory_space<vmem>>, %arg7: memref<32x128xf32, #tpu.memory_space<vmem>>) attributes {dimension_semantics = [#tpu.dimension_semantics<parallel>, #tpu.dimension_semantics<parallel>, #tpu.dimension_semantics<arbitrary>], iteration_bounds = array<i64: 1, 1, 2>, scalar_prefetch = 0 : i64, scratch_operands = 1 : i64, tpu.core_type = #tpu.core_type<tc>, window_params = [{transform_indices = @transform_0, window_bounds = array<i64: 32, 512>}, {transform_indices = @transform_1, window_bounds = array<i64: 512, 128>}, {transform_indices = @transform_2, window_bounds = array<i64: 1, 128>}, {transform_indices = @transform_3, window_bounds = array<i64: 32, 128>}]} {
    %c0_i32 = arith.constant 0 : i32
    %0 = arith.cmpi eq, %arg2, %c0_i32 : i32
    %1 = arith.extui %0 : i1 to i32
    %c0_i32_0 = arith.constant 0 : i32
    %2 = arith.cmpi ne, %1, %c0_i32_0 : i32
    scf.if %2 {
      %cst_9 = arith.constant 0.000000e+00 : f32
      %12 = vector.broadcast %cst_9 : f32 to vector<32x128xf32>
      %c0_10 = arith.constant 0 : index
      %c0_11 = arith.constant 0 : index
      %13 = vector.load %arg7[%c0_10, %c0_11] : memref<32x128xf32, #tpu.memory_space<vmem>>, vector<32x128xf32>
      tpu.vector_store %arg7[%c0_10, %c0_11], %12 {strides = array<i32>} : memref<32x128xf32, #tpu.memory_space<vmem>>, vector<32x128xf32>,
    } else {
    }
    %c0 = arith.constant 0 : index
    %c0_1 = arith.constant 0 : index
    %3 = vector.load %arg7[%c0, %c0_1] : memref<32x128xf32, #tpu.memory_space<vmem>>, vector<32x128xf32>
    %c0_2 = arith.constant 0 : index
    %c0_3 = arith.constant 0 : index
    %4 = vector.load %arg3[%c0_2, %c0_3] : memref<32x512xbf16, #tpu.memory_space<vmem>>, vector<32x512xbf16>
    %c0_4 = arith.constant 0 : index
    %c0_5 = arith.constant 0 : index
    %5 = vector.load %arg4[%c0_4, %c0_5] : memref<512x128xbf16, #tpu.memory_space<vmem>>, vector<512x128xbf16>
    %cst = arith.constant dense<0.000000e+00> : vector<32x128xf32>
    %6 = tpu.matmul %4, %5, %cst {dimension_numbers = #tpu.dot_dimension_numbers<[1], [0], [0], [1], [0, 0, 1, 1], [], []>} : vector<32x512xbf16>, vector<512x128xbf16>, vector<32x128xf32> -> vector<32x128xf32>
    %7 = arith.addf %3, %6 : vector<32x128xf32>
    %c0_6 = arith.constant 0 : index
    %c0_7 = arith.constant 0 : index
    %8 = vector.load %arg7[%c0_6, %c0_7] : memref<32x128xf32, #tpu.memory_space<vmem>>, vector<32x128xf32>
    tpu.vector_store %arg7[%c0_6, %c0_7], %7 {strides = array<i32>} : memref<32x128xf32, #tpu.memory_space<vmem>>, vector<32x128xf32>,
    %c1_i32 = arith.constant 1 : i32
    %9 = arith.cmpi eq, %arg2, %c1_i32 : i32
    %10 = arith.extui %9 : i1 to i32
    %c0_i32_8 = arith.constant 0 : i32
    %11 = arith.cmpi ne, %10, %c0_i32_8 : i32
    scf.if %11 {
      %c0_9 = arith.constant 0 : index
      %c0_10 = arith.constant 0 : index
      %12 = vector.load %arg7[%c0_9, %c0_10] : memref<32x128xf32, #tpu.memory_space<vmem>>, vector<32x128xf32>
      %c0_11 = arith.constant 0 : index
      %c0_12 = arith.constant 0 : index
      %13 = vector.load %arg5[%c0_11, %c0_12] : memref<1x128xf32, #tpu.memory_space<vmem>>, vector<1x128xf32>
      %14 = vector.broadcast %13 : vector<1x128xf32> to vector<32x128xf32>
      %15 = arith.addf %12, %14 : vector<32x128xf32>
      %cst_13 = arith.constant 0.000000e+00 : f32
      %16 = vector.broadcast %cst_13 : f32 to vector<32x128xf32>
      %17 = arith.maximumf %15, %16 : vector<32x128xf32>
      %18 = arith.truncf %17 : vector<32x128xf32> to vector<32x128xbf16>
      %c0_14 = arith.constant 0 : index
      %c0_15 = arith.constant 0 : index
      %19 = vector.load %arg6[%c0_14, %c0_15] : memref<32x128xbf16, #tpu.memory_space<vmem>>, vector<32x128xbf16>
      tpu.vector_store %arg6[%c0_14, %c0_15], %18 {strides = array<i32>} : memref<32x128xbf16, #tpu.memory_space<vmem>>, vector<32x128xbf16>,
    } else {
    }
    return
  }
  func.func @transform_0(%arg0: i32, %arg1: i32, %arg2: i32) -> (i32, i32) {
    %c0_i32 = arith.constant 0 : i32
    return %arg0, %arg2 : i32, i32
  }
  func.func @transform_1(%arg0: i32, %arg1: i32, %arg2: i32) -> (i32, i32) {
    %c0_i32 = arith.constant 0 : i32
    return %arg2, %arg1 : i32, i32
  }
  func.func @transform_2(%arg0: i32, %arg1: i32, %arg2: i32) -> (i32, i32) {
    %c0_i32 = arith.constant 0 : i32
    %c0_i32_0 = arith.constant 0 : i32
    return %c0_i32, %arg1 : i32, i32
  }
  func.func @transform_3(%arg0: i32, %arg1: i32, %arg2: i32) -> (i32, i32) {
    %c0_i32 = arith.constant 0 : i32
    return %arg0, %arg1 : i32, i32
  }
}

module attributes {stable_mosaic.version = 11 : i64} {
  func.func @_mm_bias_kernel(%arg0: i32, %arg1: i32, %arg2: i32, %arg3: memref<16x384xbf16, #tpu.memory_space<vmem>>, %arg4: memref<384x256xbf16, #tpu.memory_space<vmem>>, %arg5: memref<1x256xf32, #tpu.memory_space<vmem>>, %arg6: memref<16x256xbf16, #tpu.memory_space<vmem>>, %arg7: memref<16x256xf32, #tpu.memory_space<vmem>>) attributes {dimension_semantics = [#tpu.dimension_semantics<parallel>, #tpu.dimension_semantics<parallel>, #tpu.dimension_semantics<arbitrary>], iteration_bounds = array<i64: 1, 1, 3>, scalar_prefetch = 0 : i64, scratch_operands = 1 : i64, tpu.core_type = #tpu.core_type<tc>, window_params = [{transform_indices = @transform_0, window_bounds = array<i64: 16, 384>}, {transform_indices = @transform_1, window_bounds = array<i64: 384, 256>}, {transform_indices = @transform_2, window_bounds = array<i64: 1, 256>}, {transform_indices = @transform_3, window_bounds = array<i64: 16, 256>}]} {
    %c0_i32 = arith.constant 0 : i32
    %0 = arith.cmpi eq, %arg2, %c0_i32 : i32
    %1 = arith.extui %0 : i1 to i32
    %c0_i32_0 = arith.constant 0 : i32
    %2 = arith.cmpi ne, %1, %c0_i32_0 : i32
    scf.if %2 {
      %cst_9 = arith.constant 0.000000e+00 : f32
      %12 = vector.broadcast %cst_9 : f32 to vector<16x256xf32>
      %c0_10 = arith.constant 0 : index
      %c0_11 = arith.constant 0 : index
      %13 = vector.load %arg7[%c0_10, %c0_11] : memref<16x256xf32, #tpu.memory_space<vmem>>, vector<16x256xf32>
      tpu.vector_store %arg7[%c0_10, %c0_11], %12 {strides = array<i32>} : memref<16x256xf32, #tpu.memory_space<vmem>>, vector<16x256xf32>,
    } else {
    }
    %c0 = arith.constant 0 : index
    %c0_1 = arith.constant 0 : index
    %3 = vector.load %arg7[%c0, %c0_1] : memref<16x256xf32, #tpu.memory_space<vmem>>, vector<16x256xf32>
    %c0_2 = arith.constant 0 : index
    %c0_3 = arith.constant 0 : index
    %4 = vector.load %arg3[%c0_2, %c0_3] : memref<16x384xbf16, #tpu.memory_space<vmem>>, vector<16x384xbf16>
    %c0_4 = arith.constant 0 : index
    %c0_5 = arith.constant 0 : index
    %5 = vector.load %arg4[%c0_4, %c0_5] : memref<384x256xbf16, #tpu.memory_space<vmem>>, vector<384x256xbf16>
    %cst = arith.constant dense<0.000000e+00> : vector<16x256xf32>
    %6 = tpu.matmul %4, %5, %cst {dimension_numbers = #tpu.dot_dimension_numbers<[1], [0], [0], [1], [0, 0, 1, 1], [], []>} : vector<16x384xbf16>, vector<384x256xbf16>, vector<16x256xf32> -> vector<16x256xf32>
    %7 = arith.addf %3, %6 : vector<16x256xf32>
    %c0_6 = arith.constant 0 : index
    %c0_7 = arith.constant 0 : index
    %8 = vector.load %arg7[%c0_6, %c0_7] : memref<16x256xf32, #tpu.memory_space<vmem>>, vector<16x256xf32>
    tpu.vector_store %arg7[%c0_6, %c0_7], %7 {strides = array<i32>} : memref<16x256xf32, #tpu.memory_space<vmem>>, vector<16x256xf32>,
    %c2_i32 = arith.constant 2 : i32
    %9 = arith.cmpi eq, %arg2, %c2_i32 : i32
    %10 = arith.extui %9 : i1 to i32
    %c0_i32_8 = arith.constant 0 : i32
    %11 = arith.cmpi ne, %10, %c0_i32_8 : i32
    scf.if %11 {
      %c0_9 = arith.constant 0 : index
      %c0_10 = arith.constant 0 : index
      %12 = vector.load %arg7[%c0_9, %c0_10] : memref<16x256xf32, #tpu.memory_space<vmem>>, vector<16x256xf32>
      %c0_11 = arith.constant 0 : index
      %c0_12 = arith.constant 0 : index
      %13 = vector.load %arg5[%c0_11, %c0_12] : memref<1x256xf32, #tpu.memory_space<vmem>>, vector<1x256xf32>
      %14 = vector.broadcast %13 : vector<1x256xf32> to vector<16x256xf32>
      %15 = arith.addf %12, %14 : vector<16x256xf32>
      %cst_13 = arith.constant 0.000000e+00 : f32
      %16 = vector.broadcast %cst_13 : f32 to vector<16x256xf32>
      %17 = arith.maximumf %15, %16 : vector<16x256xf32>
      %18 = arith.truncf %17 : vector<16x256xf32> to vector<16x256xbf16>
      %c0_14 = arith.constant 0 : index
      %c0_15 = arith.constant 0 : index
      %19 = vector.load %arg6[%c0_14, %c0_15] : memref<16x256xbf16, #tpu.memory_space<vmem>>, vector<16x256xbf16>
      tpu.vector_store %arg6[%c0_14, %c0_15], %18 {strides = array<i32>} : memref<16x256xbf16, #tpu.memory_space<vmem>>, vector<16x256xbf16>,
    } else {
    }
    return
  }
  func.func @transform_0(%arg0: i32, %arg1: i32, %arg2: i32) -> (i32, i32) {
    %c0_i32 = arith.constant 0 : i32
    return %arg0, %arg2 : i32, i32
  }
  func.func @transform_1(%arg0: i32, %arg1: i32, %arg2: i32) -> (i32, i32) {
    %c0_i32 = arith.constant 0 : i32
    return %arg2, %arg1 : i32, i32
  }
  func.func @transform_2(%arg0: i32, %arg1: i32, %arg2: i32) -> (i32, i32) {
    %c0_i32 = arith.constant 0 : i32
    %c0_i32_0 = arith.constant 0 : i32
    return %c0_i32, %arg1 : i32, i32
  }
  func.func @transform_3(%arg0: i32, %arg1: i32, %arg2: i32) -> (i32, i32) {
    %c0_i32 = arith.constant 0 : i32
    return %arg0, %arg1 : i32, i32
  }
}

module attributes {stable_mosaic.version = 11 : i64} {
  func.func @_mm_bias_kernel(%arg0: i32, %arg1: i32, %arg2: i32, %arg3: memref<16x256xbf16, #tpu.memory_space<vmem>>, %arg4: memref<256x128xbf16, #tpu.memory_space<vmem>>, %arg5: memref<1x128xf32, #tpu.memory_space<vmem>>, %arg6: memref<16x128xbf16, #tpu.memory_space<vmem>>, %arg7: memref<16x128xf32, #tpu.memory_space<vmem>>) attributes {dimension_semantics = [#tpu.dimension_semantics<parallel>, #tpu.dimension_semantics<parallel>, #tpu.dimension_semantics<arbitrary>], iteration_bounds = array<i64: 1, 1, 1>, scalar_prefetch = 0 : i64, scratch_operands = 1 : i64, tpu.core_type = #tpu.core_type<tc>, window_params = [{transform_indices = @transform_0, window_bounds = array<i64: 16, 256>}, {transform_indices = @transform_1, window_bounds = array<i64: 256, 128>}, {transform_indices = @transform_2, window_bounds = array<i64: 1, 128>}, {transform_indices = @transform_3, window_bounds = array<i64: 16, 128>}]} {
    %c0_i32 = arith.constant 0 : i32
    %0 = arith.cmpi eq, %arg2, %c0_i32 : i32
    %1 = arith.extui %0 : i1 to i32
    %c0_i32_0 = arith.constant 0 : i32
    %2 = arith.cmpi ne, %1, %c0_i32_0 : i32
    scf.if %2 {
      %cst_10 = arith.constant 0.000000e+00 : f32
      %12 = vector.broadcast %cst_10 : f32 to vector<16x128xf32>
      %c0_11 = arith.constant 0 : index
      %c0_12 = arith.constant 0 : index
      %13 = vector.load %arg7[%c0_11, %c0_12] : memref<16x128xf32, #tpu.memory_space<vmem>>, vector<16x128xf32>
      tpu.vector_store %arg7[%c0_11, %c0_12], %12 {strides = array<i32>} : memref<16x128xf32, #tpu.memory_space<vmem>>, vector<16x128xf32>,
    } else {
    }
    %c0 = arith.constant 0 : index
    %c0_1 = arith.constant 0 : index
    %3 = vector.load %arg7[%c0, %c0_1] : memref<16x128xf32, #tpu.memory_space<vmem>>, vector<16x128xf32>
    %c0_2 = arith.constant 0 : index
    %c0_3 = arith.constant 0 : index
    %4 = vector.load %arg3[%c0_2, %c0_3] : memref<16x256xbf16, #tpu.memory_space<vmem>>, vector<16x256xbf16>
    %c0_4 = arith.constant 0 : index
    %c0_5 = arith.constant 0 : index
    %5 = vector.load %arg4[%c0_4, %c0_5] : memref<256x128xbf16, #tpu.memory_space<vmem>>, vector<256x128xbf16>
    %cst = arith.constant dense<0.000000e+00> : vector<16x128xf32>
    %6 = tpu.matmul %4, %5, %cst {dimension_numbers = #tpu.dot_dimension_numbers<[1], [0], [0], [1], [0, 0, 1, 1], [], []>} : vector<16x256xbf16>, vector<256x128xbf16>, vector<16x128xf32> -> vector<16x128xf32>
    %7 = arith.addf %3, %6 : vector<16x128xf32>
    %c0_6 = arith.constant 0 : index
    %c0_7 = arith.constant 0 : index
    %8 = vector.load %arg7[%c0_6, %c0_7] : memref<16x128xf32, #tpu.memory_space<vmem>>, vector<16x128xf32>
    tpu.vector_store %arg7[%c0_6, %c0_7], %7 {strides = array<i32>} : memref<16x128xf32, #tpu.memory_space<vmem>>, vector<16x128xf32>,
    %c0_i32_8 = arith.constant 0 : i32
    %9 = arith.cmpi eq, %arg2, %c0_i32_8 : i32
    %10 = arith.extui %9 : i1 to i32
    %c0_i32_9 = arith.constant 0 : i32
    %11 = arith.cmpi ne, %10, %c0_i32_9 : i32
    scf.if %11 {
      %c0_10 = arith.constant 0 : index
      %c0_11 = arith.constant 0 : index
      %12 = vector.load %arg7[%c0_10, %c0_11] : memref<16x128xf32, #tpu.memory_space<vmem>>, vector<16x128xf32>
      %c0_12 = arith.constant 0 : index
      %c0_13 = arith.constant 0 : index
      %13 = vector.load %arg5[%c0_12, %c0_13] : memref<1x128xf32, #tpu.memory_space<vmem>>, vector<1x128xf32>
      %14 = vector.broadcast %13 : vector<1x128xf32> to vector<16x128xf32>
      %15 = arith.addf %12, %14 : vector<16x128xf32>
      %16 = arith.truncf %15 : vector<16x128xf32> to vector<16x128xbf16>
      %c0_14 = arith.constant 0 : index
      %c0_15 = arith.constant 0 : index
      %17 = vector.load %arg6[%c0_14, %c0_15] : memref<16x128xbf16, #tpu.memory_space<vmem>>, vector<16x128xbf16>
      tpu.vector_store %arg6[%c0_14, %c0_15], %16 {strides = array<i32>} : memref<16x128xbf16, #tpu.memory_space<vmem>>, vector<16x128xbf16>,
    } else {
    }
    return
  }
  func.func @transform_0(%arg0: i32, %arg1: i32, %arg2: i32) -> (i32, i32) {
    %c0_i32 = arith.constant 0 : i32
    return %arg0, %arg2 : i32, i32
  }
  func.func @transform_1(%arg0: i32, %arg1: i32, %arg2: i32) -> (i32, i32) {
    %c0_i32 = arith.constant 0 : i32
    return %arg2, %arg1 : i32, i32
  }
  func.func @transform_2(%arg0: i32, %arg1: i32, %arg2: i32) -> (i32, i32) {
    %c0_i32 = arith.constant 0 : i32
    %c0_i32_0 = arith.constant 0 : i32
    return %c0_i32, %arg1 : i32, i32
  }
  func.func @transform_3(%arg0: i32, %arg1: i32, %arg2: i32) -> (i32, i32) {
    %c0_i32 = arith.constant 0 : i32
    return %arg0, %arg1 : i32, i32
  }
}

module attributes {stable_mosaic.version = 11 : i64} {
  func.func @_mm_bias_kernel(%arg0: i32, %arg1: i32, %arg2: i32, %arg3: memref<32x128xbf16, #tpu.memory_space<vmem>>, %arg4: memref<128x128xbf16, #tpu.memory_space<vmem>>, %arg5: memref<1x128xf32, #tpu.memory_space<vmem>>, %arg6: memref<32x128xbf16, #tpu.memory_space<vmem>>, %arg7: memref<32x128xf32, #tpu.memory_space<vmem>>) attributes {dimension_semantics = [#tpu.dimension_semantics<parallel>, #tpu.dimension_semantics<parallel>, #tpu.dimension_semantics<arbitrary>], iteration_bounds = array<i64: 1, 1, 1>, scalar_prefetch = 0 : i64, scratch_operands = 1 : i64, tpu.core_type = #tpu.core_type<tc>, window_params = [{transform_indices = @transform_0, window_bounds = array<i64: 32, 128>}, {transform_indices = @transform_1, window_bounds = array<i64: 128, 128>}, {transform_indices = @transform_2, window_bounds = array<i64: 1, 128>}, {transform_indices = @transform_3, window_bounds = array<i64: 32, 128>}]} {
    %c0_i32 = arith.constant 0 : i32
    %0 = arith.cmpi eq, %arg2, %c0_i32 : i32
    %1 = arith.extui %0 : i1 to i32
    %c0_i32_0 = arith.constant 0 : i32
    %2 = arith.cmpi ne, %1, %c0_i32_0 : i32
    scf.if %2 {
      %cst_10 = arith.constant 0.000000e+00 : f32
      %12 = vector.broadcast %cst_10 : f32 to vector<32x128xf32>
      %c0_11 = arith.constant 0 : index
      %c0_12 = arith.constant 0 : index
      %13 = vector.load %arg7[%c0_11, %c0_12] : memref<32x128xf32, #tpu.memory_space<vmem>>, vector<32x128xf32>
      tpu.vector_store %arg7[%c0_11, %c0_12], %12 {strides = array<i32>} : memref<32x128xf32, #tpu.memory_space<vmem>>, vector<32x128xf32>,
    } else {
    }
    %c0 = arith.constant 0 : index
    %c0_1 = arith.constant 0 : index
    %3 = vector.load %arg7[%c0, %c0_1] : memref<32x128xf32, #tpu.memory_space<vmem>>, vector<32x128xf32>
    %c0_2 = arith.constant 0 : index
    %c0_3 = arith.constant 0 : index
    %4 = vector.load %arg3[%c0_2, %c0_3] : memref<32x128xbf16, #tpu.memory_space<vmem>>, vector<32x128xbf16>
    %c0_4 = arith.constant 0 : index
    %c0_5 = arith.constant 0 : index
    %5 = vector.load %arg4[%c0_4, %c0_5] : memref<128x128xbf16, #tpu.memory_space<vmem>>, vector<128x128xbf16>
    %cst = arith.constant dense<0.000000e+00> : vector<32x128xf32>
    %6 = tpu.matmul %4, %5, %cst {dimension_numbers = #tpu.dot_dimension_numbers<[1], [0], [0], [1], [0, 0, 1, 1], [], []>} : vector<32x128xbf16>, vector<128x128xbf16>, vector<32x128xf32> -> vector<32x128xf32>
    %7 = arith.addf %3, %6 : vector<32x128xf32>
    %c0_6 = arith.constant 0 : index
    %c0_7 = arith.constant 0 : index
    %8 = vector.load %arg7[%c0_6, %c0_7] : memref<32x128xf32, #tpu.memory_space<vmem>>, vector<32x128xf32>
    tpu.vector_store %arg7[%c0_6, %c0_7], %7 {strides = array<i32>} : memref<32x128xf32, #tpu.memory_space<vmem>>, vector<32x128xf32>,
    %c0_i32_8 = arith.constant 0 : i32
    %9 = arith.cmpi eq, %arg2, %c0_i32_8 : i32
    %10 = arith.extui %9 : i1 to i32
    %c0_i32_9 = arith.constant 0 : i32
    %11 = arith.cmpi ne, %10, %c0_i32_9 : i32
    scf.if %11 {
      %c0_10 = arith.constant 0 : index
      %c0_11 = arith.constant 0 : index
      %12 = vector.load %arg7[%c0_10, %c0_11] : memref<32x128xf32, #tpu.memory_space<vmem>>, vector<32x128xf32>
      %c0_12 = arith.constant 0 : index
      %c0_13 = arith.constant 0 : index
      %13 = vector.load %arg5[%c0_12, %c0_13] : memref<1x128xf32, #tpu.memory_space<vmem>>, vector<1x128xf32>
      %14 = vector.broadcast %13 : vector<1x128xf32> to vector<32x128xf32>
      %15 = arith.addf %12, %14 : vector<32x128xf32>
      %16 = arith.truncf %15 : vector<32x128xf32> to vector<32x128xbf16>
      %c0_14 = arith.constant 0 : index
      %c0_15 = arith.constant 0 : index
      %17 = vector.load %arg6[%c0_14, %c0_15] : memref<32x128xbf16, #tpu.memory_space<vmem>>, vector<32x128xbf16>
      tpu.vector_store %arg6[%c0_14, %c0_15], %16 {strides = array<i32>} : memref<32x128xbf16, #tpu.memory_space<vmem>>, vector<32x128xbf16>,
    } else {
    }
    return
  }
  func.func @transform_0(%arg0: i32, %arg1: i32, %arg2: i32) -> (i32, i32) {
    %c0_i32 = arith.constant 0 : i32
    return %arg0, %arg2 : i32, i32
  }
  func.func @transform_1(%arg0: i32, %arg1: i32, %arg2: i32) -> (i32, i32) {
    %c0_i32 = arith.constant 0 : i32
    return %arg2, %arg1 : i32, i32
  }
  func.func @transform_2(%arg0: i32, %arg1: i32, %arg2: i32) -> (i32, i32) {
    %c0_i32 = arith.constant 0 : i32
    %c0_i32_0 = arith.constant 0 : i32
    return %c0_i32, %arg1 : i32, i32
  }
  func.func @transform_3(%arg0: i32, %arg1: i32, %arg2: i32) -> (i32, i32) {
    %c0_i32 = arith.constant 0 : i32
    return %arg0, %arg1 : i32, i32
  }
}

module attributes {stable_mosaic.version = 11 : i64} {
  func.func @_mm_bias_kernel(%arg0: i32, %arg1: i32, %arg2: i32, %arg3: memref<128x128xbf16, #tpu.memory_space<vmem>>, %arg4: memref<128x128xbf16, #tpu.memory_space<vmem>>, %arg5: memref<1x128xf32, #tpu.memory_space<vmem>>, %arg6: memref<128x128xbf16, #tpu.memory_space<vmem>>, %arg7: memref<128x128xf32, #tpu.memory_space<vmem>>) attributes {dimension_semantics = [#tpu.dimension_semantics<parallel>, #tpu.dimension_semantics<parallel>, #tpu.dimension_semantics<arbitrary>], iteration_bounds = array<i64: 1, 1, 1>, scalar_prefetch = 0 : i64, scratch_operands = 1 : i64, tpu.core_type = #tpu.core_type<tc>, window_params = [{transform_indices = @transform_0, window_bounds = array<i64: 128, 128>}, {transform_indices = @transform_1, window_bounds = array<i64: 128, 128>}, {transform_indices = @transform_2, window_bounds = array<i64: 1, 128>}, {transform_indices = @transform_3, window_bounds = array<i64: 128, 128>}]} {
    %c0_i32 = arith.constant 0 : i32
    %0 = arith.cmpi eq, %arg2, %c0_i32 : i32
    %1 = arith.extui %0 : i1 to i32
    %c0_i32_0 = arith.constant 0 : i32
    %2 = arith.cmpi ne, %1, %c0_i32_0 : i32
    scf.if %2 {
      %cst_10 = arith.constant 0.000000e+00 : f32
      %12 = vector.broadcast %cst_10 : f32 to vector<128x128xf32>
      %c0_11 = arith.constant 0 : index
      %c0_12 = arith.constant 0 : index
      %13 = vector.load %arg7[%c0_11, %c0_12] : memref<128x128xf32, #tpu.memory_space<vmem>>, vector<128x128xf32>
      tpu.vector_store %arg7[%c0_11, %c0_12], %12 {strides = array<i32>} : memref<128x128xf32, #tpu.memory_space<vmem>>, vector<128x128xf32>,
    } else {
    }
    %c0 = arith.constant 0 : index
    %c0_1 = arith.constant 0 : index
    %3 = vector.load %arg7[%c0, %c0_1] : memref<128x128xf32, #tpu.memory_space<vmem>>, vector<128x128xf32>
    %c0_2 = arith.constant 0 : index
    %c0_3 = arith.constant 0 : index
    %4 = vector.load %arg3[%c0_2, %c0_3] : memref<128x128xbf16, #tpu.memory_space<vmem>>, vector<128x128xbf16>
    %c0_4 = arith.constant 0 : index
    %c0_5 = arith.constant 0 : index
    %5 = vector.load %arg4[%c0_4, %c0_5] : memref<128x128xbf16, #tpu.memory_space<vmem>>, vector<128x128xbf16>
    %cst = arith.constant dense<0.000000e+00> : vector<128x128xf32>
    %6 = tpu.matmul %4, %5, %cst {dimension_numbers = #tpu.dot_dimension_numbers<[1], [0], [0], [1], [0, 0, 1, 1], [], []>} : vector<128x128xbf16>, vector<128x128xbf16>, vector<128x128xf32> -> vector<128x128xf32>
    %7 = arith.addf %3, %6 : vector<128x128xf32>
    %c0_6 = arith.constant 0 : index
    %c0_7 = arith.constant 0 : index
    %8 = vector.load %arg7[%c0_6, %c0_7] : memref<128x128xf32, #tpu.memory_space<vmem>>, vector<128x128xf32>
    tpu.vector_store %arg7[%c0_6, %c0_7], %7 {strides = array<i32>} : memref<128x128xf32, #tpu.memory_space<vmem>>, vector<128x128xf32>,
    %c0_i32_8 = arith.constant 0 : i32
    %9 = arith.cmpi eq, %arg2, %c0_i32_8 : i32
    %10 = arith.extui %9 : i1 to i32
    %c0_i32_9 = arith.constant 0 : i32
    %11 = arith.cmpi ne, %10, %c0_i32_9 : i32
    scf.if %11 {
      %c0_10 = arith.constant 0 : index
      %c0_11 = arith.constant 0 : index
      %12 = vector.load %arg7[%c0_10, %c0_11] : memref<128x128xf32, #tpu.memory_space<vmem>>, vector<128x128xf32>
      %c0_12 = arith.constant 0 : index
      %c0_13 = arith.constant 0 : index
      %13 = vector.load %arg5[%c0_12, %c0_13] : memref<1x128xf32, #tpu.memory_space<vmem>>, vector<1x128xf32>
      %14 = vector.broadcast %13 : vector<1x128xf32> to vector<128x128xf32>
      %15 = arith.addf %12, %14 : vector<128x128xf32>
      %16 = arith.truncf %15 : vector<128x128xf32> to vector<128x128xbf16>
      %c0_14 = arith.constant 0 : index
      %c0_15 = arith.constant 0 : index
      %17 = vector.load %arg6[%c0_14, %c0_15] : memref<128x128xbf16, #tpu.memory_space<vmem>>, vector<128x128xbf16>
      tpu.vector_store %arg6[%c0_14, %c0_15], %16 {strides = array<i32>} : memref<128x128xbf16, #tpu.memory_space<vmem>>, vector<128x128xbf16>,
    } else {
    }
    return
  }
  func.func @transform_0(%arg0: i32, %arg1: i32, %arg2: i32) -> (i32, i32) {
    %c0_i32 = arith.constant 0 : i32
    return %arg0, %arg2 : i32, i32
  }
  func.func @transform_1(%arg0: i32, %arg1: i32, %arg2: i32) -> (i32, i32) {
    %c0_i32 = arith.constant 0 : i32
    return %arg2, %arg1 : i32, i32
  }
  func.func @transform_2(%arg0: i32, %arg1: i32, %arg2: i32) -> (i32, i32) {
    %c0_i32 = arith.constant 0 : i32
    %c0_i32_0 = arith.constant 0 : i32
    return %c0_i32, %arg1 : i32, i32
  }
  func.func @transform_3(%arg0: i32, %arg1: i32, %arg2: i32) -> (i32, i32) {
    %c0_i32 = arith.constant 0 : i32
    return %arg0, %arg1 : i32, i32
  }
}

module attributes {stable_mosaic.version = 11 : i64} {
  func.func @_mm_bias_kernel(%arg0: i32, %arg1: i32, %arg2: i32, %arg3: memref<256x128xbf16, #tpu.memory_space<vmem>>, %arg4: memref<128x128xbf16, #tpu.memory_space<vmem>>, %arg5: memref<1x128xf32, #tpu.memory_space<vmem>>, %arg6: memref<256x128xbf16, #tpu.memory_space<vmem>>, %arg7: memref<256x128xf32, #tpu.memory_space<vmem>>) attributes {dimension_semantics = [#tpu.dimension_semantics<parallel>, #tpu.dimension_semantics<parallel>, #tpu.dimension_semantics<arbitrary>], iteration_bounds = array<i64: 2, 1, 1>, scalar_prefetch = 0 : i64, scratch_operands = 1 : i64, tpu.core_type = #tpu.core_type<tc>, window_params = [{transform_indices = @transform_0, window_bounds = array<i64: 256, 128>}, {transform_indices = @transform_1, window_bounds = array<i64: 128, 128>}, {transform_indices = @transform_2, window_bounds = array<i64: 1, 128>}, {transform_indices = @transform_3, window_bounds = array<i64: 256, 128>}]} {
    %c0_i32 = arith.constant 0 : i32
    %0 = arith.cmpi eq, %arg2, %c0_i32 : i32
    %1 = arith.extui %0 : i1 to i32
    %c0_i32_0 = arith.constant 0 : i32
    %2 = arith.cmpi ne, %1, %c0_i32_0 : i32
    scf.if %2 {
      %cst_10 = arith.constant 0.000000e+00 : f32
      %12 = vector.broadcast %cst_10 : f32 to vector<256x128xf32>
      %c0_11 = arith.constant 0 : index
      %c0_12 = arith.constant 0 : index
      %13 = vector.load %arg7[%c0_11, %c0_12] : memref<256x128xf32, #tpu.memory_space<vmem>>, vector<256x128xf32>
      tpu.vector_store %arg7[%c0_11, %c0_12], %12 {strides = array<i32>} : memref<256x128xf32, #tpu.memory_space<vmem>>, vector<256x128xf32>,
    } else {
    }
    %c0 = arith.constant 0 : index
    %c0_1 = arith.constant 0 : index
    %3 = vector.load %arg7[%c0, %c0_1] : memref<256x128xf32, #tpu.memory_space<vmem>>, vector<256x128xf32>
    %c0_2 = arith.constant 0 : index
    %c0_3 = arith.constant 0 : index
    %4 = vector.load %arg3[%c0_2, %c0_3] : memref<256x128xbf16, #tpu.memory_space<vmem>>, vector<256x128xbf16>
    %c0_4 = arith.constant 0 : index
    %c0_5 = arith.constant 0 : index
    %5 = vector.load %arg4[%c0_4, %c0_5] : memref<128x128xbf16, #tpu.memory_space<vmem>>, vector<128x128xbf16>
    %cst = arith.constant dense<0.000000e+00> : vector<256x128xf32>
    %6 = tpu.matmul %4, %5, %cst {dimension_numbers = #tpu.dot_dimension_numbers<[1], [0], [0], [1], [0, 0, 1, 1], [], []>} : vector<256x128xbf16>, vector<128x128xbf16>, vector<256x128xf32> -> vector<256x128xf32>
    %7 = arith.addf %3, %6 : vector<256x128xf32>
    %c0_6 = arith.constant 0 : index
    %c0_7 = arith.constant 0 : index
    %8 = vector.load %arg7[%c0_6, %c0_7] : memref<256x128xf32, #tpu.memory_space<vmem>>, vector<256x128xf32>
    tpu.vector_store %arg7[%c0_6, %c0_7], %7 {strides = array<i32>} : memref<256x128xf32, #tpu.memory_space<vmem>>, vector<256x128xf32>,
    %c0_i32_8 = arith.constant 0 : i32
    %9 = arith.cmpi eq, %arg2, %c0_i32_8 : i32
    %10 = arith.extui %9 : i1 to i32
    %c0_i32_9 = arith.constant 0 : i32
    %11 = arith.cmpi ne, %10, %c0_i32_9 : i32
    scf.if %11 {
      %c0_10 = arith.constant 0 : index
      %c0_11 = arith.constant 0 : index
      %12 = vector.load %arg7[%c0_10, %c0_11] : memref<256x128xf32, #tpu.memory_space<vmem>>, vector<256x128xf32>
      %c0_12 = arith.constant 0 : index
      %c0_13 = arith.constant 0 : index
      %13 = vector.load %arg5[%c0_12, %c0_13] : memref<1x128xf32, #tpu.memory_space<vmem>>, vector<1x128xf32>
      %14 = vector.broadcast %13 : vector<1x128xf32> to vector<256x128xf32>
      %15 = arith.addf %12, %14 : vector<256x128xf32>
      %16 = arith.truncf %15 : vector<256x128xf32> to vector<256x128xbf16>
      %c0_14 = arith.constant 0 : index
      %c0_15 = arith.constant 0 : index
      %17 = vector.load %arg6[%c0_14, %c0_15] : memref<256x128xbf16, #tpu.memory_space<vmem>>, vector<256x128xbf16>
      tpu.vector_store %arg6[%c0_14, %c0_15], %16 {strides = array<i32>} : memref<256x128xbf16, #tpu.memory_space<vmem>>, vector<256x128xbf16>,
    } else {
    }
    return
  }
  func.func @transform_0(%arg0: i32, %arg1: i32, %arg2: i32) -> (i32, i32) {
    %c0_i32 = arith.constant 0 : i32
    return %arg0, %arg2 : i32, i32
  }
  func.func @transform_1(%arg0: i32, %arg1: i32, %arg2: i32) -> (i32, i32) {
    %c0_i32 = arith.constant 0 : i32
    return %arg2, %arg1 : i32, i32
  }
  func.func @transform_2(%arg0: i32, %arg1: i32, %arg2: i32) -> (i32, i32) {
    %c0_i32 = arith.constant 0 : i32
    %c0_i32_0 = arith.constant 0 : i32
    return %c0_i32, %arg1 : i32, i32
  }
  func.func @transform_3(%arg0: i32, %arg1: i32, %arg2: i32) -> (i32, i32) {
    %c0_i32 = arith.constant 0 : i32
    return %arg0, %arg1 : i32, i32
  }
}

module attributes {stable_mosaic.version = 11 : i64} {
  func.func @_mm_bias_kernel(%arg0: i32, %arg1: i32, %arg2: i32, %arg3: memref<256x512xbf16, #tpu.memory_space<vmem>>, %arg4: memref<512x128xbf16, #tpu.memory_space<vmem>>, %arg5: memref<1x128xf32, #tpu.memory_space<vmem>>, %arg6: memref<256x128xbf16, #tpu.memory_space<vmem>>, %arg7: memref<256x128xf32, #tpu.memory_space<vmem>>) attributes {dimension_semantics = [#tpu.dimension_semantics<parallel>, #tpu.dimension_semantics<parallel>, #tpu.dimension_semantics<arbitrary>], iteration_bounds = array<i64: 2, 1, 2>, scalar_prefetch = 0 : i64, scratch_operands = 1 : i64, tpu.core_type = #tpu.core_type<tc>, window_params = [{transform_indices = @transform_0, window_bounds = array<i64: 256, 512>}, {transform_indices = @transform_1, window_bounds = array<i64: 512, 128>}, {transform_indices = @transform_2, window_bounds = array<i64: 1, 128>}, {transform_indices = @transform_3, window_bounds = array<i64: 256, 128>}]} {
    %c0_i32 = arith.constant 0 : i32
    %0 = arith.cmpi eq, %arg2, %c0_i32 : i32
    %1 = arith.extui %0 : i1 to i32
    %c0_i32_0 = arith.constant 0 : i32
    %2 = arith.cmpi ne, %1, %c0_i32_0 : i32
    scf.if %2 {
      %cst_9 = arith.constant 0.000000e+00 : f32
      %12 = vector.broadcast %cst_9 : f32 to vector<256x128xf32>
      %c0_10 = arith.constant 0 : index
      %c0_11 = arith.constant 0 : index
      %13 = vector.load %arg7[%c0_10, %c0_11] : memref<256x128xf32, #tpu.memory_space<vmem>>, vector<256x128xf32>
      tpu.vector_store %arg7[%c0_10, %c0_11], %12 {strides = array<i32>} : memref<256x128xf32, #tpu.memory_space<vmem>>, vector<256x128xf32>,
    } else {
    }
    %c0 = arith.constant 0 : index
    %c0_1 = arith.constant 0 : index
    %3 = vector.load %arg7[%c0, %c0_1] : memref<256x128xf32, #tpu.memory_space<vmem>>, vector<256x128xf32>
    %c0_2 = arith.constant 0 : index
    %c0_3 = arith.constant 0 : index
    %4 = vector.load %arg3[%c0_2, %c0_3] : memref<256x512xbf16, #tpu.memory_space<vmem>>, vector<256x512xbf16>
    %c0_4 = arith.constant 0 : index
    %c0_5 = arith.constant 0 : index
    %5 = vector.load %arg4[%c0_4, %c0_5] : memref<512x128xbf16, #tpu.memory_space<vmem>>, vector<512x128xbf16>
    %cst = arith.constant dense<0.000000e+00> : vector<256x128xf32>
    %6 = tpu.matmul %4, %5, %cst {dimension_numbers = #tpu.dot_dimension_numbers<[1], [0], [0], [1], [0, 0, 1, 1], [], []>} : vector<256x512xbf16>, vector<512x128xbf16>, vector<256x128xf32> -> vector<256x128xf32>
    %7 = arith.addf %3, %6 : vector<256x128xf32>
    %c0_6 = arith.constant 0 : index
    %c0_7 = arith.constant 0 : index
    %8 = vector.load %arg7[%c0_6, %c0_7] : memref<256x128xf32, #tpu.memory_space<vmem>>, vector<256x128xf32>
    tpu.vector_store %arg7[%c0_6, %c0_7], %7 {strides = array<i32>} : memref<256x128xf32, #tpu.memory_space<vmem>>, vector<256x128xf32>,
    %c1_i32 = arith.constant 1 : i32
    %9 = arith.cmpi eq, %arg2, %c1_i32 : i32
    %10 = arith.extui %9 : i1 to i32
    %c0_i32_8 = arith.constant 0 : i32
    %11 = arith.cmpi ne, %10, %c0_i32_8 : i32
    scf.if %11 {
      %c0_9 = arith.constant 0 : index
      %c0_10 = arith.constant 0 : index
      %12 = vector.load %arg7[%c0_9, %c0_10] : memref<256x128xf32, #tpu.memory_space<vmem>>, vector<256x128xf32>
      %c0_11 = arith.constant 0 : index
      %c0_12 = arith.constant 0 : index
      %13 = vector.load %arg5[%c0_11, %c0_12] : memref<1x128xf32, #tpu.memory_space<vmem>>, vector<1x128xf32>
      %14 = vector.broadcast %13 : vector<1x128xf32> to vector<256x128xf32>
      %15 = arith.addf %12, %14 : vector<256x128xf32>
      %16 = arith.truncf %15 : vector<256x128xf32> to vector<256x128xbf16>
      %c0_13 = arith.constant 0 : index
      %c0_14 = arith.constant 0 : index
      %17 = vector.load %arg6[%c0_13, %c0_14] : memref<256x128xbf16, #tpu.memory_space<vmem>>, vector<256x128xbf16>
      tpu.vector_store %arg6[%c0_13, %c0_14], %16 {strides = array<i32>} : memref<256x128xbf16, #tpu.memory_space<vmem>>, vector<256x128xbf16>,
    } else {
    }
    return
  }
  func.func @transform_0(%arg0: i32, %arg1: i32, %arg2: i32) -> (i32, i32) {
    %c0_i32 = arith.constant 0 : i32
    return %arg0, %arg2 : i32, i32
  }
  func.func @transform_1(%arg0: i32, %arg1: i32, %arg2: i32) -> (i32, i32) {
    %c0_i32 = arith.constant 0 : i32
    return %arg2, %arg1 : i32, i32
  }
  func.func @transform_2(%arg0: i32, %arg1: i32, %arg2: i32) -> (i32, i32) {
    %c0_i32 = arith.constant 0 : i32
    %c0_i32_0 = arith.constant 0 : i32
    return %c0_i32, %arg1 : i32, i32
  }
  func.func @transform_3(%arg0: i32, %arg1: i32, %arg2: i32) -> (i32, i32) {
    %c0_i32 = arith.constant 0 : i32
    return %arg0, %arg1 : i32, i32
  }
}

module attributes {stable_mosaic.version = 11 : i64} {
  func.func @_fused_mlp_kernel(%arg0: i32, %arg1: memref<16x3200xbf16, #tpu.memory_space<vmem>>, %arg2: memref<3200x256xbf16, #tpu.memory_space<vmem>>, %arg3: memref<1x256xf32, #tpu.memory_space<vmem>>, %arg4: memref<256x256xbf16, #tpu.memory_space<vmem>>, %arg5: memref<1x256xf32, #tpu.memory_space<vmem>>, %arg6: memref<256x128xbf16, #tpu.memory_space<vmem>>, %arg7: memref<1x128xf32, #tpu.memory_space<vmem>>, %arg8: memref<16x128xf32, #tpu.memory_space<vmem>>) attributes {dimension_semantics = [#tpu.dimension_semantics<parallel>], iteration_bounds = array<i64: 1>, scalar_prefetch = 0 : i64, scratch_operands = 0 : i64, tpu.core_type = #tpu.core_type<tc>, window_params = [{transform_indices = @transform_0, window_bounds = array<i64: 16, 3200>}, {pipeline_mode = #tpu.pipeline_mode<synchronous>, transform_indices = @transform_1, window_bounds = array<i64: 3200, 256>}, {pipeline_mode = #tpu.pipeline_mode<synchronous>, transform_indices = @transform_2, window_bounds = array<i64: 1, 256>}, {pipeline_mode = #tpu.pipeline_mode<synchronous>, transform_indices = @transform_3, window_bounds = array<i64: 256, 256>}, {pipeline_mode = #tpu.pipeline_mode<synchronous>, transform_indices = @transform_4, window_bounds = array<i64: 1, 256>}, {pipeline_mode = #tpu.pipeline_mode<synchronous>, transform_indices = @transform_5, window_bounds = array<i64: 256, 128>}, {pipeline_mode = #tpu.pipeline_mode<synchronous>, transform_indices = @transform_6, window_bounds = array<i64: 1, 128>}, {transform_indices = @transform_7, window_bounds = array<i64: 16, 128>}]} {
    %c0 = arith.constant 0 : index
    %c0_0 = arith.constant 0 : index
    %0 = vector.load %arg1[%c0, %c0_0] : memref<16x3200xbf16, #tpu.memory_space<vmem>>, vector<16x3200xbf16>
    %c0_1 = arith.constant 0 : index
    %c0_2 = arith.constant 0 : index
    %1 = vector.load %arg2[%c0_1, %c0_2] : memref<3200x256xbf16, #tpu.memory_space<vmem>>, vector<3200x256xbf16>
    %c0_3 = arith.constant 0 : index
    %c0_4 = arith.constant 0 : index
    %2 = vector.load %arg3[%c0_3, %c0_4] : memref<1x256xf32, #tpu.memory_space<vmem>>, vector<1x256xf32>
    %cst = arith.constant dense<0.000000e+00> : vector<16x256xf32>
    %3 = tpu.matmul %0, %1, %cst {dimension_numbers = #tpu.dot_dimension_numbers<[1], [0], [0], [1], [0, 0, 1, 1], [], []>} : vector<16x3200xbf16>, vector<3200x256xbf16>, vector<16x256xf32> -> vector<16x256xf32>
    %4 = vector.broadcast %2 : vector<1x256xf32> to vector<16x256xf32>
    %5 = arith.addf %3, %4 : vector<16x256xf32>
    %cst_5 = arith.constant 0.000000e+00 : f32
    %6 = vector.broadcast %cst_5 : f32 to vector<16x256xf32>
    %7 = arith.maximumf %5, %6 : vector<16x256xf32>
    %8 = arith.truncf %7 : vector<16x256xf32> to vector<16x256xbf16>
    %c0_6 = arith.constant 0 : index
    %c0_7 = arith.constant 0 : index
    %9 = vector.load %arg4[%c0_6, %c0_7] : memref<256x256xbf16, #tpu.memory_space<vmem>>, vector<256x256xbf16>
    %c0_8 = arith.constant 0 : index
    %c0_9 = arith.constant 0 : index
    %10 = vector.load %arg5[%c0_8, %c0_9] : memref<1x256xf32, #tpu.memory_space<vmem>>, vector<1x256xf32>
    %cst_10 = arith.constant dense<0.000000e+00> : vector<16x256xf32>
    %11 = tpu.matmul %8, %9, %cst_10 {dimension_numbers = #tpu.dot_dimension_numbers<[1], [0], [0], [1], [0, 0, 1, 1], [], []>} : vector<16x256xbf16>, vector<256x256xbf16>, vector<16x256xf32> -> vector<16x256xf32>
    %12 = vector.broadcast %10 : vector<1x256xf32> to vector<16x256xf32>
    %13 = arith.addf %11, %12 : vector<16x256xf32>
    %cst_11 = arith.constant 0.000000e+00 : f32
    %14 = vector.broadcast %cst_11 : f32 to vector<16x256xf32>
    %15 = arith.maximumf %13, %14 : vector<16x256xf32>
    %16 = arith.truncf %15 : vector<16x256xf32> to vector<16x256xbf16>
    %c0_12 = arith.constant 0 : index
    %c0_13 = arith.constant 0 : index
    %17 = vector.load %arg6[%c0_12, %c0_13] : memref<256x128xbf16, #tpu.memory_space<vmem>>, vector<256x128xbf16>
    %c0_14 = arith.constant 0 : index
    %c0_15 = arith.constant 0 : index
    %18 = vector.load %arg7[%c0_14, %c0_15] : memref<1x128xf32, #tpu.memory_space<vmem>>, vector<1x128xf32>
    %cst_16 = arith.constant dense<0.000000e+00> : vector<16x128xf32>
    %19 = tpu.matmul %16, %17, %cst_16 {dimension_numbers = #tpu.dot_dimension_numbers<[1], [0], [0], [1], [0, 0, 1, 1], [], []>} : vector<16x256xbf16>, vector<256x128xbf16>, vector<16x128xf32> -> vector<16x128xf32>
    %20 = vector.broadcast %18 : vector<1x128xf32> to vector<16x128xf32>
    %21 = arith.addf %19, %20 : vector<16x128xf32>
    %c0_17 = arith.constant 0 : index
    %c0_18 = arith.constant 0 : index
    %22 = vector.load %arg8[%c0_17, %c0_18] : memref<16x128xf32, #tpu.memory_space<vmem>>, vector<16x128xf32>
    tpu.vector_store %arg8[%c0_17, %c0_18], %21 {strides = array<i32>} : memref<16x128xf32, #tpu.memory_space<vmem>>, vector<16x128xf32>,
    return
  }
  func.func @transform_0(%arg0: i32) -> (i32, i32) {
    %c0_i32 = arith.constant 0 : i32
    %c0_i32_0 = arith.constant 0 : i32
    return %arg0, %c0_i32 : i32, i32
  }
  func.func @transform_1(%arg0: i32) -> (i32, i32) {
    %c0_i32 = arith.constant 0 : i32
    %c0_i32_0 = arith.constant 0 : i32
    %c0_i32_1 = arith.constant 0 : i32
    return %c0_i32, %c0_i32_0 : i32, i32
  }
  func.func @transform_2(%arg0: i32) -> (i32, i32) {
    %c0_i32 = arith.constant 0 : i32
    %c0_i32_0 = arith.constant 0 : i32
    %c0_i32_1 = arith.constant 0 : i32
    return %c0_i32, %c0_i32_0 : i32, i32
  }
  func.func @transform_3(%arg0: i32) -> (i32, i32) {
    %c0_i32 = arith.constant 0 : i32
    %c0_i32_0 = arith.constant 0 : i32
    %c0_i32_1 = arith.constant 0 : i32
    return %c0_i32, %c0_i32_0 : i32, i32
  }
  func.func @transform_4(%arg0: i32) -> (i32, i32) {
    %c0_i32 = arith.constant 0 : i32
    %c0_i32_0 = arith.constant 0 : i32
    %c0_i32_1 = arith.constant 0 : i32
    return %c0_i32, %c0_i32_0 : i32, i32
  }
  func.func @transform_5(%arg0: i32) -> (i32, i32) {
    %c0_i32 = arith.constant 0 : i32
    %c0_i32_0 = arith.constant 0 : i32
    %c0_i32_1 = arith.constant 0 : i32
    return %c0_i32, %c0_i32_0 : i32, i32
  }
  func.func @transform_6(%arg0: i32) -> (i32, i32) {
    %c0_i32 = arith.constant 0 : i32
    %c0_i32_0 = arith.constant 0 : i32
    %c0_i32_1 = arith.constant 0 : i32
    return %c0_i32, %c0_i32_0 : i32, i32
  }
  func.func @transform_7(%arg0: i32) -> (i32, i32) {
    %c0_i32 = arith.constant 0 : i32
    %c0_i32_0 = arith.constant 0 : i32
    return %arg0, %c0_i32 : i32, i32
  }
}

</mosaic_0001>

<bundles_post_ra>
// kernel: _forward_impl.11
= control target key start
LH: loop header
LB: loop body
LE: loop exit
PB: predicated region body
PF: predicated region fallthrough
CT: control target
= control target key end

     0   :  { %s1499_s12 = smov 0   ;;  %s1501_s13 = smov 0   ;;  %s1636_s0 = inlined_call_operand.vmem [shape: bf16[2048,128], index: 0, kind: input, shape index: {}]   ;;  %s1637_s1 = inlined_call_operand.vmem [shape: bf16[128,128], index: 1, kind: input, shape index: {}]   ;;  %s1638_s2 = inlined_call_operand.vmem [shape: f32[1,128], index: 2, kind: input, shape index: {}]   ;;  %s1639_s3 = inlined_call_operand.vmem [shape: bf16[2048,128], index: 3, kind: output, shape index: {}]  }
   0x1   :  { %s1503_s14 = smov 0  }
   0x2 LB: > { %s32_s15 = sadd.s32 1, %s1473_s13  ;;  %p1128_p0 = scmp.ge.s32.totalorder %s1477_s14, 1  ;;  %s1477_s14 = sphi %s1503_s14, %s13_s14   ;;  %s1473_s13 = sphi %s1501_s13, %s1641_s13   ;;  %s1469_s12 = sphi %s1499_s12, %s1640_s12  }
   0x3   : > { %p34_p1 = scmp.ge.s32.totalorder %s32_s15, 8  ;;  %p188_p2 = scmp.lt.s32.totalorder %s1477_s14, 9 }
   0x5   : > { %s1643_s15 = smov (%p34_p1, %s32_s15), 0  ;;  %p189_p3 = pnand %p1128_p0, %p188_p2 }
   0x6   : > { %v1431_v0 = vld [vmem:[%s1637_s1] sm:$0xff] (!%p189_p3)   ;;  %s1129_s18 = sshll.u32 (!%p189_p3), %s1469_s12, 5  ;;  %v1432_v1 = vld [vmem:[%s1637_s1 + $0x8] sm:$0xff] (!%p189_p3)   ;;  %v1433_v2 = vld [vmem:[%s1637_s1 + $0x10] sm:$0xff] (!%p189_p3)  }
   0x7   : > { %192 = sbr.rel (%p189_p3) target bundleno = 285 (0x11d), region = 32  ;;  %p230_p4 = scmp.lt.s32.totalorder (!%p189_p3), %s1129_s18, 255  ;;  %1343 = vmatprep.subr.bf16.mxu0 (!%p189_p3), %v1431_v0  ;;  %1391 = vmatprep.subr.bf16.mxu1 (!%p189_p3), %v1431_v0  ;;  %v1434_v3 = vld [vmem:[%s1637_s1 + $0x18] sm:$0xff] (!%p189_p3)   ;;  %v1435_v6 = vld [vmem:[%s1637_s1 + $0x20] sm:$0xff] (!%p189_p3)   ;;  %v1436_v7 = vld [vmem:[%s1637_s1 + $0x28] sm:$0xff] (!%p189_p3)  }
   0x8   : > { %1344 = vmatpush3.bf16.msra.mxu0 (!%p189_p3), %v1431_v0  ;;  %1399 = vmatpush3.bf16.msra.mxu1 (!%p189_p3), %v1431_v0  ;;  %v1437_v8 = vld [vmem:[%s1637_s1 + $0x30] sm:$0xff] (!%p189_p3)   ;;  %v1438_v9 = vld [vmem:[%s1637_s1 + $0x38] sm:$0xff] (!%p189_p3)   ;;  %v1570_v24 = vld [vmem:[%s1638_s2] ss:$0 sm:$0xff] (!%p189_p3) }
   0x9   : > { %1345 = vmatprep.subr.bf16.mxu0 (!%p189_p3), %v1432_v1  ;;  %1392 = vmatprep.subr.bf16.mxu1 (!%p189_p3), %v1432_v1 }
   0xc   : > { %1346 = vmatpush3.bf16.msra.mxu0 (!%p189_p3), %v1432_v1  ;;  %1400 = vmatpush3.bf16.msra.mxu1 (!%p189_p3), %v1432_v1 }
   0xd   : > { %1347 = vmatprep.subr.bf16.mxu0 (!%p189_p3), %v1433_v2  ;;  %1393 = vmatprep.subr.bf16.mxu1 (!%p189_p3), %v1433_v2 }
   0xe   : > { %s1645_s18 = smov (!%p230_p4, %s1129_s18), 255 }
   0xf   : > { %s1130_s23 = sshll.u32 %s1645_s18, 2 }
  0x10   : > { %s1534_s26 = scalar_lea.vmem %s1636_s0, %s1130_s23  ;;  %1348 = vmatpush3.bf16.msra.mxu0 %v1433_v2  ;;  %1401 = vmatpush3.bf16.msra.mxu1 %v1433_v2  ;;  %s1585_s17 = scalar_lea.vmem %s1639_s3, %s1130_s23 }
  0x11   : > { %v1439_v4 = vld [vmem:[%s1534_s26] sm:$0xff]   ;;  %1349 = vmatprep.subr.bf16.mxu0 %v1434_v3  ;;  %1394 = vmatprep.subr.bf16.mxu1 %v1434_v3  ;;  %v1441_v10 = vld [vmem:[%s1534_s26 + $0x8] sm:$0xff]   ;;  %v1443_v12 = vld [vmem:[%s1534_s26 + $0x10] sm:$0xff]  }
  0x12   : > { %v1440_v5 = vld [vmem:[%s1534_s26 + $0x40] sm:$0xff]   ;;  %1359 = vmatprep.mubr.bf16.mxu0 %v1439_v4  ;;  %v1442_v11 = vld [vmem:[%s1534_s26 + $0x48] sm:$0xff]   ;;  %v1444_v13 = vld [vmem:[%s1534_s26 + $0x50] sm:$0xff]  }
  0x13   : > { %1375 = vmatprep.mubr.bf16.mxu1 %v1440_v5  ;;  %v1445_v14 = vld [vmem:[%s1534_s26 + $0x18] sm:$0xff]   ;;  %v1447_v16 = vld [vmem:[%s1534_s26 + $0x20] sm:$0xff]   ;;  %v1449_v18 = vld [vmem:[%s1534_s26 + $0x28] sm:$0xff]  }
  0x14   : > { %1350 = vmatpush3.bf16.msra.mxu0 %v1434_v3  ;;  %1402 = vmatpush3.bf16.msra.mxu1 %v1434_v3  ;;  %v1446_v15 = vld [vmem:[%s1534_s26 + $0x58] sm:$0xff]   ;;  %v1448_v17 = vld [vmem:[%s1534_s26 + $0x60] sm:$0xff]   ;;  %v1450_v19 = vld [vmem:[%s1534_s26 + $0x68] sm:$0xff]  }
  0x15   : > { %1351 = vmatprep.subr.bf16.mxu0 %v1435_v6  ;;  %1395 = vmatprep.subr.bf16.mxu1 %v1435_v6  ;;  %v1451_v20 = vld [vmem:[%s1534_s26 + $0x30] sm:$0xff]   ;;  %v1453_v22 = vld [vmem:[%s1534_s26 + $0x38] sm:$0xff]  }
  0x16   : > { %v1452_v21 = vld [vmem:[%s1534_s26 + $0x70] sm:$0xff]   ;;  %v1454_v23 = vld [vmem:[%s1534_s26 + $0x78] sm:$0xff]  }
  0x18   : > { %1352 = vmatpush3.bf16.msra.mxu0 %v1435_v6  ;;  %1403 = vmatpush3.bf16.msra.mxu1 %v1435_v6 }
  0x19   : > { %1353 = vmatprep.subr.bf16.mxu0 %v1436_v7  ;;  %1396 = vmatprep.subr.bf16.mxu1 %v1436_v7 }
  0x1c   : > { %1354 = vmatpush3.bf16.msra.mxu0 %v1436_v7  ;;  %1404 = vmatpush3.bf16.msra.mxu1 %v1436_v7 }
  0x1d   : > { %1355 = vmatprep.subr.bf16.mxu0 %v1437_v8  ;;  %1397 = vmatprep.subr.bf16.mxu1 %v1437_v8 }
  0x20   : > { %1356 = vmatpush3.bf16.msra.mxu0 %v1437_v8  ;;  %1405 = vmatpush3.bf16.msra.mxu1 %v1437_v8 }
  0x21   : > { %1357 = vmatprep.subr.bf16.mxu0 %v1438_v9  ;;  %1398 = vmatprep.subr.bf16.mxu1 %v1438_v9 }
  0x24   : > { %1358 = vmatpush3.bf16.msra.mxu0 %v1438_v9  ;;  %1406 = vmatpush3.bf16.msra.mxu1 %v1438_v9 }
  0x27   : > { %1360 = vmatmul.mubr.bf16.vlgmr.msra.gmra.mrb[0].mxu0 %v1441_v10  ;;  %1376 = vmatmul.mubr.bf16.vlgmr.msra.gmra.mrb[0].mxu1 %v1442_v11 }
  0x28   : > { %1363 = vmatprep.mubr.bf16.mxu0 %v1443_v12  ;;  %1379 = vmatprep.mubr.bf16.mxu1 %v1444_v13 }
  0x2f   : > { %1364 = vmatmul.mubr.bf16.gmra.mrb[4].mxu0 %v1445_v14  ;;  %1380 = vmatmul.mubr.bf16.gmra.mrb[4].mxu1 %v1446_v15 }
  0x30   : > { %1367 = vmatprep.mubr.bf16.mxu0 %v1447_v16  ;;  %1383 = vmatprep.mubr.bf16.mxu1 %v1448_v17 }
  0x37   : > { %1368 = vmatmul.mubr.bf16.gmra.mrb[8].mxu0 %v1449_v18  ;;  %1384 = vmatmul.mubr.bf16.gmra.mrb[8].mxu1 %v1450_v19 }
  0x38   : > { %1371 = vmatprep.mubr.bf16.mxu0 %v1451_v20  ;;  %1387 = vmatprep.mubr.bf16.mxu1 %v1452_v21 }
  0x3f   : > { %1372 = vmatmul.mubr.bf16.gmra.mrb[12].mxu0 %v1453_v22  ;;  %1388 = vmatmul.mubr.bf16.gmra.mrb[12].mxu1 %v1454_v23 }
  0xfa   : > { %v1361_v25 = vpop.f32.mrb[0].mxu0  ;;  %v1377_v26 = vpop.f32.mrb[0].mxu1 }
  0xfb   : > { %v789_v27 = vadd.f32 %v1361_v25, %v1570_v24  ;;  %v805_v28 = vadd.f32 %v1377_v26, %v1570_v24  ;;  %v554_v29 = vpop.f32.mrb[1].mxu0  ;;  %v618_v30 = vpop.f32.mrb[1].mxu1 }
  0xfc   : > { %v787_v31 = vadd.f32 %v1570_v24, %v554_v29  ;;  %v803_v32 = vadd.f32 %v1570_v24, %v618_v30  ;;  %v1362_v33 = vpop.f32.mrb[2].mxu0  ;;  %v1378_v34 = vpop.f32.mrb[2].mxu1 }
  0xfd   : > { %v790_v35 = vadd.f32 %v1362_v33, %v1570_v24  ;;  %v806_v36 = vadd.f32 %v1378_v34, %v1570_v24  ;;  %v557_v37 = vpop.f32.mrb[3].mxu0  ;;  %v621_v38 = vpop.f32.mrb[3].mxu1  ;;  %v821_v41 = vmax.f32 %v789_v27, 0.0  ;;  %v837_v42 = vmax.f32 %v805_v28, 0.0 }
  0xfe   : > { %v788_v39 = vadd.f32 %v1570_v24, %v557_v37  ;;  %v804_v40 = vadd.f32 %v1570_v24, %v621_v38  ;;  %v819_v45 = vmax.f32 %v787_v31, 0.0  ;;  %v835_v46 = vmax.f32 %v803_v32, 0.0 }
  0xff   : > { %v822_v43 = vmax.f32 %v790_v35, 0.0  ;;  %v838_v44 = vmax.f32 %v806_v36, 0.0 }
 0x100   : > { %v820_v47 = vmax.f32 %v788_v39, 0.0  ;;  %v836_v48 = vmax.f32 %v804_v40, 0.0 }
 0x101   : > { %v1232_v49 = vpack.c.bf16 %v822_v43, %v821_v41  ;;  %v1272_v50 = vpack.c.bf16 %v838_v44, %v837_v42 }
 0x102   : > { %v1227_v51 = vpack.c.bf16 %v820_v47, %v819_v45  ;;  %v1267_v52 = vpack.c.bf16 %v836_v48, %v835_v46  ;;  %v1365_v53 = vpop.f32.mrb[4].mxu0  ;;  %v1381_v54 = vpop.f32.mrb[4].mxu1 }
 0x103   : > { %1304 = vst [vmem:[%s1585_s17 + $0x8] sm:$0xff] %v1232_v49   ;;  %1312 = vst [vmem:[%s1585_s17 + $0x48] sm:$0xff] %v1272_v50   ;;  %v793_v55 = vadd.f32 %v1365_v53, %v1570_v24  ;;  %v809_v56 = vadd.f32 %v1381_v54, %v1570_v24  ;;  %v570_v57 = vpop.f32.mrb[5].mxu0  ;;  %v634_v58 = vpop.f32.mrb[5].mxu1 }
 0x104   : > { %1228 = vst [vmem:[%s1585_s17] sm:$0xff] %v1227_v51   ;;  %1311 = vst [vmem:[%s1585_s17 + $0x40] sm:$0xff] %v1267_v52   ;;  %v791_v59 = vadd.f32 %v1570_v24, %v570_v57  ;;  %v807_v60 = vadd.f32 %v1570_v24, %v634_v58  ;;  %v1366_v61 = vpop.f32.mrb[6].mxu0  ;;  %v1382_v62 = vpop.f32.mrb[6].mxu1 }
 0x105   : > { %v794_v63 = vadd.f32 %v1366_v61, %v1570_v24  ;;  %v810_v0 = vadd.f32 %v1382_v62, %v1570_v24  ;;  %v573_v1 = vpop.f32.mrb[7].mxu0  ;;  %v637_v2 = vpop.f32.mrb[7].mxu1  ;;  %v825_v5 = vmax.f32 %v793_v55, 0.0  ;;  %v841_v6 = vmax.f32 %v809_v56, 0.0 }
 0x106   : > { %v792_v3 = vadd.f32 %v1570_v24, %v573_v1  ;;  %v808_v4 = vadd.f32 %v1570_v24, %v637_v2  ;;  %v823_v9 = vmax.f32 %v791_v59, 0.0  ;;  %v839_v10 = vmax.f32 %v807_v60, 0.0 }
 0x107   : > { %v826_v7 = vmax.f32 %v794_v63, 0.0  ;;  %v842_v8 = vmax.f32 %v810_v0, 0.0 }
 0x108   : > { %v824_v11 = vmax.f32 %v792_v3, 0.0  ;;  %v840_v12 = vmax.f32 %v808_v4, 0.0 }
 0x109   : > { %v1242_v13 = vpack.c.bf16 %v826_v7, %v825_v5  ;;  %v1282_v14 = vpack.c.bf16 %v842_v8, %v841_v6 }
 0x10a   : > { %v1237_v15 = vpack.c.bf16 %v824_v11, %v823_v9  ;;  %v1277_v16 = vpack.c.bf16 %v840_v12, %v839_v10  ;;  %v1369_v17 = vpop.f32.mrb[8].mxu0  ;;  %v1385_v18 = vpop.f32.mrb[8].mxu1 }
 0x10b   : > { %1306 = vst [vmem:[%s1585_s17 + $0x18] sm:$0xff] %v1242_v13   ;;  %1314 = vst [vmem:[%s1585_s17 + $0x58] sm:$0xff] %v1282_v14   ;;  %v797_v19 = vadd.f32 %v1369_v17, %v1570_v24  ;;  %v813_v20 = vadd.f32 %v1385_v18, %v1570_v24  ;;  %v586_v21 = vpop.f32.mrb[9].mxu0  ;;  %v650_v22 = vpop.f32.mrb[9].mxu1 }
 0x10c   : > { %1305 = vst [vmem:[%s1585_s17 + $0x10] sm:$0xff] %v1237_v15   ;;  %1313 = vst [vmem:[%s1585_s17 + $0x50] sm:$0xff] %v1277_v16   ;;  %v795_v23 = vadd.f32 %v1570_v24, %v586_v21  ;;  %v811_v25 = vadd.f32 %v1570_v24, %v650_v22  ;;  %v1370_v26 = vpop.f32.mrb[10].mxu0  ;;  %v1386_v27 = vpop.f32.mrb[10].mxu1 }
 0x10d   : > { %v798_v28 = vadd.f32 %v1370_v26, %v1570_v24  ;;  %v814_v29 = vadd.f32 %v1386_v27, %v1570_v24  ;;  %v589_v30 = vpop.f32.mrb[11].mxu0  ;;  %v653_v31 = vpop.f32.mrb[11].mxu1  ;;  %v829_v34 = vmax.f32 %v797_v19, 0.0  ;;  %v845_v35 = vmax.f32 %v813_v20, 0.0 }
 0x10e   : > { %v796_v32 = vadd.f32 %v1570_v24, %v589_v30  ;;  %v812_v33 = vadd.f32 %v1570_v24, %v653_v31  ;;  %v827_v38 = vmax.f32 %v795_v23, 0.0  ;;  %v843_v39 = vmax.f32 %v811_v25, 0.0 }
 0x10f   : > { %v830_v36 = vmax.f32 %v798_v28, 0.0  ;;  %v846_v37 = vmax.f32 %v814_v29, 0.0 }
 0x110   : > { %v828_v40 = vmax.f32 %v796_v32, 0.0  ;;  %v844_v41 = vmax.f32 %v812_v33, 0.0 }
 0x111   : > { %v1252_v42 = vpack.c.bf16 %v830_v36, %v829_v34  ;;  %v1292_v43 = vpack.c.bf16 %v846_v37, %v845_v35 }
 0x112   : > { %v1247_v44 = vpack.c.bf16 %v828_v40, %v827_v38  ;;  %v1287_v45 = vpack.c.bf16 %v844_v41, %v843_v39  ;;  %v1373_v46 = vpop.f32.mrb[12].mxu0  ;;  %v1389_v47 = vpop.f32.mrb[12].mxu1 }
 0x113   : > { %1308 = vst [vmem:[%s1585_s17 + $0x28] sm:$0xff] %v1252_v42   ;;  %1316 = vst [vmem:[%s1585_s17 + $0x68] sm:$0xff] %v1292_v43   ;;  %v801_v48 = vadd.f32 %v1373_v46, %v1570_v24  ;;  %v817_v49 = vadd.f32 %v1389_v47, %v1570_v24  ;;  %v602_v50 = vpop.f32.mrb[13].mxu0  ;;  %v666_v51 = vpop.f32.mrb[13].mxu1 }
 0x114   : > { %1307 = vst [vmem:[%s1585_s17 + $0x20] sm:$0xff] %v1247_v44   ;;  %1315 = vst [vmem:[%s1585_s17 + $0x60] sm:$0xff] %v1287_v45   ;;  %v799_v52 = vadd.f32 %v1570_v24, %v602_v50  ;;  %v815_v53 = vadd.f32 %v1570_v24, %v666_v51  ;;  %v1374_v54 = vpop.f32.mrb[14].mxu0  ;;  %v1390_v55 = vpop.f32.mrb[14].mxu1 }
 0x115   : > { %v802_v56 = vadd.f32 %v1374_v54, %v1570_v24  ;;  %v818_v57 = vadd.f32 %v1390_v55, %v1570_v24  ;;  %v605_v58 = vpop.f32.mrb[15].mxu0  ;;  %v669_v59 = vpop.f32.mrb[15].mxu1  ;;  %v833_v62 = vmax.f32 %v801_v48, 0.0  ;;  %v849_v63 = vmax.f32 %v817_v49, 0.0 }
 0x116   : > { %v800_v60 = vadd.f32 %v1570_v24, %v605_v58  ;;  %v816_v61 = vadd.f32 %v1570_v24, %v669_v59  ;;  %v831_v2 = vmax.f32 %v799_v52, 0.0  ;;  %v847_v3 = vmax.f32 %v815_v53, 0.0 }
 0x117   : > { %v834_v0 = vmax.f32 %v802_v56, 0.0  ;;  %v850_v1 = vmax.f32 %v818_v57, 0.0 }
 0x118   : > { %v832_v4 = vmax.f32 %v800_v60, 0.0  ;;  %v848_v5 = vmax.f32 %v816_v61, 0.0 }
 0x119   : > { %v1262_v6 = vpack.c.bf16 %v834_v0, %v833_v62  ;;  %v1302_v7 = vpack.c.bf16 %v850_v1, %v849_v63 }
 0x11a   : > { %v1257_v8 = vpack.c.bf16 %v832_v4, %v831_v2  ;;  %v1297_v9 = vpack.c.bf16 %v848_v5, %v847_v3 }
 0x11b   : > { %1310 = vst [vmem:[%s1585_s17 + $0x38] sm:$0xff] %v1262_v6   ;;  %1318 = vst [vmem:[%s1585_s17 + $0x78] sm:$0xff] %v1302_v7  }
 0x11c   : > { %1309 = vst [vmem:[%s1585_s17 + $0x30] sm:$0xff] %v1257_v8   ;;  %1317 = vst [vmem:[%s1585_s17 + $0x70] sm:$0xff] %v1297_v9  }
 0x11d PF: > { %s13_s14 = sadd.s32 1, %s1477_s14   ;;  %s1640_s12 = smov %s1473_s13 }
 0x11e   : > { %p10_p5 = scmp.ge.s32.totalorder %s13_s14, 10   ;;  %s1641_s13 = smov %s1643_s15 }
 0x120   :  { %12 = sbr.rel (!%p10_p5) target bundleno = 2 (0x2), region = 76 }

// kernel: _forward_impl.12
= control target key start
LH: loop header
LB: loop body
LE: loop exit
PB: predicated region body
PF: predicated region fallthrough
CT: control target
= control target key end

     0   :  { %s1744_s12 = smov 0   ;;  %s1746_s13 = smov 0   ;;  %s1918_s0 = inlined_call_operand.vmem [shape: bf16[512,256], index: 0, kind: input, shape index: {}]   ;;  %s1919_s1 = inlined_call_operand.vmem [shape: bf16[256,128], index: 1, kind: input, shape index: {}]   ;;  %s1920_s2 = inlined_call_operand.vmem [shape: f32[1,128], index: 2, kind: input, shape index: {}]   ;;  %s1921_s3 = inlined_call_operand.vmem [shape: bf16[512,128], index: 3, kind: output, shape index: {}]  }
   0x1   :  { %s1748_s14 = smov 0  }
   0x2 LB: > { %s32_s15 = sadd.s32 1, %s1718_s13  ;;  %p1267_p0 = scmp.ge.s32.totalorder %s1722_s14, 1  ;;  %s1722_s14 = sphi %s1748_s14, %s13_s14   ;;  %s1718_s13 = sphi %s1746_s13, %s1923_s13   ;;  %s1714_s12 = sphi %s1744_s12, %s1922_s12  }
   0x3   : > { %p34_p1 = scmp.ge.s32.totalorder %s32_s15, 2  ;;  %p191_p2 = scmp.lt.s32.totalorder %s1722_s14, 3 }
   0x5   : > { %s1925_s15 = smov (%p34_p1, %s32_s15), 0  ;;  %p192_p3 = pnand %p1267_p0, %p191_p2 }
   0x6   : > { %v1636_v0 = vld [vmem:[%s1919_s1 + $0x40] sm:$0xff] (!%p192_p3)   ;;  %s1268_s18 = sshll.u32 (!%p192_p3), %s1714_s12, 5  ;;  %v1638_v2 = vld [vmem:[%s1919_s1 + $0x48] sm:$0xff] (!%p192_p3)   ;;  %v1640_v4 = vld [vmem:[%s1919_s1 + $0x50] sm:$0xff] (!%p192_p3)  }
   0x7   : > { %195 = sbr.rel (%p192_p3) target bundleno = 320 (0x140), region = 32  ;;  %v1637_v1 = vld [vmem:[%s1919_s1] sm:$0xff] (!%p192_p3)   ;;  %1484 = vmatprep.subr.bf16.mxu0 (!%p192_p3), %v1636_v0  ;;  %1596 = vmatprep.subr.bf16.mxu1 (!%p192_p3), %v1636_v0  ;;  %v1639_v3 = vld [vmem:[%s1919_s1 + $0x8] sm:$0xff] (!%p192_p3)   ;;  %p236_p4 = scmp.lt.s32.totalorder (!%p192_p3), %s1268_s18, 63  ;;  %v1641_v5 = vld [vmem:[%s1919_s1 + $0x10] sm:$0xff] (!%p192_p3)  }
   0x8   : > { %1485 = vmatpush3.bf16.msra.mxu0 (!%p192_p3), %v1637_v1  ;;  %1604 = vmatpush3.bf16.msra.mxu1 (!%p192_p3), %v1637_v1  ;;  %v1642_v6 = vld [vmem:[%s1919_s1 + $0x58] sm:$0xff] (!%p192_p3)   ;;  %v1644_v8 = vld [vmem:[%s1919_s1 + $0x60] sm:$0xff] (!%p192_p3)   ;;  %v1646_v10 = vld [vmem:[%s1919_s1 + $0x68] sm:$0xff] (!%p192_p3)  }
   0x9   : > { %1486 = vmatprep.subr.bf16.mxu0 (!%p192_p3), %v1638_v2  ;;  %1597 = vmatprep.subr.bf16.mxu1 (!%p192_p3), %v1638_v2  ;;  %v1643_v7 = vld [vmem:[%s1919_s1 + $0x18] sm:$0xff] (!%p192_p3)   ;;  %v1645_v9 = vld [vmem:[%s1919_s1 + $0x20] sm:$0xff] (!%p192_p3)   ;;  %v1647_v13 = vld [vmem:[%s1919_s1 + $0x28] sm:$0xff] (!%p192_p3)  }
   0xa   : > { %v1648_v14 = vld [vmem:[%s1919_s1 + $0x70] sm:$0xff] (!%p192_p3)   ;;  %v1650_v16 = vld [vmem:[%s1919_s1 + $0x78] sm:$0xff] (!%p192_p3)   ;;  %v1853_v51 = vld [vmem:[%s1920_s2] ss:$0 sm:$0xff] (!%p192_p3) }
   0xb   : > { %v1649_v15 = vld [vmem:[%s1919_s1 + $0x30] sm:$0xff] (!%p192_p3)   ;;  %v1651_v17 = vld [vmem:[%s1919_s1 + $0x38] sm:$0xff] (!%p192_p3)  }
   0xc   : > { %1487 = vmatpush3.bf16.msra.mxu0 (!%p192_p3), %v1639_v3  ;;  %1605 = vmatpush3.bf16.msra.mxu1 (!%p192_p3), %v1639_v3 }
   0xd   : > { %1488 = vmatprep.subr.bf16.mxu0 (!%p192_p3), %v1640_v4  ;;  %1598 = vmatprep.subr.bf16.mxu1 (!%p192_p3), %v1640_v4 }
   0xe   : > { %s1927_s18 = smov (!%p236_p4, %s1268_s18), 63 }
   0xf   : > { %s1356_s6 = sshll.u32 %s1927_s18, 3  ;;  %s1272_s5 = sshll.u32 %s1927_s18, 2 }
  0x10   : > { %1489 = vmatpush3.bf16.msra.mxu0 %v1641_v5  ;;  %1606 = vmatpush3.bf16.msra.mxu1 %v1641_v5  ;;  %s1795_s11 = scalar_lea.vmem %s1918_s0, %s1356_s6  ;;  %s1863_s8 = scalar_lea.vmem %s1921_s3, %s1272_s5 }
  0x11   : > { %1490 = vmatprep.subr.bf16.mxu0 %v1642_v6  ;;  %1599 = vmatprep.subr.bf16.mxu1 %v1642_v6  ;;  %v1654_v11 = vld [vmem:[%s1795_s11 + $0x4] ss:$8 sps:$4 sm:$0xff]   ;;  %v1652_v18 = vld [vmem:[%s1795_s11] ss:$8 sps:$4 sm:$0xff]   ;;  %v1658_v20 = vld [vmem:[%s1795_s11 + $0x14] ss:$8 sps:$4 sm:$0xff]  }
  0x12   : > { %v1657_v12 = vld [vmem:[%s1795_s11 + $0x84] ss:$8 sps:$4 sm:$0xff]   ;;  %688 = vmatprep.mubr.bf16.mxu0 %v1654_v11  ;;  %v1655_v19 = vld [vmem:[%s1795_s11 + $0x80] ss:$8 sps:$4 sm:$0xff]   ;;  %v1660_v21 = vld [vmem:[%s1795_s11 + $0x94] ss:$8 sps:$4 sm:$0xff]  }
  0x13   : > { %752 = vmatprep.mubr.bf16.mxu1 %v1657_v12  ;;  %v1662_v22 = vld [vmem:[%s1795_s11 + $0x10] ss:$8 sps:$4 sm:$0xff]   ;;  %v1664_v24 = vld [vmem:[%s1795_s11 + $0x24] ss:$8 sps:$4 sm:$0xff]   ;;  %v1668_v26 = vld [vmem:[%s1795_s11 + $0x20] ss:$8 sps:$4 sm:$0xff]  }
  0x14   : > { %1491 = vmatpush3.bf16.msra.mxu0 %v1643_v7  ;;  %1607 = vmatpush3.bf16.msra.mxu1 %v1643_v7  ;;  %v1663_v23 = vld [vmem:[%s1795_s11 + $0x90] ss:$8 sps:$4 sm:$0xff]   ;;  %v1666_v25 = vld [vmem:[%s1795_s11 + $0xa4] ss:$8 sps:$4 sm:$0xff]   ;;  %v1669_v27 = vld [vmem:[%s1795_s11 + $0xa0] ss:$8 sps:$4 sm:$0xff]  }
  0x15   : > { %1492 = vmatprep.subr.bf16.mxu0 %v1644_v8  ;;  %1600 = vmatprep.subr.bf16.mxu1 %v1644_v8  ;;  %v1670_v28 = vld [vmem:[%s1795_s11 + $0x34] ss:$8 sps:$4 sm:$0xff]   ;;  %v1674_v30 = vld [vmem:[%s1795_s11 + $0x30] ss:$8 sps:$4 sm:$0xff]   ;;  %v1676_v32 = vld [vmem:[%s1795_s11 + $0x44] ss:$8 sps:$4 sm:$0xff]  }
  0x16   : > { %v1672_v29 = vld [vmem:[%s1795_s11 + $0xb4] ss:$8 sps:$4 sm:$0xff]   ;;  %v1675_v31 = vld [vmem:[%s1795_s11 + $0xb0] ss:$8 sps:$4 sm:$0xff]   ;;  %v1678_v33 = vld [vmem:[%s1795_s11 + $0xc4] ss:$8 sps:$4 sm:$0xff]  }
  0x17   : > { %v1680_v34 = vld [vmem:[%s1795_s11 + $0x40] ss:$8 sps:$4 sm:$0xff]   ;;  %v1682_v36 = vld [vmem:[%s1795_s11 + $0x54] ss:$8 sps:$4 sm:$0xff]   ;;  %v1686_v38 = vld [vmem:[%s1795_s11 + $0x50] ss:$8 sps:$4 sm:$0xff]  }
  0x18   : > { %1493 = vmatpush3.bf16.msra.mxu0 %v1645_v9  ;;  %1608 = vmatpush3.bf16.msra.mxu1 %v1645_v9  ;;  %v1681_v35 = vld [vmem:[%s1795_s11 + $0xc0] ss:$8 sps:$4 sm:$0xff]   ;;  %v1684_v37 = vld [vmem:[%s1795_s11 + $0xd4] ss:$8 sps:$4 sm:$0xff]   ;;  %v1687_v39 = vld [vmem:[%s1795_s11 + $0xd0] ss:$8 sps:$4 sm:$0xff]  }
  0x19   : > { %1494 = vmatprep.subr.bf16.mxu0 %v1646_v10  ;;  %1601 = vmatprep.subr.bf16.mxu1 %v1646_v10  ;;  %v1688_v40 = vld [vmem:[%s1795_s11 + $0x64] ss:$8 sps:$4 sm:$0xff]   ;;  %v1692_v42 = vld [vmem:[%s1795_s11 + $0x60] ss:$8 sps:$4 sm:$0xff]   ;;  %v1694_v44 = vld [vmem:[%s1795_s11 + $0x74] ss:$8 sps:$4 sm:$0xff]  }
  0x1a   : > { %v1690_v41 = vld [vmem:[%s1795_s11 + $0xe4] ss:$8 sps:$4 sm:$0xff]   ;;  %v1693_v43 = vld [vmem:[%s1795_s11 + $0xe0] ss:$8 sps:$4 sm:$0xff]   ;;  %v1696_v45 = vld [vmem:[%s1795_s11 + $0xf4] ss:$8 sps:$4 sm:$0xff]  }
  0x1b   : > { %v1698_v46 = vld [vmem:[%s1795_s11 + $0x70] ss:$8 sps:$4 sm:$0xff]  }
  0x1c   : > { %1495 = vmatpush3.bf16.msra.mxu0 %v1647_v13  ;;  %1609 = vmatpush3.bf16.msra.mxu1 %v1647_v13  ;;  %v1699_v47 = vld [vmem:[%s1795_s11 + $0xf0] ss:$8 sps:$4 sm:$0xff]  }
  0x1d   : > { %1496 = vmatprep.subr.bf16.mxu0 %v1648_v14  ;;  %1602 = vmatprep.subr.bf16.mxu1 %v1648_v14 }
  0x20   : > { %1497 = vmatpush3.bf16.msra.mxu0 %v1649_v15  ;;  %1610 = vmatpush3.bf16.msra.mxu1 %v1649_v15 }
  0x21   : > { %1498 = vmatprep.subr.bf16.mxu0 %v1650_v16  ;;  %1603 = vmatprep.subr.bf16.mxu1 %v1650_v16 }
  0x24   : > { %1499 = vmatpush3.bf16.msra.mxu0 %v1651_v17  ;;  %1611 = vmatpush3.bf16.msra.mxu1 %v1651_v17 }
  0x27   : > { %689 = vmatmul.mubr.bf16.vlgmr.msra.gmra.mrb[0].mxu0 %v1652_v18  ;;  %753 = vmatmul.mubr.bf16.vlgmr.msra.gmra.mrb[0].mxu1 %v1655_v19 }
  0x28   : > { %696 = vmatprep.mubr.bf16.mxu0 %v1658_v20  ;;  %760 = vmatprep.mubr.bf16.mxu1 %v1660_v21 }
  0x2f   : > { %697 = vmatmul.mubr.bf16.gmra.mrb[4].mxu0 %v1662_v22  ;;  %761 = vmatmul.mubr.bf16.gmra.mrb[4].mxu1 %v1663_v23 }
  0x30   : > { %704 = vmatprep.mubr.bf16.mxu0 %v1664_v24  ;;  %768 = vmatprep.mubr.bf16.mxu1 %v1666_v25 }
  0x37   : > { %705 = vmatmul.mubr.bf16.gmra.mrb[8].mxu0 %v1668_v26  ;;  %769 = vmatmul.mubr.bf16.gmra.mrb[8].mxu1 %v1669_v27 }
  0x38   : > { %712 = vmatprep.mubr.bf16.mxu0 %v1670_v28  ;;  %776 = vmatprep.mubr.bf16.mxu1 %v1672_v29 }
  0x3f   : > { %713 = vmatmul.mubr.bf16.gmra.mrb[12].mxu0 %v1674_v30  ;;  %777 = vmatmul.mubr.bf16.gmra.mrb[12].mxu1 %v1675_v31 }
  0x40   : > { %720 = vmatprep.mubr.bf16.mxu0 %v1676_v32  ;;  %784 = vmatprep.mubr.bf16.mxu1 %v1678_v33 }
  0x47   : > { %721 = vmatmul.mubr.bf16.gmra.mrb[16].mxu0 %v1680_v34  ;;  %785 = vmatmul.mubr.bf16.gmra.mrb[16].mxu1 %v1681_v35 }
  0x48   : > { %728 = vmatprep.mubr.bf16.mxu0 %v1682_v36  ;;  %792 = vmatprep.mubr.bf16.mxu1 %v1684_v37 }
  0x4f   : > { %729 = vmatmul.mubr.bf16.gmra.mrb[20].mxu0 %v1686_v38  ;;  %793 = vmatmul.mubr.bf16.gmra.mrb[20].mxu1 %v1687_v39 }
  0x50   : > { %736 = vmatprep.mubr.bf16.mxu0 %v1688_v40  ;;  %800 = vmatprep.mubr.bf16.mxu1 %v1690_v41 }
  0x57   : > { %737 = vmatmul.mubr.bf16.gmra.mrb[24].mxu0 %v1692_v42  ;;  %801 = vmatmul.mubr.bf16.gmra.mrb[24].mxu1 %v1693_v43 }
  0x58   : > { %744 = vmatprep.mubr.bf16.mxu0 %v1694_v44  ;;  %808 = vmatprep.mubr.bf16.mxu1 %v1696_v45 }
  0x5f   : > { %745 = vmatmul.mubr.bf16.gmra.mrb[28].mxu0 %v1698_v46  ;;  %809 = vmatmul.mubr.bf16.gmra.mrb[28].mxu1 %v1699_v47 }
  0xfa   : > { %v1500_v48 = vpop.f32.mrb[0].mxu0  ;;  %v1548_v49 = vpop.f32.mrb[0].mxu1 }
  0xfb   : > { %v1501_v50 = vpop.f32.mrb[1].mxu0  ;;  %v1549_v52 = vpop.f32.mrb[1].mxu1 }
  0xfc   : > { %v1502_v53 = vadd.f32 %v1501_v50, %v1500_v48  ;;  %v1550_v54 = vadd.f32 %v1549_v52, %v1548_v49  ;;  %v1503_v55 = vpop.f32.mrb[2].mxu0  ;;  %v1551_v56 = vpop.f32.mrb[2].mxu1 }
  0xfd   : > { %v1504_v57 = vpop.f32.mrb[3].mxu0  ;;  %v1552_v58 = vpop.f32.mrb[3].mxu1 }
  0xfe   : > { %v923_v59 = vadd.f32 %v1502_v53, %v1853_v51  ;;  %v939_v60 = vadd.f32 %v1550_v54, %v1853_v51  ;;  %v1505_v61 = vadd.f32 %v1504_v57, %v1503_v55  ;;  %v1553_v62 = vadd.f32 %v1552_v58, %v1551_v56 }
 0x100   : > { %v924_v63 = vadd.f32 %v1505_v61, %v1853_v51  ;;  %v940_v0 = vadd.f32 %v1553_v62, %v1853_v51  ;;  %v955_v1 = vmax.f32 %v923_v59, 0.0  ;;  %v971_v2 = vmax.f32 %v939_v60, 0.0 }
 0x102   : > { %v956_v3 = vmax.f32 %v924_v63, 0.0  ;;  %v972_v4 = vmax.f32 %v940_v0, 0.0  ;;  %v1506_v5 = vpop.f32.mrb[4].mxu0  ;;  %v1554_v6 = vpop.f32.mrb[4].mxu1 }
 0x103   : > { %v1507_v7 = vpop.f32.mrb[5].mxu0  ;;  %v1555_v8 = vpop.f32.mrb[5].mxu1 }
 0x104   : > { %v1392_v9 = vpack.c.bf16 %v956_v3, %v955_v1  ;;  %v1432_v10 = vpack.c.bf16 %v972_v4, %v971_v2  ;;  %v1508_v11 = vadd.f32 %v1507_v7, %v1506_v5  ;;  %v1556_v12 = vadd.f32 %v1555_v8, %v1554_v6  ;;  %v1509_v13 = vpop.f32.mrb[6].mxu0  ;;  %v1557_v14 = vpop.f32.mrb[6].mxu1 }
 0x105   : > { %v1510_v15 = vpop.f32.mrb[7].mxu0  ;;  %v1558_v16 = vpop.f32.mrb[7].mxu1 }
 0x106   : > { %1393 = vst [vmem:[%s1863_s8] sm:$0xff] %v1392_v9   ;;  %1476 = vst [vmem:[%s1863_s8 + $0x40] sm:$0xff] %v1432_v10   ;;  %v925_v17 = vadd.f32 %v1508_v11, %v1853_v51  ;;  %v941_v18 = vadd.f32 %v1556_v12, %v1853_v51  ;;  %v1511_v19 = vadd.f32 %v1510_v15, %v1509_v13 }
 0x107   : > { %v1559_v20 = vadd.f32 %v1558_v16, %v1557_v14 }
 0x108   : > { %v926_v21 = vadd.f32 %v1511_v19, %v1853_v51  ;;  %v957_v23 = vmax.f32 %v925_v17, 0.0  ;;  %v973_v24 = vmax.f32 %v941_v18, 0.0 }
 0x109   : > { %v942_v22 = vadd.f32 %v1559_v20, %v1853_v51 }
 0x10a   : > { %v958_v25 = vmax.f32 %v926_v21, 0.0  ;;  %v1512_v27 = vpop.f32.mrb[8].mxu0  ;;  %v1560_v28 = vpop.f32.mrb[8].mxu1 }
 0x10b   : > { %v974_v26 = vmax.f32 %v942_v22, 0.0  ;;  %v1513_v29 = vpop.f32.mrb[9].mxu0  ;;  %v1561_v30 = vpop.f32.mrb[9].mxu1 }
 0x10c   : > { %v1397_v31 = vpack.c.bf16 %v958_v25, %v957_v23  ;;  %v1514_v33 = vadd.f32 %v1513_v29, %v1512_v27  ;;  %v1562_v34 = vadd.f32 %v1561_v30, %v1560_v28  ;;  %v1515_v35 = vpop.f32.mrb[10].mxu0  ;;  %v1563_v36 = vpop.f32.mrb[10].mxu1 }
 0x10d   : > { %v1437_v32 = vpack.c.bf16 %v974_v26, %v973_v24  ;;  %v1516_v37 = vpop.f32.mrb[11].mxu0  ;;  %v1564_v38 = vpop.f32.mrb[11].mxu1 }
 0x10e   : > { %1469 = vst [vmem:[%s1863_s8 + $0x8] sm:$0xff] %v1397_v31   ;;  %v927_v39 = vadd.f32 %v1514_v33, %v1853_v51  ;;  %v943_v40 = vadd.f32 %v1562_v34, %v1853_v51  ;;  %v1517_v41 = vadd.f32 %v1516_v37, %v1515_v35  ;;  %v1565_v42 = vadd.f32 %v1564_v38, %v1563_v36 }
 0x10f   : > { %1477 = vst [vmem:[%s1863_s8 + $0x48] sm:$0xff] %v1437_v32  }
 0x110   : > { %v928_v43 = vadd.f32 %v1517_v41, %v1853_v51  ;;  %v944_v44 = vadd.f32 %v1565_v42, %v1853_v51  ;;  %v959_v45 = vmax.f32 %v927_v39, 0.0  ;;  %v975_v46 = vmax.f32 %v943_v40, 0.0 }
 0x112   : > { %v960_v47 = vmax.f32 %v928_v43, 0.0  ;;  %v976_v48 = vmax.f32 %v944_v44, 0.0  ;;  %v1518_v49 = vpop.f32.mrb[12].mxu0  ;;  %v1566_v50 = vpop.f32.mrb[12].mxu1 }
 0x113   : > { %v1519_v52 = vpop.f32.mrb[13].mxu0  ;;  %v1567_v53 = vpop.f32.mrb[13].mxu1 }
 0x114   : > { %v1402_v54 = vpack.c.bf16 %v960_v47, %v959_v45  ;;  %v1442_v55 = vpack.c.bf16 %v976_v48, %v975_v46  ;;  %v1520_v56 = vadd.f32 %v1519_v52, %v1518_v49  ;;  %v1568_v57 = vadd.f32 %v1567_v53, %v1566_v50  ;;  %v1521_v58 = vpop.f32.mrb[14].mxu0  ;;  %v1569_v59 = vpop.f32.mrb[14].mxu1 }
 0x115   : > { %v1522_v60 = vpop.f32.mrb[15].mxu0  ;;  %v1570_v61 = vpop.f32.mrb[15].mxu1 }
 0x116   : > { %1470 = vst [vmem:[%s1863_s8 + $0x10] sm:$0xff] %v1402_v54   ;;  %1478 = vst [vmem:[%s1863_s8 + $0x50] sm:$0xff] %v1442_v55   ;;  %v929_v62 = vadd.f32 %v1520_v56, %v1853_v51  ;;  %v945_v63 = vadd.f32 %v1568_v57, %v1853_v51  ;;  %v1523_v0 = vadd.f32 %v1522_v60, %v1521_v58 }
 0x117   : > { %v1571_v1 = vadd.f32 %v1570_v61, %v1569_v59 }
 0x118   : > { %v930_v2 = vadd.f32 %v1523_v0, %v1853_v51  ;;  %v961_v4 = vmax.f32 %v929_v62, 0.0  ;;  %v977_v5 = vmax.f32 %v945_v63, 0.0 }
 0x119   : > { %v946_v3 = vadd.f32 %v1571_v1, %v1853_v51 }
 0x11a   : > { %v962_v6 = vmax.f32 %v930_v2, 0.0  ;;  %v1524_v8 = vpop.f32.mrb[16].mxu0  ;;  %v1572_v9 = vpop.f32.mrb[16].mxu1 }
 0x11b   : > { %v978_v7 = vmax.f32 %v946_v3, 0.0  ;;  %v1525_v10 = vpop.f32.mrb[17].mxu0  ;;  %v1573_v11 = vpop.f32.mrb[17].mxu1 }
 0x11c   : > { %v1407_v12 = vpack.c.bf16 %v962_v6, %v961_v4  ;;  %v1526_v14 = vadd.f32 %v1525_v10, %v1524_v8  ;;  %v1574_v15 = vadd.f32 %v1573_v11, %v1572_v9  ;;  %v1527_v16 = vpop.f32.mrb[18].mxu0  ;;  %v1575_v17 = vpop.f32.mrb[18].mxu1 }
 0x11d   : > { %v1447_v13 = vpack.c.bf16 %v978_v7, %v977_v5  ;;  %v1528_v18 = vpop.f32.mrb[19].mxu0  ;;  %v1576_v19 = vpop.f32.mrb[19].mxu1 }
 0x11e   : > { %1471 = vst [vmem:[%s1863_s8 + $0x18] sm:$0xff] %v1407_v12   ;;  %v931_v20 = vadd.f32 %v1526_v14, %v1853_v51  ;;  %v947_v21 = vadd.f32 %v1574_v15, %v1853_v51  ;;  %v1529_v22 = vadd.f32 %v1528_v18, %v1527_v16  ;;  %v1577_v23 = vadd.f32 %v1576_v19, %v1575_v17 }
 0x11f   : > { %1479 = vst [vmem:[%s1863_s8 + $0x58] sm:$0xff] %v1447_v13  }
 0x120   : > { %v932_v24 = vadd.f32 %v1529_v22, %v1853_v51  ;;  %v948_v25 = vadd.f32 %v1577_v23, %v1853_v51  ;;  %v963_v26 = vmax.f32 %v931_v20, 0.0  ;;  %v979_v27 = vmax.f32 %v947_v21, 0.0 }
 0x122   : > { %v964_v28 = vmax.f32 %v932_v24, 0.0  ;;  %v980_v29 = vmax.f32 %v948_v25, 0.0  ;;  %v1530_v30 = vpop.f32.mrb[20].mxu0  ;;  %v1578_v31 = vpop.f32.mrb[20].mxu1 }
 0x123   : > { %v1531_v32 = vpop.f32.mrb[21].mxu0  ;;  %v1579_v33 = vpop.f32.mrb[21].mxu1 }
 0x124   : > { %v1412_v34 = vpack.c.bf16 %v964_v28, %v963_v26  ;;  %v1452_v35 = vpack.c.bf16 %v980_v29, %v979_v27  ;;  %v1532_v36 = vadd.f32 %v1531_v32, %v1530_v30  ;;  %v1580_v37 = vadd.f32 %v1579_v33, %v1578_v31  ;;  %v1533_v38 = vpop.f32.mrb[22].mxu0  ;;  %v1581_v39 = vpop.f32.mrb[22].mxu1 }
 0x125   : > { %v1534_v40 = vpop.f32.mrb[23].mxu0  ;;  %v1582_v41 = vpop.f32.mrb[23].mxu1 }
 0x126   : > { %1472 = vst [vmem:[%s1863_s8 + $0x20] sm:$0xff] %v1412_v34   ;;  %1480 = vst [vmem:[%s1863_s8 + $0x60] sm:$0xff] %v1452_v35   ;;  %v933_v42 = vadd.f32 %v1532_v36, %v1853_v51  ;;  %v949_v43 = vadd.f32 %v1580_v37, %v1853_v51  ;;  %v1535_v44 = vadd.f32 %v1534_v40, %v1533_v38 }
 0x127   : > { %v1583_v45 = vadd.f32 %v1582_v41, %v1581_v39 }
 0x128   : > { %v934_v46 = vadd.f32 %v1535_v44, %v1853_v51  ;;  %v965_v48 = vmax.f32 %v933_v42, 0.0  ;;  %v981_v49 = vmax.f32 %v949_v43, 0.0 }
 0x129   : > { %v950_v47 = vadd.f32 %v1583_v45, %v1853_v51 }
 0x12a   : > { %v966_v50 = vmax.f32 %v934_v46, 0.0  ;;  %v1536_v53 = vpop.f32.mrb[24].mxu0  ;;  %v1584_v54 = vpop.f32.mrb[24].mxu1 }
 0x12b   : > { %v982_v52 = vmax.f32 %v950_v47, 0.0  ;;  %v1537_v55 = vpop.f32.mrb[25].mxu0  ;;  %v1585_v56 = vpop.f32.mrb[25].mxu1 }
 0x12c   : > { %v1417_v57 = vpack.c.bf16 %v966_v50, %v965_v48  ;;  %v1538_v59 = vadd.f32 %v1537_v55, %v1536_v53  ;;  %v1586_v60 = vadd.f32 %v1585_v56, %v1584_v54  ;;  %v1539_v61 = vpop.f32.mrb[26].mxu0  ;;  %v1587_v62 = vpop.f32.mrb[26].mxu1 }
 0x12d   : > { %v1457_v58 = vpack.c.bf16 %v982_v52, %v981_v49  ;;  %v1540_v63 = vpop.f32.mrb[27].mxu0  ;;  %v1588_v0 = vpop.f32.mrb[27].mxu1 }
 0x12e   : > { %1473 = vst [vmem:[%s1863_s8 + $0x28] sm:$0xff] %v1417_v57   ;;  %v935_v1 = vadd.f32 %v1538_v59, %v1853_v51  ;;  %v951_v2 = vadd.f32 %v1586_v60, %v1853_v51  ;;  %v1541_v3 = vadd.f32 %v1540_v63, %v1539_v61  ;;  %v1589_v4 = vadd.f32 %v1588_v0, %v1587_v62 }
 0x12f   : > { %1481 = vst [vmem:[%s1863_s8 + $0x68] sm:$0xff] %v1457_v58  }
 0x130   : > { %v936_v5 = vadd.f32 %v1541_v3, %v1853_v51  ;;  %v952_v6 = vadd.f32 %v1589_v4, %v1853_v51  ;;  %v967_v7 = vmax.f32 %v935_v1, 0.0  ;;  %v983_v8 = vmax.f32 %v951_v2, 0.0 }
 0x132   : > { %v968_v9 = vmax.f32 %v936_v5, 0.0  ;;  %v984_v10 = vmax.f32 %v952_v6, 0.0  ;;  %v1542_v11 = vpop.f32.mrb[28].mxu0  ;;  %v1590_v12 = vpop.f32.mrb[28].mxu1 }
 0x133   : > { %v1543_v13 = vpop.f32.mrb[29].mxu0  ;;  %v1591_v14 = vpop.f32.mrb[29].mxu1 }
 0x134   : > { %v1422_v15 = vpack.c.bf16 %v968_v9, %v967_v7  ;;  %v1462_v16 = vpack.c.bf16 %v984_v10, %v983_v8  ;;  %v1544_v17 = vadd.f32 %v1543_v13, %v1542_v11  ;;  %v1592_v18 = vadd.f32 %v1591_v14, %v1590_v12  ;;  %v1545_v19 = vpop.f32.mrb[30].mxu0  ;;  %v1593_v20 = vpop.f32.mrb[30].mxu1 }
 0x135   : > { %v1546_v21 = vpop.f32.mrb[31].mxu0  ;;  %v1594_v22 = vpop.f32.mrb[31].mxu1 }
 0x136   : > { %1474 = vst [vmem:[%s1863_s8 + $0x30] sm:$0xff] %v1422_v15   ;;  %1482 = vst [vmem:[%s1863_s8 + $0x70] sm:$0xff] %v1462_v16   ;;  %v937_v23 = vadd.f32 %v1544_v17, %v1853_v51  ;;  %v953_v24 = vadd.f32 %v1592_v18, %v1853_v51  ;;  %v1547_v25 = vadd.f32 %v1546_v21, %v1545_v19 }
 0x137   : > { %v1595_v26 = vadd.f32 %v1594_v22, %v1593_v20 }
 0x138   : > { %v938_v27 = vadd.f32 %v1547_v25, %v1853_v51  ;;  %v969_v29 = vmax.f32 %v937_v23, 0.0  ;;  %v985_v30 = vmax.f32 %v953_v24, 0.0 }
 0x139   : > { %v954_v28 = vadd.f32 %v1595_v26, %v1853_v51 }
 0x13a   : > { %v970_v31 = vmax.f32 %v938_v27, 0.0 }
 0x13b   : > { %v986_v32 = vmax.f32 %v954_v28, 0.0 }
 0x13c   : > { %v1427_v33 = vpack.c.bf16 %v970_v31, %v969_v29 }
 0x13d   : > { %v1467_v34 = vpack.c.bf16 %v986_v32, %v985_v30 }
 0x13e   : > { %1475 = vst [vmem:[%s1863_s8 + $0x38] sm:$0xff] %v1427_v33  }
 0x13f   : > { %1483 = vst [vmem:[%s1863_s8 + $0x78] sm:$0xff] %v1467_v34  }
 0x140 PF: > { %s13_s14 = sadd.s32 1, %s1722_s14   ;;  %s1922_s12 = smov %s1718_s13 }
 0x141   : > { %p10_p5 = scmp.ge.s32.totalorder %s13_s14, 4   ;;  %s1923_s13 = smov %s1925_s15 }
 0x143   :  { %12 = sbr.rel (!%p10_p5) target bundleno = 2 (0x2), region = 76 }

// kernel: _forward_impl.13
= control target key start
LH: loop header
LB: loop body
LE: loop exit
PB: predicated region body
PF: predicated region fallthrough
CT: control target
= control target key end

     0   :  { %s1276_s1 = inlined_call_operand.vmem [shape: bf16[384,128], index: 1, kind: input, shape index: {}]   ;;  %s1277_s0 = inlined_call_operand.vmem [shape: bf16[128,384], index: 0, kind: input, shape index: {}]   ;;  %s1278_s2 = inlined_call_operand.vmem [shape: f32[1,128], index: 2, kind: input, shape index: {}]   ;;  %s1279_s3 = inlined_call_operand.vmem [shape: bf16[128,128], index: 3, kind: output, shape index: {}]  }
   0x1   :  { %v1011_v0 = vld [vmem:[%s1276_s1 + $0x40] sm:$0xff]   ;;  %v1014_v3 = vld [vmem:[%s1276_s1 + $0x48] sm:$0xff]   ;;  %v1017_v6 = vld [vmem:[%s1276_s1 + $0x50] sm:$0xff]  }
   0x2   :  { %v1012_v1 = vld [vmem:[%s1276_s1] sm:$0xff]   ;;  %899 = vmatprep.subr.bf16.mxu0 %v1011_v0  ;;  %v1015_v4 = vld [vmem:[%s1276_s1 + $0x8] sm:$0xff]   ;;  %v1018_v7 = vld [vmem:[%s1276_s1 + $0x10] sm:$0xff]  }
   0x3   :  { %v1013_v2 = vld [vmem:[%s1276_s1 + $0x80] sm:$0xff]   ;;  %900 = vmatpush3.bf16.msra.mxu0 %v1012_v1  ;;  %v1016_v5 = vld [vmem:[%s1276_s1 + $0x88] sm:$0xff]   ;;  %v1019_v8 = vld [vmem:[%s1276_s1 + $0x90] sm:$0xff]  }
   0x4   :  { %979 = vmatprep.subr.bf16.mxu1 %v1013_v2  ;;  %901 = vmatprep.subr.bf16.mxu0 %v1014_v3  ;;  %v1020_v9 = vld [vmem:[%s1276_s1 + $0x58] sm:$0xff]   ;;  %v1023_v12 = vld [vmem:[%s1276_s1 + $0x60] sm:$0xff]   ;;  %v1026_v15 = vld [vmem:[%s1276_s1 + $0x68] sm:$0xff]  }
   0x5   :  { %980 = vmatpush3.bf16.msra.mxu1 %v1013_v2  ;;  %v1021_v10 = vld [vmem:[%s1276_s1 + $0x18] sm:$0xff]   ;;  %v1025_v13 = vld [vmem:[%s1276_s1 + $0xa0] sm:$0xff]   ;;  %v1028_v16 = vld [vmem:[%s1276_s1 + $0xa8] sm:$0xff]  }
   0x6   :  { %981 = vmatprep.subr.bf16.mxu1 %v1016_v5  ;;  %v1022_v11 = vld [vmem:[%s1276_s1 + $0x98] sm:$0xff]   ;;  %v1024_v14 = vld [vmem:[%s1276_s1 + $0x20] sm:$0xff]   ;;  %v1027_v17 = vld [vmem:[%s1276_s1 + $0x28] sm:$0xff]  }
   0x7   :  { %902 = vmatpush3.bf16.msra.mxu0 %v1015_v4  ;;  %v1029_v18 = vld [vmem:[%s1276_s1 + $0x70] sm:$0xff]   ;;  %v1032_v21 = vld [vmem:[%s1276_s1 + $0x78] sm:$0xff]   ;;  %v1035_v26 = vld [vmem:[%s1277_s0] ss:$12 sps:$4 sm:$0xff]  }
   0x8   :  { %903 = vmatprep.subr.bf16.mxu0 %v1017_v6  ;;  %v1030_v19 = vld [vmem:[%s1276_s1 + $0x30] sm:$0xff]   ;;  %v1034_v22 = vld [vmem:[%s1276_s1 + $0xb8] sm:$0xff]   ;;  %v1039_v28 = vld [vmem:[%s1277_s0 + $0x20] ss:$12 sps:$4 sm:$0xff]  }
   0x9   :  { %982 = vmatpush3.bf16.msra.mxu1 %v1016_v5  ;;  %v1031_v20 = vld [vmem:[%s1276_s1 + $0xb0] sm:$0xff]   ;;  %v1033_v25 = vld [vmem:[%s1276_s1 + $0x38] sm:$0xff]   ;;  %v1055_v36 = vld [vmem:[%s1277_s0 + $0x80] ss:$12 sps:$4 sm:$0xff]  }
   0xa   :  { %983 = vmatprep.subr.bf16.mxu1 %v1019_v8  ;;  %v1037_v23 = vld [vmem:[%s1277_s0 + $0x4] ss:$12 sps:$4 sm:$0xff]   ;;  %v1038_v24 = vld [vmem:[%s1277_s0 + $0x8] ss:$12 sps:$4 sm:$0xff]   ;;  %v1048_v35 = vld [vmem:[%s1277_s0 + $0x4c] ss:$12 sps:$4 sm:$0xff]  }
   0xb   :  { %904 = vmatpush3.bf16.msra.mxu0 %v1018_v7  ;;  %435 = vmatprep.mubr.bf16.mxu0 %v1037_v23  ;;  %v1040_v27 = vld [vmem:[%s1277_s0 + $0x1c] ss:$12 sps:$4 sm:$0xff]   ;;  %v1046_v29 = vld [vmem:[%s1277_s0 + $0x38] ss:$12 sps:$4 sm:$0xff]   ;;  %v1043_v31 = vld [vmem:[%s1277_s0 + $0x34] ss:$12 sps:$4 sm:$0xff]  }
   0xc   :  { %905 = vmatprep.subr.bf16.mxu0 %v1020_v9  ;;  %995 = vmatprep.mubr.bf16.mxu1 %v1038_v24  ;;  %v1042_v30 = vld [vmem:[%s1277_s0 + $0x18] ss:$12 sps:$4 sm:$0xff]   ;;  %v1047_v32 = vld [vmem:[%s1277_s0 + $0x50] ss:$12 sps:$4 sm:$0xff]   ;;  %v1054_v33 = vld [vmem:[%s1277_s0 + $0x68] ss:$12 sps:$4 sm:$0xff]  }
   0xd   :  { %984 = vmatpush3.bf16.msra.mxu1 %v1019_v8  ;;  %v1045_v34 = vld [vmem:[%s1277_s0 + $0x30] ss:$12 sps:$4 sm:$0xff]   ;;  %v1062_v37 = vld [vmem:[%s1277_s0 + $0x98] ss:$12 sps:$4 sm:$0xff]   ;;  %v1050_v38 = vld [vmem:[%s1277_s0 + $0x48] ss:$12 sps:$4 sm:$0xff]  }
   0xe   :  { %985 = vmatprep.subr.bf16.mxu1 %v1022_v11  ;;  %v1051_v39 = vld [vmem:[%s1277_s0 + $0x64] ss:$12 sps:$4 sm:$0xff]   ;;  %v1053_v41 = vld [vmem:[%s1277_s0 + $0x60] ss:$12 sps:$4 sm:$0xff]   ;;  %v1056_v42 = vld [vmem:[%s1277_s0 + $0x7c] ss:$12 sps:$4 sm:$0xff]  }
   0xf   :  { %906 = vmatpush3.bf16.msra.mxu0 %v1021_v10  ;;  %v1063_v40 = vld [vmem:[%s1277_s0 + $0xb0] ss:$12 sps:$4 sm:$0xff]   ;;  %v1058_v43 = vld [vmem:[%s1277_s0 + $0x78] ss:$12 sps:$4 sm:$0xff]   ;;  %v1059_v44 = vld [vmem:[%s1277_s0 + $0x94] ss:$12 sps:$4 sm:$0xff]  }
  0x10   :  { %907 = vmatprep.subr.bf16.mxu0 %v1023_v12  ;;  %v1061_v45 = vld [vmem:[%s1277_s0 + $0x90] ss:$12 sps:$4 sm:$0xff]   ;;  %v1064_v46 = vld [vmem:[%s1277_s0 + $0xac] ss:$12 sps:$4 sm:$0xff]   ;;  %v1066_v47 = vld [vmem:[%s1277_s0 + $0xa8] ss:$12 sps:$4 sm:$0xff]  }
  0x11   :  { %986 = vmatpush3.bf16.msra.mxu1 %v1022_v11  ;;  %v1234_v55 = vld [vmem:[%s1278_s2] ss:$0 sm:$0xff] }
  0x12   :  { %987 = vmatprep.subr.bf16.mxu1 %v1025_v13 }
  0x13   :  { %908 = vmatpush3.bf16.msra.mxu0 %v1024_v14 }
  0x14   :  { %909 = vmatprep.subr.bf16.mxu0 %v1026_v15 }
  0x15   :  { %988 = vmatpush3.bf16.msra.mxu1 %v1025_v13 }
  0x16   :  { %989 = vmatprep.subr.bf16.mxu1 %v1028_v16 }
  0x17   :  { %910 = vmatpush3.bf16.msra.mxu0 %v1027_v17 }
  0x18   :  { %911 = vmatprep.subr.bf16.mxu0 %v1029_v18 }
  0x19   :  { %990 = vmatpush3.bf16.msra.mxu1 %v1028_v16 }
  0x1a   :  { %991 = vmatprep.subr.bf16.mxu1 %v1031_v20 }
  0x1b   :  { %912 = vmatpush3.bf16.msra.mxu0 %v1030_v19 }
  0x1c   :  { %913 = vmatprep.subr.bf16.mxu0 %v1032_v21 }
  0x1d   :  { %992 = vmatpush3.bf16.msra.mxu1 %v1031_v20 }
  0x1e   :  { %993 = vmatprep.subr.bf16.mxu1 %v1034_v22 }
  0x1f   :  { %914 = vmatpush3.bf16.msra.mxu0 %v1033_v25 }
  0x21   :  { %994 = vmatpush3.bf16.msra.mxu1 %v1034_v22 }
  0x22   :  { %436 = vmatmul.mubr.bf16.vlgmr.msra.gmra.mrb[0].mxu0 %v1035_v26 }
  0x23   :  { %443 = vmatprep.mubr.bf16.mxu0 %v1040_v27 }
  0x24   :  { %996 = vmatmul.mubr.bf16.vlgmr.msra.gmra.mrb[0].mxu1 %v1039_v28 }
  0x25   :  { %999 = vmatprep.mubr.bf16.mxu1 %v1046_v29 }
  0x2a   :  { %444 = vmatmul.mubr.bf16.gmra.mrb[4].mxu0 %v1042_v30 }
  0x2b   :  { %451 = vmatprep.mubr.bf16.mxu0 %v1043_v31 }
  0x2c   :  { %1000 = vmatmul.mubr.bf16.gmra.mrb[4].mxu1 %v1047_v32 }
  0x2d   :  { %1003 = vmatprep.mubr.bf16.mxu1 %v1054_v33 }
  0x32   :  { %452 = vmatmul.mubr.bf16.gmra.mrb[8].mxu0 %v1045_v34 }
  0x33   :  { %459 = vmatprep.mubr.bf16.mxu0 %v1048_v35 }
  0x34   :  { %1004 = vmatmul.mubr.bf16.gmra.mrb[8].mxu1 %v1055_v36 }
  0x35   :  { %1007 = vmatprep.mubr.bf16.mxu1 %v1062_v37 }
  0x3a   :  { %460 = vmatmul.mubr.bf16.gmra.mrb[12].mxu0 %v1050_v38 }
  0x3b   :  { %467 = vmatprep.mubr.bf16.mxu0 %v1051_v39 }
  0x3c   :  { %1008 = vmatmul.mubr.bf16.gmra.mrb[12].mxu1 %v1063_v40 }
  0x42   :  { %468 = vmatmul.mubr.bf16.gmra.mrb[16].mxu0 %v1053_v41 }
  0x43   :  { %475 = vmatprep.mubr.bf16.mxu0 %v1056_v42 }
  0x4a   :  { %476 = vmatmul.mubr.bf16.gmra.mrb[20].mxu0 %v1058_v43 }
  0x4b   :  { %483 = vmatprep.mubr.bf16.mxu0 %v1059_v44 }
  0x52   :  { %484 = vmatmul.mubr.bf16.gmra.mrb[24].mxu0 %v1061_v45 }
  0x53   :  { %491 = vmatprep.mubr.bf16.mxu0 %v1064_v46 }
  0x5a   :  { %492 = vmatmul.mubr.bf16.gmra.mrb[28].mxu0 %v1066_v47 }
  0xf5   :  { %v915_v48 = vpop.f32.mrb[0].mxu0 }
  0xf6   :  { %v916_v49 = vpop.f32.mrb[1].mxu0 }
  0xf7   :  { %v917_v50 = vadd.f32 %v916_v49, %v915_v48  ;;  %v918_v51 = vpop.f32.mrb[2].mxu0  ;;  %v997_v52 = vpop.f32.mrb[0].mxu1 }
  0xf8   :  { %v919_v53 = vpop.f32.mrb[3].mxu0  ;;  %v534_v54 = vpop.f32.mrb[1].mxu1 }
  0xf9   :  { %v920_v56 = vadd.f32 %v919_v53, %v918_v51  ;;  %v535_v57 = vadd.f32 %v917_v50, %v534_v54  ;;  %v998_v58 = vpop.f32.mrb[2].mxu1 }
  0xfa   :  { %v537_v59 = vpop.f32.mrb[3].mxu1 }
  0xfb   :  { %v655_v60 = vadd.f32 %v1234_v55, %v535_v57  ;;  %v538_v61 = vadd.f32 %v920_v56, %v537_v59 }
  0xfd   :  { %v656_v62 = vadd.f32 %v1234_v55, %v538_v61  ;;  %v921_v63 = vpop.f32.mrb[4].mxu0  ;;  %v671_v1 = vmax.f32 %v655_v60, 0.0 }
  0xfe   :  { %v922_v0 = vpop.f32.mrb[5].mxu0 }
  0xff   :  { %v672_v2 = vmax.f32 %v656_v62, 0.0  ;;  %v923_v3 = vadd.f32 %v922_v0, %v921_v63  ;;  %v924_v4 = vpop.f32.mrb[6].mxu0  ;;  %v1001_v5 = vpop.f32.mrb[4].mxu1 }
 0x100   :  { %v925_v6 = vpop.f32.mrb[7].mxu0  ;;  %v550_v7 = vpop.f32.mrb[5].mxu1 }
 0x101   :  { %v855_v8 = vpack.c.bf16 %v672_v2, %v671_v1  ;;  %v543_v9 = vadd.f32 %v997_v52, %v923_v3  ;;  %v926_v10 = vadd.f32 %v925_v6, %v924_v4  ;;  %v1002_v11 = vpop.f32.mrb[6].mxu1 }
 0x102   :  { %v553_v12 = vpop.f32.mrb[7].mxu1 }
 0x103   :  { %856 = vst [vmem:[%s1279_s3] sm:$0xff] %v855_v8   ;;  %v657_v13 = vadd.f32 %v1234_v55, %v543_v9  ;;  %v546_v14 = vadd.f32 %v998_v58, %v926_v10 }
 0x105   :  { %v658_v15 = vadd.f32 %v1234_v55, %v546_v14  ;;  %v927_v16 = vpop.f32.mrb[8].mxu0  ;;  %v673_v18 = vmax.f32 %v657_v13, 0.0 }
 0x106   :  { %v928_v17 = vpop.f32.mrb[9].mxu0 }
 0x107   :  { %v674_v19 = vmax.f32 %v658_v15, 0.0  ;;  %v929_v20 = vadd.f32 %v928_v17, %v927_v16  ;;  %v930_v21 = vpop.f32.mrb[10].mxu0  ;;  %v1005_v22 = vpop.f32.mrb[8].mxu1 }
 0x108   :  { %v931_v23 = vpop.f32.mrb[11].mxu0  ;;  %v566_v24 = vpop.f32.mrb[9].mxu1 }
 0x109   :  { %v860_v25 = vpack.c.bf16 %v674_v19, %v673_v18  ;;  %v932_v26 = vadd.f32 %v931_v23, %v930_v21  ;;  %v551_v27 = vadd.f32 %v929_v20, %v550_v7  ;;  %v1006_v28 = vpop.f32.mrb[10].mxu1 }
 0x10a   :  { %v569_v29 = vpop.f32.mrb[11].mxu1 }
 0x10b   :  { %892 = vst [vmem:[%s1279_s3 + $0x8] sm:$0xff] %v860_v25   ;;  %v659_v30 = vadd.f32 %v1234_v55, %v551_v27  ;;  %v554_v31 = vadd.f32 %v932_v26, %v553_v12 }
 0x10d   :  { %v660_v32 = vadd.f32 %v1234_v55, %v554_v31  ;;  %v933_v33 = vpop.f32.mrb[12].mxu0  ;;  %v675_v35 = vmax.f32 %v659_v30, 0.0 }
 0x10e   :  { %v934_v34 = vpop.f32.mrb[13].mxu0 }
 0x10f   :  { %v676_v36 = vmax.f32 %v660_v32, 0.0  ;;  %v935_v37 = vadd.f32 %v934_v34, %v933_v33  ;;  %v936_v38 = vpop.f32.mrb[14].mxu0  ;;  %v1009_v39 = vpop.f32.mrb[12].mxu1 }
 0x110   :  { %v937_v40 = vpop.f32.mrb[15].mxu0  ;;  %v582_v41 = vpop.f32.mrb[13].mxu1 }
 0x111   :  { %v865_v42 = vpack.c.bf16 %v676_v36, %v675_v35  ;;  %v559_v43 = vadd.f32 %v1001_v5, %v935_v37  ;;  %v938_v44 = vadd.f32 %v937_v40, %v936_v38  ;;  %v1010_v45 = vpop.f32.mrb[14].mxu1 }
 0x112   :  { %v585_v46 = vpop.f32.mrb[15].mxu1 }
 0x113   :  { %893 = vst [vmem:[%s1279_s3 + $0x10] sm:$0xff] %v865_v42   ;;  %v661_v47 = vadd.f32 %v1234_v55, %v559_v43  ;;  %v562_v48 = vadd.f32 %v1002_v11, %v938_v44 }
 0x115   :  { %v662_v49 = vadd.f32 %v1234_v55, %v562_v48  ;;  %v939_v50 = vpop.f32.mrb[16].mxu0  ;;  %v677_v52 = vmax.f32 %v661_v47, 0.0 }
 0x116   :  { %v940_v51 = vpop.f32.mrb[17].mxu0 }
 0x117   :  { %v678_v53 = vmax.f32 %v662_v49, 0.0  ;;  %v941_v54 = vadd.f32 %v940_v51, %v939_v50  ;;  %v942_v56 = vpop.f32.mrb[18].mxu0 }
 0x118   :  { %v943_v57 = vpop.f32.mrb[19].mxu0 }
 0x119   :  { %v870_v58 = vpack.c.bf16 %v678_v53, %v677_v52  ;;  %v944_v59 = vadd.f32 %v943_v57, %v942_v56  ;;  %v567_v60 = vadd.f32 %v941_v54, %v566_v24 }
 0x11b   :  { %894 = vst [vmem:[%s1279_s3 + $0x18] sm:$0xff] %v870_v58   ;;  %v663_v61 = vadd.f32 %v1234_v55, %v567_v60  ;;  %v570_v62 = vadd.f32 %v944_v59, %v569_v29 }
 0x11d   :  { %v664_v63 = vadd.f32 %v1234_v55, %v570_v62  ;;  %v945_v0 = vpop.f32.mrb[20].mxu0  ;;  %v679_v2 = vmax.f32 %v663_v61, 0.0 }
 0x11e   :  { %v946_v1 = vpop.f32.mrb[21].mxu0 }
 0x11f   :  { %v680_v3 = vmax.f32 %v664_v63, 0.0  ;;  %v947_v4 = vadd.f32 %v946_v1, %v945_v0  ;;  %v948_v5 = vpop.f32.mrb[22].mxu0 }
 0x120   :  { %v949_v6 = vpop.f32.mrb[23].mxu0 }
 0x121   :  { %v875_v7 = vpack.c.bf16 %v680_v3, %v679_v2  ;;  %v575_v8 = vadd.f32 %v1005_v22, %v947_v4  ;;  %v950_v9 = vadd.f32 %v949_v6, %v948_v5 }
 0x123   :  { %895 = vst [vmem:[%s1279_s3 + $0x20] sm:$0xff] %v875_v7   ;;  %v665_v10 = vadd.f32 %v1234_v55, %v575_v8  ;;  %v578_v11 = vadd.f32 %v1006_v28, %v950_v9 }
 0x125   :  { %v666_v12 = vadd.f32 %v1234_v55, %v578_v11  ;;  %v951_v13 = vpop.f32.mrb[24].mxu0  ;;  %v681_v15 = vmax.f32 %v665_v10, 0.0 }
 0x126   :  { %v952_v14 = vpop.f32.mrb[25].mxu0 }
 0x127   :  { %v682_v16 = vmax.f32 %v666_v12, 0.0  ;;  %v953_v17 = vadd.f32 %v952_v14, %v951_v13  ;;  %v954_v18 = vpop.f32.mrb[26].mxu0 }
 0x128   :  { %v955_v19 = vpop.f32.mrb[27].mxu0 }
 0x129   :  { %v880_v20 = vpack.c.bf16 %v682_v16, %v681_v15  ;;  %v956_v21 = vadd.f32 %v955_v19, %v954_v18  ;;  %v583_v22 = vadd.f32 %v953_v17, %v582_v41 }
 0x12b   :  { %896 = vst [vmem:[%s1279_s3 + $0x28] sm:$0xff] %v880_v20   ;;  %v667_v23 = vadd.f32 %v1234_v55, %v583_v22  ;;  %v586_v24 = vadd.f32 %v956_v21, %v585_v46 }
 0x12d   :  { %v668_v25 = vadd.f32 %v1234_v55, %v586_v24  ;;  %v957_v26 = vpop.f32.mrb[28].mxu0  ;;  %v683_v28 = vmax.f32 %v667_v23, 0.0 }
 0x12e   :  { %v958_v27 = vpop.f32.mrb[29].mxu0 }
 0x12f   :  { %v684_v29 = vmax.f32 %v668_v25, 0.0  ;;  %v959_v30 = vadd.f32 %v958_v27, %v957_v26  ;;  %v960_v31 = vpop.f32.mrb[30].mxu0 }
 0x130   :  { %v961_v32 = vpop.f32.mrb[31].mxu0 }
 0x131   :  { %v885_v33 = vpack.c.bf16 %v684_v29, %v683_v28  ;;  %v591_v34 = vadd.f32 %v1009_v39, %v959_v30  ;;  %v962_v35 = vadd.f32 %v961_v32, %v960_v31 }
 0x133   :  { %897 = vst [vmem:[%s1279_s3 + $0x30] sm:$0xff] %v885_v33   ;;  %v669_v36 = vadd.f32 %v1234_v55, %v591_v34  ;;  %v594_v37 = vadd.f32 %v1010_v45, %v962_v35 }
 0x135   :  { %v670_v38 = vadd.f32 %v1234_v55, %v594_v37  ;;  %v685_v40 = vmax.f32 %v669_v36, 0.0 }
 0x137   :  { %v686_v41 = vmax.f32 %v670_v38, 0.0 }
 0x139   :  { %v890_v42 = vpack.c.bf16 %v686_v41, %v685_v40 }
 0x13b   :  { %898 = vst [vmem:[%s1279_s3 + $0x38] sm:$0xff] %v890_v42  }

// kernel: _forward_impl.14
= control target key start
LH: loop header
LB: loop body
LE: loop exit
PB: predicated region body
PF: predicated region fallthrough
CT: control target
= control target key end

     0   :  { %s1144_s12 = smov 0   ;;  %s1146_s13 = smov 0   ;;  %s1264_s0 = inlined_call_operand.vmem [shape: bf16[32,1024], index: 0, kind: input, shape index: {}]   ;;  %s1265_s1 = inlined_call_operand.vmem [shape: bf16[1024,128], index: 1, kind: input, shape index: {}]   ;;  %s1266_s2 = inlined_call_operand.vmem [shape: f32[1,128], index: 2, kind: input, shape index: {}]   ;;  %s1267_s3 = inlined_call_operand.vmem [shape: bf16[32,128], index: 3, kind: output, shape index: {}]  }
   0x1   :  { %s1148_s14 = smov 0   ;;  %s1150_s15 = smov 0  }
   0x2   :  { %s1152_s16 = smov 0  }
   0x3 LB: > { %s25_s17 = sadd.s32 1, %s1117_s15  ;;  %p48_p1 = scmp.ne.s32.totalorder %s1109_s13, %s1105_s12  ;;  %s1121_s16 = sphi %s1152_s16, %s13_s16   ;;  %s1117_s15 = sphi %s1150_s15, %s1271_s15   ;;  %s1113_s14 = sphi %s1148_s14, %s1270_s14   ;;  %s1109_s13 = sphi %s1146_s13, %s1269_s13   ;;  %s1105_s12 = sphi %s1144_s12, %s1268_s12  }
   0x4   : > { %p26_p0 = scmp.ge.s32.totalorder %s25_s17, 2  ;;  %p49_p2 = scmp.eq.s32.totalorder %s1121_s16, 0 }
   0x5   : > { %s41_s19 = sadd.s32 1, %s1109_s13  ;;  %p867_p5 = scmp.ge.s32.totalorder %s1121_s16, 2 }
   0x6   : > { %s1273_s17 = smov (%p26_p0, %s25_s17), 0  ;;  %p50_p3 = por %p49_p2, %p48_p1 }
   0x7   : > { %s37_s18 = ssub.s32 %s1117_s15, %s1273_s17  ;;  %162 = sbr.rel (%p867_p5) target bundleno = 22 (0x16), region = 20 }
   0x8   : > { %p39_p4 = scmp.eq.s32.totalorder %s37_s18, 0 }
   0xa   : > { %s1179_s20 = scalar_select %p39_p4, %s1109_s13, %s41_s19  }
   0xe   : > { %165 = sbr.rel (!%p50_p3) target bundleno = 22 (0x16), region = 24  ;;  %s167_s21 = sand.u32 (%p50_p3), 1, %s1109_s13  }
   0xf   : > { %s926_s22 = sshll.u32 (%p50_p3), %s1117_s15, 4  ;;  %s868_s23 = sshll.u32 (%p50_p3), %s167_s21, 6 }
  0x10   : > { %s175_s26 = scalar_lea.vmem (%p50_p3), %s1264_s0, %s926_s22  ;;  %s169_s27 = scalar_lea.vmem (%p50_p3), [#allocation3], %s868_s23 }
  0x11   : > { %v188_v0 = vld [vmem:[%s175_s26] sm:$0xff] (%p50_p3)  ;;  %v190_v1 = vld [vmem:[%s175_s26 + $0x8] sm:$0xff] (%p50_p3) }
  0x12   : > { %v192_v2 = vld [vmem:[%s175_s26 + $0x20] sm:$0xff] (%p50_p3)  ;;  %189 = vst [vmem:[%s169_s27] sm:$0xff] (%p50_p3), %v188_v0  ;;  %191 = vst [vmem:[%s169_s27 + $0x8] sm:$0xff] (%p50_p3), %v190_v1  ;;  %v194_v3 = vld [vmem:[%s175_s26 + $0x28] sm:$0xff] (%p50_p3) }
  0x13   : > { %193 = vst [vmem:[%s169_s27 + $0x10] sm:$0xff] (%p50_p3), %v192_v2  ;;  %v196_v4 = vld [vmem:[%s175_s26 + $0x40] sm:$0xff] (%p50_p3)  ;;  %v198_v5 = vld [vmem:[%s175_s26 + $0x48] sm:$0xff] (%p50_p3)  ;;  %195 = vst [vmem:[%s169_s27 + $0x18] sm:$0xff] (%p50_p3), %v194_v3 }
  0x14   : > { %197 = vst [vmem:[%s169_s27 + $0x20] sm:$0xff] (%p50_p3), %v196_v4  ;;  %199 = vst [vmem:[%s169_s27 + $0x28] sm:$0xff] (%p50_p3), %v198_v5  ;;  %v200_v6 = vld [vmem:[%s175_s26 + $0x60] sm:$0xff] (%p50_p3)  ;;  %v202_v7 = vld [vmem:[%s175_s26 + $0x68] sm:$0xff] (%p50_p3) }
  0x15   : > { %201 = vst [vmem:[%s169_s27 + $0x30] sm:$0xff] %v200_v6  ;;  %203 = vst [vmem:[%s169_s27 + $0x38] sm:$0xff] %v202_v7 }
  0x16 PF: > { %p871_p6 = scmp.ge.s32.totalorder %s1121_s16, 1  ;;  %p220_p7 = scmp.lt.s32.totalorder %s1121_s16, 3 }
  0x18   : > { %p221_p8 = pnand %p871_p6, %p220_p7 }
  0x19   : > { %s227_s28 = sand.u32 (!%p221_p8), 1, %s1105_s12   ;;  %s873_s29 = sshll.u32 (!%p221_p8), %s1113_s14, 6 }
  0x1a   : > { %224 = sbr.rel (%p221_p8) target bundleno = 319 (0x13f), region = 51  ;;  %s872_s30 = sshll.u32 (!%p221_p8), %s227_s28, 6 }
  0x1b   : > { %p267_p9 = scmp.lt.s32.totalorder (!%p221_p8), %s873_s29, 127  ;;  %s1196_s8 = scalar_lea.vmem (!%p221_p8), [#allocation3], %s872_s30 }
  0x1c   : > { %p875_p10 = scmp.ne.s32.totalorder (!%p221_p8), %s1113_s14, 0 }
  0x21   : > { %s1275_s29 = smov (!%p267_p9, %s873_s29), 127  ;;  %291 = sbr.rel (%p875_p10) target bundleno = 40 (0x28), region = 59 }
  0x22   : > { %s874_s4 = sshll.u32 %s1275_s29, 2  ;;  %v1123_v8 = vmov (!%p875_p10), 0.0  }
  0x23   : > { %s1194_s7 = scalar_lea.vmem %s1265_s1, %s874_s4  ;;  %292 = vst [vmem:[#allocation2] sm:$0xff] (!%p875_p10), %v1123_v8  ;;  %293 = vst [vmem:[#allocation2 + $0x8] sm:$0xff] (!%p875_p10), %v1123_v8 }
  0x24   : > { %294 = vst [vmem:[#allocation2 + $0x10] sm:$0xff] (!%p875_p10), %v1123_v8  ;;  %295 = vst [vmem:[#allocation2 + $0x18] sm:$0xff] (!%p875_p10), %v1123_v8 }
  0x28 PF: > { %v1039_v9 = vld [vmem:[%s1194_s7 + $0x40] sm:$0xff]   ;;  %v1043_v13 = vld [vmem:[%s1194_s7 + $0x48] sm:$0xff]   ;;  %v1047_v17 = vld [vmem:[%s1194_s7 + $0x50] sm:$0xff]   ;;  %p916_p11 = scmp.ne.s32.totalorder %s1113_s14, 1 }
  0x29   : > { %v1040_v10 = vld [vmem:[%s1194_s7 + $0xc0] sm:$0xff]   ;;  %942 = vmatprep.subr.bf16.mxu0 %v1039_v9  ;;  %v1044_v14 = vld [vmem:[%s1194_s7 + $0xc8] sm:$0xff]   ;;  %v1048_v18 = vld [vmem:[%s1194_s7 + $0xd0] sm:$0xff]  }
  0x2a   : > { %v1041_v11 = vld [vmem:[%s1194_s7] sm:$0xff]   ;;  %970 = vmatprep.subr.bf16.mxu1 %v1040_v10  ;;  %v1045_v15 = vld [vmem:[%s1194_s7 + $0x8] sm:$0xff]   ;;  %v1049_v19 = vld [vmem:[%s1194_s7 + $0x10] sm:$0xff]  }
  0x2b   : > { %v1042_v12 = vld [vmem:[%s1194_s7 + $0x80] sm:$0xff]   ;;  %943 = vmatpush3.bf16.msra.mxu0 %v1041_v11  ;;  %v1046_v16 = vld [vmem:[%s1194_s7 + $0x88] sm:$0xff]   ;;  %v1050_v20 = vld [vmem:[%s1194_s7 + $0x90] sm:$0xff]  }
  0x2c   : > { %971 = vmatpush3.bf16.msra.mxu1 %v1042_v12  ;;  %944 = vmatprep.subr.bf16.mxu0 %v1043_v13  ;;  %v1051_v21 = vld [vmem:[%s1194_s7 + $0x58] sm:$0xff]   ;;  %v1055_v25 = vld [vmem:[%s1194_s7 + $0x60] sm:$0xff]   ;;  %v1059_v29 = vld [vmem:[%s1194_s7 + $0x68] sm:$0xff]  }
  0x2d   : > { %972 = vmatprep.subr.bf16.mxu1 %v1044_v14  ;;  %v1052_v22 = vld [vmem:[%s1194_s7 + $0xd8] sm:$0xff]   ;;  %v1056_v26 = vld [vmem:[%s1194_s7 + $0xe0] sm:$0xff]   ;;  %v1060_v30 = vld [vmem:[%s1194_s7 + $0xe8] sm:$0xff]  }
  0x2e   : > { %v1053_v23 = vld [vmem:[%s1194_s7 + $0x18] sm:$0xff]   ;;  %v1057_v27 = vld [vmem:[%s1194_s7 + $0x20] sm:$0xff]   ;;  %v1061_v31 = vld [vmem:[%s1194_s7 + $0x28] sm:$0xff]  }
  0x2f   : > { %945 = vmatpush3.bf16.msra.mxu0 %v1045_v15  ;;  %v1054_v24 = vld [vmem:[%s1194_s7 + $0x98] sm:$0xff]   ;;  %v1058_v28 = vld [vmem:[%s1194_s7 + $0xa0] sm:$0xff]   ;;  %v1062_v32 = vld [vmem:[%s1194_s7 + $0xa8] sm:$0xff]  }
  0x30   : > { %973 = vmatpush3.bf16.msra.mxu1 %v1046_v16  ;;  %946 = vmatprep.subr.bf16.mxu0 %v1047_v17  ;;  %v1063_v33 = vld [vmem:[%s1194_s7 + $0x70] sm:$0xff]   ;;  %v1067_v37 = vld [vmem:[%s1194_s7 + $0x78] sm:$0xff]   ;;  %v296_v58 = vld [vmem:[#allocation2] sm:$0xff] }
  0x31   : > { %974 = vmatprep.subr.bf16.mxu1 %v1048_v18  ;;  %v1064_v34 = vld [vmem:[%s1194_s7 + $0xf0] sm:$0xff]   ;;  %v1068_v38 = vld [vmem:[%s1194_s7 + $0xf8] sm:$0xff]   ;;  %v297_v63 = vld [vmem:[#allocation2 + $0x8] sm:$0xff] }
  0x32   : > { %v1065_v35 = vld [vmem:[%s1194_s7 + $0x30] sm:$0xff]   ;;  %v1069_v39 = vld [vmem:[%s1194_s7 + $0x38] sm:$0xff]  }
  0x33   : > { %947 = vmatpush3.bf16.msra.mxu0 %v1049_v19  ;;  %v1066_v36 = vld [vmem:[%s1194_s7 + $0xb0] sm:$0xff]   ;;  %v1070_v40 = vld [vmem:[%s1194_s7 + $0xb8] sm:$0xff]  }
  0x34   : > { %975 = vmatpush3.bf16.msra.mxu1 %v1050_v20  ;;  %948 = vmatprep.subr.bf16.mxu0 %v1051_v21  ;;  %v1071_v41 = vld [vmem:[%s1196_s8] ss:$16 sps:$4 sm:$0xff]   ;;  %v1073_v42 = vld [vmem:[%s1196_s8 + $0x4] ss:$16 sps:$4 sm:$0xff]   ;;  %v1074_v43 = vld [vmem:[%s1196_s8 + $0x8] ss:$16 sps:$4 sm:$0xff]  }
  0x35   : > { %976 = vmatprep.subr.bf16.mxu1 %v1052_v22  ;;  %v1076_v44 = vld [vmem:[%s1196_s8 + $0xc] ss:$16 sps:$4 sm:$0xff]   ;;  %636 = vmatprep.mubr.bf16.mxu0 %v1073_v42  ;;  %v1077_v45 = vld [vmem:[%s1196_s8 + $0x24] ss:$16 sps:$4 sm:$0xff]   ;;  %v1081_v47 = vld [vmem:[%s1196_s8 + $0x20] ss:$16 sps:$4 sm:$0xff]  }
  0x36   : > { %685 = vmatprep.mubr.bf16.mxu1 %v1076_v44  ;;  %v1079_v46 = vld [vmem:[%s1196_s8 + $0x2c] ss:$16 sps:$4 sm:$0xff]   ;;  %v1082_v48 = vld [vmem:[%s1196_s8 + $0x28] ss:$16 sps:$4 sm:$0xff]   ;;  %v298_v12 = vld [vmem:[#allocation2 + $0x10] sm:$0xff] }
  0x37   : > { %949 = vmatpush3.bf16.msra.mxu0 %v1053_v23  ;;  %v299_v17 = vld [vmem:[#allocation2 + $0x18] sm:$0xff]  ;;  %v917_v23 = vld [vmem:[%s1266_s2] ss:$0 sm:$0xff] (!%p916_p11) }
  0x38   : > { %977 = vmatpush3.bf16.msra.mxu1 %v1054_v24  ;;  %950 = vmatprep.subr.bf16.mxu0 %v1055_v25 }
  0x39   : > { %978 = vmatprep.subr.bf16.mxu1 %v1056_v26 }
  0x3b   : > { %951 = vmatpush3.bf16.msra.mxu0 %v1057_v27 }
  0x3c   : > { %979 = vmatpush3.bf16.msra.mxu1 %v1058_v28  ;;  %952 = vmatprep.subr.bf16.mxu0 %v1059_v29 }
  0x3d   : > { %980 = vmatprep.subr.bf16.mxu1 %v1060_v30 }
  0x3f   : > { %953 = vmatpush3.bf16.msra.mxu0 %v1061_v31 }
  0x40   : > { %981 = vmatpush3.bf16.msra.mxu1 %v1062_v32  ;;  %954 = vmatprep.subr.bf16.mxu0 %v1063_v33 }
  0x41   : > { %982 = vmatprep.subr.bf16.mxu1 %v1064_v34 }
  0x43   : > { %955 = vmatpush3.bf16.msra.mxu0 %v1065_v35 }
  0x44   : > { %983 = vmatpush3.bf16.msra.mxu1 %v1066_v36  ;;  %956 = vmatprep.subr.bf16.mxu0 %v1067_v37 }
  0x45   : > { %984 = vmatprep.subr.bf16.mxu1 %v1068_v38 }
  0x47   : > { %957 = vmatpush3.bf16.msra.mxu0 %v1069_v39 }
  0x48   : > { %985 = vmatpush3.bf16.msra.mxu1 %v1070_v40 }
  0x4a   : > { %637 = vmatmul.mubr.bf16.vlgmr.msra.gmra.mrb[0].mxu0 %v1071_v41 }
  0x4b   : > { %686 = vmatmul.mubr.bf16.vlgmr.msra.gmra.mrb[0].mxu1 %v1074_v43  ;;  %644 = vmatprep.mubr.bf16.mxu0 %v1077_v45 }
  0x4c   : > { %693 = vmatprep.mubr.bf16.mxu1 %v1079_v46 }
  0x52   : > { %645 = vmatmul.mubr.bf16.gmra.mrb[4].mxu0 %v1081_v47 }
  0x53   : > { %694 = vmatmul.mubr.bf16.gmra.mrb[4].mxu1 %v1082_v48 }
 0x11d   : > { %v958_v49 = vpop.f32.mrb[0].mxu0 }
 0x11e   : > { %v986_v50 = vpop.f32.mrb[0].mxu1  ;;  %v959_v51 = vpop.f32.mrb[1].mxu0 }
 0x11f   : > { %v960_v52 = vadd.f32 %v959_v51, %v958_v49  ;;  %v987_v53 = vpop.f32.mrb[1].mxu1  ;;  %v961_v54 = vpop.f32.mrb[2].mxu0 }
 0x120   : > { %v988_v55 = vadd.f32 %v987_v53, %v986_v50  ;;  %v989_v56 = vpop.f32.mrb[2].mxu1  ;;  %v962_v57 = vpop.f32.mrb[3].mxu0 }
 0x121   : > { %v963_v59 = vadd.f32 %v962_v57, %v961_v54  ;;  %v990_v60 = vpop.f32.mrb[3].mxu1 }
 0x122   : > { %v688_v61 = vadd.f32 %v988_v55, %v960_v52  ;;  %v991_v62 = vadd.f32 %v990_v60, %v989_v56 }
 0x124   : > { %v702_v0 = vadd.f32 %v688_v61, %v296_v58  ;;  %v691_v1 = vadd.f32 %v991_v62, %v963_v59 }
 0x125   : > { %v964_v2 = vpop.f32.mrb[4].mxu0 }
 0x126   : > { %706 = vst [vmem:[#allocation2] sm:$0xff] %v702_v0  ;;  %v703_v3 = vadd.f32 %v691_v1, %v297_v63  ;;  %v992_v4 = vpop.f32.mrb[4].mxu1  ;;  %v965_v5 = vpop.f32.mrb[5].mxu0 }
 0x127   : > { %v966_v6 = vadd.f32 %v965_v5, %v964_v2  ;;  %v993_v7 = vpop.f32.mrb[5].mxu1  ;;  %v967_v8 = vpop.f32.mrb[6].mxu0 }
 0x128   : > { %707 = vst [vmem:[#allocation2 + $0x8] sm:$0xff] %v703_v3  ;;  %v994_v9 = vadd.f32 %v993_v7, %v992_v4  ;;  %v995_v10 = vpop.f32.mrb[6].mxu1  ;;  %v968_v11 = vpop.f32.mrb[7].mxu0 }
 0x129   : > { %v969_v13 = vadd.f32 %v968_v11, %v967_v8  ;;  %v996_v14 = vpop.f32.mrb[7].mxu1 }
 0x12a   : > { %v696_v15 = vadd.f32 %v994_v9, %v966_v6  ;;  %v997_v16 = vadd.f32 %v996_v14, %v995_v10  ;;  %713 = sbr.rel (%p916_p11) target bundleno = 319 (0x13f), region = 63 }
 0x12c   : > { %v704_v18 = vadd.f32 %v696_v15, %v298_v12  ;;  %v699_v19 = vadd.f32 %v997_v16, %v969_v13 }
 0x12d   : > { %v714_v21 = vld [vmem:[#allocation2] sm:$0xff] (!%p916_p11) }
 0x12e   : > { %708 = vst [vmem:[#allocation2 + $0x10] sm:$0xff] %v704_v18  ;;  %v705_v20 = vadd.f32 %v699_v19, %v299_v17  ;;  %v725_v24 = vadd.f32 (!%p916_p11), %v917_v23, %v714_v21 }
 0x12f   : > { %v715_v22 = vld [vmem:[#allocation2 + $0x8] sm:$0xff] (!%p916_p11) }
 0x130   : > { %709 = vst [vmem:[#allocation2 + $0x18] sm:$0xff] %v705_v20  ;;  %v726_v25 = vadd.f32 (!%p916_p11), %v917_v23, %v715_v22  ;;  %v729_v30 = vmax.f32 (!%p916_p11), %v725_v24, 0.0 }
 0x132   : > { %v730_v31 = vmax.f32 %v726_v25, 0.0 }
 0x134   : > { %v934_v34 = vpack.c.bf16 %v730_v31, %v729_v30 }
 0x135   : > { %v716_v26 = vld [vmem:[#allocation2 + $0x10] sm:$0xff] }
 0x136   : > { %v727_v28 = vadd.f32 %v917_v23, %v716_v26  ;;  %935 = vst [vmem:[%s1267_s3] sm:$0xff] %v934_v34  }
 0x137   : > { %v717_v27 = vld [vmem:[#allocation2 + $0x18] sm:$0xff] }
 0x138   : > { %v728_v29 = vadd.f32 %v917_v23, %v717_v27  ;;  %v731_v32 = vmax.f32 %v727_v28, 0.0 }
 0x13a   : > { %v732_v33 = vmax.f32 %v728_v29, 0.0 }
 0x13c   : > { %v939_v35 = vpack.c.bf16 %v732_v33, %v731_v32 }
 0x13e   : > { %941 = vst [vmem:[%s1267_s3 + $0x8] sm:$0xff] %v939_v35  }
 0x13f PF: > { %s13_s16 = sadd.s32 1, %s1121_s16   ;;  %s1268_s12 = smov %s1109_s13 }
 0x140   : > { %p10_p12 = scmp.ge.s32.totalorder %s13_s16, 4   ;;  %s1269_s13 = smov %s1179_s20 }
 0x141   : > { %s1270_s14 = smov %s1117_s15  ;;  %s1271_s15 = smov %s1273_s17 }
 0x142   :  { %12 = sbr.rel (!%p10_p12) target bundleno = 3 (0x3), region = 104 }

// kernel: _forward_impl.15
= control target key start
LH: loop header
LB: loop body
LE: loop exit
PB: predicated region body
PF: predicated region fallthrough
CT: control target
= control target key end

     0   :  { %s1151_s12 = smov 0   ;;  %s1153_s13 = smov 0   ;;  %s1282_s0 = inlined_call_operand.vmem [shape: bf16[16,1152], index: 0, kind: input, shape index: {}]   ;;  %s1283_s1 = inlined_call_operand.vmem [shape: bf16[1152,256], index: 1, kind: input, shape index: {}]   ;;  %s1284_s2 = inlined_call_operand.vmem [shape: f32[1,256], index: 2, kind: input, shape index: {}]   ;;  %s1285_s3 = inlined_call_operand.vmem [shape: bf16[16,256], index: 3, kind: output, shape index: {}]  }
   0x1   :  { %s1155_s14 = smov 0   ;;  %s1157_s15 = smov 0  }
   0x2   :  { %s1159_s16 = smov 0  }
   0x3 LB: > { %s25_s17 = sadd.s32 1, %s1123_s15  ;;  %p48_p1 = scmp.ne.s32.totalorder %s1115_s13, %s1111_s12  ;;  %s1127_s16 = sphi %s1159_s16, %s13_s16   ;;  %s1123_s15 = sphi %s1157_s15, %s1289_s15   ;;  %s1119_s14 = sphi %s1155_s14, %s1288_s14   ;;  %s1115_s13 = sphi %s1153_s13, %s1287_s13   ;;  %s1111_s12 = sphi %s1151_s12, %s1286_s12  }
   0x4   : > { %p26_p0 = scmp.ge.s32.totalorder %s25_s17, 3  ;;  %p49_p2 = scmp.eq.s32.totalorder %s1127_s16, 0 }
   0x5   : > { %s41_s19 = sadd.s32 1, %s1115_s13  ;;  %p893_p5 = scmp.ge.s32.totalorder %s1127_s16, 3 }
   0x6   : > { %s1291_s17 = smov (%p26_p0, %s25_s17), 0  ;;  %p50_p3 = por %p49_p2, %p48_p1 }
   0x7   : > { %s37_s18 = ssub.s32 %s1123_s15, %s1291_s17  ;;  %164 = sbr.rel (%p893_p5) target bundleno = 21 (0x15), region = 20 }
   0x8   : > { %p39_p4 = scmp.eq.s32.totalorder %s37_s18, 0 }
   0xa   : > { %s1186_s20 = scalar_select %p39_p4, %s1115_s13, %s41_s19  }
   0xe   : > { %167 = sbr.rel (!%p50_p3) target bundleno = 21 (0x15), region = 24  ;;  %s169_s21 = sand.u32 (%p50_p3), 1, %s1115_s13  }
   0xf   : > { %s961_s22 = smul.u32 (%p50_p3), 12, %s1123_s15 }
  0x10   : > { %s969_s23 = smul.u32 (%p50_p3), 24, %s169_s21 }
  0x11   : > { %s177_s26 = scalar_lea.vmem (%p50_p3), %s1282_s0, %s961_s22 }
  0x12   : > { %v192_v0 = vld [vmem:[%s177_s26] sm:$0xff] (%p50_p3)  ;;  %v895_v2 = vld [vmem:[%s177_s26 + $0x8] sm:$0xf] (%p50_p3)  ;;  %s171_s27 = scalar_lea.vmem (%p50_p3), [#allocation3], %s969_s23  ;;  %v897_v3 = vld [vmem:[%s177_s26 + $0x2c] sm:$0xf] (%p50_p3) }
  0x13   : > { %v194_v1 = vld [vmem:[%s177_s26 + $0x24] sm:$0xff] (%p50_p3)  ;;  %193 = vst [vmem:[%s171_s27] sm:$0xff] (%p50_p3), %v192_v0  ;;  %896 = vst [vmem:[%s171_s27 + $0x8] sm:$0xf] (%p50_p3), %v895_v2 }
  0x14   : > { %195 = vst [vmem:[%s171_s27 + $0xc] sm:$0xff] (%p50_p3), %v194_v1  ;;  %898 = vst [vmem:[%s171_s27 + $0x14] sm:$0xf] (%p50_p3), %v897_v3 }
  0x15 PF: > { %p899_p6 = scmp.ge.s32.totalorder %s1127_s16, 1  ;;  %p226_p7 = scmp.lt.s32.totalorder %s1127_s16, 4 }
  0x17   : > { %p227_p8 = pnand %p899_p6, %p226_p7 }
  0x18   : > { %s233_s28 = sand.u32 (!%p227_p8), 1, %s1111_s12   ;;  %s277_s29 = smul.u32 (!%p227_p8), 48, %s1119_s14 }
  0x19   : > { %230 = sbr.rel (%p227_p8) target bundleno = 338 (0x152), region = 54  ;;  %p902_p10 = scmp.ne.s32.totalorder (!%p227_p8), %s1119_s14, 0 }
  0x1a   : > { %s970_s30 = smul.u32 (!%p227_p8), 24, %s233_s28  ;;  %p279_p9 = scmp.lt.s32.totalorder (!%p227_p8), %s277_s29, 143 }
  0x1c   : > { %s1203_s8 = scalar_lea.vmem (!%p227_p8), [#allocation3], %s970_s30 }
  0x20   : > { %s1293_s29 = smov (!%p279_p9, %s277_s29), 143  ;;  %310 = sbr.rel (%p902_p10) target bundleno = 39 (0x27), region = 62 }
  0x21   : > { %s962_s4 = sshll.u32 %s1293_s29, 3  ;;  %v1129_v4 = vmov (!%p902_p10), 0.0  }
  0x22   : > { %s1201_s7 = scalar_lea.vmem %s1283_s1, %s962_s4  ;;  %311 = vst [vmem:[#allocation2] sm:$0xff] (!%p902_p10), %v1129_v4  ;;  %312 = vst [vmem:[#allocation2 + $0x8] sm:$0xff] (!%p902_p10), %v1129_v4 }
  0x23   : > { %313 = vst [vmem:[#allocation2 + $0x10] sm:$0xff] (!%p902_p10), %v1129_v4  ;;  %314 = vst [vmem:[#allocation2 + $0x18] sm:$0xff] (!%p902_p10), %v1129_v4 }
  0x27 PF: > { %v1013_v5 = vld [vmem:[%s1201_s7 + $0x4] ss:$8 sps:$4 sm:$0xff]   ;;  %v1015_v6 = vld [vmem:[%s1201_s7] ss:$8 sps:$4 sm:$0xff]   ;;  %v1130_v7 = vmov 0   ;;  %p954_p11 = scmp.ne.s32.totalorder %s1119_s14, 2 }
  0x28   : > { %702 = vmatprep.mubr.bf16.mxu0 %v1130_v7  ;;  %627 = vmatprep.subr.bf16.mxu1 %v1013_v5  ;;  %v1016_v8 = vld [vmem:[%s1201_s7 + $0x14] ss:$8 sps:$4 sm:$0xff]   ;;  %v1018_v9 = vld [vmem:[%s1201_s7 + $0x10] ss:$8 sps:$4 sm:$0xff]   ;;  %v1019_v10 = vld [vmem:[%s1201_s7 + $0x24] ss:$8 sps:$4 sm:$0xff]  }
  0x29   : > { %628 = vmatpush1.bf16.msra.mxu1 %v1015_v6  ;;  %v1021_v11 = vld [vmem:[%s1201_s7 + $0x20] ss:$8 sps:$4 sm:$0xff]   ;;  %v1022_v12 = vld [vmem:[%s1201_s7 + $0x34] ss:$8 sps:$4 sm:$0xff]   ;;  %v1024_v13 = vld [vmem:[%s1201_s7 + $0x30] ss:$8 sps:$4 sm:$0xff]  }
  0x2a   : > { %629 = vmatprep.subr.bf16.mxu1 %v1016_v8  ;;  %v1037_v14 = vld [vmem:[%s1201_s7 + $0x104] ss:$8 sps:$4 sm:$0xff]   ;;  %v1039_v15 = vld [vmem:[%s1201_s7 + $0x100] ss:$8 sps:$4 sm:$0xff]   ;;  %v1043_v17 = vld [vmem:[%s1201_s7 + $0x114] ss:$8 sps:$4 sm:$0xff]  }
  0x2b   : > { %v1025_v16 = vld [vmem:[%s1201_s7 + $0x44] ss:$8 sps:$4 sm:$0xff]   ;;  %670 = vmatprep.subr.bf16.mxu0 %v1037_v14  ;;  %v1045_v18 = vld [vmem:[%s1201_s7 + $0x110] ss:$8 sps:$4 sm:$0xff]   ;;  %v1027_v19 = vld [vmem:[%s1201_s7 + $0x40] ss:$8 sps:$4 sm:$0xff]  }
  0x2c   : > { %671 = vmatpush1.bf16.msra.mxu0 %v1039_v15  ;;  %v1028_v20 = vld [vmem:[%s1201_s7 + $0x54] ss:$8 sps:$4 sm:$0xff]   ;;  %v1049_v21 = vld [vmem:[%s1201_s7 + $0x124] ss:$8 sps:$4 sm:$0xff]   ;;  %v1051_v22 = vld [vmem:[%s1201_s7 + $0x120] ss:$8 sps:$4 sm:$0xff]  }
  0x2d   : > { %630 = vmatpush1.bf16.msra.mxu1 %v1018_v9  ;;  %672 = vmatprep.subr.bf16.mxu0 %v1043_v17  ;;  %v1030_v23 = vld [vmem:[%s1201_s7 + $0x50] ss:$8 sps:$4 sm:$0xff]   ;;  %v1055_v24 = vld [vmem:[%s1201_s7 + $0x134] ss:$8 sps:$4 sm:$0xff]   ;;  %v1031_v25 = vld [vmem:[%s1201_s7 + $0x64] ss:$8 sps:$4 sm:$0xff]  }
  0x2e   : > { %631 = vmatprep.subr.bf16.mxu1 %v1019_v10  ;;  %v1057_v26 = vld [vmem:[%s1201_s7 + $0x130] ss:$8 sps:$4 sm:$0xff]   ;;  %v1033_v27 = vld [vmem:[%s1201_s7 + $0x60] ss:$8 sps:$4 sm:$0xff]   ;;  %v1061_v28 = vld [vmem:[%s1201_s7 + $0x144] ss:$8 sps:$4 sm:$0xff]  }
  0x2f   : > { %v1034_v29 = vld [vmem:[%s1201_s7 + $0x74] ss:$8 sps:$4 sm:$0xff]   ;;  %v1063_v30 = vld [vmem:[%s1201_s7 + $0x140] ss:$8 sps:$4 sm:$0xff]   ;;  %v1036_v31 = vld [vmem:[%s1201_s7 + $0x70] ss:$8 sps:$4 sm:$0xff]  }
  0x30   : > { %673 = vmatpush1.bf16.msra.mxu0 %v1045_v18  ;;  %v1067_v32 = vld [vmem:[%s1201_s7 + $0x154] ss:$8 sps:$4 sm:$0xff]   ;;  %v1040_v33 = vld [vmem:[%s1201_s7 + $0x84] ss:$8 sps:$4 sm:$0xff]   ;;  %v1069_v34 = vld [vmem:[%s1201_s7 + $0x150] ss:$8 sps:$4 sm:$0xff]  }
  0x31   : > { %632 = vmatpush1.bf16.msra.mxu1 %v1021_v11  ;;  %674 = vmatprep.subr.bf16.mxu0 %v1049_v21  ;;  %v1042_v35 = vld [vmem:[%s1201_s7 + $0x80] ss:$8 sps:$4 sm:$0xff]   ;;  %v1073_v36 = vld [vmem:[%s1201_s7 + $0x164] ss:$8 sps:$4 sm:$0xff]   ;;  %v1046_v37 = vld [vmem:[%s1201_s7 + $0x94] ss:$8 sps:$4 sm:$0xff]  }
  0x32   : > { %633 = vmatprep.subr.bf16.mxu1 %v1022_v12  ;;  %v1075_v38 = vld [vmem:[%s1201_s7 + $0x160] ss:$8 sps:$4 sm:$0xff]   ;;  %v1048_v40 = vld [vmem:[%s1201_s7 + $0x90] ss:$8 sps:$4 sm:$0xff]   ;;  %v1079_v41 = vld [vmem:[%s1201_s7 + $0x174] ss:$8 sps:$4 sm:$0xff]  }
  0x33   : > { %v1088_v39 = vld [vmem:[%s1203_s8 + $0x4] ss:$12 sps:$4 sm:$0xff]   ;;  %v1085_v46 = vld [vmem:[%s1203_s8 + $0x8] ss:$12 sps:$4 sm:$0xff]   ;;  %v1086_v56 = vld [vmem:[%s1203_s8] ss:$12 sps:$4 sm:$0xff]  }
  0x34   : > { %675 = vmatpush1.bf16.msra.mxu0 %v1051_v22  ;;  %v1052_v42 = vld [vmem:[%s1201_s7 + $0xa4] ss:$8 sps:$4 sm:$0xff]   ;;  %659 = vmatprep.mubr.bf16.mxu1 %v1088_v39  ;;  %v1081_v43 = vld [vmem:[%s1201_s7 + $0x170] ss:$8 sps:$4 sm:$0xff]   ;;  %v1054_v44 = vld [vmem:[%s1201_s7 + $0xa0] ss:$8 sps:$4 sm:$0xff]  }
  0x35   : > { %634 = vmatpush1.bf16.msra.mxu1 %v1024_v13  ;;  %676 = vmatprep.subr.bf16.mxu0 %v1055_v24  ;;  %v1058_v45 = vld [vmem:[%s1201_s7 + $0xb4] ss:$8 sps:$4 sm:$0xff]   ;;  %v1060_v47 = vld [vmem:[%s1201_s7 + $0xb0] ss:$8 sps:$4 sm:$0xff]   ;;  %v1064_v48 = vld [vmem:[%s1201_s7 + $0xc4] ss:$8 sps:$4 sm:$0xff]   ;;  %v731_v13 = vlaneseq (!%p954_p11) }
  0x36   : > { %635 = vmatprep.subr.bf16.mxu1 %v1025_v16  ;;  %v1066_v49 = vld [vmem:[%s1201_s7 + $0xc0] ss:$8 sps:$4 sm:$0xff]   ;;  %v1070_v50 = vld [vmem:[%s1201_s7 + $0xd4] ss:$8 sps:$4 sm:$0xff]   ;;  %v1072_v51 = vld [vmem:[%s1201_s7 + $0xd0] ss:$8 sps:$4 sm:$0xff]  }
  0x37   : > { %v1076_v52 = vld [vmem:[%s1201_s7 + $0xe4] ss:$8 sps:$4 sm:$0xff]   ;;  %v1078_v53 = vld [vmem:[%s1201_s7 + $0xe0] ss:$8 sps:$4 sm:$0xff]   ;;  %v1082_v54 = vld [vmem:[%s1201_s7 + $0xf4] ss:$8 sps:$4 sm:$0xff]  }
  0x38   : > { %677 = vmatpush1.bf16.msra.mxu0 %v1057_v26  ;;  %v1084_v55 = vld [vmem:[%s1201_s7 + $0xf0] ss:$8 sps:$4 sm:$0xff]   ;;  %v315_v61 = vld [vmem:[#allocation2] sm:$0xff]  ;;  %v316_v0 = vld [vmem:[#allocation2 + $0x8] sm:$0xff]  ;;  %v732_v14 = vshrl.u32 (!%p954_p11), %v731_v13, 7 }
  0x39   : > { %636 = vmatpush1.bf16.msra.mxu1 %v1027_v19  ;;  %678 = vmatprep.subr.bf16.mxu0 %v1061_v28  ;;  %v317_v3 = vld [vmem:[#allocation2 + $0x10] sm:$0xff]  ;;  %v318_v7 = vld [vmem:[#allocation2 + $0x18] sm:$0xff]  ;;  %v729_v15 = vld [vmem:[%s1284_s2] sm:$0x3] (!%p954_p11) }
  0x3a   : > { %637 = vmatprep.subr.bf16.mxu1 %v1028_v20  ;;  %v733_v17 = vsub.s32 (!%p954_p11), 0, %v732_v14  ;;  %v737_v18 = vsub.s32 (!%p954_p11), 1, %v732_v14 }
  0x3c   : > { %679 = vmatpush1.bf16.msra.mxu0 %v1063_v30  ;;  %v734_v22 = vrot.slane (!%p954_p11), %v729_v15, %v733_v17 }
  0x3d   : > { %638 = vmatpush1.bf16.msra.mxu1 %v1030_v23  ;;  %680 = vmatprep.subr.bf16.mxu0 %v1067_v32  ;;  %v738_v23 = vrot.slane (!%p954_p11), %v729_v15, %v737_v18 }
  0x3e   : > { %639 = vmatprep.subr.bf16.mxu1 %v1031_v25 }
  0x40   : > { %681 = vmatpush1.bf16.msra.mxu0 %v1069_v34 }
  0x41   : > { %640 = vmatpush1.bf16.msra.mxu1 %v1033_v27  ;;  %682 = vmatprep.subr.bf16.mxu0 %v1073_v36 }
  0x42   : > { %641 = vmatprep.subr.bf16.mxu1 %v1034_v29 }
  0x44   : > { %683 = vmatpush1.bf16.msra.mxu0 %v1075_v38 }
  0x45   : > { %642 = vmatpush1.bf16.msra.mxu1 %v1036_v31  ;;  %684 = vmatprep.subr.bf16.mxu0 %v1079_v41 }
  0x46   : > { %643 = vmatprep.subr.bf16.mxu1 %v1040_v33 }
  0x48   : > { %685 = vmatpush1.bf16.msra.mxu0 %v1081_v43 }
  0x49   : > { %644 = vmatpush1.bf16.msra.mxu1 %v1042_v35 }
  0x4a   : > { %645 = vmatprep.subr.bf16.mxu1 %v1046_v37 }
  0x4b   : > { %703 = vmatmul.mubr.bf16.vlgmr.msra.gmra.mrb[0].mxu0 %v1085_v46 }
  0x4d   : > { %646 = vmatpush1.bf16.msra.mxu1 %v1048_v40 }
  0x4e   : > { %647 = vmatprep.subr.bf16.mxu1 %v1052_v42 }
  0x51   : > { %648 = vmatpush1.bf16.msra.mxu1 %v1054_v44 }
  0x52   : > { %649 = vmatprep.subr.bf16.mxu1 %v1058_v45 }
  0x55   : > { %650 = vmatpush1.bf16.msra.mxu1 %v1060_v47 }
  0x56   : > { %651 = vmatprep.subr.bf16.mxu1 %v1064_v48 }
  0x59   : > { %652 = vmatpush1.bf16.msra.mxu1 %v1066_v49 }
  0x5a   : > { %653 = vmatprep.subr.bf16.mxu1 %v1070_v50 }
  0x5d   : > { %654 = vmatpush1.bf16.msra.mxu1 %v1072_v51 }
  0x5e   : > { %655 = vmatprep.subr.bf16.mxu1 %v1076_v52 }
  0x61   : > { %656 = vmatpush1.bf16.msra.mxu1 %v1078_v53 }
  0x62   : > { %657 = vmatprep.subr.bf16.mxu1 %v1082_v54 }
  0x65   : > { %658 = vmatpush1.bf16.msra.mxu1 %v1084_v55 }
  0x68   : > { %660 = vmatmul.mubr.bf16.vlgmr.msra.gmra.mrb[0].mxu1 %v1086_v56 }
 0x11e   : > { %v704_v57 = vpop.f32.mrb[0].mxu0 }
 0x11f   : > { %v706_v58 = vpop.f32.mrb[1].mxu0 }
 0x120   : > { %v708_v59 = vpop.f32.mrb[2].mxu0 }
 0x121   : > { %v710_v60 = vpop.f32.mrb[3].mxu0 }
 0x13b   : > { %v661_v62 = vpop.f32.mrb[0].mxu1 }
 0x13c   : > { %v705_v63 = vadd.f32 %v704_v57, %v661_v62  ;;  %v663_v1 = vpop.f32.mrb[1].mxu1 }
 0x13d   : > { %v707_v2 = vadd.f32 %v706_v58, %v663_v1  ;;  %v665_v4 = vpop.f32.mrb[2].mxu1  ;;  %724 = sbr.rel (%p954_p11) target bundleno = 338 (0x152), region = 66 }
 0x13e   : > { %v713_v5 = vadd.f32 %v705_v63, %v315_v61  ;;  %v709_v6 = vadd.f32 %v708_v59, %v665_v4  ;;  %v667_v8 = vpop.f32.mrb[3].mxu1 }
 0x13f   : > { %v714_v9 = vadd.f32 %v707_v2, %v316_v0  ;;  %v711_v10 = vadd.f32 %v710_v60, %v667_v8 }
 0x140   : > { %717 = vst [vmem:[#allocation2] sm:$0xff] %v713_v5  ;;  %v715_v11 = vadd.f32 %v709_v6, %v317_v3 }
 0x141   : > { %718 = vst [vmem:[#allocation2 + $0x8] sm:$0xff] %v714_v9  ;;  %v716_v12 = vadd.f32 %v711_v10, %v318_v7 }
 0x142   : > { %719 = vst [vmem:[#allocation2 + $0x10] sm:$0xff] %v715_v11 }
 0x143   : > { %720 = vst [vmem:[#allocation2 + $0x18] sm:$0xff] %v716_v12 }
 0x147   : > { %v725_v16 = vld [vmem:[#allocation2] sm:$0xff] }
 0x148   : > { %v726_v19 = vld [vmem:[#allocation2 + $0x8] sm:$0xff]  ;;  %v741_v24 = vadd.f32 %v734_v22, %v725_v16 }
 0x149   : > { %v727_v20 = vld [vmem:[#allocation2 + $0x10] sm:$0xff]  ;;  %v742_v25 = vadd.f32 %v738_v23, %v726_v19 }
 0x14a   : > { %v728_v21 = vld [vmem:[#allocation2 + $0x18] sm:$0xff]  ;;  %v743_v26 = vadd.f32 %v734_v22, %v727_v20  ;;  %v745_v28 = vmax.f32 %v741_v24, 0.0 }
 0x14b   : > { %v744_v27 = vadd.f32 %v738_v23, %v728_v21  ;;  %v746_v29 = vmax.f32 %v742_v25, 0.0 }
 0x14c   : > { %v747_v30 = vmax.f32 %v743_v26, 0.0 }
 0x14d   : > { %v748_v31 = vmax.f32 %v744_v27, 0.0  ;;  %v963_v32 = vpack.c.bf16 %v746_v29, %v745_v28 }
 0x14f   : > { %v964_v33 = vpack.c.bf16 %v748_v31, %v747_v30  ;;  %761 = vst [vmem:[%s1285_s3] sm:$0xff] %v963_v32 }
 0x151   : > { %762 = vst [vmem:[%s1285_s3 + $0x8] sm:$0xff] %v964_v33 }
 0x152 PF: > { %s13_s16 = sadd.s32 1, %s1127_s16   ;;  %s1286_s12 = smov %s1115_s13 }
 0x153   : > { %p10_p12 = scmp.ge.s32.totalorder %s13_s16, 5   ;;  %s1287_s13 = smov %s1186_s20 }
 0x154   : > { %s1288_s14 = smov %s1123_s15  ;;  %s1289_s15 = smov %s1291_s17 }
 0x155   :  { %12 = sbr.rel (!%p10_p12) target bundleno = 3 (0x3), region = 113 }

// kernel: _forward_impl.19
= control target key start
LH: loop header
LB: loop body
LE: loop exit
PB: predicated region body
PF: predicated region fallthrough
CT: control target
= control target key end

     0   :  { %s385_s1 = inlined_call_operand.vmem [shape: bf16[256,128], index: 1, kind: input, shape index: {}]   ;;  %s386_s0 = inlined_call_operand.vmem [shape: bf16[16,256], index: 0, kind: input, shape index: {}]   ;;  %s387_s2 = inlined_call_operand.vmem [shape: f32[1,128], index: 2, kind: input, shape index: {}]   ;;  %s388_s3 = inlined_call_operand.vmem [shape: bf16[16,128], index: 3, kind: output, shape index: {}]  }
   0x1   :  { %v286_v0 = vld [vmem:[%s385_s1 + $0x40] sm:$0xff]   ;;  %v288_v2 = vld [vmem:[%s385_s1 + $0x48] sm:$0xff]   ;;  %v290_v4 = vld [vmem:[%s385_s1 + $0x50] sm:$0xff]  }
   0x2   :  { %v287_v1 = vld [vmem:[%s385_s1] sm:$0xff]   ;;  %264 = vmatprep.subr.bf16.mxu0 %v286_v0  ;;  %v289_v3 = vld [vmem:[%s385_s1 + $0x8] sm:$0xff]   ;;  %v291_v5 = vld [vmem:[%s385_s1 + $0x10] sm:$0xff]  }
   0x3   :  { %265 = vmatpush3.bf16.msra.mxu0 %v287_v1  ;;  %v292_v6 = vld [vmem:[%s385_s1 + $0x58] sm:$0xff]   ;;  %v294_v8 = vld [vmem:[%s385_s1 + $0x60] sm:$0xff]   ;;  %v296_v10 = vld [vmem:[%s385_s1 + $0x68] sm:$0xff]  }
   0x4   :  { %266 = vmatprep.subr.bf16.mxu0 %v288_v2  ;;  %v293_v7 = vld [vmem:[%s385_s1 + $0x18] sm:$0xff]   ;;  %v295_v9 = vld [vmem:[%s385_s1 + $0x20] sm:$0xff]   ;;  %v297_v12 = vld [vmem:[%s385_s1 + $0x28] sm:$0xff]  }
   0x5   :  { %v304_v11 = vld [vmem:[%s386_s0 + $0x4] ss:$8 sps:$4 sm:$0xff]   ;;  %v298_v13 = vld [vmem:[%s385_s1 + $0x70] sm:$0xff]   ;;  %v300_v15 = vld [vmem:[%s385_s1 + $0x78] sm:$0xff]  }
   0x6   :  { %195 = vmatprep.mubr.bf16.mxu0 %v304_v11  ;;  %v299_v14 = vld [vmem:[%s385_s1 + $0x30] sm:$0xff]   ;;  %v301_v16 = vld [vmem:[%s385_s1 + $0x38] sm:$0xff]   ;;  %v302_v17 = vld [vmem:[%s386_s0] ss:$8 sps:$4 sm:$0xff]  }
   0x7   :  { %267 = vmatpush3.bf16.msra.mxu0 %v289_v3  ;;  %v254_v22 = vld [vmem:[%s387_s2] ss:$0 sm:$0xff] }
   0x8   :  { %268 = vmatprep.subr.bf16.mxu0 %v290_v4 }
   0xb   :  { %269 = vmatpush3.bf16.msra.mxu0 %v291_v5 }
   0xc   :  { %270 = vmatprep.subr.bf16.mxu0 %v292_v6 }
   0xf   :  { %271 = vmatpush3.bf16.msra.mxu0 %v293_v7 }
  0x10   :  { %272 = vmatprep.subr.bf16.mxu0 %v294_v8 }
  0x13   :  { %273 = vmatpush3.bf16.msra.mxu0 %v295_v9 }
  0x14   :  { %274 = vmatprep.subr.bf16.mxu0 %v296_v10 }
  0x17   :  { %275 = vmatpush3.bf16.msra.mxu0 %v297_v12 }
  0x18   :  { %276 = vmatprep.subr.bf16.mxu0 %v298_v13 }
  0x1b   :  { %277 = vmatpush3.bf16.msra.mxu0 %v299_v14 }
  0x1c   :  { %278 = vmatprep.subr.bf16.mxu0 %v300_v15 }
  0x1f   :  { %279 = vmatpush3.bf16.msra.mxu0 %v301_v16 }
  0x22   :  { %196 = vmatmul.mubr.bf16.vlgmr.msra.gmra.mrb[0].mxu0 %v302_v17 }
  0xf5   :  { %v280_v18 = vpop.f32.mrb[0].mxu0 }
  0xf6   :  { %v281_v19 = vpop.f32.mrb[1].mxu0 }
  0xf7   :  { %v282_v20 = vadd.f32 %v281_v19, %v280_v18  ;;  %v283_v21 = vpop.f32.mrb[2].mxu0 }
  0xf8   :  { %v284_v23 = vpop.f32.mrb[3].mxu0 }
  0xf9   :  { %v285_v24 = vadd.f32 %v284_v23, %v283_v21  ;;  %v220_v25 = vadd.f32 %v282_v20, %v254_v22 }
  0xfb   :  { %v221_v26 = vadd.f32 %v285_v24, %v254_v22 }
  0xfd   :  { %v262_v27 = vpack.c.bf16 %v221_v26, %v220_v25 }
  0xff   :  { %263 = vst [vmem:[%s388_s3] sm:$0xff] %v262_v27  }

// kernel: _forward_impl.18
= control target key start
LH: loop header
LB: loop body
LE: loop exit
PB: predicated region body
PF: predicated region fallthrough
CT: control target
= control target key end

     0   :  { %s335_s1 = inlined_call_operand.vmem [shape: bf16[128,128], index: 1, kind: input, shape index: {}]   ;;  %s336_s0 = inlined_call_operand.vmem [shape: bf16[32,128], index: 0, kind: input, shape index: {}]   ;;  %s337_s2 = inlined_call_operand.vmem [shape: f32[1,128], index: 2, kind: input, shape index: {}]   ;;  %s338_s3 = inlined_call_operand.vmem [shape: bf16[32,128], index: 3, kind: output, shape index: {}]  }
   0x1   :  { %v266_v0 = vld [vmem:[%s335_s1] sm:$0xff]   ;;  %v267_v1 = vld [vmem:[%s335_s1 + $0x8] sm:$0xff]   ;;  %v268_v2 = vld [vmem:[%s335_s1 + $0x10] sm:$0xff]  }
   0x2   :  { %246 = vmatprep.subr.bf16.mxu0 %v266_v0  ;;  %v269_v3 = vld [vmem:[%s335_s1 + $0x18] sm:$0xff]   ;;  %v274_v4 = vld [vmem:[%s336_s0] sm:$0xff]   ;;  %v271_v6 = vld [vmem:[%s335_s1 + $0x28] sm:$0xff]  }
   0x3   :  { %247 = vmatpush3.bf16.msra.mxu0 %v266_v0  ;;  %262 = vmatprep.mubr.bf16.mxu0 %v274_v4  ;;  %v270_v5 = vld [vmem:[%s335_s1 + $0x20] sm:$0xff]   ;;  %v272_v7 = vld [vmem:[%s335_s1 + $0x30] sm:$0xff]   ;;  %v273_v8 = vld [vmem:[%s335_s1 + $0x38] sm:$0xff]  }
   0x4   :  { %248 = vmatprep.subr.bf16.mxu0 %v267_v1  ;;  %v275_v9 = vld [vmem:[%s336_s0 + $0x8] sm:$0xff]   ;;  %v216_v11 = vld [vmem:[%s337_s2] ss:$0 sm:$0xff] }
   0x7   :  { %249 = vmatpush3.bf16.msra.mxu0 %v267_v1 }
   0x8   :  { %250 = vmatprep.subr.bf16.mxu0 %v268_v2 }
   0xb   :  { %251 = vmatpush3.bf16.msra.mxu0 %v268_v2 }
   0xc   :  { %252 = vmatprep.subr.bf16.mxu0 %v269_v3 }
   0xf   :  { %253 = vmatpush3.bf16.msra.mxu0 %v269_v3 }
  0x10   :  { %254 = vmatprep.subr.bf16.mxu0 %v270_v5 }
  0x13   :  { %255 = vmatpush3.bf16.msra.mxu0 %v270_v5 }
  0x14   :  { %256 = vmatprep.subr.bf16.mxu0 %v271_v6 }
  0x17   :  { %257 = vmatpush3.bf16.msra.mxu0 %v271_v6 }
  0x18   :  { %258 = vmatprep.subr.bf16.mxu0 %v272_v7 }
  0x1b   :  { %259 = vmatpush3.bf16.msra.mxu0 %v272_v7 }
  0x1c   :  { %260 = vmatprep.subr.bf16.mxu0 %v273_v8 }
  0x1f   :  { %261 = vmatpush3.bf16.msra.mxu0 %v273_v8 }
  0x22   :  { %263 = vmatmul.mubr.bf16.vlgmr.msra.gmra.mrb[0].mxu0 %v275_v9 }
  0xf5   :  { %v264_v10 = vpop.f32.mrb[0].mxu0 }
  0xf6   :  { %v141_v12 = vpop.f32.mrb[1].mxu0  ;;  %v180_v14 = vadd.f32 %v264_v10, %v216_v11 }
  0xf7   :  { %v265_v13 = vpop.f32.mrb[2].mxu0  ;;  %v178_v17 = vadd.f32 %v216_v11, %v141_v12 }
  0xf8   :  { %v181_v15 = vadd.f32 %v265_v13, %v216_v11  ;;  %v144_v16 = vpop.f32.mrb[3].mxu0 }
  0xf9   :  { %v179_v18 = vadd.f32 %v216_v11, %v144_v16 }
  0xfa   :  { %v233_v19 = vpack.c.bf16 %v181_v15, %v180_v14 }
  0xfb   :  { %v228_v20 = vpack.c.bf16 %v179_v18, %v178_v17 }
  0xfc   :  { %235 = vst [vmem:[%s338_s3 + $0x8] sm:$0xff] %v233_v19  }
  0xfd   :  { %229 = vst [vmem:[%s338_s3] sm:$0xff] %v228_v20  }

// kernel: _forward_impl.17
= control target key start
LH: loop header
LB: loop body
LE: loop exit
PB: predicated region body
PF: predicated region fallthrough
CT: control target
= control target key end

     0   :  { %s705_s1 = inlined_call_operand.vmem [shape: bf16[128,128], index: 1, kind: input, shape index: {}]   ;;  %s706_s0 = inlined_call_operand.vmem [shape: bf16[128,128], index: 0, kind: input, shape index: {}]   ;;  %s707_s2 = inlined_call_operand.vmem [shape: f32[1,128], index: 2, kind: input, shape index: {}]   ;;  %s708_s3 = inlined_call_operand.vmem [shape: bf16[128,128], index: 3, kind: output, shape index: {}]  }
   0x1   :  { %v594_v0 = vld [vmem:[%s705_s1] sm:$0xff]   ;;  %v595_v1 = vld [vmem:[%s705_s1 + $0x8] sm:$0xff]   ;;  %v596_v2 = vld [vmem:[%s705_s1 + $0x10] sm:$0xff]  }
   0x2   :  { %546 = vmatprep.subr.bf16.mxu0 %v594_v0  ;;  %578 = vmatprep.subr.bf16.mxu1 %v594_v0  ;;  %v597_v3 = vld [vmem:[%s705_s1 + $0x18] sm:$0xff]   ;;  %v602_v4 = vld [vmem:[%s706_s0] sm:$0xff]   ;;  %v599_v7 = vld [vmem:[%s705_s1 + $0x28] sm:$0xff]  }
   0x3   :  { %547 = vmatpush3.bf16.msra.mxu0 %v594_v0  ;;  %586 = vmatpush3.bf16.msra.mxu1 %v594_v0  ;;  %v603_v5 = vld [vmem:[%s706_s0 + $0x20] sm:$0xff]   ;;  %v600_v8 = vld [vmem:[%s705_s1 + $0x30] sm:$0xff]   ;;  %v601_v9 = vld [vmem:[%s705_s1 + $0x38] sm:$0xff]  }
   0x4   :  { %548 = vmatprep.subr.bf16.mxu0 %v595_v1  ;;  %579 = vmatprep.subr.bf16.mxu1 %v595_v1  ;;  %v598_v6 = vld [vmem:[%s705_s1 + $0x20] sm:$0xff]   ;;  %v604_v10 = vld [vmem:[%s706_s0 + $0x8] sm:$0xff]   ;;  %v606_v12 = vld [vmem:[%s706_s0 + $0x10] sm:$0xff]  }
   0x5   :  { %562 = vmatprep.mubr.bf16.mxu0 %v602_v4  ;;  %570 = vmatprep.mubr.bf16.mxu1 %v603_v5  ;;  %v605_v11 = vld [vmem:[%s706_s0 + $0x28] sm:$0xff]   ;;  %v607_v13 = vld [vmem:[%s706_s0 + $0x30] sm:$0xff]   ;;  %v608_v14 = vld [vmem:[%s706_s0 + $0x18] sm:$0xff]  }
   0x6   :  { %v609_v15 = vld [vmem:[%s706_s0 + $0x38] sm:$0xff]   ;;  %v450_v17 = vld [vmem:[%s707_s2] ss:$0 sm:$0xff] }
   0x7   :  { %549 = vmatpush3.bf16.msra.mxu0 %v595_v1  ;;  %587 = vmatpush3.bf16.msra.mxu1 %v595_v1 }
   0x8   :  { %550 = vmatprep.subr.bf16.mxu0 %v596_v2  ;;  %580 = vmatprep.subr.bf16.mxu1 %v596_v2 }
   0xb   :  { %551 = vmatpush3.bf16.msra.mxu0 %v596_v2  ;;  %588 = vmatpush3.bf16.msra.mxu1 %v596_v2 }
   0xc   :  { %552 = vmatprep.subr.bf16.mxu0 %v597_v3  ;;  %581 = vmatprep.subr.bf16.mxu1 %v597_v3 }
   0xf   :  { %553 = vmatpush3.bf16.msra.mxu0 %v597_v3  ;;  %589 = vmatpush3.bf16.msra.mxu1 %v597_v3 }
  0x10   :  { %554 = vmatprep.subr.bf16.mxu0 %v598_v6  ;;  %582 = vmatprep.subr.bf16.mxu1 %v598_v6 }
  0x13   :  { %555 = vmatpush3.bf16.msra.mxu0 %v598_v6  ;;  %590 = vmatpush3.bf16.msra.mxu1 %v598_v6 }
  0x14   :  { %556 = vmatprep.subr.bf16.mxu0 %v599_v7  ;;  %583 = vmatprep.subr.bf16.mxu1 %v599_v7 }
  0x17   :  { %557 = vmatpush3.bf16.msra.mxu0 %v599_v7  ;;  %591 = vmatpush3.bf16.msra.mxu1 %v599_v7 }
  0x18   :  { %558 = vmatprep.subr.bf16.mxu0 %v600_v8  ;;  %584 = vmatprep.subr.bf16.mxu1 %v600_v8 }
  0x1b   :  { %559 = vmatpush3.bf16.msra.mxu0 %v600_v8  ;;  %592 = vmatpush3.bf16.msra.mxu1 %v600_v8 }
  0x1c   :  { %560 = vmatprep.subr.bf16.mxu0 %v601_v9  ;;  %585 = vmatprep.subr.bf16.mxu1 %v601_v9 }
  0x1f   :  { %561 = vmatpush3.bf16.msra.mxu0 %v601_v9  ;;  %593 = vmatpush3.bf16.msra.mxu1 %v601_v9 }
  0x22   :  { %563 = vmatmul.mubr.bf16.vlgmr.msra.gmra.mrb[0].mxu0 %v604_v10  ;;  %571 = vmatmul.mubr.bf16.vlgmr.msra.gmra.mrb[0].mxu1 %v605_v11 }
  0x23   :  { %566 = vmatprep.mubr.bf16.mxu0 %v606_v12  ;;  %574 = vmatprep.mubr.bf16.mxu1 %v607_v13 }
  0x2a   :  { %567 = vmatmul.mubr.bf16.gmra.mrb[4].mxu0 %v608_v14  ;;  %575 = vmatmul.mubr.bf16.gmra.mrb[4].mxu1 %v609_v15 }
  0xf5   :  { %v564_v16 = vpop.f32.mrb[0].mxu0  ;;  %v572_v18 = vpop.f32.mrb[0].mxu1 }
  0xf6   :  { %v213_v19 = vpop.f32.mrb[1].mxu0  ;;  %v245_v20 = vpop.f32.mrb[1].mxu1  ;;  %v336_v23 = vadd.f32 %v564_v16, %v450_v17  ;;  %v344_v24 = vadd.f32 %v572_v18, %v450_v17 }
  0xf7   :  { %v565_v21 = vpop.f32.mrb[2].mxu0  ;;  %v573_v22 = vpop.f32.mrb[2].mxu1  ;;  %v334_v29 = vadd.f32 %v450_v17, %v213_v19  ;;  %v342_v30 = vadd.f32 %v450_v17, %v245_v20 }
  0xf8   :  { %v337_v25 = vadd.f32 %v565_v21, %v450_v17  ;;  %v345_v26 = vadd.f32 %v573_v22, %v450_v17  ;;  %v216_v27 = vpop.f32.mrb[3].mxu0  ;;  %v248_v28 = vpop.f32.mrb[3].mxu1 }
  0xf9   :  { %v335_v31 = vadd.f32 %v450_v17, %v216_v27  ;;  %v343_v32 = vadd.f32 %v450_v17, %v248_v28 }
  0xfa   :  { %v491_v33 = vpack.c.bf16 %v337_v25, %v336_v23  ;;  %v511_v34 = vpack.c.bf16 %v345_v26, %v344_v24 }
  0xfb   :  { %v486_v35 = vpack.c.bf16 %v335_v31, %v334_v29  ;;  %v506_v36 = vpack.c.bf16 %v343_v32, %v342_v30 }
  0xfc   :  { %523 = vst [vmem:[%s708_s3 + $0x8] sm:$0xff] %v491_v33   ;;  %527 = vst [vmem:[%s708_s3 + $0x28] sm:$0xff] %v511_v34  }
  0xfd   :  { %487 = vst [vmem:[%s708_s3] sm:$0xff] %v486_v35   ;;  %526 = vst [vmem:[%s708_s3 + $0x20] sm:$0xff] %v506_v36   ;;  %v568_v37 = vpop.f32.mrb[4].mxu0  ;;  %v576_v38 = vpop.f32.mrb[4].mxu1 }
  0xfe   :  { %v229_v39 = vpop.f32.mrb[5].mxu0  ;;  %v261_v40 = vpop.f32.mrb[5].mxu1  ;;  %v340_v43 = vadd.f32 %v568_v37, %v450_v17  ;;  %v348_v44 = vadd.f32 %v576_v38, %v450_v17 }
  0xff   :  { %v569_v41 = vpop.f32.mrb[6].mxu0  ;;  %v577_v42 = vpop.f32.mrb[6].mxu1  ;;  %v338_v49 = vadd.f32 %v450_v17, %v229_v39  ;;  %v346_v50 = vadd.f32 %v450_v17, %v261_v40 }
 0x100   :  { %v341_v45 = vadd.f32 %v569_v41, %v450_v17  ;;  %v349_v46 = vadd.f32 %v577_v42, %v450_v17  ;;  %v232_v47 = vpop.f32.mrb[7].mxu0  ;;  %v264_v48 = vpop.f32.mrb[7].mxu1 }
 0x101   :  { %v339_v51 = vadd.f32 %v450_v17, %v232_v47  ;;  %v347_v52 = vadd.f32 %v450_v17, %v264_v48 }
 0x102   :  { %v501_v53 = vpack.c.bf16 %v341_v45, %v340_v43  ;;  %v521_v54 = vpack.c.bf16 %v349_v46, %v348_v44 }
 0x103   :  { %v496_v55 = vpack.c.bf16 %v339_v51, %v338_v49  ;;  %v516_v56 = vpack.c.bf16 %v347_v52, %v346_v50 }
 0x104   :  { %525 = vst [vmem:[%s708_s3 + $0x18] sm:$0xff] %v501_v53   ;;  %529 = vst [vmem:[%s708_s3 + $0x38] sm:$0xff] %v521_v54  }
 0x105   :  { %524 = vst [vmem:[%s708_s3 + $0x10] sm:$0xff] %v496_v55   ;;  %528 = vst [vmem:[%s708_s3 + $0x30] sm:$0xff] %v516_v56  }

// kernel: _forward_impl.16
= control target key start
LH: loop header
LB: loop body
LE: loop exit
PB: predicated region body
PF: predicated region fallthrough
CT: control target
= control target key end

     0   :  { %s1467_s12 = smov 0   ;;  %s1469_s13 = smov 0   ;;  %s1604_s0 = inlined_call_operand.vmem [shape: bf16[512,128], index: 0, kind: input, shape index: {}]   ;;  %s1605_s1 = inlined_call_operand.vmem [shape: bf16[128,128], index: 1, kind: input, shape index: {}]   ;;  %s1606_s2 = inlined_call_operand.vmem [shape: f32[1,128], index: 2, kind: input, shape index: {}]   ;;  %s1607_s3 = inlined_call_operand.vmem [shape: bf16[512,128], index: 3, kind: output, shape index: {}]  }
   0x1   :  { %s1471_s14 = smov 0  }
   0x2 LB: > { %s32_s15 = sadd.s32 1, %s1441_s13  ;;  %p1096_p0 = scmp.ge.s32.totalorder %s1445_s14, 1  ;;  %s1445_s14 = sphi %s1471_s14, %s13_s14   ;;  %s1441_s13 = sphi %s1469_s13, %s1609_s13   ;;  %s1437_s12 = sphi %s1467_s12, %s1608_s12  }
   0x3   : > { %p34_p1 = scmp.ge.s32.totalorder %s32_s15, 2  ;;  %p188_p2 = scmp.lt.s32.totalorder %s1445_s14, 3 }
   0x5   : > { %s1611_s15 = smov (%p34_p1, %s32_s15), 0  ;;  %p189_p3 = pnand %p1096_p0, %p188_p2 }
   0x6   : > { %v1399_v0 = vld [vmem:[%s1605_s1] sm:$0xff] (!%p189_p3)   ;;  %s1097_s18 = sshll.u32 (!%p189_p3), %s1437_s12, 5  ;;  %v1400_v1 = vld [vmem:[%s1605_s1 + $0x8] sm:$0xff] (!%p189_p3)   ;;  %v1401_v2 = vld [vmem:[%s1605_s1 + $0x10] sm:$0xff] (!%p189_p3)  }
   0x7   : > { %192 = sbr.rel (%p189_p3) target bundleno = 283 (0x11b), region = 32  ;;  %p230_p4 = scmp.lt.s32.totalorder (!%p189_p3), %s1097_s18, 63  ;;  %1311 = vmatprep.subr.bf16.mxu0 (!%p189_p3), %v1399_v0  ;;  %1359 = vmatprep.subr.bf16.mxu1 (!%p189_p3), %v1399_v0  ;;  %v1402_v3 = vld [vmem:[%s1605_s1 + $0x18] sm:$0xff] (!%p189_p3)   ;;  %v1403_v6 = vld [vmem:[%s1605_s1 + $0x20] sm:$0xff] (!%p189_p3)   ;;  %v1404_v7 = vld [vmem:[%s1605_s1 + $0x28] sm:$0xff] (!%p189_p3)  }
   0x8   : > { %1312 = vmatpush3.bf16.msra.mxu0 (!%p189_p3), %v1399_v0  ;;  %1367 = vmatpush3.bf16.msra.mxu1 (!%p189_p3), %v1399_v0  ;;  %v1405_v8 = vld [vmem:[%s1605_s1 + $0x30] sm:$0xff] (!%p189_p3)   ;;  %v1406_v9 = vld [vmem:[%s1605_s1 + $0x38] sm:$0xff] (!%p189_p3)   ;;  %v1538_v25 = vld [vmem:[%s1606_s2] ss:$0 sm:$0xff] (!%p189_p3) }
   0x9   : > { %1313 = vmatprep.subr.bf16.mxu0 (!%p189_p3), %v1400_v1  ;;  %1360 = vmatprep.subr.bf16.mxu1 (!%p189_p3), %v1400_v1 }
   0xc   : > { %1314 = vmatpush3.bf16.msra.mxu0 (!%p189_p3), %v1400_v1  ;;  %1368 = vmatpush3.bf16.msra.mxu1 (!%p189_p3), %v1400_v1 }
   0xd   : > { %1315 = vmatprep.subr.bf16.mxu0 (!%p189_p3), %v1401_v2  ;;  %1361 = vmatprep.subr.bf16.mxu1 (!%p189_p3), %v1401_v2 }
   0xe   : > { %s1613_s18 = smov (!%p230_p4, %s1097_s18), 63 }
   0xf   : > { %s1098_s23 = sshll.u32 %s1613_s18, 2 }
  0x10   : > { %s1502_s26 = scalar_lea.vmem %s1604_s0, %s1098_s23  ;;  %1316 = vmatpush3.bf16.msra.mxu0 %v1401_v2  ;;  %1369 = vmatpush3.bf16.msra.mxu1 %v1401_v2  ;;  %s1551_s17 = scalar_lea.vmem %s1607_s3, %s1098_s23 }
  0x11   : > { %v1407_v4 = vld [vmem:[%s1502_s26] sm:$0xff]   ;;  %1317 = vmatprep.subr.bf16.mxu0 %v1402_v3  ;;  %1362 = vmatprep.subr.bf16.mxu1 %v1402_v3  ;;  %v1409_v10 = vld [vmem:[%s1502_s26 + $0x8] sm:$0xff]   ;;  %v1411_v12 = vld [vmem:[%s1502_s26 + $0x10] sm:$0xff]  }
  0x12   : > { %v1408_v5 = vld [vmem:[%s1502_s26 + $0x40] sm:$0xff]   ;;  %1327 = vmatprep.mubr.bf16.mxu0 %v1407_v4  ;;  %v1410_v11 = vld [vmem:[%s1502_s26 + $0x48] sm:$0xff]   ;;  %v1412_v13 = vld [vmem:[%s1502_s26 + $0x50] sm:$0xff]  }
  0x13   : > { %1343 = vmatprep.mubr.bf16.mxu1 %v1408_v5  ;;  %v1413_v14 = vld [vmem:[%s1502_s26 + $0x18] sm:$0xff]   ;;  %v1415_v16 = vld [vmem:[%s1502_s26 + $0x20] sm:$0xff]   ;;  %v1417_v18 = vld [vmem:[%s1502_s26 + $0x28] sm:$0xff]  }
  0x14   : > { %1318 = vmatpush3.bf16.msra.mxu0 %v1402_v3  ;;  %1370 = vmatpush3.bf16.msra.mxu1 %v1402_v3  ;;  %v1414_v15 = vld [vmem:[%s1502_s26 + $0x58] sm:$0xff]   ;;  %v1416_v17 = vld [vmem:[%s1502_s26 + $0x60] sm:$0xff]   ;;  %v1418_v19 = vld [vmem:[%s1502_s26 + $0x68] sm:$0xff]  }
  0x15   : > { %1319 = vmatprep.subr.bf16.mxu0 %v1403_v6  ;;  %1363 = vmatprep.subr.bf16.mxu1 %v1403_v6  ;;  %v1419_v20 = vld [vmem:[%s1502_s26 + $0x30] sm:$0xff]   ;;  %v1421_v22 = vld [vmem:[%s1502_s26 + $0x38] sm:$0xff]  }
  0x16   : > { %v1420_v21 = vld [vmem:[%s1502_s26 + $0x70] sm:$0xff]   ;;  %v1422_v23 = vld [vmem:[%s1502_s26 + $0x78] sm:$0xff]  }
  0x18   : > { %1320 = vmatpush3.bf16.msra.mxu0 %v1403_v6  ;;  %1371 = vmatpush3.bf16.msra.mxu1 %v1403_v6 }
  0x19   : > { %1321 = vmatprep.subr.bf16.mxu0 %v1404_v7  ;;  %1364 = vmatprep.subr.bf16.mxu1 %v1404_v7 }
  0x1c   : > { %1322 = vmatpush3.bf16.msra.mxu0 %v1404_v7  ;;  %1372 = vmatpush3.bf16.msra.mxu1 %v1404_v7 }
  0x1d   : > { %1323 = vmatprep.subr.bf16.mxu0 %v1405_v8  ;;  %1365 = vmatprep.subr.bf16.mxu1 %v1405_v8 }
  0x20   : > { %1324 = vmatpush3.bf16.msra.mxu0 %v1405_v8  ;;  %1373 = vmatpush3.bf16.msra.mxu1 %v1405_v8 }
  0x21   : > { %1325 = vmatprep.subr.bf16.mxu0 %v1406_v9  ;;  %1366 = vmatprep.subr.bf16.mxu1 %v1406_v9 }
  0x24   : > { %1326 = vmatpush3.bf16.msra.mxu0 %v1406_v9  ;;  %1374 = vmatpush3.bf16.msra.mxu1 %v1406_v9 }
  0x27   : > { %1328 = vmatmul.mubr.bf16.vlgmr.msra.gmra.mrb[0].mxu0 %v1409_v10  ;;  %1344 = vmatmul.mubr.bf16.vlgmr.msra.gmra.mrb[0].mxu1 %v1410_v11 }
  0x28   : > { %1331 = vmatprep.mubr.bf16.mxu0 %v1411_v12  ;;  %1347 = vmatprep.mubr.bf16.mxu1 %v1412_v13 }
  0x2f   : > { %1332 = vmatmul.mubr.bf16.gmra.mrb[4].mxu0 %v1413_v14  ;;  %1348 = vmatmul.mubr.bf16.gmra.mrb[4].mxu1 %v1414_v15 }
  0x30   : > { %1335 = vmatprep.mubr.bf16.mxu0 %v1415_v16  ;;  %1351 = vmatprep.mubr.bf16.mxu1 %v1416_v17 }
  0x37   : > { %1336 = vmatmul.mubr.bf16.gmra.mrb[8].mxu0 %v1417_v18  ;;  %1352 = vmatmul.mubr.bf16.gmra.mrb[8].mxu1 %v1418_v19 }
  0x38   : > { %1339 = vmatprep.mubr.bf16.mxu0 %v1419_v20  ;;  %1355 = vmatprep.mubr.bf16.mxu1 %v1420_v21 }
  0x3f   : > { %1340 = vmatmul.mubr.bf16.gmra.mrb[12].mxu0 %v1421_v22  ;;  %1356 = vmatmul.mubr.bf16.gmra.mrb[12].mxu1 %v1422_v23 }
  0xfa   : > { %v1329_v24 = vpop.f32.mrb[0].mxu0  ;;  %v1345_v26 = vpop.f32.mrb[0].mxu1 }
  0xfb   : > { %v554_v27 = vpop.f32.mrb[1].mxu0  ;;  %v618_v28 = vpop.f32.mrb[1].mxu1  ;;  %v789_v31 = vadd.f32 %v1329_v24, %v1538_v25  ;;  %v805_v32 = vadd.f32 %v1345_v26, %v1538_v25 }
  0xfc   : > { %v1330_v29 = vpop.f32.mrb[2].mxu0  ;;  %v1346_v30 = vpop.f32.mrb[2].mxu1  ;;  %v787_v37 = vadd.f32 %v1538_v25, %v554_v27  ;;  %v803_v38 = vadd.f32 %v1538_v25, %v618_v28 }
  0xfd   : > { %v790_v33 = vadd.f32 %v1330_v29, %v1538_v25  ;;  %v806_v34 = vadd.f32 %v1346_v30, %v1538_v25  ;;  %v557_v35 = vpop.f32.mrb[3].mxu0  ;;  %v621_v36 = vpop.f32.mrb[3].mxu1 }
  0xfe   : > { %v788_v39 = vadd.f32 %v1538_v25, %v557_v35  ;;  %v804_v40 = vadd.f32 %v1538_v25, %v621_v36 }
  0xff   : > { %v1200_v41 = vpack.c.bf16 %v790_v33, %v789_v31  ;;  %v1240_v42 = vpack.c.bf16 %v806_v34, %v805_v32 }
 0x100   : > { %v1195_v43 = vpack.c.bf16 %v788_v39, %v787_v37  ;;  %v1235_v44 = vpack.c.bf16 %v804_v40, %v803_v38 }
 0x101   : > { %1272 = vst [vmem:[%s1551_s17 + $0x8] sm:$0xff] %v1200_v41   ;;  %1280 = vst [vmem:[%s1551_s17 + $0x48] sm:$0xff] %v1240_v42  }
 0x102   : > { %1196 = vst [vmem:[%s1551_s17] sm:$0xff] %v1195_v43   ;;  %1279 = vst [vmem:[%s1551_s17 + $0x40] sm:$0xff] %v1235_v44   ;;  %v1333_v45 = vpop.f32.mrb[4].mxu0  ;;  %v1349_v46 = vpop.f32.mrb[4].mxu1 }
 0x103   : > { %v570_v47 = vpop.f32.mrb[5].mxu0  ;;  %v634_v48 = vpop.f32.mrb[5].mxu1  ;;  %v793_v51 = vadd.f32 %v1333_v45, %v1538_v25  ;;  %v809_v52 = vadd.f32 %v1349_v46, %v1538_v25 }
 0x104   : > { %v1334_v49 = vpop.f32.mrb[6].mxu0  ;;  %v1350_v50 = vpop.f32.mrb[6].mxu1  ;;  %v791_v57 = vadd.f32 %v1538_v25, %v570_v47  ;;  %v807_v58 = vadd.f32 %v1538_v25, %v634_v48 }
 0x105   : > { %v794_v53 = vadd.f32 %v1334_v49, %v1538_v25  ;;  %v810_v54 = vadd.f32 %v1350_v50, %v1538_v25  ;;  %v573_v55 = vpop.f32.mrb[7].mxu0  ;;  %v637_v56 = vpop.f32.mrb[7].mxu1 }
 0x106   : > { %v792_v59 = vadd.f32 %v1538_v25, %v573_v55  ;;  %v808_v60 = vadd.f32 %v1538_v25, %v637_v56 }
 0x107   : > { %v1210_v61 = vpack.c.bf16 %v794_v53, %v793_v51  ;;  %v1250_v62 = vpack.c.bf16 %v810_v54, %v809_v52 }
 0x108   : > { %v1205_v63 = vpack.c.bf16 %v792_v59, %v791_v57  ;;  %v1245_v0 = vpack.c.bf16 %v808_v60, %v807_v58 }
 0x109   : > { %1274 = vst [vmem:[%s1551_s17 + $0x18] sm:$0xff] %v1210_v61   ;;  %1282 = vst [vmem:[%s1551_s17 + $0x58] sm:$0xff] %v1250_v62  }
 0x10a   : > { %1273 = vst [vmem:[%s1551_s17 + $0x10] sm:$0xff] %v1205_v63   ;;  %1281 = vst [vmem:[%s1551_s17 + $0x50] sm:$0xff] %v1245_v0   ;;  %v1337_v1 = vpop.f32.mrb[8].mxu0  ;;  %v1353_v2 = vpop.f32.mrb[8].mxu1 }
 0x10b   : > { %v586_v3 = vpop.f32.mrb[9].mxu0  ;;  %v650_v4 = vpop.f32.mrb[9].mxu1  ;;  %v797_v7 = vadd.f32 %v1337_v1, %v1538_v25  ;;  %v813_v8 = vadd.f32 %v1353_v2, %v1538_v25 }
 0x10c   : > { %v1338_v5 = vpop.f32.mrb[10].mxu0  ;;  %v1354_v6 = vpop.f32.mrb[10].mxu1  ;;  %v795_v13 = vadd.f32 %v1538_v25, %v586_v3  ;;  %v811_v14 = vadd.f32 %v1538_v25, %v650_v4 }
 0x10d   : > { %v798_v9 = vadd.f32 %v1338_v5, %v1538_v25  ;;  %v814_v10 = vadd.f32 %v1354_v6, %v1538_v25  ;;  %v589_v11 = vpop.f32.mrb[11].mxu0  ;;  %v653_v12 = vpop.f32.mrb[11].mxu1 }
 0x10e   : > { %v796_v15 = vadd.f32 %v1538_v25, %v589_v11  ;;  %v812_v16 = vadd.f32 %v1538_v25, %v653_v12 }
 0x10f   : > { %v1220_v17 = vpack.c.bf16 %v798_v9, %v797_v7  ;;  %v1260_v18 = vpack.c.bf16 %v814_v10, %v813_v8 }
 0x110   : > { %v1215_v19 = vpack.c.bf16 %v796_v15, %v795_v13  ;;  %v1255_v20 = vpack.c.bf16 %v812_v16, %v811_v14 }
 0x111   : > { %1276 = vst [vmem:[%s1551_s17 + $0x28] sm:$0xff] %v1220_v17   ;;  %1284 = vst [vmem:[%s1551_s17 + $0x68] sm:$0xff] %v1260_v18  }
 0x112   : > { %1275 = vst [vmem:[%s1551_s17 + $0x20] sm:$0xff] %v1215_v19   ;;  %1283 = vst [vmem:[%s1551_s17 + $0x60] sm:$0xff] %v1255_v20   ;;  %v1341_v21 = vpop.f32.mrb[12].mxu0  ;;  %v1357_v22 = vpop.f32.mrb[12].mxu1 }
 0x113   : > { %v602_v23 = vpop.f32.mrb[13].mxu0  ;;  %v666_v24 = vpop.f32.mrb[13].mxu1  ;;  %v801_v28 = vadd.f32 %v1341_v21, %v1538_v25  ;;  %v817_v29 = vadd.f32 %v1357_v22, %v1538_v25 }
 0x114   : > { %v1342_v26 = vpop.f32.mrb[14].mxu0  ;;  %v1358_v27 = vpop.f32.mrb[14].mxu1  ;;  %v799_v34 = vadd.f32 %v1538_v25, %v602_v23  ;;  %v815_v35 = vadd.f32 %v1538_v25, %v666_v24 }
 0x115   : > { %v802_v30 = vadd.f32 %v1342_v26, %v1538_v25  ;;  %v818_v31 = vadd.f32 %v1358_v27, %v1538_v25  ;;  %v605_v32 = vpop.f32.mrb[15].mxu0  ;;  %v669_v33 = vpop.f32.mrb[15].mxu1 }
 0x116   : > { %v800_v36 = vadd.f32 %v1538_v25, %v605_v32  ;;  %v816_v37 = vadd.f32 %v1538_v25, %v669_v33 }
 0x117   : > { %v1230_v38 = vpack.c.bf16 %v802_v30, %v801_v28  ;;  %v1270_v39 = vpack.c.bf16 %v818_v31, %v817_v29 }
 0x118   : > { %v1225_v40 = vpack.c.bf16 %v800_v36, %v799_v34  ;;  %v1265_v41 = vpack.c.bf16 %v816_v37, %v815_v35 }
 0x119   : > { %1278 = vst [vmem:[%s1551_s17 + $0x38] sm:$0xff] %v1230_v38   ;;  %1286 = vst [vmem:[%s1551_s17 + $0x78] sm:$0xff] %v1270_v39  }
 0x11a   : > { %1277 = vst [vmem:[%s1551_s17 + $0x30] sm:$0xff] %v1225_v40   ;;  %1285 = vst [vmem:[%s1551_s17 + $0x70] sm:$0xff] %v1265_v41  }
 0x11b PF: > { %s13_s14 = sadd.s32 1, %s1445_s14   ;;  %s1608_s12 = smov %s1441_s13 }
 0x11c   : > { %p10_p5 = scmp.ge.s32.totalorder %s13_s14, 4   ;;  %s1609_s13 = smov %s1611_s15 }
 0x11e   :  { %12 = sbr.rel (!%p10_p5) target bundleno = 2 (0x2), region = 76 }

// kernel: _forward_impl.20
= control target key start
LH: loop header
LB: loop body
LE: loop exit
PB: predicated region body
PF: predicated region fallthrough
CT: control target
= control target key end

     0   :  { %s2609_s12 = smov 0   ;;  %s2611_s13 = smov 0   ;;  %s2990_s0 = inlined_call_operand.vmem [shape: bf16[512,1024], index: 0, kind: input, shape index: {}]   ;;  %s2991_s1 = inlined_call_operand.vmem [shape: bf16[1024,128], index: 1, kind: input, shape index: {}]   ;;  %s2992_s2 = inlined_call_operand.vmem [shape: f32[1,128], index: 2, kind: input, shape index: {}]   ;;  %s2993_s3 = inlined_call_operand.vmem [shape: bf16[512,128], index: 3, kind: output, shape index: {}]  }
   0x1   :  { %s2613_s14 = smov 0   ;;  %s2615_s15 = smov 0  }
   0x2   :  { %s2617_s16 = smov 0   ;;  %s2619_s17 = smov 0  }
   0x3   :  { %s2621_s18 = smov 0  }
   0x4 LB: > { %s25_s19 = sadd.s32 1, %s2578_s16  ;;  %s32_s20 = sadd.s32 1, %s2582_s17  ;;  %s2586_s18 = sphi %s2621_s18, %s13_s18   ;;  %s2582_s17 = sphi %s2619_s17, %s2999_s17   ;;  %s2578_s16 = sphi %s2617_s16, %s2998_s16   ;;  %s2574_s15 = sphi %s2615_s15, %s2997_s15   ;;  %s2570_s14 = sphi %s2613_s14, %s2996_s14   ;;  %s2566_s13 = sphi %s2611_s13, %s2995_s13   ;;  %s2562_s12 = sphi %s2609_s12, %s2994_s12  }
   0x5   : > { %p26_p0 = scmp.ge.s32.totalorder %s25_s19, 2  ;;  %p48_p1 = scmp.ne.s32.totalorder %s2566_s13, %s2562_s12 }
   0x6   : > { %p49_p2 = scmp.eq.s32.totalorder %s2586_s18, 0  ;;  %s41_s24 = sadd.s32 1, %s2566_s13 }
   0x7   : > { %s3001_s19 = smov (%p26_p0, %s25_s19), 0  ;;  %s3003_s20 = smov (!%p26_p0, %s32_s20), %s2582_s17 }
   0x8   : > { %p50_p3 = por %p49_p2, %p48_p1  ;;  %p34_p4 = scmp.ge.s32.totalorder %s3003_s20, 2 }
   0x9   : > { %s37_s21 = ssub.s32 %s2578_s16, %s3001_s19  ;;  %p1850_p6 = scmp.ge.s32.totalorder %s2586_s18, 4 }
   0xa   : > { %s3005_s20 = smov (%p34_p4, %s3003_s20), 0 }
   0xb   : > { %s36_s22 = ssub.s32 %s2582_s17, %s3005_s20  ;;  %162 = sbr.rel (%p1850_p6) target bundleno = 57 (0x39), region = 20 }
   0xc   : > { %s38_s23 = sor.u32 %s37_s21, %s36_s22 }
   0xd   : > { %p39_p5 = scmp.eq.s32.totalorder %s38_s23, 0 }
   0xf   : > { %s2660_s25 = scalar_select %p39_p5, %s2566_s13, %s41_s24  }
  0x12   : > { %165 = sbr.rel (!%p50_p3) target bundleno = 57 (0x39), region = 24  ;;  %s167_s26 = sand.u32 (%p50_p3), 1, %s2566_s13  }
  0x13   : > { %s1853_s27 = sshll.u32 (%p50_p3), %s2578_s16, 2  ;;  %s1851_s28 = sshll.u32 (%p50_p3), %s167_s26, 9 }
  0x14   : > { %s1995_s29 = sshll.u32 (%p50_p3), %s2582_s17, 8  ;;  %s2674_s8 = scalar_lea.vmem (%p50_p3), [#allocation3], %s1851_s28 }
  0x15   : > { %s173_s30 = sadd.s32 (%p50_p3), %s1995_s29, %s1853_s27 }
  0x16   : > { %s1855_s4 = sshll.u32 (%p50_p3), %s173_s30, 2 }
  0x17   : > { %s2669_s7 = scalar_lea.vmem (%p50_p3), %s2990_s0, %s1855_s4 }
  0x18   : > { %v188_v0 = vld [vmem:[%s2669_s7] sm:$0xff] (%p50_p3)  ;;  %v190_v1 = vld [vmem:[%s2669_s7 + $0x8] sm:$0xff] (%p50_p3) }
  0x19   : > { %v192_v2 = vld [vmem:[%s2669_s7 + $0x20] sm:$0xff]  ;;  %189 = vst [vmem:[%s2674_s8] sm:$0xff] %v188_v0  ;;  %191 = vst [vmem:[%s2674_s8 + $0x8] sm:$0xff] %v190_v1  ;;  %v194_v3 = vld [vmem:[%s2669_s7 + $0x28] sm:$0xff] }
  0x1a   : > { %193 = vst [vmem:[%s2674_s8 + $0x10] sm:$0xff] %v192_v2  ;;  %v196_v4 = vld [vmem:[%s2669_s7 + $0x40] sm:$0xff]  ;;  %v198_v5 = vld [vmem:[%s2669_s7 + $0x48] sm:$0xff]  ;;  %195 = vst [vmem:[%s2674_s8 + $0x18] sm:$0xff] %v194_v3 }
  0x1b   : > { %197 = vst [vmem:[%s2674_s8 + $0x20] sm:$0xff] %v196_v4  ;;  %199 = vst [vmem:[%s2674_s8 + $0x28] sm:$0xff] %v198_v5  ;;  %v200_v6 = vld [vmem:[%s2669_s7 + $0x60] sm:$0xff]  ;;  %v202_v7 = vld [vmem:[%s2669_s7 + $0x68] sm:$0xff] }
  0x1c   : > { %v204_v8 = vld [vmem:[%s2669_s7 + $0x80] sm:$0xff]  ;;  %201 = vst [vmem:[%s2674_s8 + $0x30] sm:$0xff] %v200_v6  ;;  %203 = vst [vmem:[%s2674_s8 + $0x38] sm:$0xff] %v202_v7  ;;  %v206_v9 = vld [vmem:[%s2669_s7 + $0x88] sm:$0xff] }
  0x1d   : > { %205 = vst [vmem:[%s2674_s8 + $0x40] sm:$0xff] %v204_v8  ;;  %v208_v10 = vld [vmem:[%s2669_s7 + $0xa0] sm:$0xff]  ;;  %v210_v11 = vld [vmem:[%s2669_s7 + $0xa8] sm:$0xff]  ;;  %207 = vst [vmem:[%s2674_s8 + $0x48] sm:$0xff] %v206_v9 }
  0x1e   : > { %209 = vst [vmem:[%s2674_s8 + $0x50] sm:$0xff] %v208_v10  ;;  %211 = vst [vmem:[%s2674_s8 + $0x58] sm:$0xff] %v210_v11  ;;  %v212_v12 = vld [vmem:[%s2669_s7 + $0xc0] sm:$0xff]  ;;  %v214_v13 = vld [vmem:[%s2669_s7 + $0xc8] sm:$0xff] }
  0x1f   : > { %v216_v14 = vld [vmem:[%s2669_s7 + $0xe0] sm:$0xff]  ;;  %213 = vst [vmem:[%s2674_s8 + $0x60] sm:$0xff] %v212_v12  ;;  %215 = vst [vmem:[%s2674_s8 + $0x68] sm:$0xff] %v214_v13  ;;  %v218_v15 = vld [vmem:[%s2669_s7 + $0xe8] sm:$0xff] }
  0x20   : > { %217 = vst [vmem:[%s2674_s8 + $0x70] sm:$0xff] %v216_v14  ;;  %v220_v16 = vld [vmem:[%s2669_s7 + $0x100] sm:$0xff]  ;;  %v222_v17 = vld [vmem:[%s2669_s7 + $0x108] sm:$0xff]  ;;  %219 = vst [vmem:[%s2674_s8 + $0x78] sm:$0xff] %v218_v15 }
  0x21   : > { %221 = vst [vmem:[%s2674_s8 + $0x80] sm:$0xff] %v220_v16  ;;  %223 = vst [vmem:[%s2674_s8 + $0x88] sm:$0xff] %v222_v17  ;;  %v224_v18 = vld [vmem:[%s2669_s7 + $0x120] sm:$0xff]  ;;  %v226_v19 = vld [vmem:[%s2669_s7 + $0x128] sm:$0xff] }
  0x22   : > { %v228_v20 = vld [vmem:[%s2669_s7 + $0x140] sm:$0xff]  ;;  %225 = vst [vmem:[%s2674_s8 + $0x90] sm:$0xff] %v224_v18  ;;  %227 = vst [vmem:[%s2674_s8 + $0x98] sm:$0xff] %v226_v19  ;;  %v230_v21 = vld [vmem:[%s2669_s7 + $0x148] sm:$0xff] }
  0x23   : > { %229 = vst [vmem:[%s2674_s8 + $0xa0] sm:$0xff] %v228_v20  ;;  %v232_v22 = vld [vmem:[%s2669_s7 + $0x160] sm:$0xff]  ;;  %v234_v23 = vld [vmem:[%s2669_s7 + $0x168] sm:$0xff]  ;;  %231 = vst [vmem:[%s2674_s8 + $0xa8] sm:$0xff] %v230_v21 }
  0x24   : > { %233 = vst [vmem:[%s2674_s8 + $0xb0] sm:$0xff] %v232_v22  ;;  %235 = vst [vmem:[%s2674_s8 + $0xb8] sm:$0xff] %v234_v23  ;;  %v236_v24 = vld [vmem:[%s2669_s7 + $0x180] sm:$0xff]  ;;  %v238_v25 = vld [vmem:[%s2669_s7 + $0x188] sm:$0xff] }
  0x25   : > { %v240_v26 = vld [vmem:[%s2669_s7 + $0x1a0] sm:$0xff]  ;;  %237 = vst [vmem:[%s2674_s8 + $0xc0] sm:$0xff] %v236_v24  ;;  %239 = vst [vmem:[%s2674_s8 + $0xc8] sm:$0xff] %v238_v25  ;;  %v242_v27 = vld [vmem:[%s2669_s7 + $0x1a8] sm:$0xff] }
  0x26   : > { %241 = vst [vmem:[%s2674_s8 + $0xd0] sm:$0xff] %v240_v26  ;;  %v244_v28 = vld [vmem:[%s2669_s7 + $0x1c0] sm:$0xff]  ;;  %v246_v29 = vld [vmem:[%s2669_s7 + $0x1c8] sm:$0xff]  ;;  %243 = vst [vmem:[%s2674_s8 + $0xd8] sm:$0xff] %v242_v27 }
  0x27   : > { %245 = vst [vmem:[%s2674_s8 + $0xe0] sm:$0xff] %v244_v28  ;;  %247 = vst [vmem:[%s2674_s8 + $0xe8] sm:$0xff] %v246_v29  ;;  %v248_v30 = vld [vmem:[%s2669_s7 + $0x1e0] sm:$0xff]  ;;  %v250_v31 = vld [vmem:[%s2669_s7 + $0x1e8] sm:$0xff] }
  0x28   : > { %v252_v32 = vld [vmem:[%s2669_s7 + $0x200] sm:$0xff]  ;;  %249 = vst [vmem:[%s2674_s8 + $0xf0] sm:$0xff] %v248_v30  ;;  %251 = vst [vmem:[%s2674_s8 + $0xf8] sm:$0xff] %v250_v31  ;;  %v254_v33 = vld [vmem:[%s2669_s7 + $0x208] sm:$0xff] }
  0x29   : > { %253 = vst [vmem:[%s2674_s8 + $0x100] sm:$0xff] %v252_v32  ;;  %v256_v34 = vld [vmem:[%s2669_s7 + $0x220] sm:$0xff]  ;;  %v258_v35 = vld [vmem:[%s2669_s7 + $0x228] sm:$0xff]  ;;  %255 = vst [vmem:[%s2674_s8 + $0x108] sm:$0xff] %v254_v33 }
  0x2a   : > { %257 = vst [vmem:[%s2674_s8 + $0x110] sm:$0xff] %v256_v34  ;;  %259 = vst [vmem:[%s2674_s8 + $0x118] sm:$0xff] %v258_v35  ;;  %v260_v36 = vld [vmem:[%s2669_s7 + $0x240] sm:$0xff]  ;;  %v262_v37 = vld [vmem:[%s2669_s7 + $0x248] sm:$0xff] }
  0x2b   : > { %v264_v38 = vld [vmem:[%s2669_s7 + $0x260] sm:$0xff]  ;;  %261 = vst [vmem:[%s2674_s8 + $0x120] sm:$0xff] %v260_v36  ;;  %263 = vst [vmem:[%s2674_s8 + $0x128] sm:$0xff] %v262_v37  ;;  %v266_v39 = vld [vmem:[%s2669_s7 + $0x268] sm:$0xff] }
  0x2c   : > { %265 = vst [vmem:[%s2674_s8 + $0x130] sm:$0xff] %v264_v38  ;;  %v268_v40 = vld [vmem:[%s2669_s7 + $0x280] sm:$0xff]  ;;  %v270_v41 = vld [vmem:[%s2669_s7 + $0x288] sm:$0xff]  ;;  %267 = vst [vmem:[%s2674_s8 + $0x138] sm:$0xff] %v266_v39 }
  0x2d   : > { %269 = vst [vmem:[%s2674_s8 + $0x140] sm:$0xff] %v268_v40  ;;  %271 = vst [vmem:[%s2674_s8 + $0x148] sm:$0xff] %v270_v41  ;;  %v272_v42 = vld [vmem:[%s2669_s7 + $0x2a0] sm:$0xff]  ;;  %v274_v43 = vld [vmem:[%s2669_s7 + $0x2a8] sm:$0xff] }
  0x2e   : > { %v276_v44 = vld [vmem:[%s2669_s7 + $0x2c0] sm:$0xff]  ;;  %273 = vst [vmem:[%s2674_s8 + $0x150] sm:$0xff] %v272_v42  ;;  %275 = vst [vmem:[%s2674_s8 + $0x158] sm:$0xff] %v274_v43  ;;  %v278_v45 = vld [vmem:[%s2669_s7 + $0x2c8] sm:$0xff] }
  0x2f   : > { %277 = vst [vmem:[%s2674_s8 + $0x160] sm:$0xff] %v276_v44  ;;  %v280_v46 = vld [vmem:[%s2669_s7 + $0x2e0] sm:$0xff]  ;;  %v282_v47 = vld [vmem:[%s2669_s7 + $0x2e8] sm:$0xff]  ;;  %279 = vst [vmem:[%s2674_s8 + $0x168] sm:$0xff] %v278_v45 }
  0x30   : > { %281 = vst [vmem:[%s2674_s8 + $0x170] sm:$0xff] %v280_v46  ;;  %283 = vst [vmem:[%s2674_s8 + $0x178] sm:$0xff] %v282_v47  ;;  %v284_v48 = vld [vmem:[%s2669_s7 + $0x300] sm:$0xff]  ;;  %v286_v49 = vld [vmem:[%s2669_s7 + $0x308] sm:$0xff] }
  0x31   : > { %v288_v50 = vld [vmem:[%s2669_s7 + $0x320] sm:$0xff]  ;;  %285 = vst [vmem:[%s2674_s8 + $0x180] sm:$0xff] %v284_v48  ;;  %287 = vst [vmem:[%s2674_s8 + $0x188] sm:$0xff] %v286_v49  ;;  %v290_v51 = vld [vmem:[%s2669_s7 + $0x328] sm:$0xff] }
  0x32   : > { %289 = vst [vmem:[%s2674_s8 + $0x190] sm:$0xff] %v288_v50  ;;  %v292_v52 = vld [vmem:[%s2669_s7 + $0x340] sm:$0xff]  ;;  %v294_v53 = vld [vmem:[%s2669_s7 + $0x348] sm:$0xff]  ;;  %291 = vst [vmem:[%s2674_s8 + $0x198] sm:$0xff] %v290_v51 }
  0x33   : > { %293 = vst [vmem:[%s2674_s8 + $0x1a0] sm:$0xff] %v292_v52  ;;  %295 = vst [vmem:[%s2674_s8 + $0x1a8] sm:$0xff] %v294_v53  ;;  %v296_v54 = vld [vmem:[%s2669_s7 + $0x360] sm:$0xff]  ;;  %v298_v55 = vld [vmem:[%s2669_s7 + $0x368] sm:$0xff] }
  0x34   : > { %v300_v56 = vld [vmem:[%s2669_s7 + $0x380] sm:$0xff]  ;;  %297 = vst [vmem:[%s2674_s8 + $0x1b0] sm:$0xff] %v296_v54  ;;  %299 = vst [vmem:[%s2674_s8 + $0x1b8] sm:$0xff] %v298_v55  ;;  %v302_v57 = vld [vmem:[%s2669_s7 + $0x388] sm:$0xff] }
  0x35   : > { %301 = vst [vmem:[%s2674_s8 + $0x1c0] sm:$0xff] %v300_v56  ;;  %v304_v58 = vld [vmem:[%s2669_s7 + $0x3a0] sm:$0xff]  ;;  %v306_v59 = vld [vmem:[%s2669_s7 + $0x3a8] sm:$0xff]  ;;  %303 = vst [vmem:[%s2674_s8 + $0x1c8] sm:$0xff] %v302_v57 }
  0x36   : > { %305 = vst [vmem:[%s2674_s8 + $0x1d0] sm:$0xff] %v304_v58  ;;  %307 = vst [vmem:[%s2674_s8 + $0x1d8] sm:$0xff] %v306_v59  ;;  %v308_v60 = vld [vmem:[%s2669_s7 + $0x3c0] sm:$0xff]  ;;  %v310_v61 = vld [vmem:[%s2669_s7 + $0x3c8] sm:$0xff] }
  0x37   : > { %v312_v62 = vld [vmem:[%s2669_s7 + $0x3e0] sm:$0xff]  ;;  %309 = vst [vmem:[%s2674_s8 + $0x1e0] sm:$0xff] %v308_v60  ;;  %311 = vst [vmem:[%s2674_s8 + $0x1e8] sm:$0xff] %v310_v61  ;;  %v314_v63 = vld [vmem:[%s2669_s7 + $0x3e8] sm:$0xff] }
  0x38   : > { %313 = vst [vmem:[%s2674_s8 + $0x1f0] sm:$0xff] %v312_v62  ;;  %315 = vst [vmem:[%s2674_s8 + $0x1f8] sm:$0xff] %v314_v63 }
  0x39 PF: > { %p1856_p7 = scmp.ge.s32.totalorder %s2586_s18, 1  ;;  %p332_p8 = scmp.lt.s32.totalorder %s2586_s18, 5 }
  0x3b   : > { %p333_p9 = pnand %p1856_p7, %p332_p8 }
  0x3c   : > { %s339_s9 = sand.u32 (!%p333_p9), 1, %s2562_s12   ;;  %s1858_s10 = sshll.u32 (!%p333_p9), %s2570_s14, 6 }
  0x3d   : > { %336 = sbr.rel (%p333_p9) target bundleno = 475 (0x1db), region = 51  ;;  %s1857_s11 = sshll.u32 (!%p333_p9), %s339_s9, 9 }
  0x3e   : > { %p379_p10 = scmp.lt.s32.totalorder (!%p333_p9), %s1858_s10, 127  ;;  %s1860_s21 = sshll.u32 (!%p333_p9), %s2574_s15, 5 }
  0x3f   : > { %p391_p11 = scmp.lt.s32.totalorder (!%p333_p9), %s1860_s21, 63  ;;  %s2816_s12 = scalar_lea.vmem (!%p333_p9), [#allocation3], %s1857_s11 }
  0x40   : > { %p1862_p12 = scmp.ne.s32.totalorder (!%p333_p9), %s2570_s14, 0 }
  0x44   : > { %s3007_s10 = smov (!%p379_p10, %s1858_s10), 127  ;;  %s3009_s21 = smov (!%p391_p11, %s1860_s21), 63 }
  0x45   : > { %s1859_s22 = sshll.u32 %s3007_s10, 2  ;;  %s1861_s27 = sshll.u32 %s3009_s21, 2  ;;  %v2588_v0 = vmov (!%p1862_p12), 0.0  }
  0x46   : > { %s2809_s26 = scalar_lea.vmem %s2991_s1, %s1859_s22  ;;  %s2814_s30 = scalar_lea.vmem %s2993_s3, %s1861_s27  ;;  %404 = vst [vmem:[#allocation2] sm:$0xff] (!%p1862_p12), %v2588_v0  ;;  %405 = vst [vmem:[#allocation2 + $0x8] sm:$0xff] (!%p1862_p12), %v2588_v0 }
  0x47   : > { %403 = sbr.rel (%p1862_p12) target bundleno = 86 (0x56), region = 59  ;;  %406 = vst [vmem:[#allocation2 + $0x10] sm:$0xff] (!%p1862_p12), %v2588_v0  ;;  %407 = vst [vmem:[#allocation2 + $0x18] sm:$0xff] (!%p1862_p12), %v2588_v0 }
  0x48   : > { %408 = vst [vmem:[#allocation2 + $0x20] sm:$0xff] (!%p1862_p12), %v2588_v0  ;;  %409 = vst [vmem:[#allocation2 + $0x28] sm:$0xff] (!%p1862_p12), %v2588_v0 }
  0x49   : > { %410 = vst [vmem:[#allocation2 + $0x30] sm:$0xff] (!%p1862_p12), %v2588_v0  ;;  %411 = vst [vmem:[#allocation2 + $0x38] sm:$0xff] (!%p1862_p12), %v2588_v0 }
  0x4a   : > { %412 = vst [vmem:[#allocation2 + $0x40] sm:$0xff] (!%p1862_p12), %v2588_v0  ;;  %413 = vst [vmem:[#allocation2 + $0x48] sm:$0xff] (!%p1862_p12), %v2588_v0 }
  0x4b   : > { %414 = vst [vmem:[#allocation2 + $0x50] sm:$0xff] (!%p1862_p12), %v2588_v0  ;;  %415 = vst [vmem:[#allocation2 + $0x58] sm:$0xff] (!%p1862_p12), %v2588_v0 }
  0x4c   : > { %416 = vst [vmem:[#allocation2 + $0x60] sm:$0xff] (!%p1862_p12), %v2588_v0  ;;  %417 = vst [vmem:[#allocation2 + $0x68] sm:$0xff] (!%p1862_p12), %v2588_v0 }
  0x4d   : > { %418 = vst [vmem:[#allocation2 + $0x70] sm:$0xff] (!%p1862_p12), %v2588_v0  ;;  %419 = vst [vmem:[#allocation2 + $0x78] sm:$0xff] (!%p1862_p12), %v2588_v0 }
  0x4e   : > { %420 = vst [vmem:[#allocation2 + $0x80] sm:$0xff] %v2588_v0  ;;  %421 = vst [vmem:[#allocation2 + $0x88] sm:$0xff] %v2588_v0 }
  0x4f   : > { %422 = vst [vmem:[#allocation2 + $0x90] sm:$0xff] %v2588_v0  ;;  %423 = vst [vmem:[#allocation2 + $0x98] sm:$0xff] %v2588_v0 }
  0x50   : > { %424 = vst [vmem:[#allocation2 + $0xa0] sm:$0xff] %v2588_v0  ;;  %425 = vst [vmem:[#allocation2 + $0xa8] sm:$0xff] %v2588_v0 }
  0x51   : > { %426 = vst [vmem:[#allocation2 + $0xb0] sm:$0xff] %v2588_v0  ;;  %427 = vst [vmem:[#allocation2 + $0xb8] sm:$0xff] %v2588_v0 }
  0x52   : > { %428 = vst [vmem:[#allocation2 + $0xc0] sm:$0xff] %v2588_v0  ;;  %429 = vst [vmem:[#allocation2 + $0xc8] sm:$0xff] %v2588_v0 }
  0x53   : > { %430 = vst [vmem:[#allocation2 + $0xd0] sm:$0xff] %v2588_v0  ;;  %431 = vst [vmem:[#allocation2 + $0xd8] sm:$0xff] %v2588_v0 }
  0x54   : > { %432 = vst [vmem:[#allocation2 + $0xe0] sm:$0xff] %v2588_v0  ;;  %433 = vst [vmem:[#allocation2 + $0xe8] sm:$0xff] %v2588_v0 }
  0x55   : > { %434 = vst [vmem:[#allocation2 + $0xf0] sm:$0xff] %v2588_v0  ;;  %435 = vst [vmem:[#allocation2 + $0xf8] sm:$0xff] %v2588_v0 }
  0x56 PF: > { %v2404_v1 = vld [vmem:[%s2809_s26 + $0x40] sm:$0xff]   ;;  %v2408_v5 = vld [vmem:[%s2809_s26 + $0x48] sm:$0xff]   ;;  %v2412_v9 = vld [vmem:[%s2809_s26 + $0x50] sm:$0xff]   ;;  %p1959_p13 = scmp.ne.s32.totalorder %s2570_s14, 1 }
  0x57   : > { %v2405_v2 = vld [vmem:[%s2809_s26 + $0xc0] sm:$0xff]   ;;  %2123 = vmatprep.subr.bf16.mxu0 %v2404_v1  ;;  %v2409_v6 = vld [vmem:[%s2809_s26 + $0xc8] sm:$0xff]   ;;  %v2413_v10 = vld [vmem:[%s2809_s26 + $0xd0] sm:$0xff]  }
  0x58   : > { %v2406_v3 = vld [vmem:[%s2809_s26] sm:$0xff]   ;;  %2235 = vmatprep.subr.bf16.mxu1 %v2405_v2  ;;  %v2410_v7 = vld [vmem:[%s2809_s26 + $0x8] sm:$0xff]   ;;  %v2414_v11 = vld [vmem:[%s2809_s26 + $0x10] sm:$0xff]  }
  0x59   : > { %v2407_v4 = vld [vmem:[%s2809_s26 + $0x80] sm:$0xff]   ;;  %2124 = vmatpush3.bf16.msra.mxu0 %v2406_v3  ;;  %v2411_v8 = vld [vmem:[%s2809_s26 + $0x88] sm:$0xff]   ;;  %v2415_v12 = vld [vmem:[%s2809_s26 + $0x90] sm:$0xff]  }
  0x5a   : > { %2236 = vmatpush3.bf16.msra.mxu1 %v2407_v4  ;;  %2125 = vmatprep.subr.bf16.mxu0 %v2408_v5  ;;  %v2416_v13 = vld [vmem:[%s2809_s26 + $0x58] sm:$0xff]   ;;  %v2420_v17 = vld [vmem:[%s2809_s26 + $0x60] sm:$0xff]   ;;  %v2424_v21 = vld [vmem:[%s2809_s26 + $0x68] sm:$0xff]  }
  0x5b   : > { %2237 = vmatprep.subr.bf16.mxu1 %v2409_v6  ;;  %v2417_v14 = vld [vmem:[%s2809_s26 + $0xd8] sm:$0xff]   ;;  %v2421_v18 = vld [vmem:[%s2809_s26 + $0xe0] sm:$0xff]   ;;  %v2425_v22 = vld [vmem:[%s2809_s26 + $0xe8] sm:$0xff]  }
  0x5c   : > { %v2418_v15 = vld [vmem:[%s2809_s26 + $0x18] sm:$0xff]   ;;  %v2422_v19 = vld [vmem:[%s2809_s26 + $0x20] sm:$0xff]   ;;  %v2426_v23 = vld [vmem:[%s2809_s26 + $0x28] sm:$0xff]  }
  0x5d   : > { %2126 = vmatpush3.bf16.msra.mxu0 %v2410_v7  ;;  %v2419_v16 = vld [vmem:[%s2809_s26 + $0x98] sm:$0xff]   ;;  %v2423_v20 = vld [vmem:[%s2809_s26 + $0xa0] sm:$0xff]   ;;  %v2427_v24 = vld [vmem:[%s2809_s26 + $0xa8] sm:$0xff]  }
  0x5e   : > { %2238 = vmatpush3.bf16.msra.mxu1 %v2411_v8  ;;  %2127 = vmatprep.subr.bf16.mxu0 %v2412_v9  ;;  %v2428_v25 = vld [vmem:[%s2809_s26 + $0x70] sm:$0xff]   ;;  %v2432_v29 = vld [vmem:[%s2809_s26 + $0x78] sm:$0xff]  }
  0x5f   : > { %2239 = vmatprep.subr.bf16.mxu1 %v2413_v10  ;;  %v2429_v26 = vld [vmem:[%s2809_s26 + $0xf0] sm:$0xff]   ;;  %v2433_v30 = vld [vmem:[%s2809_s26 + $0xf8] sm:$0xff]  }
  0x60   : > { %v2430_v27 = vld [vmem:[%s2809_s26 + $0x30] sm:$0xff]   ;;  %v2434_v31 = vld [vmem:[%s2809_s26 + $0x38] sm:$0xff]  }
  0x61   : > { %2128 = vmatpush3.bf16.msra.mxu0 %v2414_v11  ;;  %v2431_v28 = vld [vmem:[%s2809_s26 + $0xb0] sm:$0xff]   ;;  %v2435_v32 = vld [vmem:[%s2809_s26 + $0xb8] sm:$0xff]  }
  0x62   : > { %2240 = vmatpush3.bf16.msra.mxu1 %v2415_v12  ;;  %2129 = vmatprep.subr.bf16.mxu0 %v2416_v13  ;;  %v2436_v33 = vld [vmem:[%s2816_s12] ss:$16 sps:$4 sm:$0xff]   ;;  %v2438_v34 = vld [vmem:[%s2816_s12 + $0x4] ss:$16 sps:$4 sm:$0xff]   ;;  %v2439_v35 = vld [vmem:[%s2816_s12 + $0x8] ss:$16 sps:$4 sm:$0xff]  }
  0x63   : > { %2241 = vmatprep.subr.bf16.mxu1 %v2417_v14  ;;  %v2441_v36 = vld [vmem:[%s2816_s12 + $0xc] ss:$16 sps:$4 sm:$0xff]   ;;  %1140 = vmatprep.mubr.bf16.mxu0 %v2438_v34  ;;  %v2442_v37 = vld [vmem:[%s2816_s12 + $0x24] ss:$16 sps:$4 sm:$0xff]   ;;  %v2446_v39 = vld [vmem:[%s2816_s12 + $0x20] ss:$16 sps:$4 sm:$0xff]  }
  0x64   : > { %1301 = vmatprep.mubr.bf16.mxu1 %v2441_v36  ;;  %v2444_v38 = vld [vmem:[%s2816_s12 + $0x2c] ss:$16 sps:$4 sm:$0xff]   ;;  %v2447_v40 = vld [vmem:[%s2816_s12 + $0x28] ss:$16 sps:$4 sm:$0xff]   ;;  %v2448_v41 = vld [vmem:[%s2816_s12 + $0x44] ss:$16 sps:$4 sm:$0xff]  }
  0x65   : > { %2130 = vmatpush3.bf16.msra.mxu0 %v2418_v15  ;;  %v2450_v42 = vld [vmem:[%s2816_s12 + $0x4c] ss:$16 sps:$4 sm:$0xff]   ;;  %v2452_v43 = vld [vmem:[%s2816_s12 + $0x40] ss:$16 sps:$4 sm:$0xff]   ;;  %v2453_v44 = vld [vmem:[%s2816_s12 + $0x48] ss:$16 sps:$4 sm:$0xff]  }
  0x66   : > { %2242 = vmatpush3.bf16.msra.mxu1 %v2419_v16  ;;  %2131 = vmatprep.subr.bf16.mxu0 %v2420_v17  ;;  %v2454_v45 = vld [vmem:[%s2816_s12 + $0x64] ss:$16 sps:$4 sm:$0xff]   ;;  %v2456_v46 = vld [vmem:[%s2816_s12 + $0x6c] ss:$16 sps:$4 sm:$0xff]   ;;  %v2458_v47 = vld [vmem:[%s2816_s12 + $0x60] ss:$16 sps:$4 sm:$0xff]  }
  0x67   : > { %2243 = vmatprep.subr.bf16.mxu1 %v2421_v18  ;;  %v2459_v48 = vld [vmem:[%s2816_s12 + $0x68] ss:$16 sps:$4 sm:$0xff]   ;;  %v2460_v49 = vld [vmem:[%s2816_s12 + $0x84] ss:$16 sps:$4 sm:$0xff]   ;;  %v2462_v50 = vld [vmem:[%s2816_s12 + $0x8c] ss:$16 sps:$4 sm:$0xff]  }
  0x68   : > { %v2464_v51 = vld [vmem:[%s2816_s12 + $0x80] ss:$16 sps:$4 sm:$0xff]   ;;  %v2465_v52 = vld [vmem:[%s2816_s12 + $0x88] ss:$16 sps:$4 sm:$0xff]   ;;  %v2466_v53 = vld [vmem:[%s2816_s12 + $0xa4] ss:$16 sps:$4 sm:$0xff]  }
  0x69   : > { %2132 = vmatpush3.bf16.msra.mxu0 %v2422_v19  ;;  %v2468_v54 = vld [vmem:[%s2816_s12 + $0xac] ss:$16 sps:$4 sm:$0xff]   ;;  %v2470_v55 = vld [vmem:[%s2816_s12 + $0xa0] ss:$16 sps:$4 sm:$0xff]   ;;  %v2471_v56 = vld [vmem:[%s2816_s12 + $0xa8] ss:$16 sps:$4 sm:$0xff]  }
  0x6a   : > { %2244 = vmatpush3.bf16.msra.mxu1 %v2423_v20  ;;  %2133 = vmatprep.subr.bf16.mxu0 %v2424_v21  ;;  %v2472_v57 = vld [vmem:[%s2816_s12 + $0xc4] ss:$16 sps:$4 sm:$0xff]   ;;  %v2474_v58 = vld [vmem:[%s2816_s12 + $0xcc] ss:$16 sps:$4 sm:$0xff]   ;;  %v2476_v59 = vld [vmem:[%s2816_s12 + $0xc0] ss:$16 sps:$4 sm:$0xff]  }
  0x6b   : > { %2245 = vmatprep.subr.bf16.mxu1 %v2425_v22  ;;  %v2477_v60 = vld [vmem:[%s2816_s12 + $0xc8] ss:$16 sps:$4 sm:$0xff]   ;;  %v2478_v61 = vld [vmem:[%s2816_s12 + $0xe4] ss:$16 sps:$4 sm:$0xff]   ;;  %v2480_v62 = vld [vmem:[%s2816_s12 + $0xec] ss:$16 sps:$4 sm:$0xff]  }
  0x6c   : > { %v2482_v63 = vld [vmem:[%s2816_s12 + $0xe0] ss:$16 sps:$4 sm:$0xff]   ;;  %v2483_v0 = vld [vmem:[%s2816_s12 + $0xe8] ss:$16 sps:$4 sm:$0xff]   ;;  %v2484_v1 = vld [vmem:[%s2816_s12 + $0x104] ss:$16 sps:$4 sm:$0xff]  }
  0x6d   : > { %2134 = vmatpush3.bf16.msra.mxu0 %v2426_v23  ;;  %v2486_v2 = vld [vmem:[%s2816_s12 + $0x10c] ss:$16 sps:$4 sm:$0xff]   ;;  %v2488_v3 = vld [vmem:[%s2816_s12 + $0x100] ss:$16 sps:$4 sm:$0xff]   ;;  %v2489_v4 = vld [vmem:[%s2816_s12 + $0x108] ss:$16 sps:$4 sm:$0xff]  }
  0x6e   : > { %2246 = vmatpush3.bf16.msra.mxu1 %v2427_v24  ;;  %2135 = vmatprep.subr.bf16.mxu0 %v2428_v25  ;;  %v2490_v5 = vld [vmem:[%s2816_s12 + $0x124] ss:$16 sps:$4 sm:$0xff]   ;;  %v2492_v6 = vld [vmem:[%s2816_s12 + $0x12c] ss:$16 sps:$4 sm:$0xff]   ;;  %v2494_v7 = vld [vmem:[%s2816_s12 + $0x120] ss:$16 sps:$4 sm:$0xff]  }
  0x6f   : > { %2247 = vmatprep.subr.bf16.mxu1 %v2429_v26  ;;  %v2495_v8 = vld [vmem:[%s2816_s12 + $0x128] ss:$16 sps:$4 sm:$0xff]   ;;  %v2496_v9 = vld [vmem:[%s2816_s12 + $0x144] ss:$16 sps:$4 sm:$0xff]   ;;  %v2498_v10 = vld [vmem:[%s2816_s12 + $0x14c] ss:$16 sps:$4 sm:$0xff]  }
  0x70   : > { %v2500_v11 = vld [vmem:[%s2816_s12 + $0x140] ss:$16 sps:$4 sm:$0xff]   ;;  %v2501_v12 = vld [vmem:[%s2816_s12 + $0x148] ss:$16 sps:$4 sm:$0xff]   ;;  %v2502_v13 = vld [vmem:[%s2816_s12 + $0x164] ss:$16 sps:$4 sm:$0xff]  }
  0x71   : > { %2136 = vmatpush3.bf16.msra.mxu0 %v2430_v27  ;;  %v2504_v14 = vld [vmem:[%s2816_s12 + $0x16c] ss:$16 sps:$4 sm:$0xff]   ;;  %v2506_v15 = vld [vmem:[%s2816_s12 + $0x160] ss:$16 sps:$4 sm:$0xff]   ;;  %v2507_v16 = vld [vmem:[%s2816_s12 + $0x168] ss:$16 sps:$4 sm:$0xff]  }
  0x72   : > { %2248 = vmatpush3.bf16.msra.mxu1 %v2431_v28  ;;  %2137 = vmatprep.subr.bf16.mxu0 %v2432_v29  ;;  %v2508_v17 = vld [vmem:[%s2816_s12 + $0x184] ss:$16 sps:$4 sm:$0xff]   ;;  %v2510_v18 = vld [vmem:[%s2816_s12 + $0x18c] ss:$16 sps:$4 sm:$0xff]   ;;  %v2512_v19 = vld [vmem:[%s2816_s12 + $0x180] ss:$16 sps:$4 sm:$0xff]  }
  0x73   : > { %2249 = vmatprep.subr.bf16.mxu1 %v2433_v30  ;;  %v2513_v20 = vld [vmem:[%s2816_s12 + $0x188] ss:$16 sps:$4 sm:$0xff]   ;;  %v2514_v21 = vld [vmem:[%s2816_s12 + $0x1a4] ss:$16 sps:$4 sm:$0xff]   ;;  %v2516_v22 = vld [vmem:[%s2816_s12 + $0x1ac] ss:$16 sps:$4 sm:$0xff]  }
  0x74   : > { %v2518_v23 = vld [vmem:[%s2816_s12 + $0x1a0] ss:$16 sps:$4 sm:$0xff]   ;;  %v2519_v24 = vld [vmem:[%s2816_s12 + $0x1a8] ss:$16 sps:$4 sm:$0xff]   ;;  %v2520_v25 = vld [vmem:[%s2816_s12 + $0x1c4] ss:$16 sps:$4 sm:$0xff]  }
  0x75   : > { %2138 = vmatpush3.bf16.msra.mxu0 %v2434_v31  ;;  %v2522_v26 = vld [vmem:[%s2816_s12 + $0x1cc] ss:$16 sps:$4 sm:$0xff]   ;;  %v2524_v27 = vld [vmem:[%s2816_s12 + $0x1c0] ss:$16 sps:$4 sm:$0xff]   ;;  %v2525_v28 = vld [vmem:[%s2816_s12 + $0x1c8] ss:$16 sps:$4 sm:$0xff]  }
  0x76   : > { %2250 = vmatpush3.bf16.msra.mxu1 %v2435_v32  ;;  %v2526_v29 = vld [vmem:[%s2816_s12 + $0x1e4] ss:$16 sps:$4 sm:$0xff]   ;;  %v2528_v30 = vld [vmem:[%s2816_s12 + $0x1ec] ss:$16 sps:$4 sm:$0xff]   ;;  %v2530_v31 = vld [vmem:[%s2816_s12 + $0x1e0] ss:$16 sps:$4 sm:$0xff]  }
  0x77   : > { %v2531_v32 = vld [vmem:[%s2816_s12 + $0x1e8] ss:$16 sps:$4 sm:$0xff]  }
  0x78   : > { %1141 = vmatmul.mubr.bf16.vlgmr.msra.gmra.mrb[0].mxu0 %v2436_v33 }
  0x79   : > { %1302 = vmatmul.mubr.bf16.vlgmr.msra.gmra.mrb[0].mxu1 %v2439_v35  ;;  %1148 = vmatprep.mubr.bf16.mxu0 %v2442_v37 }
  0x7a   : > { %1309 = vmatprep.mubr.bf16.mxu1 %v2444_v38 }
  0x80   : > { %1149 = vmatmul.mubr.bf16.gmra.mrb[4].mxu0 %v2446_v39 }
  0x81   : > { %1310 = vmatmul.mubr.bf16.gmra.mrb[4].mxu1 %v2447_v40  ;;  %1156 = vmatprep.mubr.bf16.mxu0 %v2448_v41 }
  0x82   : > { %1317 = vmatprep.mubr.bf16.mxu1 %v2450_v42  ;;  %v436_v42 = vld [vmem:[#allocation2] sm:$0xff] }
  0x88   : > { %1157 = vmatmul.mubr.bf16.gmra.mrb[8].mxu0 %v2452_v43 }
  0x89   : > { %1318 = vmatmul.mubr.bf16.gmra.mrb[8].mxu1 %v2453_v44  ;;  %1164 = vmatprep.mubr.bf16.mxu0 %v2454_v45 }
  0x8a   : > { %1325 = vmatprep.mubr.bf16.mxu1 %v2456_v46 }
  0x90   : > { %1165 = vmatmul.mubr.bf16.gmra.mrb[12].mxu0 %v2458_v47  ;;  %v437_v47 = vld [vmem:[#allocation2 + $0x8] sm:$0xff] }
  0x91   : > { %1326 = vmatmul.mubr.bf16.gmra.mrb[12].mxu1 %v2459_v48  ;;  %1172 = vmatprep.mubr.bf16.mxu0 %v2460_v49 }
  0x92   : > { %1333 = vmatprep.mubr.bf16.mxu1 %v2462_v50 }
  0x98   : > { %1173 = vmatmul.mubr.bf16.gmra.mrb[16].mxu0 %v2464_v51 }
  0x99   : > { %1334 = vmatmul.mubr.bf16.gmra.mrb[16].mxu1 %v2465_v52  ;;  %1180 = vmatprep.mubr.bf16.mxu0 %v2466_v53 }
  0x9a   : > { %1341 = vmatprep.mubr.bf16.mxu1 %v2468_v54 }
  0xa0   : > { %1181 = vmatmul.mubr.bf16.gmra.mrb[20].mxu0 %v2470_v55 }
  0xa1   : > { %1342 = vmatmul.mubr.bf16.gmra.mrb[20].mxu1 %v2471_v56  ;;  %1188 = vmatprep.mubr.bf16.mxu0 %v2472_v57 }
  0xa2   : > { %1349 = vmatprep.mubr.bf16.mxu1 %v2474_v58 }
  0xa8   : > { %1189 = vmatmul.mubr.bf16.gmra.mrb[24].mxu0 %v2476_v59 }
  0xa9   : > { %1350 = vmatmul.mubr.bf16.gmra.mrb[24].mxu1 %v2477_v60  ;;  %1196 = vmatprep.mubr.bf16.mxu0 %v2478_v61  ;;  %v438_v60 = vld [vmem:[#allocation2 + $0x10] sm:$0xff] }
  0xaa   : > { %1357 = vmatprep.mubr.bf16.mxu1 %v2480_v62 }
  0xb0   : > { %1197 = vmatmul.mubr.bf16.gmra.mrb[28].mxu0 %v2482_v63 }
  0xb1   : > { %1358 = vmatmul.mubr.bf16.gmra.mrb[28].mxu1 %v2483_v0  ;;  %1204 = vmatprep.mubr.bf16.mxu0 %v2484_v1  ;;  %v439_v1 = vld [vmem:[#allocation2 + $0x18] sm:$0xff] }
  0xb2   : > { %1365 = vmatprep.mubr.bf16.mxu1 %v2486_v2 }
  0xb8   : > { %1205 = vmatmul.mubr.bf16.gmra.mrb[32].mxu0 %v2488_v3 }
  0xb9   : > { %1366 = vmatmul.mubr.bf16.gmra.mrb[32].mxu1 %v2489_v4  ;;  %1212 = vmatprep.mubr.bf16.mxu0 %v2490_v5 }
  0xba   : > { %1373 = vmatprep.mubr.bf16.mxu1 %v2492_v6 }
  0xc0   : > { %1213 = vmatmul.mubr.bf16.gmra.mrb[36].mxu0 %v2494_v7 }
  0xc1   : > { %1374 = vmatmul.mubr.bf16.gmra.mrb[36].mxu1 %v2495_v8  ;;  %1220 = vmatprep.mubr.bf16.mxu0 %v2496_v9 }
  0xc2   : > { %1381 = vmatprep.mubr.bf16.mxu1 %v2498_v10 }
  0xc8   : > { %1221 = vmatmul.mubr.bf16.gmra.mrb[40].mxu0 %v2500_v11 }
  0xc9   : > { %1382 = vmatmul.mubr.bf16.gmra.mrb[40].mxu1 %v2501_v12  ;;  %1228 = vmatprep.mubr.bf16.mxu0 %v2502_v13 }
  0xca   : > { %1389 = vmatprep.mubr.bf16.mxu1 %v2504_v14  ;;  %v440_v14 = vld [vmem:[#allocation2 + $0x20] sm:$0xff] }
  0xd0   : > { %1229 = vmatmul.mubr.bf16.gmra.mrb[44].mxu0 %v2506_v15 }
  0xd1   : > { %1390 = vmatmul.mubr.bf16.gmra.mrb[44].mxu1 %v2507_v16  ;;  %1236 = vmatprep.mubr.bf16.mxu0 %v2508_v17 }
  0xd2   : > { %1397 = vmatprep.mubr.bf16.mxu1 %v2510_v18 }
  0xd8   : > { %1237 = vmatmul.mubr.bf16.gmra.mrb[48].mxu0 %v2512_v19  ;;  %v441_v19 = vld [vmem:[#allocation2 + $0x28] sm:$0xff] }
  0xd9   : > { %1398 = vmatmul.mubr.bf16.gmra.mrb[48].mxu1 %v2513_v20  ;;  %1244 = vmatprep.mubr.bf16.mxu0 %v2514_v21 }
  0xda   : > { %1405 = vmatprep.mubr.bf16.mxu1 %v2516_v22 }
  0xe0   : > { %1245 = vmatmul.mubr.bf16.gmra.mrb[52].mxu0 %v2518_v23 }
  0xe1   : > { %1406 = vmatmul.mubr.bf16.gmra.mrb[52].mxu1 %v2519_v24  ;;  %1252 = vmatprep.mubr.bf16.mxu0 %v2520_v25 }
  0xe2   : > { %1413 = vmatprep.mubr.bf16.mxu1 %v2522_v26 }
  0xe8   : > { %1253 = vmatmul.mubr.bf16.gmra.mrb[56].mxu0 %v2524_v27 }
  0xe9   : > { %1414 = vmatmul.mubr.bf16.gmra.mrb[56].mxu1 %v2525_v28  ;;  %1260 = vmatprep.mubr.bf16.mxu0 %v2526_v29 }
  0xea   : > { %1421 = vmatprep.mubr.bf16.mxu1 %v2528_v30 }
  0xf0   : > { %1261 = vmatmul.mubr.bf16.gmra.mrb[60].mxu0 %v2530_v31 }
  0xf1   : > { %1422 = vmatmul.mubr.bf16.gmra.mrb[60].mxu1 %v2531_v32  ;;  %v442_v32 = vld [vmem:[#allocation2 + $0x30] sm:$0xff] }
 0x14b   : > { %v2139_v33 = vpop.f32.mrb[0].mxu0 }
 0x14c   : > { %v2251_v34 = vpop.f32.mrb[0].mxu1  ;;  %v2140_v35 = vpop.f32.mrb[1].mxu0 }
 0x14d   : > { %v2141_v36 = vadd.f32 %v2140_v35, %v2139_v33  ;;  %v2252_v37 = vpop.f32.mrb[1].mxu1  ;;  %v2142_v38 = vpop.f32.mrb[2].mxu0 }
 0x14e   : > { %v2253_v39 = vadd.f32 %v2252_v37, %v2251_v34  ;;  %v2254_v40 = vpop.f32.mrb[2].mxu1  ;;  %v2143_v41 = vpop.f32.mrb[3].mxu0  ;;  %v443_v37 = vld [vmem:[#allocation2 + $0x38] sm:$0xff] }
 0x14f   : > { %v2144_v43 = vadd.f32 %v2143_v41, %v2142_v38  ;;  %v2255_v44 = vpop.f32.mrb[3].mxu1 }
 0x150   : > { %v1304_v45 = vadd.f32 %v2253_v39, %v2141_v36  ;;  %v2256_v46 = vadd.f32 %v2255_v44, %v2254_v40 }
 0x152   : > { %v1430_v48 = vadd.f32 %v1304_v45, %v436_v42  ;;  %v1307_v49 = vadd.f32 %v2256_v46, %v2144_v43 }
 0x153   : > { %v2145_v50 = vpop.f32.mrb[4].mxu0 }
 0x154   : > { %1462 = vst [vmem:[#allocation2] sm:$0xff] %v1430_v48  ;;  %v1431_v51 = vadd.f32 %v1307_v49, %v437_v47  ;;  %v2257_v52 = vpop.f32.mrb[4].mxu1  ;;  %v2146_v53 = vpop.f32.mrb[5].mxu0 }
 0x155   : > { %v2147_v54 = vadd.f32 %v2146_v53, %v2145_v50  ;;  %v2258_v55 = vpop.f32.mrb[5].mxu1  ;;  %v2148_v56 = vpop.f32.mrb[6].mxu0  ;;  %v444_v50 = vld [vmem:[#allocation2 + $0x40] sm:$0xff] }
 0x156   : > { %1463 = vst [vmem:[#allocation2 + $0x8] sm:$0xff] %v1431_v51  ;;  %v2259_v57 = vadd.f32 %v2258_v55, %v2257_v52  ;;  %v2260_v58 = vpop.f32.mrb[6].mxu1  ;;  %v2149_v59 = vpop.f32.mrb[7].mxu0  ;;  %v445_v55 = vld [vmem:[#allocation2 + $0x48] sm:$0xff] }
 0x157   : > { %v2150_v61 = vadd.f32 %v2149_v59, %v2148_v56  ;;  %v2261_v62 = vpop.f32.mrb[7].mxu1 }
 0x158   : > { %v1312_v63 = vadd.f32 %v2259_v57, %v2147_v54  ;;  %v2262_v0 = vadd.f32 %v2261_v62, %v2260_v58 }
 0x15a   : > { %v1432_v2 = vadd.f32 %v1312_v63, %v438_v60  ;;  %v1315_v3 = vadd.f32 %v2262_v0, %v2150_v61 }
 0x15b   : > { %v2151_v4 = vpop.f32.mrb[8].mxu0 }
 0x15c   : > { %1464 = vst [vmem:[#allocation2 + $0x10] sm:$0xff] %v1432_v2  ;;  %v1433_v5 = vadd.f32 %v1315_v3, %v439_v1  ;;  %v2263_v6 = vpop.f32.mrb[8].mxu1  ;;  %v2152_v7 = vpop.f32.mrb[9].mxu0 }
 0x15d   : > { %v2153_v8 = vadd.f32 %v2152_v7, %v2151_v4  ;;  %v2264_v9 = vpop.f32.mrb[9].mxu1  ;;  %v2154_v10 = vpop.f32.mrb[10].mxu0  ;;  %v446_v4 = vld [vmem:[#allocation2 + $0x50] sm:$0xff] }
 0x15e   : > { %1465 = vst [vmem:[#allocation2 + $0x18] sm:$0xff] %v1433_v5  ;;  %v2265_v11 = vadd.f32 %v2264_v9, %v2263_v6  ;;  %v2266_v12 = vpop.f32.mrb[10].mxu1  ;;  %v2155_v13 = vpop.f32.mrb[11].mxu0  ;;  %v447_v9 = vld [vmem:[#allocation2 + $0x58] sm:$0xff] }
 0x15f   : > { %v2156_v15 = vadd.f32 %v2155_v13, %v2154_v10  ;;  %v2267_v16 = vpop.f32.mrb[11].mxu1 }
 0x160   : > { %v1320_v17 = vadd.f32 %v2265_v11, %v2153_v8  ;;  %v2268_v18 = vadd.f32 %v2267_v16, %v2266_v12 }
 0x162   : > { %v1434_v20 = vadd.f32 %v1320_v17, %v440_v14  ;;  %v1323_v21 = vadd.f32 %v2268_v18, %v2156_v15 }
 0x163   : > { %v2157_v22 = vpop.f32.mrb[12].mxu0 }
 0x164   : > { %1466 = vst [vmem:[#allocation2 + $0x20] sm:$0xff] %v1434_v20  ;;  %v1435_v23 = vadd.f32 %v1323_v21, %v441_v19  ;;  %v2269_v24 = vpop.f32.mrb[12].mxu1  ;;  %v2158_v25 = vpop.f32.mrb[13].mxu0 }
 0x165   : > { %v2159_v26 = vadd.f32 %v2158_v25, %v2157_v22  ;;  %v2270_v27 = vpop.f32.mrb[13].mxu1  ;;  %v2160_v28 = vpop.f32.mrb[14].mxu0  ;;  %v448_v22 = vld [vmem:[#allocation2 + $0x60] sm:$0xff] }
 0x166   : > { %1467 = vst [vmem:[#allocation2 + $0x28] sm:$0xff] %v1435_v23  ;;  %v2271_v29 = vadd.f32 %v2270_v27, %v2269_v24  ;;  %v2272_v30 = vpop.f32.mrb[14].mxu1  ;;  %v2161_v31 = vpop.f32.mrb[15].mxu0  ;;  %v449_v27 = vld [vmem:[#allocation2 + $0x68] sm:$0xff] }
 0x167   : > { %v2162_v33 = vadd.f32 %v2161_v31, %v2160_v28  ;;  %v2273_v34 = vpop.f32.mrb[15].mxu1 }
 0x168   : > { %v1328_v35 = vadd.f32 %v2271_v29, %v2159_v26  ;;  %v2274_v36 = vadd.f32 %v2273_v34, %v2272_v30 }
 0x16a   : > { %v1436_v38 = vadd.f32 %v1328_v35, %v442_v32  ;;  %v1331_v39 = vadd.f32 %v2274_v36, %v2162_v33 }
 0x16b   : > { %v2163_v40 = vpop.f32.mrb[16].mxu0 }
 0x16c   : > { %1468 = vst [vmem:[#allocation2 + $0x30] sm:$0xff] %v1436_v38  ;;  %v1437_v41 = vadd.f32 %v1331_v39, %v443_v37  ;;  %v2275_v42 = vpop.f32.mrb[16].mxu1  ;;  %v2164_v43 = vpop.f32.mrb[17].mxu0 }
 0x16d   : > { %v2165_v44 = vadd.f32 %v2164_v43, %v2163_v40  ;;  %v2276_v45 = vpop.f32.mrb[17].mxu1  ;;  %v2166_v46 = vpop.f32.mrb[18].mxu0  ;;  %v450_v40 = vld [vmem:[#allocation2 + $0x70] sm:$0xff] }
 0x16e   : > { %1469 = vst [vmem:[#allocation2 + $0x38] sm:$0xff] %v1437_v41  ;;  %v2277_v47 = vadd.f32 %v2276_v45, %v2275_v42  ;;  %v2278_v48 = vpop.f32.mrb[18].mxu1  ;;  %v2167_v49 = vpop.f32.mrb[19].mxu0  ;;  %v451_v45 = vld [vmem:[#allocation2 + $0x78] sm:$0xff] }
 0x16f   : > { %v2168_v51 = vadd.f32 %v2167_v49, %v2166_v46  ;;  %v2279_v52 = vpop.f32.mrb[19].mxu1 }
 0x170   : > { %v1336_v53 = vadd.f32 %v2277_v47, %v2165_v44  ;;  %v2280_v54 = vadd.f32 %v2279_v52, %v2278_v48 }
 0x172   : > { %v1438_v56 = vadd.f32 %v1336_v53, %v444_v50  ;;  %v1339_v57 = vadd.f32 %v2280_v54, %v2168_v51 }
 0x173   : > { %v2169_v58 = vpop.f32.mrb[20].mxu0 }
 0x174   : > { %1470 = vst [vmem:[#allocation2 + $0x40] sm:$0xff] %v1438_v56  ;;  %v1439_v59 = vadd.f32 %v1339_v57, %v445_v55  ;;  %v2281_v60 = vpop.f32.mrb[20].mxu1  ;;  %v2170_v61 = vpop.f32.mrb[21].mxu0 }
 0x175   : > { %v2171_v62 = vadd.f32 %v2170_v61, %v2169_v58  ;;  %v2282_v63 = vpop.f32.mrb[21].mxu1  ;;  %v2172_v0 = vpop.f32.mrb[22].mxu0  ;;  %v452_v58 = vld [vmem:[#allocation2 + $0x80] sm:$0xff] }
 0x176   : > { %1471 = vst [vmem:[#allocation2 + $0x48] sm:$0xff] %v1439_v59  ;;  %v2283_v1 = vadd.f32 %v2282_v63, %v2281_v60  ;;  %v2284_v2 = vpop.f32.mrb[22].mxu1  ;;  %v2173_v3 = vpop.f32.mrb[23].mxu0  ;;  %v453_v63 = vld [vmem:[#allocation2 + $0x88] sm:$0xff] }
 0x177   : > { %v2174_v5 = vadd.f32 %v2173_v3, %v2172_v0  ;;  %v2285_v6 = vpop.f32.mrb[23].mxu1 }
 0x178   : > { %v1344_v7 = vadd.f32 %v2283_v1, %v2171_v62  ;;  %v2286_v8 = vadd.f32 %v2285_v6, %v2284_v2 }
 0x17a   : > { %v1440_v10 = vadd.f32 %v1344_v7, %v446_v4  ;;  %v1347_v11 = vadd.f32 %v2286_v8, %v2174_v5 }
 0x17b   : > { %v2175_v12 = vpop.f32.mrb[24].mxu0 }
 0x17c   : > { %1472 = vst [vmem:[#allocation2 + $0x50] sm:$0xff] %v1440_v10  ;;  %v1441_v13 = vadd.f32 %v1347_v11, %v447_v9  ;;  %v2287_v14 = vpop.f32.mrb[24].mxu1  ;;  %v2176_v15 = vpop.f32.mrb[25].mxu0 }
 0x17d   : > { %v2177_v16 = vadd.f32 %v2176_v15, %v2175_v12  ;;  %v2288_v17 = vpop.f32.mrb[25].mxu1  ;;  %v2178_v18 = vpop.f32.mrb[26].mxu0  ;;  %v454_v12 = vld [vmem:[#allocation2 + $0x90] sm:$0xff] }
 0x17e   : > { %1473 = vst [vmem:[#allocation2 + $0x58] sm:$0xff] %v1441_v13  ;;  %v2289_v19 = vadd.f32 %v2288_v17, %v2287_v14  ;;  %v2290_v20 = vpop.f32.mrb[26].mxu1  ;;  %v2179_v21 = vpop.f32.mrb[27].mxu0  ;;  %v455_v17 = vld [vmem:[#allocation2 + $0x98] sm:$0xff] }
 0x17f   : > { %v2180_v23 = vadd.f32 %v2179_v21, %v2178_v18  ;;  %v2291_v24 = vpop.f32.mrb[27].mxu1 }
 0x180   : > { %v1352_v25 = vadd.f32 %v2289_v19, %v2177_v16  ;;  %v2292_v26 = vadd.f32 %v2291_v24, %v2290_v20 }
 0x182   : > { %v1442_v28 = vadd.f32 %v1352_v25, %v448_v22  ;;  %v1355_v29 = vadd.f32 %v2292_v26, %v2180_v23 }
 0x183   : > { %v2181_v30 = vpop.f32.mrb[28].mxu0 }
 0x184   : > { %1474 = vst [vmem:[#allocation2 + $0x60] sm:$0xff] %v1442_v28  ;;  %v1443_v31 = vadd.f32 %v1355_v29, %v449_v27  ;;  %v2293_v32 = vpop.f32.mrb[28].mxu1  ;;  %v2182_v33 = vpop.f32.mrb[29].mxu0 }
 0x185   : > { %v2183_v34 = vadd.f32 %v2182_v33, %v2181_v30  ;;  %v2294_v35 = vpop.f32.mrb[29].mxu1  ;;  %v2184_v36 = vpop.f32.mrb[30].mxu0  ;;  %v456_v30 = vld [vmem:[#allocation2 + $0xa0] sm:$0xff] }
 0x186   : > { %1475 = vst [vmem:[#allocation2 + $0x68] sm:$0xff] %v1443_v31  ;;  %v2295_v37 = vadd.f32 %v2294_v35, %v2293_v32  ;;  %v2296_v38 = vpop.f32.mrb[30].mxu1  ;;  %v2185_v39 = vpop.f32.mrb[31].mxu0  ;;  %v457_v35 = vld [vmem:[#allocation2 + $0xa8] sm:$0xff] }
 0x187   : > { %v2186_v41 = vadd.f32 %v2185_v39, %v2184_v36  ;;  %v2297_v42 = vpop.f32.mrb[31].mxu1 }
 0x188   : > { %v1360_v43 = vadd.f32 %v2295_v37, %v2183_v34  ;;  %v2298_v44 = vadd.f32 %v2297_v42, %v2296_v38 }
 0x18a   : > { %v1444_v46 = vadd.f32 %v1360_v43, %v450_v40  ;;  %v1363_v47 = vadd.f32 %v2298_v44, %v2186_v41 }
 0x18b   : > { %v2187_v48 = vpop.f32.mrb[32].mxu0 }
 0x18c   : > { %1476 = vst [vmem:[#allocation2 + $0x70] sm:$0xff] %v1444_v46  ;;  %v1445_v49 = vadd.f32 %v1363_v47, %v451_v45  ;;  %v2299_v50 = vpop.f32.mrb[32].mxu1  ;;  %v2188_v51 = vpop.f32.mrb[33].mxu0 }
 0x18d   : > { %v2189_v52 = vadd.f32 %v2188_v51, %v2187_v48  ;;  %v2300_v53 = vpop.f32.mrb[33].mxu1  ;;  %v2190_v54 = vpop.f32.mrb[34].mxu0  ;;  %v458_v48 = vld [vmem:[#allocation2 + $0xb0] sm:$0xff] }
 0x18e   : > { %1477 = vst [vmem:[#allocation2 + $0x78] sm:$0xff] %v1445_v49  ;;  %v2301_v55 = vadd.f32 %v2300_v53, %v2299_v50  ;;  %v2302_v56 = vpop.f32.mrb[34].mxu1  ;;  %v2191_v57 = vpop.f32.mrb[35].mxu0  ;;  %v459_v53 = vld [vmem:[#allocation2 + $0xb8] sm:$0xff] }
 0x18f   : > { %v2192_v59 = vadd.f32 %v2191_v57, %v2190_v54  ;;  %v2303_v60 = vpop.f32.mrb[35].mxu1 }
 0x190   : > { %v1368_v61 = vadd.f32 %v2301_v55, %v2189_v52  ;;  %v2304_v62 = vadd.f32 %v2303_v60, %v2302_v56 }
 0x192   : > { %v1446_v0 = vadd.f32 %v1368_v61, %v452_v58  ;;  %v1371_v1 = vadd.f32 %v2304_v62, %v2192_v59 }
 0x193   : > { %v2193_v2 = vpop.f32.mrb[36].mxu0 }
 0x194   : > { %1478 = vst [vmem:[#allocation2 + $0x80] sm:$0xff] %v1446_v0  ;;  %v1447_v3 = vadd.f32 %v1371_v1, %v453_v63  ;;  %v2305_v4 = vpop.f32.mrb[36].mxu1  ;;  %v2194_v5 = vpop.f32.mrb[37].mxu0 }
 0x195   : > { %v2195_v6 = vadd.f32 %v2194_v5, %v2193_v2  ;;  %v2306_v7 = vpop.f32.mrb[37].mxu1  ;;  %v2196_v8 = vpop.f32.mrb[38].mxu0  ;;  %v460_v2 = vld [vmem:[#allocation2 + $0xc0] sm:$0xff] }
 0x196   : > { %1479 = vst [vmem:[#allocation2 + $0x88] sm:$0xff] %v1447_v3  ;;  %v2307_v9 = vadd.f32 %v2306_v7, %v2305_v4  ;;  %v2308_v10 = vpop.f32.mrb[38].mxu1  ;;  %v2197_v11 = vpop.f32.mrb[39].mxu0  ;;  %v461_v7 = vld [vmem:[#allocation2 + $0xc8] sm:$0xff] }
 0x197   : > { %v2198_v13 = vadd.f32 %v2197_v11, %v2196_v8  ;;  %v2309_v14 = vpop.f32.mrb[39].mxu1 }
 0x198   : > { %v1376_v15 = vadd.f32 %v2307_v9, %v2195_v6  ;;  %v2310_v16 = vadd.f32 %v2309_v14, %v2308_v10 }
 0x19a   : > { %v1448_v18 = vadd.f32 %v1376_v15, %v454_v12  ;;  %v1379_v19 = vadd.f32 %v2310_v16, %v2198_v13 }
 0x19b   : > { %v2199_v20 = vpop.f32.mrb[40].mxu0 }
 0x19c   : > { %1480 = vst [vmem:[#allocation2 + $0x90] sm:$0xff] %v1448_v18  ;;  %v1449_v21 = vadd.f32 %v1379_v19, %v455_v17  ;;  %v2311_v22 = vpop.f32.mrb[40].mxu1  ;;  %v2200_v23 = vpop.f32.mrb[41].mxu0 }
 0x19d   : > { %v2201_v24 = vadd.f32 %v2200_v23, %v2199_v20  ;;  %v2312_v25 = vpop.f32.mrb[41].mxu1  ;;  %v2202_v26 = vpop.f32.mrb[42].mxu0  ;;  %v462_v20 = vld [vmem:[#allocation2 + $0xd0] sm:$0xff] }
 0x19e   : > { %1481 = vst [vmem:[#allocation2 + $0x98] sm:$0xff] %v1449_v21  ;;  %v2313_v27 = vadd.f32 %v2312_v25, %v2311_v22  ;;  %v2314_v28 = vpop.f32.mrb[42].mxu1  ;;  %v2203_v29 = vpop.f32.mrb[43].mxu0  ;;  %v463_v25 = vld [vmem:[#allocation2 + $0xd8] sm:$0xff] }
 0x19f   : > { %v2204_v31 = vadd.f32 %v2203_v29, %v2202_v26  ;;  %v2315_v32 = vpop.f32.mrb[43].mxu1 }
 0x1a0   : > { %v1384_v33 = vadd.f32 %v2313_v27, %v2201_v24  ;;  %v2316_v34 = vadd.f32 %v2315_v32, %v2314_v28 }
 0x1a2   : > { %v1450_v36 = vadd.f32 %v1384_v33, %v456_v30  ;;  %v1387_v37 = vadd.f32 %v2316_v34, %v2204_v31 }
 0x1a3   : > { %v2205_v38 = vpop.f32.mrb[44].mxu0 }
 0x1a4   : > { %1482 = vst [vmem:[#allocation2 + $0xa0] sm:$0xff] %v1450_v36  ;;  %v1451_v39 = vadd.f32 %v1387_v37, %v457_v35  ;;  %v2317_v40 = vpop.f32.mrb[44].mxu1  ;;  %v2206_v41 = vpop.f32.mrb[45].mxu0 }
 0x1a5   : > { %v2207_v42 = vadd.f32 %v2206_v41, %v2205_v38  ;;  %v2318_v43 = vpop.f32.mrb[45].mxu1  ;;  %v2208_v44 = vpop.f32.mrb[46].mxu0  ;;  %v464_v38 = vld [vmem:[#allocation2 + $0xe0] sm:$0xff] }
 0x1a6   : > { %1483 = vst [vmem:[#allocation2 + $0xa8] sm:$0xff] %v1451_v39  ;;  %v2319_v45 = vadd.f32 %v2318_v43, %v2317_v40  ;;  %v2320_v46 = vpop.f32.mrb[46].mxu1  ;;  %v2209_v47 = vpop.f32.mrb[47].mxu0  ;;  %v465_v43 = vld [vmem:[#allocation2 + $0xe8] sm:$0xff] }
 0x1a7   : > { %v2210_v49 = vadd.f32 %v2209_v47, %v2208_v44  ;;  %v2321_v50 = vpop.f32.mrb[47].mxu1 }
 0x1a8   : > { %v1392_v51 = vadd.f32 %v2319_v45, %v2207_v42  ;;  %v2322_v52 = vadd.f32 %v2321_v50, %v2320_v46 }
 0x1aa   : > { %v1452_v54 = vadd.f32 %v1392_v51, %v458_v48  ;;  %v1395_v55 = vadd.f32 %v2322_v52, %v2210_v49 }
 0x1ab   : > { %v2211_v56 = vpop.f32.mrb[48].mxu0 }
 0x1ac   : > { %1484 = vst [vmem:[#allocation2 + $0xb0] sm:$0xff] %v1452_v54  ;;  %v1453_v57 = vadd.f32 %v1395_v55, %v459_v53  ;;  %v2323_v58 = vpop.f32.mrb[48].mxu1  ;;  %v2212_v59 = vpop.f32.mrb[49].mxu0 }
 0x1ad   : > { %v2213_v60 = vadd.f32 %v2212_v59, %v2211_v56  ;;  %v2324_v61 = vpop.f32.mrb[49].mxu1  ;;  %v2214_v62 = vpop.f32.mrb[50].mxu0  ;;  %v466_v56 = vld [vmem:[#allocation2 + $0xf0] sm:$0xff] }
 0x1ae   : > { %1485 = vst [vmem:[#allocation2 + $0xb8] sm:$0xff] %v1453_v57  ;;  %v2325_v63 = vadd.f32 %v2324_v61, %v2323_v58  ;;  %v2326_v0 = vpop.f32.mrb[50].mxu1  ;;  %v2215_v1 = vpop.f32.mrb[51].mxu0  ;;  %v467_v61 = vld [vmem:[#allocation2 + $0xf8] sm:$0xff] }
 0x1af   : > { %v2216_v3 = vadd.f32 %v2215_v1, %v2214_v62  ;;  %v2327_v4 = vpop.f32.mrb[51].mxu1  ;;  %v1498_v1 = vld [vmem:[#allocation2] sm:$0xff] (!%p1959_p13) }
 0x1b0   : > { %v1400_v5 = vadd.f32 %v2325_v63, %v2213_v60  ;;  %v2328_v6 = vadd.f32 %v2327_v4, %v2326_v0 }
 0x1b2   : > { %v1454_v8 = vadd.f32 %v1400_v5, %v460_v2  ;;  %v1403_v9 = vadd.f32 %v2328_v6, %v2216_v3  ;;  %v1499_v2 = vld [vmem:[#allocation2 + $0x8] sm:$0xff] (!%p1959_p13)  ;;  %v2919_v3 = vld [vmem:[%s2992_s2] ss:$0 sm:$0xff] (!%p1959_p13)  ;;  %v1500_v6 = vld [vmem:[#allocation2 + $0x10] sm:$0xff] (!%p1959_p13) }
 0x1b3   : > { %v2217_v10 = vpop.f32.mrb[52].mxu0  ;;  %v1537_v4 = vadd.f32 (!%p1959_p13), %v2919_v3, %v1498_v1  ;;  %v1538_v5 = vadd.f32 (!%p1959_p13), %v2919_v3, %v1499_v2 }
 0x1b4   : > { %1486 = vst [vmem:[#allocation2 + $0xc0] sm:$0xff] %v1454_v8  ;;  %v1455_v11 = vadd.f32 %v1403_v9, %v461_v7  ;;  %v2329_v12 = vpop.f32.mrb[52].mxu1  ;;  %v2218_v13 = vpop.f32.mrb[53].mxu0  ;;  %v1501_v7 = vld [vmem:[#allocation2 + $0x18] sm:$0xff] (!%p1959_p13)  ;;  %v1502_v8 = vld [vmem:[#allocation2 + $0x20] sm:$0xff] (!%p1959_p13)  ;;  %v1539_v9 = vadd.f32 (!%p1959_p13), %v2919_v3, %v1500_v6 }
 0x1b5   : > { %v2219_v14 = vadd.f32 %v2218_v13, %v2217_v10  ;;  %v2330_v15 = vpop.f32.mrb[53].mxu1  ;;  %v2220_v16 = vpop.f32.mrb[54].mxu0  ;;  %v1540_v10 = vadd.f32 (!%p1959_p13), %v2919_v3, %v1501_v7  ;;  %v1504_v13 = vld [vmem:[#allocation2 + $0x30] sm:$0xff] (!%p1959_p13) }
 0x1b6   : > { %1487 = vst [vmem:[#allocation2 + $0xc8] sm:$0xff] %v1455_v11  ;;  %v2331_v17 = vadd.f32 %v2330_v15, %v2329_v12  ;;  %v2332_v18 = vpop.f32.mrb[54].mxu1  ;;  %v2221_v19 = vpop.f32.mrb[55].mxu0  ;;  %v1503_v11 = vld [vmem:[#allocation2 + $0x28] sm:$0xff] (!%p1959_p13)  ;;  %v1541_v12 = vadd.f32 (!%p1959_p13), %v2919_v3, %v1502_v8  ;;  %v2031_v15 = vpack.c.bf16 (!%p1959_p13), %v1538_v5, %v1537_v4 }
 0x1b7   : > { %v2222_v21 = vadd.f32 %v2221_v19, %v2220_v16  ;;  %v2333_v22 = vpop.f32.mrb[55].mxu1  ;;  %v1542_v16 = vadd.f32 (!%p1959_p13), %v2919_v3, %v1503_v11  ;;  %v1506_v19 = vld [vmem:[#allocation2 + $0x40] sm:$0xff] (!%p1959_p13) }
 0x1b8   : > { %v1408_v23 = vadd.f32 %v2331_v17, %v2219_v14  ;;  %v2334_v24 = vadd.f32 %v2333_v22, %v2332_v18  ;;  %v1505_v14 = vld [vmem:[#allocation2 + $0x38] sm:$0xff] (!%p1959_p13)  ;;  %v1543_v17 = vadd.f32 (!%p1959_p13), %v2919_v3, %v1504_v13  ;;  %v2036_v22 = vpack.c.bf16 (!%p1959_p13), %v1540_v10, %v1539_v9  ;;  %2032 = vst [vmem:[%s2814_s30] sm:$0xff] (!%p1959_p13), %v2031_v15  }
 0x1b9   : > { %v1544_v18 = vadd.f32 (!%p1959_p13), %v2919_v3, %v1505_v14 }
 0x1ba   : > { %v1456_v26 = vadd.f32 %v1408_v23, %v462_v20  ;;  %v1411_v27 = vadd.f32 %v2334_v24, %v2222_v21  ;;  %v1507_v20 = vld [vmem:[#allocation2 + $0x48] sm:$0xff] (!%p1959_p13)  ;;  %v1508_v21 = vld [vmem:[#allocation2 + $0x50] sm:$0xff] (!%p1959_p13)  ;;  %v1545_v23 = vadd.f32 (!%p1959_p13), %v2919_v3, %v1506_v19  ;;  %2108 = vst [vmem:[%s2814_s30 + $0x8] sm:$0xff] (!%p1959_p13), %v2036_v22  }
 0x1bb   : > { %v2223_v28 = vpop.f32.mrb[56].mxu0  ;;  %v1546_v24 = vadd.f32 (!%p1959_p13), %v2919_v3, %v1507_v20 }
 0x1bc   : > { %1488 = vst [vmem:[#allocation2 + $0xd0] sm:$0xff] %v1456_v26  ;;  %v1457_v29 = vadd.f32 %v1411_v27, %v463_v25  ;;  %v2335_v30 = vpop.f32.mrb[56].mxu1  ;;  %v2224_v31 = vpop.f32.mrb[57].mxu0  ;;  %v1509_v25 = vld [vmem:[#allocation2 + $0x58] sm:$0xff] (!%p1959_p13)  ;;  %v1547_v26 = vadd.f32 (!%p1959_p13), %v2919_v3, %v1508_v21  ;;  %v1510_v27 = vld [vmem:[#allocation2 + $0x60] sm:$0xff] (!%p1959_p13) }
 0x1bd   : > { %v2225_v32 = vadd.f32 %v2224_v31, %v2223_v28  ;;  %v2336_v33 = vpop.f32.mrb[57].mxu1  ;;  %v2226_v34 = vpop.f32.mrb[58].mxu0  ;;  %v1511_v28 = vld [vmem:[#allocation2 + $0x68] sm:$0xff] (!%p1959_p13)  ;;  %v1548_v31 = vadd.f32 (!%p1959_p13), %v2919_v3, %v1509_v25 }
 0x1be   : > { %1489 = vst [vmem:[#allocation2 + $0xd8] sm:$0xff] %v1457_v29  ;;  %v2337_v35 = vadd.f32 %v2336_v33, %v2335_v30  ;;  %v2338_v36 = vpop.f32.mrb[58].mxu1  ;;  %v2227_v37 = vpop.f32.mrb[59].mxu0  ;;  %v2041_v29 = vpack.c.bf16 (!%p1959_p13), %v1542_v16, %v1541_v12  ;;  %v2046_v30 = vpack.c.bf16 (!%p1959_p13), %v1544_v18, %v1543_v17  ;;  %v1512_v33 = vld [vmem:[#allocation2 + $0x70] sm:$0xff] (!%p1959_p13) }
 0x1bf   : > { %v2228_v39 = vadd.f32 %v2227_v37, %v2226_v34  ;;  %v2339_v40 = vpop.f32.mrb[59].mxu1  ;;  %v1513_v34 = vld [vmem:[#allocation2 + $0x78] sm:$0xff] (!%p1959_p13)  ;;  %v1550_v37 = vadd.f32 (!%p1959_p13), %v2919_v3, %v1511_v28 }
 0x1c0   : > { %v1416_v41 = vadd.f32 %v2337_v35, %v2225_v32  ;;  %v2340_v42 = vadd.f32 %v2339_v40, %v2338_v36  ;;  %v1549_v32 = vadd.f32 (!%p1959_p13), %v2919_v3, %v1510_v27  ;;  %v1514_v35 = vld [vmem:[#allocation2 + $0x80] sm:$0xff] (!%p1959_p13)  ;;  %v2051_v36 = vpack.c.bf16 (!%p1959_p13), %v1546_v24, %v1545_v23  ;;  %v1515_v40 = vld [vmem:[#allocation2 + $0x88] sm:$0xff] (!%p1959_p13)  ;;  %2109 = vst [vmem:[%s2814_s30 + $0x10] sm:$0xff] (!%p1959_p13), %v2041_v29  }
 0x1c1   : > { %2110 = vst [vmem:[%s2814_s30 + $0x18] sm:$0xff] (!%p1959_p13), %v2046_v30  }
 0x1c2   : > { %v1458_v44 = vadd.f32 %v1416_v41, %v464_v38  ;;  %v1419_v45 = vadd.f32 %v2340_v42, %v2228_v39  ;;  %v1551_v38 = vadd.f32 (!%p1959_p13), %v2919_v3, %v1512_v33  ;;  %v1552_v39 = vadd.f32 (!%p1959_p13), %v2919_v3, %v1513_v34  ;;  %v1516_v41 = vld [vmem:[#allocation2 + $0x90] sm:$0xff] (!%p1959_p13)  ;;  %v1517_v42 = vld [vmem:[#allocation2 + $0x98] sm:$0xff] (!%p1959_p13)  ;;  %2111 = vst [vmem:[%s2814_s30 + $0x20] sm:$0xff] (!%p1959_p13), %v2051_v36  }
 0x1c3   : > { %v2229_v46 = vpop.f32.mrb[60].mxu0 }
 0x1c4   : > { %1490 = vst [vmem:[#allocation2 + $0xe0] sm:$0xff] %v1458_v44  ;;  %v1459_v47 = vadd.f32 %v1419_v45, %v465_v43  ;;  %v2341_v48 = vpop.f32.mrb[60].mxu1  ;;  %v2230_v49 = vpop.f32.mrb[61].mxu0  ;;  %v2056_v43 = vpack.c.bf16 (!%p1959_p13), %v1548_v31, %v1547_v26  ;;  %v1553_v44 = vadd.f32 (!%p1959_p13), %v2919_v3, %v1514_v35  ;;  %v1554_v45 = vadd.f32 (!%p1959_p13), %v2919_v3, %v1515_v40 }
 0x1c5   : > { %v2231_v50 = vadd.f32 %v2230_v49, %v2229_v46  ;;  %v2342_v51 = vpop.f32.mrb[61].mxu1  ;;  %v2232_v52 = vpop.f32.mrb[62].mxu0  ;;  %v1555_v46 = vadd.f32 (!%p1959_p13), %v2919_v3, %v1516_v41  ;;  %v1520_v49 = vld [vmem:[#allocation2 + $0xb0] sm:$0xff] (!%p1959_p13) }
 0x1c6   : > { %1491 = vst [vmem:[#allocation2 + $0xe8] sm:$0xff] %v1459_v47  ;;  %v2343_v53 = vadd.f32 %v2342_v51, %v2341_v48  ;;  %v2344_v54 = vpop.f32.mrb[62].mxu1  ;;  %v2233_v55 = vpop.f32.mrb[63].mxu0  ;;  %v1518_v47 = vld [vmem:[#allocation2 + $0xa0] sm:$0xff] (!%p1959_p13)  ;;  %v1519_v48 = vld [vmem:[#allocation2 + $0xa8] sm:$0xff] (!%p1959_p13)  ;;  %v2066_v51 = vpack.c.bf16 (!%p1959_p13), %v1552_v39, %v1551_v38  ;;  %2112 = vst [vmem:[%s2814_s30 + $0x28] sm:$0xff] (!%p1959_p13), %v2056_v43  }
 0x1c7   : > { %v2234_v57 = vadd.f32 %v2233_v55, %v2232_v52  ;;  %v2345_v58 = vpop.f32.mrb[63].mxu1  ;;  %v1556_v52 = vadd.f32 (!%p1959_p13), %v2919_v3, %v1517_v42  ;;  %v1522_v55 = vld [vmem:[#allocation2 + $0xc0] sm:$0xff] (!%p1959_p13) }
 0x1c8   : > { %v1424_v59 = vadd.f32 %v2343_v53, %v2231_v50  ;;  %v2346_v60 = vadd.f32 %v2345_v58, %v2344_v54  ;;  %1497 = sbr.rel (%p1959_p13) target bundleno = 475 (0x1db), region = 63  ;;  %v2061_v50 = vpack.c.bf16 (!%p1959_p13), %v1550_v37, %v1549_v32  ;;  %v1557_v53 = vadd.f32 (!%p1959_p13), %v2919_v3, %v1518_v47  ;;  %v1521_v54 = vld [vmem:[#allocation2 + $0xb8] sm:$0xff] (!%p1959_p13)  ;;  %2114 = vst [vmem:[%s2814_s30 + $0x38] sm:$0xff] (!%p1959_p13), %v2066_v51  }
 0x1c9   : > { %v1558_v58 = vadd.f32 (!%p1959_p13), %v2919_v3, %v1519_v48  ;;  %v1561_v1 = vadd.f32 (!%p1959_p13), %v2919_v3, %v1522_v55 }
 0x1ca   : > { %v1460_v62 = vadd.f32 %v1424_v59, %v466_v56  ;;  %v1427_v63 = vadd.f32 %v2346_v60, %v2234_v57  ;;  %v1523_v56 = vld [vmem:[#allocation2 + $0xc8] sm:$0xff] (!%p1959_p13)  ;;  %v2071_v57 = vpack.c.bf16 (!%p1959_p13), %v1554_v45, %v1553_v44  ;;  %v1559_v59 = vadd.f32 (!%p1959_p13), %v2919_v3, %v1520_v49  ;;  %2113 = vst [vmem:[%s2814_s30 + $0x30] sm:$0xff] (!%p1959_p13), %v2061_v50  }
 0x1cb   : > { %v1560_v60 = vadd.f32 (!%p1959_p13), %v2919_v3, %v1521_v54  ;;  %v1562_v2 = vadd.f32 (!%p1959_p13), %v2919_v3, %v1523_v56  ;;  %v2081_v8 = vpack.c.bf16 (!%p1959_p13), %v1558_v58, %v1557_v53 }
 0x1cc   : > { %1492 = vst [vmem:[#allocation2 + $0xf0] sm:$0xff] %v1460_v62  ;;  %v1461_v0 = vadd.f32 %v1427_v63, %v467_v61  ;;  %v1524_v61 = vld [vmem:[#allocation2 + $0xd0] sm:$0xff] (!%p1959_p13)  ;;  %v1525_v62 = vld [vmem:[#allocation2 + $0xd8] sm:$0xff] (!%p1959_p13)  ;;  %v1526_v63 = vld [vmem:[#allocation2 + $0xe0] sm:$0xff] (!%p1959_p13) }
 0x1cd   : > { %v1563_v4 = vadd.f32 (!%p1959_p13), %v2919_v3, %v1524_v61  ;;  %v1527_v5 = vld [vmem:[#allocation2 + $0xe8] sm:$0xff] (!%p1959_p13)  ;;  %2115 = vst [vmem:[%s2814_s30 + $0x40] sm:$0xff] (!%p1959_p13), %v2071_v57   ;;  %v2086_v9 = vpack.c.bf16 (!%p1959_p13), %v1560_v60, %v1559_v59  ;;  %v1564_v10 = vadd.f32 (!%p1959_p13), %v2919_v3, %v1525_v62  ;;  %v1565_v11 = vadd.f32 (!%p1959_p13), %v2919_v3, %v1526_v63 }
 0x1ce   : > { %1493 = vst [vmem:[#allocation2 + $0xf8] sm:$0xff] %v1461_v0  ;;  %v2076_v0 = vpack.c.bf16 (!%p1959_p13), %v1556_v52, %v1555_v46  ;;  %v2091_v12 = vpack.c.bf16 (!%p1959_p13), %v1562_v2, %v1561_v1  ;;  %v1566_v13 = vadd.f32 (!%p1959_p13), %v2919_v3, %v1527_v5  ;;  %2117 = vst [vmem:[%s2814_s30 + $0x50] sm:$0xff] (!%p1959_p13), %v2081_v8  }
 0x1cf   : > { %2118 = vst [vmem:[%s2814_s30 + $0x58] sm:$0xff] %v2086_v9   ;;  %v2096_v16 = vpack.c.bf16 %v1564_v10, %v1563_v4 }
 0x1d0   : > { %2116 = vst [vmem:[%s2814_s30 + $0x48] sm:$0xff] %v2076_v0   ;;  %2119 = vst [vmem:[%s2814_s30 + $0x60] sm:$0xff] %v2091_v12   ;;  %v2101_v17 = vpack.c.bf16 %v1566_v13, %v1565_v11 }
 0x1d1   : > { %2120 = vst [vmem:[%s2814_s30 + $0x68] sm:$0xff] %v2096_v16  }
 0x1d2   : > { %2121 = vst [vmem:[%s2814_s30 + $0x70] sm:$0xff] %v2101_v17  }
 0x1d3   : > { %v1528_v6 = vld [vmem:[#allocation2 + $0xf0] sm:$0xff] }
 0x1d4   : > { %v1567_v14 = vadd.f32 %v2919_v3, %v1528_v6 }
 0x1d5   : > { %v1529_v7 = vld [vmem:[#allocation2 + $0xf8] sm:$0xff] }
 0x1d6   : > { %v1568_v15 = vadd.f32 %v2919_v3, %v1529_v7 }
 0x1d8   : > { %v2106_v18 = vpack.c.bf16 %v1568_v15, %v1567_v14 }
 0x1da   : > { %2122 = vst [vmem:[%s2814_s30 + $0x78] sm:$0xff] %v2106_v18  }
 0x1db PF: > { %s13_s18 = sadd.s32 1, %s2586_s18   ;;  %s2994_s12 = smov %s2566_s13 }
 0x1dc   : > { %p10_p0 = scmp.ge.s32.totalorder %s13_s18, 6   ;;  %s2995_s13 = smov %s2660_s25 }
 0x1dd   : > { %s2996_s14 = smov %s2578_s16  ;;  %s2997_s15 = smov %s2582_s17 }
 0x1de   : > { %s2998_s16 = smov %s3001_s19  ;;  %s2999_s17 = smov %s3005_s20 }
 0x1df   :  { %12 = sbr.rel (!%p10_p0) target bundleno = 4 (0x4), region = 104 }

// kernel: _forward_impl.21
= control target key start
LH: loop header
LB: loop body
LE: loop exit
PB: predicated region body
PF: predicated region fallthrough
CT: control target
= control target key end

     0   :  { %s6320_s1 = inlined_call_operand.vmem [shape: bf16[3200,256], index: 1, kind: input, shape index: {}]   ;;  %s6321_s0 = inlined_call_operand.vmem [shape: bf16[16,3200], index: 0, kind: input, shape index: {}]   ;;  %s6322_s3 = inlined_call_operand.vmem [shape: bf16[256,256], index: 3, kind: input, shape index: {}]   ;;  %s6323_s5 = inlined_call_operand.vmem [shape: bf16[256,128], index: 5, kind: input, shape index: {}]   ;;  %s6324_s2 = inlined_call_operand.vmem [shape: f32[1,256], index: 2, kind: input, shape index: {}, may-alias: {2,4}]   ;;  %s6325_s4 = inlined_call_operand.vmem [shape: f32[1,256], index: 4, kind: input, shape index: {}, may-alias: {2,4}]   ;;  %s6326_s6 = inlined_call_operand.vmem [shape: f32[1,128], index: 6, kind: input, shape index: {}]   ;;  %s6327_s7 = inlined_call_operand.vmem [shape: f32[16,128], index: 7, kind: output, shape index: {}]  }
   0x1   :  { %v4140_v0 = vld [vmem:[%s6320_s1 + $0x4] ss:$8 sps:$4 sm:$0xff]   ;;  %v4144_v2 = vld [vmem:[%s6320_s1] ss:$8 sps:$4 sm:$0xff]   ;;  %v4146_v4 = vld [vmem:[%s6320_s1 + $0x14] ss:$8 sps:$4 sm:$0xff]  }
   0x2   :  { %v4142_v1 = vld [vmem:[%s6320_s1 + $0x504] ss:$8 sps:$4 sm:$0xff]   ;;  %2591 = vmatprep.subr.bf16.mxu1 %v4140_v0  ;;  %v4145_v3 = vld [vmem:[%s6320_s1 + $0x500] ss:$8 sps:$4 sm:$0xff]   ;;  %v4148_v5 = vld [vmem:[%s6320_s1 + $0x514] ss:$8 sps:$4 sm:$0xff]  }
   0x3   :  { %2806 = vmatprep.subr.bf16.mxu0 %v4142_v1  ;;  %2592 = vmatpush1.bf16.msra.mxu1 %v4144_v2  ;;  %v4150_v6 = vld [vmem:[%s6320_s1 + $0x10] ss:$8 sps:$4 sm:$0xff]   ;;  %v4152_v8 = vld [vmem:[%s6320_s1 + $0x24] ss:$8 sps:$4 sm:$0xff]   ;;  %v4156_v10 = vld [vmem:[%s6320_s1 + $0x20] ss:$8 sps:$4 sm:$0xff]  }
   0x4   :  { %2807 = vmatpush1.bf16.msra.mxu0 %v4145_v3  ;;  %2593 = vmatprep.subr.bf16.mxu1 %v4146_v4  ;;  %v4151_v7 = vld [vmem:[%s6320_s1 + $0x510] ss:$8 sps:$4 sm:$0xff]   ;;  %v4154_v9 = vld [vmem:[%s6320_s1 + $0x524] ss:$8 sps:$4 sm:$0xff]   ;;  %v4157_v11 = vld [vmem:[%s6320_s1 + $0x520] ss:$8 sps:$4 sm:$0xff]  }
   0x5   :  { %2808 = vmatprep.subr.bf16.mxu0 %v4148_v5  ;;  %v4158_v12 = vld [vmem:[%s6320_s1 + $0x34] ss:$8 sps:$4 sm:$0xff]   ;;  %v4162_v14 = vld [vmem:[%s6320_s1 + $0x30] ss:$8 sps:$4 sm:$0xff]   ;;  %v4164_v16 = vld [vmem:[%s6320_s1 + $0x44] ss:$8 sps:$4 sm:$0xff]  }
   0x6   :  { %v4160_v13 = vld [vmem:[%s6320_s1 + $0x534] ss:$8 sps:$4 sm:$0xff]   ;;  %v4163_v15 = vld [vmem:[%s6320_s1 + $0x530] ss:$8 sps:$4 sm:$0xff]   ;;  %v4166_v17 = vld [vmem:[%s6320_s1 + $0x544] ss:$8 sps:$4 sm:$0xff]  }
   0x7   :  { %2594 = vmatpush1.bf16.msra.mxu1 %v4150_v6  ;;  %v4168_v18 = vld [vmem:[%s6320_s1 + $0x40] ss:$8 sps:$4 sm:$0xff]   ;;  %v4170_v20 = vld [vmem:[%s6320_s1 + $0x54] ss:$8 sps:$4 sm:$0xff]   ;;  %v4174_v22 = vld [vmem:[%s6320_s1 + $0x50] ss:$8 sps:$4 sm:$0xff]  }
   0x8   :  { %2809 = vmatpush1.bf16.msra.mxu0 %v4151_v7  ;;  %2595 = vmatprep.subr.bf16.mxu1 %v4152_v8  ;;  %v4169_v19 = vld [vmem:[%s6320_s1 + $0x540] ss:$8 sps:$4 sm:$0xff]   ;;  %v4172_v21 = vld [vmem:[%s6320_s1 + $0x554] ss:$8 sps:$4 sm:$0xff]   ;;  %v4175_v23 = vld [vmem:[%s6320_s1 + $0x550] ss:$8 sps:$4 sm:$0xff]  }
   0x9   :  { %2810 = vmatprep.subr.bf16.mxu0 %v4154_v9  ;;  %v4176_v24 = vld [vmem:[%s6320_s1 + $0x64] ss:$8 sps:$4 sm:$0xff]   ;;  %v4180_v26 = vld [vmem:[%s6320_s1 + $0x60] ss:$8 sps:$4 sm:$0xff]   ;;  %v4182_v28 = vld [vmem:[%s6320_s1 + $0x74] ss:$8 sps:$4 sm:$0xff]  }
   0xa   :  { %v4178_v25 = vld [vmem:[%s6320_s1 + $0x564] ss:$8 sps:$4 sm:$0xff]   ;;  %v4181_v27 = vld [vmem:[%s6320_s1 + $0x560] ss:$8 sps:$4 sm:$0xff]   ;;  %v4184_v29 = vld [vmem:[%s6320_s1 + $0x574] ss:$8 sps:$4 sm:$0xff]  }
   0xb   :  { %2596 = vmatpush1.bf16.msra.mxu1 %v4156_v10  ;;  %v4186_v30 = vld [vmem:[%s6320_s1 + $0x70] ss:$8 sps:$4 sm:$0xff]   ;;  %v4188_v32 = vld [vmem:[%s6320_s1 + $0x84] ss:$8 sps:$4 sm:$0xff]   ;;  %v4192_v34 = vld [vmem:[%s6320_s1 + $0x80] ss:$8 sps:$4 sm:$0xff]  }
   0xc   :  { %2811 = vmatpush1.bf16.msra.mxu0 %v4157_v11  ;;  %2597 = vmatprep.subr.bf16.mxu1 %v4158_v12  ;;  %v4187_v31 = vld [vmem:[%s6320_s1 + $0x570] ss:$8 sps:$4 sm:$0xff]   ;;  %v4190_v33 = vld [vmem:[%s6320_s1 + $0x584] ss:$8 sps:$4 sm:$0xff]   ;;  %v4193_v35 = vld [vmem:[%s6320_s1 + $0x580] ss:$8 sps:$4 sm:$0xff]  }
   0xd   :  { %2812 = vmatprep.subr.bf16.mxu0 %v4160_v13  ;;  %v4194_v36 = vld [vmem:[%s6320_s1 + $0x94] ss:$8 sps:$4 sm:$0xff]   ;;  %v4198_v38 = vld [vmem:[%s6320_s1 + $0x90] ss:$8 sps:$4 sm:$0xff]   ;;  %v4200_v40 = vld [vmem:[%s6320_s1 + $0xa4] ss:$8 sps:$4 sm:$0xff]  }
   0xe   :  { %v4196_v37 = vld [vmem:[%s6320_s1 + $0x594] ss:$8 sps:$4 sm:$0xff]   ;;  %v4199_v39 = vld [vmem:[%s6320_s1 + $0x590] ss:$8 sps:$4 sm:$0xff]   ;;  %v4202_v41 = vld [vmem:[%s6320_s1 + $0x5a4] ss:$8 sps:$4 sm:$0xff]  }
   0xf   :  { %2598 = vmatpush1.bf16.msra.mxu1 %v4162_v14  ;;  %v4204_v42 = vld [vmem:[%s6320_s1 + $0xa0] ss:$8 sps:$4 sm:$0xff]   ;;  %v4206_v44 = vld [vmem:[%s6320_s1 + $0xb4] ss:$8 sps:$4 sm:$0xff]   ;;  %v4210_v46 = vld [vmem:[%s6320_s1 + $0xb0] ss:$8 sps:$4 sm:$0xff]  }
  0x10   :  { %2813 = vmatpush1.bf16.msra.mxu0 %v4163_v15  ;;  %2599 = vmatprep.subr.bf16.mxu1 %v4164_v16  ;;  %v4205_v43 = vld [vmem:[%s6320_s1 + $0x5a0] ss:$8 sps:$4 sm:$0xff]   ;;  %v4208_v45 = vld [vmem:[%s6320_s1 + $0x5b4] ss:$8 sps:$4 sm:$0xff]   ;;  %v4211_v47 = vld [vmem:[%s6320_s1 + $0x5b0] ss:$8 sps:$4 sm:$0xff]  }
  0x11   :  { %2814 = vmatprep.subr.bf16.mxu0 %v4166_v17  ;;  %v4238_v48 = vld [vmem:[%s6321_s0 + $0x4] ss:$100 sps:$4 sm:$0xff]   ;;  %v4244_v51 = vld [vmem:[%s6321_s0 + $0x2c] ss:$100 sps:$4 sm:$0xff]   ;;  %v4218_v54 = vld [vmem:[%s6320_s1 + $0xd4] ss:$8 sps:$4 sm:$0xff]  }
  0x12   :  { %v4212_v49 = vld [vmem:[%s6320_s1 + $0xc4] ss:$8 sps:$4 sm:$0xff]   ;;  %2623 = vmatprep.mubr.bf16.mxu1 %v4238_v48  ;;  %v4216_v52 = vld [vmem:[%s6320_s1 + $0xc0] ss:$8 sps:$4 sm:$0xff]   ;;  %v4220_v55 = vld [vmem:[%s6320_s1 + $0x5d4] ss:$8 sps:$4 sm:$0xff]   ;;  %2838 = vmatprep.mubr.bf16.mxu0 %v4244_v51 }
  0x13   :  { %2600 = vmatpush1.bf16.msra.mxu1 %v4168_v18  ;;  %v4214_v50 = vld [vmem:[%s6320_s1 + $0x5c4] ss:$8 sps:$4 sm:$0xff]   ;;  %v4217_v53 = vld [vmem:[%s6320_s1 + $0x5c0] ss:$8 sps:$4 sm:$0xff]   ;;  %v4222_v56 = vld [vmem:[%s6320_s1 + $0xd0] ss:$8 sps:$4 sm:$0xff]  }
  0x14   :  { %2815 = vmatpush1.bf16.msra.mxu0 %v4169_v19  ;;  %2601 = vmatprep.subr.bf16.mxu1 %v4170_v20  ;;  %v4223_v57 = vld [vmem:[%s6320_s1 + $0x5d0] ss:$8 sps:$4 sm:$0xff]   ;;  %v4224_v58 = vld [vmem:[%s6320_s1 + $0xe4] ss:$8 sps:$4 sm:$0xff]   ;;  %v4228_v60 = vld [vmem:[%s6320_s1 + $0xe0] ss:$8 sps:$4 sm:$0xff]  }
  0x15   :  { %2816 = vmatprep.subr.bf16.mxu0 %v4172_v21  ;;  %v4226_v59 = vld [vmem:[%s6320_s1 + $0x5e4] ss:$8 sps:$4 sm:$0xff]   ;;  %v4229_v61 = vld [vmem:[%s6320_s1 + $0x5e0] ss:$8 sps:$4 sm:$0xff]   ;;  %v4230_v62 = vld [vmem:[%s6320_s1 + $0xf4] ss:$8 sps:$4 sm:$0xff]  }
  0x16   :  { %v4232_v63 = vld [vmem:[%s6320_s1 + $0x5f4] ss:$8 sps:$4 sm:$0xff]   ;;  %v4234_v0 = vld [vmem:[%s6320_s1 + $0xf0] ss:$8 sps:$4 sm:$0xff]   ;;  %v4241_v2 = vld [vmem:[%s6320_s1 + $0x104] ss:$8 sps:$4 sm:$0xff]  }
  0x17   :  { %2602 = vmatpush1.bf16.msra.mxu1 %v4174_v22  ;;  %v4235_v1 = vld [vmem:[%s6320_s1 + $0x5f0] ss:$8 sps:$4 sm:$0xff]   ;;  %v4247_v3 = vld [vmem:[%s6320_s1 + $0x604] ss:$8 sps:$4 sm:$0xff]   ;;  %v4239_v5 = vld [vmem:[%s6320_s1 + $0x100] ss:$8 sps:$4 sm:$0xff]  }
  0x18   :  { %2817 = vmatpush1.bf16.msra.mxu0 %v4175_v23  ;;  %2603 = vmatprep.subr.bf16.mxu1 %v4176_v24  ;;  %v4236_v4 = vld [vmem:[%s6321_s0] ss:$100 sps:$4 sm:$0xff]   ;;  %v4242_v6 = vld [vmem:[%s6321_s0 + $0x28] ss:$100 sps:$4 sm:$0xff]   ;;  %v4250_v8 = vld [vmem:[%s6320_s1 + $0x114] ss:$8 sps:$4 sm:$0xff]  }
  0x19   :  { %2818 = vmatprep.subr.bf16.mxu0 %v4178_v25  ;;  %v4245_v7 = vld [vmem:[%s6320_s1 + $0x600] ss:$8 sps:$4 sm:$0xff]   ;;  %v4253_v9 = vld [vmem:[%s6320_s1 + $0x614] ss:$8 sps:$4 sm:$0xff]   ;;  %v4248_v10 = vld [vmem:[%s6320_s1 + $0x110] ss:$8 sps:$4 sm:$0xff]  }
  0x1a   :  { %v4251_v11 = vld [vmem:[%s6320_s1 + $0x610] ss:$8 sps:$4 sm:$0xff]   ;;  %v4256_v12 = vld [vmem:[%s6320_s1 + $0x124] ss:$8 sps:$4 sm:$0xff]   ;;  %v4254_v14 = vld [vmem:[%s6320_s1 + $0x120] ss:$8 sps:$4 sm:$0xff]  }
  0x1b   :  { %2604 = vmatpush1.bf16.msra.mxu1 %v4180_v26  ;;  %v4259_v13 = vld [vmem:[%s6320_s1 + $0x624] ss:$8 sps:$4 sm:$0xff]   ;;  %v4257_v15 = vld [vmem:[%s6320_s1 + $0x620] ss:$8 sps:$4 sm:$0xff]   ;;  %v4262_v16 = vld [vmem:[%s6320_s1 + $0x134] ss:$8 sps:$4 sm:$0xff]  }
  0x1c   :  { %2819 = vmatpush1.bf16.msra.mxu0 %v4181_v27  ;;  %2605 = vmatprep.subr.bf16.mxu1 %v4182_v28  ;;  %v4265_v17 = vld [vmem:[%s6320_s1 + $0x634] ss:$8 sps:$4 sm:$0xff]   ;;  %v4260_v18 = vld [vmem:[%s6320_s1 + $0x130] ss:$8 sps:$4 sm:$0xff]   ;;  %v4268_v20 = vld [vmem:[%s6320_s1 + $0x144] ss:$8 sps:$4 sm:$0xff]  }
  0x1d   :  { %2820 = vmatprep.subr.bf16.mxu0 %v4184_v29  ;;  %v4263_v19 = vld [vmem:[%s6320_s1 + $0x630] ss:$8 sps:$4 sm:$0xff]   ;;  %v4271_v21 = vld [vmem:[%s6320_s1 + $0x644] ss:$8 sps:$4 sm:$0xff]   ;;  %v4266_v22 = vld [vmem:[%s6320_s1 + $0x140] ss:$8 sps:$4 sm:$0xff]  }
  0x1e   :  { %v4269_v23 = vld [vmem:[%s6320_s1 + $0x640] ss:$8 sps:$4 sm:$0xff]   ;;  %v4274_v24 = vld [vmem:[%s6320_s1 + $0x154] ss:$8 sps:$4 sm:$0xff]   ;;  %v4272_v26 = vld [vmem:[%s6320_s1 + $0x150] ss:$8 sps:$4 sm:$0xff]  }
  0x1f   :  { %2606 = vmatpush1.bf16.msra.mxu1 %v4186_v30  ;;  %v4277_v25 = vld [vmem:[%s6320_s1 + $0x654] ss:$8 sps:$4 sm:$0xff]   ;;  %v4275_v27 = vld [vmem:[%s6320_s1 + $0x650] ss:$8 sps:$4 sm:$0xff]   ;;  %v4280_v28 = vld [vmem:[%s6320_s1 + $0x164] ss:$8 sps:$4 sm:$0xff]  }
  0x20   :  { %2821 = vmatpush1.bf16.msra.mxu0 %v4187_v31  ;;  %2607 = vmatprep.subr.bf16.mxu1 %v4188_v32  ;;  %v4283_v29 = vld [vmem:[%s6320_s1 + $0x664] ss:$8 sps:$4 sm:$0xff]   ;;  %v4278_v30 = vld [vmem:[%s6320_s1 + $0x160] ss:$8 sps:$4 sm:$0xff]   ;;  %v4286_v32 = vld [vmem:[%s6320_s1 + $0x174] ss:$8 sps:$4 sm:$0xff]  }
  0x21   :  { %2822 = vmatprep.subr.bf16.mxu0 %v4190_v33  ;;  %v4281_v31 = vld [vmem:[%s6320_s1 + $0x660] ss:$8 sps:$4 sm:$0xff]   ;;  %v4289_v33 = vld [vmem:[%s6320_s1 + $0x674] ss:$8 sps:$4 sm:$0xff]  }
  0x22   :  { %v4302_v48 = vld [vmem:[%s6320_s1 + $0x1a0] ss:$8 sps:$4 sm:$0xff]   ;;  %v4313_v51 = vld [vmem:[%s6320_s1 + $0x6b4] ss:$8 sps:$4 sm:$0xff]  }
  0x23   :  { %2608 = vmatpush1.bf16.msra.mxu1 %v4192_v34  ;;  %v4340_v34 = vld [vmem:[%s6321_s0 + $0xc] ss:$100 sps:$4 sm:$0xff]  }
  0x24   :  { %2823 = vmatpush1.bf16.msra.mxu0 %v4193_v35  ;;  %2609 = vmatprep.subr.bf16.mxu1 %v4194_v36  ;;  %v4284_v35 = vld [vmem:[%s6320_s1 + $0x170] ss:$8 sps:$4 sm:$0xff]  }
  0x25   :  { %2824 = vmatprep.subr.bf16.mxu0 %v4196_v37  ;;  %v4287_v36 = vld [vmem:[%s6320_s1 + $0x670] ss:$8 sps:$4 sm:$0xff]  }
  0x26   :  { %v4346_v37 = vld [vmem:[%s6321_s0 + $0x34] ss:$100 sps:$4 sm:$0xff]  }
  0x27   :  { %2610 = vmatpush1.bf16.msra.mxu1 %v4198_v38  ;;  %v4292_v38 = vld [vmem:[%s6320_s1 + $0x184] ss:$8 sps:$4 sm:$0xff]  }
  0x28   :  { %2825 = vmatpush1.bf16.msra.mxu0 %v4199_v39  ;;  %2611 = vmatprep.subr.bf16.mxu1 %v4200_v40  ;;  %v4295_v39 = vld [vmem:[%s6320_s1 + $0x684] ss:$8 sps:$4 sm:$0xff]   ;;  %v4290_v40 = vld [vmem:[%s6320_s1 + $0x180] ss:$8 sps:$4 sm:$0xff]  }
  0x29   :  { %2826 = vmatprep.subr.bf16.mxu0 %v4202_v41  ;;  %v4293_v41 = vld [vmem:[%s6320_s1 + $0x680] ss:$8 sps:$4 sm:$0xff]  }
  0x2b   :  { %2612 = vmatpush1.bf16.msra.mxu1 %v4204_v42  ;;  %v4298_v42 = vld [vmem:[%s6320_s1 + $0x194] ss:$8 sps:$4 sm:$0xff]  }
  0x2c   :  { %2827 = vmatpush1.bf16.msra.mxu0 %v4205_v43  ;;  %2613 = vmatprep.subr.bf16.mxu1 %v4206_v44  ;;  %v4301_v43 = vld [vmem:[%s6320_s1 + $0x694] ss:$8 sps:$4 sm:$0xff]   ;;  %v4296_v44 = vld [vmem:[%s6320_s1 + $0x190] ss:$8 sps:$4 sm:$0xff]  }
  0x2d   :  { %2828 = vmatprep.subr.bf16.mxu0 %v4208_v45  ;;  %v4299_v45 = vld [vmem:[%s6320_s1 + $0x690] ss:$8 sps:$4 sm:$0xff]  }
  0x2f   :  { %2614 = vmatpush1.bf16.msra.mxu1 %v4210_v46  ;;  %v4304_v46 = vld [vmem:[%s6320_s1 + $0x1a4] ss:$8 sps:$4 sm:$0xff]  }
  0x30   :  { %2829 = vmatpush1.bf16.msra.mxu0 %v4211_v47  ;;  %2615 = vmatprep.subr.bf16.mxu1 %v4212_v49  ;;  %v4307_v47 = vld [vmem:[%s6320_s1 + $0x6a4] ss:$8 sps:$4 sm:$0xff]   ;;  %v4305_v49 = vld [vmem:[%s6320_s1 + $0x6a0] ss:$8 sps:$4 sm:$0xff]  }
  0x31   :  { %2830 = vmatprep.subr.bf16.mxu0 %v4214_v50  ;;  %v4310_v50 = vld [vmem:[%s6320_s1 + $0x1b4] ss:$8 sps:$4 sm:$0xff]  }
  0x33   :  { %2616 = vmatpush1.bf16.msra.mxu1 %v4216_v52  ;;  %v4308_v52 = vld [vmem:[%s6320_s1 + $0x1b0] ss:$8 sps:$4 sm:$0xff]  }
  0x34   :  { %2831 = vmatpush1.bf16.msra.mxu0 %v4217_v53  ;;  %2617 = vmatprep.subr.bf16.mxu1 %v4218_v54  ;;  %v4311_v53 = vld [vmem:[%s6320_s1 + $0x6b0] ss:$8 sps:$4 sm:$0xff]   ;;  %v4316_v54 = vld [vmem:[%s6320_s1 + $0x1c4] ss:$8 sps:$4 sm:$0xff]  }
  0x35   :  { %2832 = vmatprep.subr.bf16.mxu0 %v4220_v55  ;;  %v4319_v55 = vld [vmem:[%s6320_s1 + $0x6c4] ss:$8 sps:$4 sm:$0xff]  }
  0x37   :  { %2618 = vmatpush1.bf16.msra.mxu1 %v4222_v56  ;;  %v4314_v56 = vld [vmem:[%s6320_s1 + $0x1c0] ss:$8 sps:$4 sm:$0xff]  }
  0x38   :  { %2833 = vmatpush1.bf16.msra.mxu0 %v4223_v57  ;;  %2619 = vmatprep.subr.bf16.mxu1 %v4224_v58  ;;  %v4317_v57 = vld [vmem:[%s6320_s1 + $0x6c0] ss:$8 sps:$4 sm:$0xff]   ;;  %v4322_v58 = vld [vmem:[%s6320_s1 + $0x1d4] ss:$8 sps:$4 sm:$0xff]  }
  0x39   :  { %2834 = vmatprep.subr.bf16.mxu0 %v4226_v59  ;;  %v4325_v59 = vld [vmem:[%s6320_s1 + $0x6d4] ss:$8 sps:$4 sm:$0xff]  }
  0x3b   :  { %2620 = vmatpush1.bf16.msra.mxu1 %v4228_v60  ;;  %v4320_v60 = vld [vmem:[%s6320_s1 + $0x1d0] ss:$8 sps:$4 sm:$0xff]  }
  0x3c   :  { %2835 = vmatpush1.bf16.msra.mxu0 %v4229_v61  ;;  %2621 = vmatprep.subr.bf16.mxu1 %v4230_v62  ;;  %v4323_v61 = vld [vmem:[%s6320_s1 + $0x6d0] ss:$8 sps:$4 sm:$0xff]   ;;  %v4328_v62 = vld [vmem:[%s6320_s1 + $0x1e4] ss:$8 sps:$4 sm:$0xff]  }
  0x3d   :  { %2836 = vmatprep.subr.bf16.mxu0 %v4232_v63  ;;  %v4331_v63 = vld [vmem:[%s6320_s1 + $0x6e4] ss:$8 sps:$4 sm:$0xff]  }
  0x3f   :  { %2622 = vmatpush1.bf16.msra.mxu1 %v4234_v0  ;;  %v4326_v0 = vld [vmem:[%s6320_s1 + $0x1e0] ss:$8 sps:$4 sm:$0xff]  }
  0x40   :  { %2837 = vmatpush1.bf16.msra.mxu0 %v4235_v1  ;;  %2634 = vmatprep.subr.bf16.mxu1 %v4241_v2  ;;  %v4329_v1 = vld [vmem:[%s6320_s1 + $0x6e0] ss:$8 sps:$4 sm:$0xff]   ;;  %v4334_v2 = vld [vmem:[%s6320_s1 + $0x1f4] ss:$8 sps:$4 sm:$0xff]  }
  0x41   :  { %2849 = vmatprep.subr.bf16.mxu0 %v4247_v3  ;;  %v4337_v3 = vld [vmem:[%s6320_s1 + $0x6f4] ss:$8 sps:$4 sm:$0xff]  }
  0x42   :  { %2624 = vmatmul.mubr.bf16.vlgmr.msra.gmra.mrb[0].mxu1 %v4236_v4  ;;  %v4332_v4 = vld [vmem:[%s6320_s1 + $0x1f0] ss:$8 sps:$4 sm:$0xff]  }
  0x43   :  { %2839 = vmatmul.mubr.bf16.vlgmr.msra.gmra.mrb[0].mxu0 %v4242_v6  ;;  %2635 = vmatpush1.bf16.msra.mxu1 %v4239_v5  ;;  %v4335_v5 = vld [vmem:[%s6320_s1 + $0x6f0] ss:$8 sps:$4 sm:$0xff]   ;;  %v4343_v6 = vld [vmem:[%s6320_s1 + $0x204] ss:$8 sps:$4 sm:$0xff]  }
  0x44   :  { %2850 = vmatpush1.bf16.msra.mxu0 %v4245_v7  ;;  %2636 = vmatprep.subr.bf16.mxu1 %v4250_v8  ;;  %v4349_v7 = vld [vmem:[%s6320_s1 + $0x704] ss:$8 sps:$4 sm:$0xff]  }
  0x45   :  { %2851 = vmatprep.subr.bf16.mxu0 %v4253_v9  ;;  %2666 = vmatprep.mubr.bf16.mxu1 %v4340_v34  ;;  %v4338_v8 = vld [vmem:[%s6321_s0 + $0x8] ss:$100 sps:$4 sm:$0xff]  }
  0x46   :  { %2881 = vmatprep.mubr.bf16.mxu0 %v4346_v37  ;;  %v4341_v9 = vld [vmem:[%s6320_s1 + $0x200] ss:$8 sps:$4 sm:$0xff]   ;;  %v4382_v34 = vld [vmem:[%s6320_s1 + $0x264] ss:$8 sps:$4 sm:$0xff]  }
  0x47   :  { %2637 = vmatpush1.bf16.msra.mxu1 %v4248_v10  ;;  %v4344_v10 = vld [vmem:[%s6321_s0 + $0x30] ss:$100 sps:$4 sm:$0xff]   ;;  %v4383_v37 = vld [vmem:[%s6320_s1 + $0x760] ss:$8 sps:$4 sm:$0xff]  }
  0x48   :  { %2852 = vmatpush1.bf16.msra.mxu0 %v4251_v11  ;;  %2638 = vmatprep.subr.bf16.mxu1 %v4256_v12  ;;  %v4347_v11 = vld [vmem:[%s6320_s1 + $0x700] ss:$8 sps:$4 sm:$0xff]   ;;  %v4352_v12 = vld [vmem:[%s6320_s1 + $0x214] ss:$8 sps:$4 sm:$0xff]  }
  0x49   :  { %2853 = vmatprep.subr.bf16.mxu0 %v4259_v13  ;;  %v4355_v13 = vld [vmem:[%s6320_s1 + $0x714] ss:$8 sps:$4 sm:$0xff]  }
  0x4b   :  { %2639 = vmatpush1.bf16.msra.mxu1 %v4254_v14  ;;  %v4350_v14 = vld [vmem:[%s6320_s1 + $0x210] ss:$8 sps:$4 sm:$0xff]  }
  0x4c   :  { %2854 = vmatpush1.bf16.msra.mxu0 %v4257_v15  ;;  %2640 = vmatprep.subr.bf16.mxu1 %v4262_v16  ;;  %v4353_v15 = vld [vmem:[%s6320_s1 + $0x710] ss:$8 sps:$4 sm:$0xff]   ;;  %v4358_v16 = vld [vmem:[%s6320_s1 + $0x224] ss:$8 sps:$4 sm:$0xff]  }
  0x4d   :  { %2855 = vmatprep.subr.bf16.mxu0 %v4265_v17  ;;  %v4361_v17 = vld [vmem:[%s6320_s1 + $0x724] ss:$8 sps:$4 sm:$0xff]  }
  0x4f   :  { %2641 = vmatpush1.bf16.msra.mxu1 %v4260_v18  ;;  %v4356_v18 = vld [vmem:[%s6320_s1 + $0x220] ss:$8 sps:$4 sm:$0xff]  }
  0x50   :  { %2856 = vmatpush1.bf16.msra.mxu0 %v4263_v19  ;;  %2642 = vmatprep.subr.bf16.mxu1 %v4268_v20  ;;  %v4442_v19 = vld [vmem:[%s6321_s0 + $0x14] ss:$100 sps:$4 sm:$0xff]   ;;  %v4359_v20 = vld [vmem:[%s6320_s1 + $0x720] ss:$8 sps:$4 sm:$0xff]  }
  0x51   :  { %2857 = vmatprep.subr.bf16.mxu0 %v4271_v21  ;;  %v4364_v21 = vld [vmem:[%s6320_s1 + $0x234] ss:$8 sps:$4 sm:$0xff]  }
  0x53   :  { %2643 = vmatpush1.bf16.msra.mxu1 %v4266_v22  ;;  %v4367_v22 = vld [vmem:[%s6320_s1 + $0x734] ss:$8 sps:$4 sm:$0xff]  }
  0x54   :  { %2858 = vmatpush1.bf16.msra.mxu0 %v4269_v23  ;;  %2644 = vmatprep.subr.bf16.mxu1 %v4274_v24  ;;  %v4448_v23 = vld [vmem:[%s6321_s0 + $0x3c] ss:$100 sps:$4 sm:$0xff]   ;;  %v4362_v24 = vld [vmem:[%s6320_s1 + $0x230] ss:$8 sps:$4 sm:$0xff]  }
  0x55   :  { %2859 = vmatprep.subr.bf16.mxu0 %v4277_v25  ;;  %v4365_v25 = vld [vmem:[%s6320_s1 + $0x730] ss:$8 sps:$4 sm:$0xff]  }
  0x57   :  { %2645 = vmatpush1.bf16.msra.mxu1 %v4272_v26  ;;  %v4370_v26 = vld [vmem:[%s6320_s1 + $0x244] ss:$8 sps:$4 sm:$0xff]  }
  0x58   :  { %2860 = vmatpush1.bf16.msra.mxu0 %v4275_v27  ;;  %2646 = vmatprep.subr.bf16.mxu1 %v4280_v28  ;;  %v4373_v27 = vld [vmem:[%s6320_s1 + $0x744] ss:$8 sps:$4 sm:$0xff]   ;;  %v4368_v28 = vld [vmem:[%s6320_s1 + $0x240] ss:$8 sps:$4 sm:$0xff]  }
  0x59   :  { %2861 = vmatprep.subr.bf16.mxu0 %v4283_v29  ;;  %v4371_v29 = vld [vmem:[%s6320_s1 + $0x740] ss:$8 sps:$4 sm:$0xff]  }
  0x5b   :  { %2647 = vmatpush1.bf16.msra.mxu1 %v4278_v30  ;;  %v4376_v30 = vld [vmem:[%s6320_s1 + $0x254] ss:$8 sps:$4 sm:$0xff]  }
  0x5c   :  { %2862 = vmatpush1.bf16.msra.mxu0 %v4281_v31  ;;  %2648 = vmatprep.subr.bf16.mxu1 %v4286_v32  ;;  %v4379_v31 = vld [vmem:[%s6320_s1 + $0x754] ss:$8 sps:$4 sm:$0xff]   ;;  %v4374_v32 = vld [vmem:[%s6320_s1 + $0x250] ss:$8 sps:$4 sm:$0xff]  }
  0x5d   :  { %2863 = vmatprep.subr.bf16.mxu0 %v4289_v33  ;;  %v4377_v33 = vld [vmem:[%s6320_s1 + $0x750] ss:$8 sps:$4 sm:$0xff]  }
  0x5f   :  { %2649 = vmatpush1.bf16.msra.mxu1 %v4284_v35  ;;  %v4385_v35 = vld [vmem:[%s6320_s1 + $0x764] ss:$8 sps:$4 sm:$0xff]  }
  0x60   :  { %2864 = vmatpush1.bf16.msra.mxu0 %v4287_v36  ;;  %2650 = vmatprep.subr.bf16.mxu1 %v4292_v38  ;;  %v4380_v36 = vld [vmem:[%s6320_s1 + $0x260] ss:$8 sps:$4 sm:$0xff]   ;;  %v4388_v38 = vld [vmem:[%s6320_s1 + $0x274] ss:$8 sps:$4 sm:$0xff]  }
  0x61   :  { %2865 = vmatprep.subr.bf16.mxu0 %v4295_v39  ;;  %v4391_v39 = vld [vmem:[%s6320_s1 + $0x774] ss:$8 sps:$4 sm:$0xff]  }
  0x63   :  { %2651 = vmatpush1.bf16.msra.mxu1 %v4290_v40  ;;  %v4386_v40 = vld [vmem:[%s6320_s1 + $0x270] ss:$8 sps:$4 sm:$0xff]  }
  0x64   :  { %2866 = vmatpush1.bf16.msra.mxu0 %v4293_v41  ;;  %2652 = vmatprep.subr.bf16.mxu1 %v4298_v42  ;;  %v4389_v41 = vld [vmem:[%s6320_s1 + $0x770] ss:$8 sps:$4 sm:$0xff]   ;;  %v4394_v42 = vld [vmem:[%s6320_s1 + $0x284] ss:$8 sps:$4 sm:$0xff]  }
  0x65   :  { %2867 = vmatprep.subr.bf16.mxu0 %v4301_v43  ;;  %v4397_v43 = vld [vmem:[%s6320_s1 + $0x784] ss:$8 sps:$4 sm:$0xff]  }
  0x67   :  { %2653 = vmatpush1.bf16.msra.mxu1 %v4296_v44  ;;  %v4392_v44 = vld [vmem:[%s6320_s1 + $0x280] ss:$8 sps:$4 sm:$0xff]  }
  0x68   :  { %2868 = vmatpush1.bf16.msra.mxu0 %v4299_v45  ;;  %2654 = vmatprep.subr.bf16.mxu1 %v4304_v46  ;;  %v4395_v45 = vld [vmem:[%s6320_s1 + $0x780] ss:$8 sps:$4 sm:$0xff]   ;;  %v4400_v46 = vld [vmem:[%s6320_s1 + $0x294] ss:$8 sps:$4 sm:$0xff]  }
  0x69   :  { %2869 = vmatprep.subr.bf16.mxu0 %v4307_v47  ;;  %v4403_v47 = vld [vmem:[%s6320_s1 + $0x794] ss:$8 sps:$4 sm:$0xff]  }
  0x6b   :  { %2655 = vmatpush1.bf16.msra.mxu1 %v4302_v48  ;;  %v4398_v48 = vld [vmem:[%s6320_s1 + $0x290] ss:$8 sps:$4 sm:$0xff]  }
  0x6c   :  { %2870 = vmatpush1.bf16.msra.mxu0 %v4305_v49  ;;  %2656 = vmatprep.subr.bf16.mxu1 %v4310_v50  ;;  %v4401_v49 = vld [vmem:[%s6320_s1 + $0x790] ss:$8 sps:$4 sm:$0xff]   ;;  %v4406_v50 = vld [vmem:[%s6320_s1 + $0x2a4] ss:$8 sps:$4 sm:$0xff]  }
  0x6d   :  { %2871 = vmatprep.subr.bf16.mxu0 %v4313_v51  ;;  %v4409_v51 = vld [vmem:[%s6320_s1 + $0x7a4] ss:$8 sps:$4 sm:$0xff]  }
  0x6f   :  { %2657 = vmatpush1.bf16.msra.mxu1 %v4308_v52  ;;  %v4404_v52 = vld [vmem:[%s6320_s1 + $0x2a0] ss:$8 sps:$4 sm:$0xff]  }
  0x70   :  { %2872 = vmatpush1.bf16.msra.mxu0 %v4311_v53  ;;  %2658 = vmatprep.subr.bf16.mxu1 %v4316_v54  ;;  %v4407_v53 = vld [vmem:[%s6320_s1 + $0x7a0] ss:$8 sps:$4 sm:$0xff]   ;;  %v4412_v54 = vld [vmem:[%s6320_s1 + $0x2b4] ss:$8 sps:$4 sm:$0xff]  }
  0x71   :  { %2873 = vmatprep.subr.bf16.mxu0 %v4319_v55  ;;  %v4415_v55 = vld [vmem:[%s6320_s1 + $0x7b4] ss:$8 sps:$4 sm:$0xff]  }
  0x73   :  { %2659 = vmatpush1.bf16.msra.mxu1 %v4314_v56  ;;  %v4410_v56 = vld [vmem:[%s6320_s1 + $0x2b0] ss:$8 sps:$4 sm:$0xff]  }
  0x74   :  { %2874 = vmatpush1.bf16.msra.mxu0 %v4317_v57  ;;  %2660 = vmatprep.subr.bf16.mxu1 %v4322_v58  ;;  %v4413_v57 = vld [vmem:[%s6320_s1 + $0x7b0] ss:$8 sps:$4 sm:$0xff]   ;;  %v4418_v58 = vld [vmem:[%s6320_s1 + $0x2c4] ss:$8 sps:$4 sm:$0xff]  }
  0x75   :  { %2875 = vmatprep.subr.bf16.mxu0 %v4325_v59  ;;  %v4421_v59 = vld [vmem:[%s6320_s1 + $0x7c4] ss:$8 sps:$4 sm:$0xff]  }
  0x77   :  { %2661 = vmatpush1.bf16.msra.mxu1 %v4320_v60  ;;  %v4416_v60 = vld [vmem:[%s6320_s1 + $0x2c0] ss:$8 sps:$4 sm:$0xff]  }
  0x78   :  { %2876 = vmatpush1.bf16.msra.mxu0 %v4323_v61  ;;  %2662 = vmatprep.subr.bf16.mxu1 %v4328_v62  ;;  %v4419_v61 = vld [vmem:[%s6320_s1 + $0x7c0] ss:$8 sps:$4 sm:$0xff]   ;;  %v4424_v62 = vld [vmem:[%s6320_s1 + $0x2d4] ss:$8 sps:$4 sm:$0xff]  }
  0x79   :  { %2877 = vmatprep.subr.bf16.mxu0 %v4331_v63  ;;  %v4427_v63 = vld [vmem:[%s6320_s1 + $0x7d4] ss:$8 sps:$4 sm:$0xff]  }
  0x7b   :  { %2663 = vmatpush1.bf16.msra.mxu1 %v4326_v0  ;;  %v4422_v0 = vld [vmem:[%s6320_s1 + $0x2d0] ss:$8 sps:$4 sm:$0xff]  }
  0x7c   :  { %2878 = vmatpush1.bf16.msra.mxu0 %v4329_v1  ;;  %2664 = vmatprep.subr.bf16.mxu1 %v4334_v2  ;;  %v4425_v1 = vld [vmem:[%s6320_s1 + $0x7d0] ss:$8 sps:$4 sm:$0xff]   ;;  %v4430_v2 = vld [vmem:[%s6320_s1 + $0x2e4] ss:$8 sps:$4 sm:$0xff]  }
  0x7d   :  { %2879 = vmatprep.subr.bf16.mxu0 %v4337_v3  ;;  %v4433_v3 = vld [vmem:[%s6320_s1 + $0x7e4] ss:$8 sps:$4 sm:$0xff]  }
  0x7f   :  { %2665 = vmatpush1.bf16.msra.mxu1 %v4332_v4  ;;  %v4428_v4 = vld [vmem:[%s6320_s1 + $0x2e0] ss:$8 sps:$4 sm:$0xff]  }
  0x80   :  { %2880 = vmatpush1.bf16.msra.mxu0 %v4335_v5  ;;  %2677 = vmatprep.subr.bf16.mxu1 %v4343_v6  ;;  %v4431_v5 = vld [vmem:[%s6320_s1 + $0x7e0] ss:$8 sps:$4 sm:$0xff]   ;;  %v4436_v6 = vld [vmem:[%s6320_s1 + $0x2f4] ss:$8 sps:$4 sm:$0xff]  }
  0x81   :  { %2892 = vmatprep.subr.bf16.mxu0 %v4349_v7  ;;  %v4439_v7 = vld [vmem:[%s6320_s1 + $0x7f4] ss:$8 sps:$4 sm:$0xff]  }
  0x82   :  { %2667 = vmatmul.mubr.bf16.vlgmr.msra.gmra.mrb[0].mxu1 %v4338_v8  ;;  %v4434_v8 = vld [vmem:[%s6320_s1 + $0x2f0] ss:$8 sps:$4 sm:$0xff]  }
  0x83   :  { %2882 = vmatmul.mubr.bf16.vlgmr.msra.gmra.mrb[0].mxu0 %v4344_v10  ;;  %2678 = vmatpush1.bf16.msra.mxu1 %v4341_v9  ;;  %v4437_v9 = vld [vmem:[%s6320_s1 + $0x7f0] ss:$8 sps:$4 sm:$0xff]   ;;  %v4445_v10 = vld [vmem:[%s6320_s1 + $0x304] ss:$8 sps:$4 sm:$0xff]  }
  0x84   :  { %2893 = vmatpush1.bf16.msra.mxu0 %v4347_v11  ;;  %2679 = vmatprep.subr.bf16.mxu1 %v4352_v12  ;;  %v4451_v11 = vld [vmem:[%s6320_s1 + $0x804] ss:$8 sps:$4 sm:$0xff]   ;;  %v4440_v12 = vld [vmem:[%s6321_s0 + $0x10] ss:$100 sps:$4 sm:$0xff]  }
  0x85   :  { %2894 = vmatprep.subr.bf16.mxu0 %v4355_v13  ;;  %2709 = vmatprep.mubr.bf16.mxu1 %v4442_v19  ;;  %v4443_v13 = vld [vmem:[%s6320_s1 + $0x300] ss:$8 sps:$4 sm:$0xff]  }
  0x86   :  { %2924 = vmatprep.mubr.bf16.mxu0 %v4448_v23  ;;  %v4550_v19 = vld [vmem:[%s6321_s0 + $0x44] ss:$100 sps:$4 sm:$0xff]  }
  0x87   :  { %2680 = vmatpush1.bf16.msra.mxu1 %v4350_v14  ;;  %v4446_v14 = vld [vmem:[%s6321_s0 + $0x38] ss:$100 sps:$4 sm:$0xff]   ;;  %v4463_v23 = vld [vmem:[%s6320_s1 + $0x824] ss:$8 sps:$4 sm:$0xff]  }
  0x88   :  { %2895 = vmatpush1.bf16.msra.mxu0 %v4353_v15  ;;  %2681 = vmatprep.subr.bf16.mxu1 %v4358_v16  ;;  %v4449_v15 = vld [vmem:[%s6320_s1 + $0x800] ss:$8 sps:$4 sm:$0xff]   ;;  %v4454_v16 = vld [vmem:[%s6320_s1 + $0x314] ss:$8 sps:$4 sm:$0xff]  }
  0x89   :  { %2896 = vmatprep.subr.bf16.mxu0 %v4361_v17  ;;  %v4457_v17 = vld [vmem:[%s6320_s1 + $0x814] ss:$8 sps:$4 sm:$0xff]  }
  0x8b   :  { %2682 = vmatpush1.bf16.msra.mxu1 %v4356_v18  ;;  %v4544_v18 = vld [vmem:[%s6321_s0 + $0x1c] ss:$100 sps:$4 sm:$0xff]  }
  0x8c   :  { %2897 = vmatpush1.bf16.msra.mxu0 %v4359_v20  ;;  %2683 = vmatprep.subr.bf16.mxu1 %v4364_v21  ;;  %v4452_v20 = vld [vmem:[%s6320_s1 + $0x310] ss:$8 sps:$4 sm:$0xff]  }
  0x8d   :  { %2898 = vmatprep.subr.bf16.mxu0 %v4367_v22  ;;  %v4455_v21 = vld [vmem:[%s6320_s1 + $0x810] ss:$8 sps:$4 sm:$0xff]   ;;  %v4460_v22 = vld [vmem:[%s6320_s1 + $0x324] ss:$8 sps:$4 sm:$0xff]  }
  0x8f   :  { %2684 = vmatpush1.bf16.msra.mxu1 %v4362_v24  ;;  %v4458_v24 = vld [vmem:[%s6320_s1 + $0x320] ss:$8 sps:$4 sm:$0xff]  }
  0x90   :  { %2899 = vmatpush1.bf16.msra.mxu0 %v4365_v25  ;;  %2685 = vmatprep.subr.bf16.mxu1 %v4370_v26  ;;  %v4461_v25 = vld [vmem:[%s6320_s1 + $0x820] ss:$8 sps:$4 sm:$0xff]   ;;  %v4466_v26 = vld [vmem:[%s6320_s1 + $0x334] ss:$8 sps:$4 sm:$0xff]  }
  0x91   :  { %2900 = vmatprep.subr.bf16.mxu0 %v4373_v27  ;;  %v4469_v27 = vld [vmem:[%s6320_s1 + $0x834] ss:$8 sps:$4 sm:$0xff]  }
  0x93   :  { %2686 = vmatpush1.bf16.msra.mxu1 %v4368_v28  ;;  %v4464_v28 = vld [vmem:[%s6320_s1 + $0x330] ss:$8 sps:$4 sm:$0xff]  }
  0x94   :  { %2901 = vmatpush1.bf16.msra.mxu0 %v4371_v29  ;;  %2687 = vmatprep.subr.bf16.mxu1 %v4376_v30  ;;  %v4467_v29 = vld [vmem:[%s6320_s1 + $0x830] ss:$8 sps:$4 sm:$0xff]   ;;  %v4472_v30 = vld [vmem:[%s6320_s1 + $0x344] ss:$8 sps:$4 sm:$0xff]  }
  0x95   :  { %2902 = vmatprep.subr.bf16.mxu0 %v4379_v31  ;;  %v4475_v31 = vld [vmem:[%s6320_s1 + $0x844] ss:$8 sps:$4 sm:$0xff]  }
  0x97   :  { %2688 = vmatpush1.bf16.msra.mxu1 %v4374_v32  ;;  %v4470_v32 = vld [vmem:[%s6320_s1 + $0x340] ss:$8 sps:$4 sm:$0xff]  }
  0x98   :  { %2903 = vmatpush1.bf16.msra.mxu0 %v4377_v33  ;;  %2689 = vmatprep.subr.bf16.mxu1 %v4382_v34  ;;  %v4473_v33 = vld [vmem:[%s6320_s1 + $0x840] ss:$8 sps:$4 sm:$0xff]   ;;  %v4478_v34 = vld [vmem:[%s6320_s1 + $0x354] ss:$8 sps:$4 sm:$0xff]  }
  0x99   :  { %2904 = vmatprep.subr.bf16.mxu0 %v4385_v35  ;;  %v4481_v35 = vld [vmem:[%s6320_s1 + $0x854] ss:$8 sps:$4 sm:$0xff]  }
  0x9b   :  { %2690 = vmatpush1.bf16.msra.mxu1 %v4380_v36  ;;  %v4476_v36 = vld [vmem:[%s6320_s1 + $0x350] ss:$8 sps:$4 sm:$0xff]  }
  0x9c   :  { %2905 = vmatpush1.bf16.msra.mxu0 %v4383_v37  ;;  %2691 = vmatprep.subr.bf16.mxu1 %v4388_v38  ;;  %v4479_v37 = vld [vmem:[%s6320_s1 + $0x850] ss:$8 sps:$4 sm:$0xff]   ;;  %v4484_v38 = vld [vmem:[%s6320_s1 + $0x364] ss:$8 sps:$4 sm:$0xff]  }
  0x9d   :  { %2906 = vmatprep.subr.bf16.mxu0 %v4391_v39  ;;  %v4487_v39 = vld [vmem:[%s6320_s1 + $0x864] ss:$8 sps:$4 sm:$0xff]  }
  0x9f   :  { %2692 = vmatpush1.bf16.msra.mxu1 %v4386_v40  ;;  %v4482_v40 = vld [vmem:[%s6320_s1 + $0x360] ss:$8 sps:$4 sm:$0xff]  }
  0xa0   :  { %2907 = vmatpush1.bf16.msra.mxu0 %v4389_v41  ;;  %2693 = vmatprep.subr.bf16.mxu1 %v4394_v42  ;;  %v4485_v41 = vld [vmem:[%s6320_s1 + $0x860] ss:$8 sps:$4 sm:$0xff]   ;;  %v4490_v42 = vld [vmem:[%s6320_s1 + $0x374] ss:$8 sps:$4 sm:$0xff]  }
  0xa1   :  { %2908 = vmatprep.subr.bf16.mxu0 %v4397_v43  ;;  %v4493_v43 = vld [vmem:[%s6320_s1 + $0x874] ss:$8 sps:$4 sm:$0xff]  }
  0xa3   :  { %2694 = vmatpush1.bf16.msra.mxu1 %v4392_v44  ;;  %v4488_v44 = vld [vmem:[%s6320_s1 + $0x370] ss:$8 sps:$4 sm:$0xff]  }
  0xa4   :  { %2909 = vmatpush1.bf16.msra.mxu0 %v4395_v45  ;;  %2695 = vmatprep.subr.bf16.mxu1 %v4400_v46  ;;  %v4491_v45 = vld [vmem:[%s6320_s1 + $0x870] ss:$8 sps:$4 sm:$0xff]   ;;  %v4496_v46 = vld [vmem:[%s6320_s1 + $0x384] ss:$8 sps:$4 sm:$0xff]  }
  0xa5   :  { %2910 = vmatprep.subr.bf16.mxu0 %v4403_v47  ;;  %v4499_v47 = vld [vmem:[%s6320_s1 + $0x884] ss:$8 sps:$4 sm:$0xff]  }
  0xa7   :  { %2696 = vmatpush1.bf16.msra.mxu1 %v4398_v48  ;;  %v4494_v48 = vld [vmem:[%s6320_s1 + $0x380] ss:$8 sps:$4 sm:$0xff]  }
  0xa8   :  { %2911 = vmatpush1.bf16.msra.mxu0 %v4401_v49  ;;  %2697 = vmatprep.subr.bf16.mxu1 %v4406_v50  ;;  %v4497_v49 = vld [vmem:[%s6320_s1 + $0x880] ss:$8 sps:$4 sm:$0xff]   ;;  %v4502_v50 = vld [vmem:[%s6320_s1 + $0x394] ss:$8 sps:$4 sm:$0xff]  }
  0xa9   :  { %2912 = vmatprep.subr.bf16.mxu0 %v4409_v51  ;;  %v4505_v51 = vld [vmem:[%s6320_s1 + $0x894] ss:$8 sps:$4 sm:$0xff]  }
  0xab   :  { %2698 = vmatpush1.bf16.msra.mxu1 %v4404_v52  ;;  %v4500_v52 = vld [vmem:[%s6320_s1 + $0x390] ss:$8 sps:$4 sm:$0xff]  }
  0xac   :  { %2913 = vmatpush1.bf16.msra.mxu0 %v4407_v53  ;;  %2699 = vmatprep.subr.bf16.mxu1 %v4412_v54  ;;  %v4503_v53 = vld [vmem:[%s6320_s1 + $0x890] ss:$8 sps:$4 sm:$0xff]   ;;  %v4508_v54 = vld [vmem:[%s6320_s1 + $0x3a4] ss:$8 sps:$4 sm:$0xff]  }
  0xad   :  { %2914 = vmatprep.subr.bf16.mxu0 %v4415_v55  ;;  %v4511_v55 = vld [vmem:[%s6320_s1 + $0x8a4] ss:$8 sps:$4 sm:$0xff]  }
  0xaf   :  { %2700 = vmatpush1.bf16.msra.mxu1 %v4410_v56  ;;  %v4506_v56 = vld [vmem:[%s6320_s1 + $0x3a0] ss:$8 sps:$4 sm:$0xff]  }
  0xb0   :  { %2915 = vmatpush1.bf16.msra.mxu0 %v4413_v57  ;;  %2701 = vmatprep.subr.bf16.mxu1 %v4418_v58  ;;  %v4509_v57 = vld [vmem:[%s6320_s1 + $0x8a0] ss:$8 sps:$4 sm:$0xff]   ;;  %v4514_v58 = vld [vmem:[%s6320_s1 + $0x3b4] ss:$8 sps:$4 sm:$0xff]  }
  0xb1   :  { %2916 = vmatprep.subr.bf16.mxu0 %v4421_v59  ;;  %v4517_v59 = vld [vmem:[%s6320_s1 + $0x8b4] ss:$8 sps:$4 sm:$0xff]  }
  0xb3   :  { %2702 = vmatpush1.bf16.msra.mxu1 %v4416_v60  ;;  %v4512_v60 = vld [vmem:[%s6320_s1 + $0x3b0] ss:$8 sps:$4 sm:$0xff]  }
  0xb4   :  { %2917 = vmatpush1.bf16.msra.mxu0 %v4419_v61  ;;  %2703 = vmatprep.subr.bf16.mxu1 %v4424_v62  ;;  %v4515_v61 = vld [vmem:[%s6320_s1 + $0x8b0] ss:$8 sps:$4 sm:$0xff]   ;;  %v4520_v62 = vld [vmem:[%s6320_s1 + $0x3c4] ss:$8 sps:$4 sm:$0xff]  }
  0xb5   :  { %2918 = vmatprep.subr.bf16.mxu0 %v4427_v63  ;;  %v4523_v63 = vld [vmem:[%s6320_s1 + $0x8c4] ss:$8 sps:$4 sm:$0xff]  }
  0xb7   :  { %2704 = vmatpush1.bf16.msra.mxu1 %v4422_v0  ;;  %v4518_v0 = vld [vmem:[%s6320_s1 + $0x3c0] ss:$8 sps:$4 sm:$0xff]  }
  0xb8   :  { %2919 = vmatpush1.bf16.msra.mxu0 %v4425_v1  ;;  %2705 = vmatprep.subr.bf16.mxu1 %v4430_v2  ;;  %v4521_v1 = vld [vmem:[%s6320_s1 + $0x8c0] ss:$8 sps:$4 sm:$0xff]   ;;  %v4526_v2 = vld [vmem:[%s6320_s1 + $0x3d4] ss:$8 sps:$4 sm:$0xff]  }
  0xb9   :  { %2920 = vmatprep.subr.bf16.mxu0 %v4433_v3  ;;  %v4529_v3 = vld [vmem:[%s6320_s1 + $0x8d4] ss:$8 sps:$4 sm:$0xff]  }
  0xbb   :  { %2706 = vmatpush1.bf16.msra.mxu1 %v4428_v4  ;;  %v4524_v4 = vld [vmem:[%s6320_s1 + $0x3d0] ss:$8 sps:$4 sm:$0xff]  }
  0xbc   :  { %2921 = vmatpush1.bf16.msra.mxu0 %v4431_v5  ;;  %2707 = vmatprep.subr.bf16.mxu1 %v4436_v6  ;;  %v4527_v5 = vld [vmem:[%s6320_s1 + $0x8d0] ss:$8 sps:$4 sm:$0xff]   ;;  %v4532_v6 = vld [vmem:[%s6320_s1 + $0x3e4] ss:$8 sps:$4 sm:$0xff]  }
  0xbd   :  { %2922 = vmatprep.subr.bf16.mxu0 %v4439_v7  ;;  %v4535_v7 = vld [vmem:[%s6320_s1 + $0x8e4] ss:$8 sps:$4 sm:$0xff]  }
  0xbf   :  { %2708 = vmatpush1.bf16.msra.mxu1 %v4434_v8  ;;  %v4530_v8 = vld [vmem:[%s6320_s1 + $0x3e0] ss:$8 sps:$4 sm:$0xff]  }
  0xc0   :  { %2923 = vmatpush1.bf16.msra.mxu0 %v4437_v9  ;;  %2720 = vmatprep.subr.bf16.mxu1 %v4445_v10  ;;  %v4533_v9 = vld [vmem:[%s6320_s1 + $0x8e0] ss:$8 sps:$4 sm:$0xff]   ;;  %v4538_v10 = vld [vmem:[%s6320_s1 + $0x3f4] ss:$8 sps:$4 sm:$0xff]  }
  0xc1   :  { %2935 = vmatprep.subr.bf16.mxu0 %v4451_v11  ;;  %v4541_v11 = vld [vmem:[%s6320_s1 + $0x8f4] ss:$8 sps:$4 sm:$0xff]  }
  0xc2   :  { %2710 = vmatmul.mubr.bf16.vlgmr.msra.gmra.mrb[0].mxu1 %v4440_v12  ;;  %v4536_v12 = vld [vmem:[%s6320_s1 + $0x3f0] ss:$8 sps:$4 sm:$0xff]  }
  0xc3   :  { %2925 = vmatmul.mubr.bf16.vlgmr.msra.gmra.mrb[0].mxu0 %v4446_v14  ;;  %2721 = vmatpush1.bf16.msra.mxu1 %v4443_v13  ;;  %v4539_v13 = vld [vmem:[%s6320_s1 + $0x8f0] ss:$8 sps:$4 sm:$0xff]   ;;  %v4547_v14 = vld [vmem:[%s6320_s1 + $0x404] ss:$8 sps:$4 sm:$0xff]  }
  0xc4   :  { %2936 = vmatpush1.bf16.msra.mxu0 %v4449_v15  ;;  %2722 = vmatprep.subr.bf16.mxu1 %v4454_v16  ;;  %v4553_v15 = vld [vmem:[%s6320_s1 + $0x904] ss:$8 sps:$4 sm:$0xff]   ;;  %v4542_v16 = vld [vmem:[%s6321_s0 + $0x18] ss:$100 sps:$4 sm:$0xff]  }
  0xc5   :  { %2937 = vmatprep.subr.bf16.mxu0 %v4457_v17  ;;  %2752 = vmatprep.mubr.bf16.mxu1 %v4544_v18  ;;  %v4548_v17 = vld [vmem:[%s6321_s0 + $0x40] ss:$100 sps:$4 sm:$0xff]  }
  0xc6   :  { %2967 = vmatprep.mubr.bf16.mxu0 %v4550_v19  ;;  %v4545_v18 = vld [vmem:[%s6320_s1 + $0x400] ss:$8 sps:$4 sm:$0xff]  }
  0xc7   :  { %2723 = vmatpush1.bf16.msra.mxu1 %v4452_v20  ;;  %v4551_v19 = vld [vmem:[%s6320_s1 + $0x900] ss:$8 sps:$4 sm:$0xff]   ;;  %v4556_v20 = vld [vmem:[%s6320_s1 + $0x414] ss:$8 sps:$4 sm:$0xff]  }
  0xc8   :  { %2938 = vmatpush1.bf16.msra.mxu0 %v4455_v21  ;;  %2724 = vmatprep.subr.bf16.mxu1 %v4460_v22  ;;  %v4559_v21 = vld [vmem:[%s6320_s1 + $0x914] ss:$8 sps:$4 sm:$0xff]   ;;  %v4646_v22 = vld [vmem:[%s6321_s0 + $0x24] ss:$100 sps:$4 sm:$0xff]  }
  0xc9   :  { %2939 = vmatprep.subr.bf16.mxu0 %v4463_v23  ;;  %v4649_v23 = vld [vmem:[%s6321_s0 + $0x4c] ss:$100 sps:$4 sm:$0xff]  }
  0xcb   :  { %2725 = vmatpush1.bf16.msra.mxu1 %v4458_v24  ;;  %v4554_v24 = vld [vmem:[%s6320_s1 + $0x410] ss:$8 sps:$4 sm:$0xff]  }
  0xcc   :  { %2940 = vmatpush1.bf16.msra.mxu0 %v4461_v25  ;;  %2726 = vmatprep.subr.bf16.mxu1 %v4466_v26  ;;  %v4557_v25 = vld [vmem:[%s6320_s1 + $0x910] ss:$8 sps:$4 sm:$0xff]   ;;  %v4562_v26 = vld [vmem:[%s6320_s1 + $0x424] ss:$8 sps:$4 sm:$0xff]  }
  0xcd   :  { %2941 = vmatprep.subr.bf16.mxu0 %v4469_v27  ;;  %v4565_v27 = vld [vmem:[%s6320_s1 + $0x924] ss:$8 sps:$4 sm:$0xff]  }
  0xcf   :  { %2727 = vmatpush1.bf16.msra.mxu1 %v4464_v28  ;;  %v4560_v28 = vld [vmem:[%s6320_s1 + $0x420] ss:$8 sps:$4 sm:$0xff]  }
  0xd0   :  { %2942 = vmatpush1.bf16.msra.mxu0 %v4467_v29  ;;  %2728 = vmatprep.subr.bf16.mxu1 %v4472_v30  ;;  %v4563_v29 = vld [vmem:[%s6320_s1 + $0x920] ss:$8 sps:$4 sm:$0xff]   ;;  %v4568_v30 = vld [vmem:[%s6320_s1 + $0x434] ss:$8 sps:$4 sm:$0xff]  }
  0xd1   :  { %2943 = vmatprep.subr.bf16.mxu0 %v4475_v31  ;;  %v4571_v31 = vld [vmem:[%s6320_s1 + $0x934] ss:$8 sps:$4 sm:$0xff]  }
  0xd3   :  { %2729 = vmatpush1.bf16.msra.mxu1 %v4470_v32  ;;  %v4566_v32 = vld [vmem:[%s6320_s1 + $0x430] ss:$8 sps:$4 sm:$0xff]  }
  0xd4   :  { %2944 = vmatpush1.bf16.msra.mxu0 %v4473_v33  ;;  %2730 = vmatprep.subr.bf16.mxu1 %v4478_v34  ;;  %v4569_v33 = vld [vmem:[%s6320_s1 + $0x930] ss:$8 sps:$4 sm:$0xff]   ;;  %v4574_v34 = vld [vmem:[%s6320_s1 + $0x444] ss:$8 sps:$4 sm:$0xff]  }
  0xd5   :  { %2945 = vmatprep.subr.bf16.mxu0 %v4481_v35  ;;  %v4577_v35 = vld [vmem:[%s6320_s1 + $0x944] ss:$8 sps:$4 sm:$0xff]  }
  0xd7   :  { %2731 = vmatpush1.bf16.msra.mxu1 %v4476_v36  ;;  %v4572_v36 = vld [vmem:[%s6320_s1 + $0x440] ss:$8 sps:$4 sm:$0xff]  }
  0xd8   :  { %2946 = vmatpush1.bf16.msra.mxu0 %v4479_v37  ;;  %2732 = vmatprep.subr.bf16.mxu1 %v4484_v38  ;;  %v4575_v37 = vld [vmem:[%s6320_s1 + $0x940] ss:$8 sps:$4 sm:$0xff]   ;;  %v4580_v38 = vld [vmem:[%s6320_s1 + $0x454] ss:$8 sps:$4 sm:$0xff]  }
  0xd9   :  { %2947 = vmatprep.subr.bf16.mxu0 %v4487_v39  ;;  %v4583_v39 = vld [vmem:[%s6320_s1 + $0x954] ss:$8 sps:$4 sm:$0xff]  }
  0xdb   :  { %2733 = vmatpush1.bf16.msra.mxu1 %v4482_v40  ;;  %v4578_v40 = vld [vmem:[%s6320_s1 + $0x450] ss:$8 sps:$4 sm:$0xff]  }
  0xdc   :  { %2948 = vmatpush1.bf16.msra.mxu0 %v4485_v41  ;;  %2734 = vmatprep.subr.bf16.mxu1 %v4490_v42  ;;  %v4581_v41 = vld [vmem:[%s6320_s1 + $0x950] ss:$8 sps:$4 sm:$0xff]   ;;  %v4586_v42 = vld [vmem:[%s6320_s1 + $0x464] ss:$8 sps:$4 sm:$0xff]  }
  0xdd   :  { %2949 = vmatprep.subr.bf16.mxu0 %v4493_v43  ;;  %v4589_v43 = vld [vmem:[%s6320_s1 + $0x964] ss:$8 sps:$4 sm:$0xff]  }
  0xdf   :  { %2735 = vmatpush1.bf16.msra.mxu1 %v4488_v44  ;;  %v4584_v44 = vld [vmem:[%s6320_s1 + $0x460] ss:$8 sps:$4 sm:$0xff]  }
  0xe0   :  { %2950 = vmatpush1.bf16.msra.mxu0 %v4491_v45  ;;  %2736 = vmatprep.subr.bf16.mxu1 %v4496_v46  ;;  %v4587_v45 = vld [vmem:[%s6320_s1 + $0x960] ss:$8 sps:$4 sm:$0xff]   ;;  %v4592_v46 = vld [vmem:[%s6320_s1 + $0x474] ss:$8 sps:$4 sm:$0xff]  }
  0xe1   :  { %2951 = vmatprep.subr.bf16.mxu0 %v4499_v47  ;;  %v4595_v47 = vld [vmem:[%s6320_s1 + $0x974] ss:$8 sps:$4 sm:$0xff]  }
  0xe3   :  { %2737 = vmatpush1.bf16.msra.mxu1 %v4494_v48  ;;  %v4590_v48 = vld [vmem:[%s6320_s1 + $0x470] ss:$8 sps:$4 sm:$0xff]  }
  0xe4   :  { %2952 = vmatpush1.bf16.msra.mxu0 %v4497_v49  ;;  %2738 = vmatprep.subr.bf16.mxu1 %v4502_v50  ;;  %v4593_v49 = vld [vmem:[%s6320_s1 + $0x970] ss:$8 sps:$4 sm:$0xff]   ;;  %v4598_v50 = vld [vmem:[%s6320_s1 + $0x484] ss:$8 sps:$4 sm:$0xff]  }
  0xe5   :  { %2953 = vmatprep.subr.bf16.mxu0 %v4505_v51  ;;  %v4601_v51 = vld [vmem:[%s6320_s1 + $0x984] ss:$8 sps:$4 sm:$0xff]  }
  0xe7   :  { %2739 = vmatpush1.bf16.msra.mxu1 %v4500_v52  ;;  %v4596_v52 = vld [vmem:[%s6320_s1 + $0x480] ss:$8 sps:$4 sm:$0xff]  }
  0xe8   :  { %2954 = vmatpush1.bf16.msra.mxu0 %v4503_v53  ;;  %2740 = vmatprep.subr.bf16.mxu1 %v4508_v54  ;;  %v4599_v53 = vld [vmem:[%s6320_s1 + $0x980] ss:$8 sps:$4 sm:$0xff]   ;;  %v4604_v54 = vld [vmem:[%s6320_s1 + $0x494] ss:$8 sps:$4 sm:$0xff]  }
  0xe9   :  { %2955 = vmatprep.subr.bf16.mxu0 %v4511_v55  ;;  %v4607_v55 = vld [vmem:[%s6320_s1 + $0x994] ss:$8 sps:$4 sm:$0xff]  }
  0xeb   :  { %2741 = vmatpush1.bf16.msra.mxu1 %v4506_v56  ;;  %v4602_v56 = vld [vmem:[%s6320_s1 + $0x490] ss:$8 sps:$4 sm:$0xff]  }
  0xec   :  { %2956 = vmatpush1.bf16.msra.mxu0 %v4509_v57  ;;  %2742 = vmatprep.subr.bf16.mxu1 %v4514_v58  ;;  %v4605_v57 = vld [vmem:[%s6320_s1 + $0x990] ss:$8 sps:$4 sm:$0xff]   ;;  %v4610_v58 = vld [vmem:[%s6320_s1 + $0x4a4] ss:$8 sps:$4 sm:$0xff]  }
  0xed   :  { %2957 = vmatprep.subr.bf16.mxu0 %v4517_v59  ;;  %v4613_v59 = vld [vmem:[%s6320_s1 + $0x9a4] ss:$8 sps:$4 sm:$0xff]  }
  0xef   :  { %2743 = vmatpush1.bf16.msra.mxu1 %v4512_v60  ;;  %v4608_v60 = vld [vmem:[%s6320_s1 + $0x4a0] ss:$8 sps:$4 sm:$0xff]  }
  0xf0   :  { %2958 = vmatpush1.bf16.msra.mxu0 %v4515_v61  ;;  %2744 = vmatprep.subr.bf16.mxu1 %v4520_v62  ;;  %v4611_v61 = vld [vmem:[%s6320_s1 + $0x9a0] ss:$8 sps:$4 sm:$0xff]   ;;  %v4616_v62 = vld [vmem:[%s6320_s1 + $0x4b4] ss:$8 sps:$4 sm:$0xff]  }
  0xf1   :  { %2959 = vmatprep.subr.bf16.mxu0 %v4523_v63  ;;  %v4619_v63 = vld [vmem:[%s6320_s1 + $0x9b4] ss:$8 sps:$4 sm:$0xff]  }
  0xf3   :  { %2745 = vmatpush1.bf16.msra.mxu1 %v4518_v0  ;;  %v4614_v0 = vld [vmem:[%s6320_s1 + $0x4b0] ss:$8 sps:$4 sm:$0xff]  }
  0xf4   :  { %2960 = vmatpush1.bf16.msra.mxu0 %v4521_v1  ;;  %2746 = vmatprep.subr.bf16.mxu1 %v4526_v2  ;;  %v4617_v1 = vld [vmem:[%s6320_s1 + $0x9b0] ss:$8 sps:$4 sm:$0xff]   ;;  %v4622_v2 = vld [vmem:[%s6320_s1 + $0x4c4] ss:$8 sps:$4 sm:$0xff]  }
  0xf5   :  { %2961 = vmatprep.subr.bf16.mxu0 %v4529_v3  ;;  %v4625_v3 = vld [vmem:[%s6320_s1 + $0x9c4] ss:$8 sps:$4 sm:$0xff]  }
  0xf7   :  { %2747 = vmatpush1.bf16.msra.mxu1 %v4524_v4  ;;  %v4620_v4 = vld [vmem:[%s6320_s1 + $0x4c0] ss:$8 sps:$4 sm:$0xff]  }
  0xf8   :  { %2962 = vmatpush1.bf16.msra.mxu0 %v4527_v5  ;;  %2748 = vmatprep.subr.bf16.mxu1 %v4532_v6  ;;  %v4623_v5 = vld [vmem:[%s6320_s1 + $0x9c0] ss:$8 sps:$4 sm:$0xff]   ;;  %v4628_v6 = vld [vmem:[%s6320_s1 + $0x4d4] ss:$8 sps:$4 sm:$0xff]  }
  0xf9   :  { %2963 = vmatprep.subr.bf16.mxu0 %v4535_v7  ;;  %v4631_v7 = vld [vmem:[%s6320_s1 + $0x9d4] ss:$8 sps:$4 sm:$0xff]  }
  0xfb   :  { %2749 = vmatpush1.bf16.msra.mxu1 %v4530_v8  ;;  %v4626_v8 = vld [vmem:[%s6320_s1 + $0x4d0] ss:$8 sps:$4 sm:$0xff]  }
  0xfc   :  { %2964 = vmatpush1.bf16.msra.mxu0 %v4533_v9  ;;  %2750 = vmatprep.subr.bf16.mxu1 %v4538_v10  ;;  %v4629_v9 = vld [vmem:[%s6320_s1 + $0x9d0] ss:$8 sps:$4 sm:$0xff]   ;;  %v4634_v10 = vld [vmem:[%s6320_s1 + $0x4e4] ss:$8 sps:$4 sm:$0xff]  }
  0xfd   :  { %2965 = vmatprep.subr.bf16.mxu0 %v4541_v11  ;;  %v4637_v11 = vld [vmem:[%s6320_s1 + $0x9e4] ss:$8 sps:$4 sm:$0xff]  }
  0xff   :  { %2751 = vmatpush1.bf16.msra.mxu1 %v4536_v12  ;;  %v4632_v12 = vld [vmem:[%s6320_s1 + $0x4e0] ss:$8 sps:$4 sm:$0xff]  }
 0x100   :  { %2966 = vmatpush1.bf16.msra.mxu0 %v4539_v13  ;;  %2763 = vmatprep.subr.bf16.mxu1 %v4547_v14  ;;  %v4635_v13 = vld [vmem:[%s6320_s1 + $0x9e0] ss:$8 sps:$4 sm:$0xff]   ;;  %v4640_v14 = vld [vmem:[%s6320_s1 + $0x4f4] ss:$8 sps:$4 sm:$0xff]  }
 0x101   :  { %2978 = vmatprep.subr.bf16.mxu0 %v4553_v15  ;;  %v4643_v15 = vld [vmem:[%s6320_s1 + $0x9f4] ss:$8 sps:$4 sm:$0xff]  }
 0x102   :  { %2753 = vmatmul.mubr.bf16.vlgmr.msra.gmra.mrb[0].mxu1 %v4542_v16  ;;  %v4638_v16 = vld [vmem:[%s6320_s1 + $0x4f0] ss:$8 sps:$4 sm:$0xff]  }
 0x103   :  { %2968 = vmatmul.mubr.bf16.vlgmr.msra.gmra.mrb[0].mxu0 %v4548_v17  ;;  %2764 = vmatpush1.bf16.msra.mxu1 %v4545_v18  ;;  %v4641_v17 = vld [vmem:[%s6320_s1 + $0x9f0] ss:$8 sps:$4 sm:$0xff]   ;;  %v4652_v18 = vld [vmem:[%s6320_s1 + $0xa04] ss:$8 sps:$4 sm:$0xff]  }
 0x104   :  { %2979 = vmatpush1.bf16.msra.mxu0 %v4551_v19  ;;  %2765 = vmatprep.subr.bf16.mxu1 %v4556_v20  ;;  %v4727_v19 = vld [vmem:[%s6320_s1 + $0xc04] ss:$8 sps:$4 sm:$0xff]  }
 0x105   :  { %2980 = vmatprep.subr.bf16.mxu0 %v4559_v21  ;;  %2795 = vmatprep.mubr.bf16.mxu1 %v4646_v22  ;;  %v4644_v20 = vld [vmem:[%s6321_s0 + $0x20] ss:$100 sps:$4 sm:$0xff]   ;;  %v4647_v21 = vld [vmem:[%s6321_s0 + $0x48] ss:$100 sps:$4 sm:$0xff]  }
 0x106   :  { %3010 = vmatprep.mubr.bf16.mxu0 %v4649_v23  ;;  %v4650_v22 = vld [vmem:[%s6320_s1 + $0xa00] ss:$8 sps:$4 sm:$0xff]   ;;  %v4700_v23 = vld [vmem:[%s6321_s0 + $0x54] ss:$100 sps:$4 sm:$0xff]  }
 0x107   :  { %2766 = vmatpush1.bf16.msra.mxu1 %v4554_v24  ;;  %v4655_v24 = vld [vmem:[%s6320_s1 + $0xa14] ss:$8 sps:$4 sm:$0xff]  }
 0x108   :  { %2981 = vmatpush1.bf16.msra.mxu0 %v4557_v25  ;;  %2767 = vmatprep.subr.bf16.mxu1 %v4562_v26  ;;  %v4725_v25 = vld [vmem:[%s6320_s1 + $0xc00] ss:$8 sps:$4 sm:$0xff]   ;;  %v4733_v26 = vld [vmem:[%s6320_s1 + $0xc14] ss:$8 sps:$4 sm:$0xff]  }
 0x109   :  { %2982 = vmatprep.subr.bf16.mxu0 %v4565_v27  ;;  %v4653_v27 = vld [vmem:[%s6320_s1 + $0xa10] ss:$8 sps:$4 sm:$0xff]  }
 0x10b   :  { %2768 = vmatpush1.bf16.msra.mxu1 %v4560_v28  ;;  %v4658_v28 = vld [vmem:[%s6320_s1 + $0xa24] ss:$8 sps:$4 sm:$0xff]  }
 0x10c   :  { %2983 = vmatpush1.bf16.msra.mxu0 %v4563_v29  ;;  %2769 = vmatprep.subr.bf16.mxu1 %v4568_v30  ;;  %v4731_v29 = vld [vmem:[%s6320_s1 + $0xc10] ss:$8 sps:$4 sm:$0xff]   ;;  %v4739_v30 = vld [vmem:[%s6320_s1 + $0xc24] ss:$8 sps:$4 sm:$0xff]  }
 0x10d   :  { %2984 = vmatprep.subr.bf16.mxu0 %v4571_v31  ;;  %v4841_v31 = vmov 0  }
 0x10f   :  { %2770 = vmatpush1.bf16.msra.mxu1 %v4566_v32  ;;  %v4656_v32 = vld [vmem:[%s6320_s1 + $0xa20] ss:$8 sps:$4 sm:$0xff]  }
 0x110   :  { %2985 = vmatpush1.bf16.msra.mxu0 %v4569_v33  ;;  %2771 = vmatprep.subr.bf16.mxu1 %v4574_v34  ;;  %v4661_v33 = vld [vmem:[%s6320_s1 + $0xa34] ss:$8 sps:$4 sm:$0xff]   ;;  %v4737_v34 = vld [vmem:[%s6320_s1 + $0xc20] ss:$8 sps:$4 sm:$0xff]  }
 0x111   :  { %2986 = vmatprep.subr.bf16.mxu0 %v4577_v35  ;;  %v4745_v35 = vld [vmem:[%s6320_s1 + $0xc34] ss:$8 sps:$4 sm:$0xff]  }
 0x113   :  { %2772 = vmatpush1.bf16.msra.mxu1 %v4572_v36  ;;  %v4659_v36 = vld [vmem:[%s6320_s1 + $0xa30] ss:$8 sps:$4 sm:$0xff]  }
 0x114   :  { %2987 = vmatpush1.bf16.msra.mxu0 %v4575_v37  ;;  %2773 = vmatprep.subr.bf16.mxu1 %v4580_v38  ;;  %v4664_v37 = vld [vmem:[%s6320_s1 + $0xa44] ss:$8 sps:$4 sm:$0xff]   ;;  %v4743_v38 = vld [vmem:[%s6320_s1 + $0xc30] ss:$8 sps:$4 sm:$0xff]  }
 0x115   :  { %2988 = vmatprep.subr.bf16.mxu0 %v4583_v39  ;;  %v4751_v39 = vld [vmem:[%s6320_s1 + $0xc44] ss:$8 sps:$4 sm:$0xff]  }
 0x117   :  { %2774 = vmatpush1.bf16.msra.mxu1 %v4578_v40  ;;  %v4662_v40 = vld [vmem:[%s6320_s1 + $0xa40] ss:$8 sps:$4 sm:$0xff]  }
 0x118   :  { %2989 = vmatpush1.bf16.msra.mxu0 %v4581_v41  ;;  %2775 = vmatprep.subr.bf16.mxu1 %v4586_v42  ;;  %v4667_v41 = vld [vmem:[%s6320_s1 + $0xa54] ss:$8 sps:$4 sm:$0xff]   ;;  %v4749_v42 = vld [vmem:[%s6320_s1 + $0xc40] ss:$8 sps:$4 sm:$0xff]  }
 0x119   :  { %2990 = vmatprep.subr.bf16.mxu0 %v4589_v43  ;;  %v4757_v43 = vld [vmem:[%s6320_s1 + $0xc54] ss:$8 sps:$4 sm:$0xff]  }
 0x11b   :  { %2776 = vmatpush1.bf16.msra.mxu1 %v4584_v44  ;;  %v4665_v44 = vld [vmem:[%s6320_s1 + $0xa50] ss:$8 sps:$4 sm:$0xff]  }
 0x11c   :  { %2991 = vmatpush1.bf16.msra.mxu0 %v4587_v45  ;;  %2777 = vmatprep.subr.bf16.mxu1 %v4592_v46  ;;  %v4670_v45 = vld [vmem:[%s6320_s1 + $0xa64] ss:$8 sps:$4 sm:$0xff]   ;;  %v4755_v46 = vld [vmem:[%s6320_s1 + $0xc50] ss:$8 sps:$4 sm:$0xff]  }
 0x11d   :  { %2992 = vmatprep.subr.bf16.mxu0 %v4595_v47  ;;  %v4763_v47 = vld [vmem:[%s6320_s1 + $0xc64] ss:$8 sps:$4 sm:$0xff]  }
 0x11f   :  { %2778 = vmatpush1.bf16.msra.mxu1 %v4590_v48  ;;  %v4668_v48 = vld [vmem:[%s6320_s1 + $0xa60] ss:$8 sps:$4 sm:$0xff]  }
 0x120   :  { %2993 = vmatpush1.bf16.msra.mxu0 %v4593_v49  ;;  %2779 = vmatprep.subr.bf16.mxu1 %v4598_v50  ;;  %v4673_v49 = vld [vmem:[%s6320_s1 + $0xa74] ss:$8 sps:$4 sm:$0xff]   ;;  %v4761_v50 = vld [vmem:[%s6320_s1 + $0xc60] ss:$8 sps:$4 sm:$0xff]  }
 0x121   :  { %2994 = vmatprep.subr.bf16.mxu0 %v4601_v51  ;;  %v4769_v51 = vld [vmem:[%s6320_s1 + $0xc74] ss:$8 sps:$4 sm:$0xff]  }
 0x123   :  { %2780 = vmatpush1.bf16.msra.mxu1 %v4596_v52  ;;  %v4671_v52 = vld [vmem:[%s6320_s1 + $0xa70] ss:$8 sps:$4 sm:$0xff]  }
 0x124   :  { %2995 = vmatpush1.bf16.msra.mxu0 %v4599_v53  ;;  %2781 = vmatprep.subr.bf16.mxu1 %v4604_v54  ;;  %v4676_v53 = vld [vmem:[%s6320_s1 + $0xa84] ss:$8 sps:$4 sm:$0xff]   ;;  %v4767_v54 = vld [vmem:[%s6320_s1 + $0xc70] ss:$8 sps:$4 sm:$0xff]  }
 0x125   :  { %2996 = vmatprep.subr.bf16.mxu0 %v4607_v55  ;;  %v4674_v55 = vld [vmem:[%s6320_s1 + $0xa80] ss:$8 sps:$4 sm:$0xff]  }
 0x127   :  { %2782 = vmatpush1.bf16.msra.mxu1 %v4602_v56  ;;  %v4776_v56 = vld [vmem:[%s6321_s0 + $0x60] ss:$100 sps:$4 sm:$0xff]  }
 0x128   :  { %2997 = vmatpush1.bf16.msra.mxu0 %v4605_v57  ;;  %2783 = vmatprep.subr.bf16.mxu1 %v4610_v58  ;;  %v4679_v57 = vld [vmem:[%s6320_s1 + $0xa94] ss:$8 sps:$4 sm:$0xff]   ;;  %v4677_v58 = vld [vmem:[%s6320_s1 + $0xa90] ss:$8 sps:$4 sm:$0xff]  }
 0x129   :  { %2998 = vmatprep.subr.bf16.mxu0 %v4613_v59  ;;  %v4682_v59 = vld [vmem:[%s6320_s1 + $0xaa4] ss:$8 sps:$4 sm:$0xff]  }
 0x12b   :  { %2784 = vmatpush1.bf16.msra.mxu1 %v4608_v60  ;;  %v4680_v60 = vld [vmem:[%s6320_s1 + $0xaa0] ss:$8 sps:$4 sm:$0xff]  }
 0x12c   :  { %2999 = vmatpush1.bf16.msra.mxu0 %v4611_v61  ;;  %2785 = vmatprep.subr.bf16.mxu1 %v4616_v62  ;;  %v4685_v61 = vld [vmem:[%s6320_s1 + $0xab4] ss:$8 sps:$4 sm:$0xff]   ;;  %v4683_v62 = vld [vmem:[%s6320_s1 + $0xab0] ss:$8 sps:$4 sm:$0xff]  }
 0x12d   :  { %3000 = vmatprep.subr.bf16.mxu0 %v4619_v63  ;;  %v4688_v63 = vld [vmem:[%s6320_s1 + $0xac4] ss:$8 sps:$4 sm:$0xff]  }
 0x12f   :  { %2786 = vmatpush1.bf16.msra.mxu1 %v4614_v0  ;;  %v4686_v0 = vld [vmem:[%s6320_s1 + $0xac0] ss:$8 sps:$4 sm:$0xff]  }
 0x130   :  { %3001 = vmatpush1.bf16.msra.mxu0 %v4617_v1  ;;  %2787 = vmatprep.subr.bf16.mxu1 %v4622_v2  ;;  %v4691_v1 = vld [vmem:[%s6320_s1 + $0xad4] ss:$8 sps:$4 sm:$0xff]   ;;  %v4689_v2 = vld [vmem:[%s6320_s1 + $0xad0] ss:$8 sps:$4 sm:$0xff]  }
 0x131   :  { %3002 = vmatprep.subr.bf16.mxu0 %v4625_v3  ;;  %v4694_v3 = vld [vmem:[%s6320_s1 + $0xae4] ss:$8 sps:$4 sm:$0xff]  }
 0x133   :  { %2788 = vmatpush1.bf16.msra.mxu1 %v4620_v4  ;;  %v4692_v4 = vld [vmem:[%s6320_s1 + $0xae0] ss:$8 sps:$4 sm:$0xff]  }
 0x134   :  { %3003 = vmatpush1.bf16.msra.mxu0 %v4623_v5  ;;  %2789 = vmatprep.subr.bf16.mxu1 %v4628_v6  ;;  %v4697_v5 = vld [vmem:[%s6320_s1 + $0xaf4] ss:$8 sps:$4 sm:$0xff]   ;;  %v4695_v6 = vld [vmem:[%s6320_s1 + $0xaf0] ss:$8 sps:$4 sm:$0xff]  }
 0x135   :  { %3004 = vmatprep.subr.bf16.mxu0 %v4631_v7  ;;  %v4703_v7 = vld [vmem:[%s6320_s1 + $0xb04] ss:$8 sps:$4 sm:$0xff]  }
 0x137   :  { %2790 = vmatpush1.bf16.msra.mxu1 %v4626_v8  ;;  %v4698_v8 = vld [vmem:[%s6321_s0 + $0x50] ss:$100 sps:$4 sm:$0xff]  }
 0x138   :  { %3005 = vmatpush1.bf16.msra.mxu0 %v4629_v9  ;;  %2791 = vmatprep.subr.bf16.mxu1 %v4634_v10  ;;  %v4701_v9 = vld [vmem:[%s6320_s1 + $0xb00] ss:$8 sps:$4 sm:$0xff]  }
 0x139   :  { %3006 = vmatprep.subr.bf16.mxu0 %v4637_v11  ;;  %v4775_v10 = vld [vmem:[%s6321_s0 + $0x5c] ss:$100 sps:$4 sm:$0xff]  }
 0x13a   :  { %v4706_v11 = vld [vmem:[%s6320_s1 + $0xb14] ss:$8 sps:$4 sm:$0xff]  }
 0x13b   :  { %2792 = vmatpush1.bf16.msra.mxu1 %v4632_v12  ;;  %v4704_v12 = vld [vmem:[%s6320_s1 + $0xb10] ss:$8 sps:$4 sm:$0xff]  }
 0x13c   :  { %3007 = vmatpush1.bf16.msra.mxu0 %v4635_v13  ;;  %2793 = vmatprep.subr.bf16.mxu1 %v4640_v14  ;;  %v4709_v13 = vld [vmem:[%s6320_s1 + $0xb24] ss:$8 sps:$4 sm:$0xff]   ;;  %v4707_v14 = vld [vmem:[%s6320_s1 + $0xb20] ss:$8 sps:$4 sm:$0xff]  }
 0x13d   :  { %3008 = vmatprep.subr.bf16.mxu0 %v4643_v15  ;;  %v4712_v15 = vld [vmem:[%s6320_s1 + $0xb34] ss:$8 sps:$4 sm:$0xff]  }
 0x13f   :  { %2794 = vmatpush1.bf16.msra.mxu1 %v4638_v16  ;;  %v4710_v16 = vld [vmem:[%s6320_s1 + $0xb30] ss:$8 sps:$4 sm:$0xff]  }
 0x140   :  { %3009 = vmatpush1.bf16.msra.mxu0 %v4641_v17  ;;  %3107 = vmatprep.subr.bf16.mxu1 %v4727_v19  ;;  %v4715_v17 = vld [vmem:[%s6320_s1 + $0xb44] ss:$8 sps:$4 sm:$0xff]   ;;  %v4718_v19 = vld [vmem:[%s6320_s1 + $0xb54] ss:$8 sps:$4 sm:$0xff]  }
 0x141   :  { %3021 = vmatprep.subr.bf16.mxu0 %v4652_v18  ;;  %v4713_v18 = vld [vmem:[%s6320_s1 + $0xb40] ss:$8 sps:$4 sm:$0xff]  }
 0x142   :  { %2796 = vmatmul.mubr.bf16.vlgmr.msra.gmra.mrb[0].mxu1 %v4644_v20  ;;  %v4716_v20 = vld [vmem:[%s6320_s1 + $0xb50] ss:$8 sps:$4 sm:$0xff]  }
 0x143   :  { %3011 = vmatmul.mubr.bf16.vlgmr.msra.gmra.mrb[0].mxu0 %v4647_v21  ;;  %3108 = vmatpush1.bf16.msra.mxu1 %v4725_v25  ;;  %v4721_v21 = vld [vmem:[%s6320_s1 + $0xb64] ss:$8 sps:$4 sm:$0xff]   ;;  %v4777_v25 = vld [vmem:[%s6322_s3] ss:$8 sps:$4 sm:$0xff]  }
 0x144   :  { %3022 = vmatpush1.bf16.msra.mxu0 %v4650_v22  ;;  %3053 = vmatprep.mubr.bf16.mxu0 %v4700_v23  ;;  %v4719_v22 = vld [vmem:[%s6320_s1 + $0xb60] ss:$8 sps:$4 sm:$0xff]   ;;  %v4724_v23 = vld [vmem:[%s6320_s1 + $0xb74] ss:$8 sps:$4 sm:$0xff]  }
 0x145   :  { %3023 = vmatprep.subr.bf16.mxu0 %v4655_v24  ;;  %3109 = vmatprep.subr.bf16.mxu1 %v4733_v26  ;;  %v4722_v24 = vld [vmem:[%s6320_s1 + $0xb70] ss:$8 sps:$4 sm:$0xff]   ;;  %v4779_v26 = vld [vmem:[%s6322_s3 + $0x4] ss:$8 sps:$4 sm:$0xff]  }
 0x146   :  { %3139 = vmatprep.mubr.bf16.mxu1 %v4841_v31  ;;  %v4785_v31 = vld [vmem:[%s6322_s3 + $0x24] ss:$8 sps:$4 sm:$0xff]  }
 0x147   :  { %3110 = vmatpush1.bf16.msra.mxu1 %v4731_v29  ;;  %v4728_v29 = vld [vmem:[%s6320_s1 + $0xb80] ss:$8 sps:$4 sm:$0xff]  }
 0x148   :  { %3024 = vmatpush1.bf16.msra.mxu0 %v4653_v27  ;;  %3111 = vmatprep.subr.bf16.mxu1 %v4739_v30  ;;  %v4730_v27 = vld [vmem:[%s6320_s1 + $0xb84] ss:$8 sps:$4 sm:$0xff]   ;;  %v4780_v30 = vld [vmem:[%s6322_s3 + $0x10] ss:$8 sps:$4 sm:$0xff]  }
 0x149   :  { %3025 = vmatprep.subr.bf16.mxu0 %v4658_v28  ;;  %v4782_v28 = vld [vmem:[%s6322_s3 + $0x14] ss:$8 sps:$4 sm:$0xff]  }
 0x14b   :  { %3112 = vmatpush1.bf16.msra.mxu1 %v4737_v34  ;;  %v4783_v34 = vld [vmem:[%s6322_s3 + $0x20] ss:$8 sps:$4 sm:$0xff]  }
 0x14c   :  { %3026 = vmatpush1.bf16.msra.mxu0 %v4656_v32  ;;  %3113 = vmatprep.subr.bf16.mxu1 %v4745_v35  ;;  %v4736_v32 = vld [vmem:[%s6320_s1 + $0xb94] ss:$8 sps:$4 sm:$0xff]  }
 0x14d   :  { %3027 = vmatprep.subr.bf16.mxu0 %v4661_v33  ;;  %v4734_v33 = vld [vmem:[%s6320_s1 + $0xb90] ss:$8 sps:$4 sm:$0xff]   ;;  %v4788_v35 = vld [vmem:[%s6322_s3 + $0x34] ss:$8 sps:$4 sm:$0xff]  }
 0x14f   :  { %3114 = vmatpush1.bf16.msra.mxu1 %v4743_v38  ;;  %v4786_v38 = vld [vmem:[%s6322_s3 + $0x30] ss:$8 sps:$4 sm:$0xff]  }
 0x150   :  { %3028 = vmatpush1.bf16.msra.mxu0 %v4659_v36  ;;  %3115 = vmatprep.subr.bf16.mxu1 %v4751_v39  ;;  %v4742_v36 = vld [vmem:[%s6320_s1 + $0xba4] ss:$8 sps:$4 sm:$0xff]  }
 0x151   :  { %3029 = vmatprep.subr.bf16.mxu0 %v4664_v37  ;;  %v4740_v37 = vld [vmem:[%s6320_s1 + $0xba0] ss:$8 sps:$4 sm:$0xff]   ;;  %v4791_v39 = vld [vmem:[%s6322_s3 + $0x44] ss:$8 sps:$4 sm:$0xff]  }
 0x153   :  { %3116 = vmatpush1.bf16.msra.mxu1 %v4749_v42  ;;  %v4754_v42 = vld [vmem:[%s6320_s1 + $0xbc4] ss:$8 sps:$4 sm:$0xff]  }
 0x154   :  { %3030 = vmatpush1.bf16.msra.mxu0 %v4662_v40  ;;  %3117 = vmatprep.subr.bf16.mxu1 %v4757_v43  ;;  %v4748_v40 = vld [vmem:[%s6320_s1 + $0xbb4] ss:$8 sps:$4 sm:$0xff]   ;;  %v4789_v43 = vld [vmem:[%s6322_s3 + $0x40] ss:$8 sps:$4 sm:$0xff]  }
 0x155   :  { %3031 = vmatprep.subr.bf16.mxu0 %v4667_v41  ;;  %v4746_v41 = vld [vmem:[%s6320_s1 + $0xbb0] ss:$8 sps:$4 sm:$0xff]  }
 0x157   :  { %3118 = vmatpush1.bf16.msra.mxu1 %v4755_v46  ;;  %v4752_v46 = vld [vmem:[%s6320_s1 + $0xbc0] ss:$8 sps:$4 sm:$0xff]  }
 0x158   :  { %3032 = vmatpush1.bf16.msra.mxu0 %v4665_v44  ;;  %3119 = vmatprep.subr.bf16.mxu1 %v4763_v47  ;;  %v4794_v44 = vld [vmem:[%s6322_s3 + $0x54] ss:$8 sps:$4 sm:$0xff]   ;;  %v4797_v47 = vld [vmem:[%s6322_s3 + $0x64] ss:$8 sps:$4 sm:$0xff]  }
 0x159   :  { %3033 = vmatprep.subr.bf16.mxu0 %v4670_v45  ;;  %v4792_v45 = vld [vmem:[%s6322_s3 + $0x50] ss:$8 sps:$4 sm:$0xff]  }
 0x15b   :  { %3120 = vmatpush1.bf16.msra.mxu1 %v4761_v50  ;;  %v4758_v50 = vld [vmem:[%s6320_s1 + $0xbd0] ss:$8 sps:$4 sm:$0xff]  }
 0x15c   :  { %3034 = vmatpush1.bf16.msra.mxu0 %v4668_v48  ;;  %3121 = vmatprep.subr.bf16.mxu1 %v4769_v51  ;;  %v4760_v48 = vld [vmem:[%s6320_s1 + $0xbd4] ss:$8 sps:$4 sm:$0xff]  }
 0x15d   :  { %3035 = vmatprep.subr.bf16.mxu0 %v4673_v49  ;;  %v4795_v49 = vld [vmem:[%s6322_s3 + $0x60] ss:$8 sps:$4 sm:$0xff]   ;;  %v4800_v51 = vld [vmem:[%s6322_s3 + $0x74] ss:$8 sps:$4 sm:$0xff]  }
 0x15f   :  { %3122 = vmatpush1.bf16.msra.mxu1 %v4767_v54  ;;  %v4764_v54 = vld [vmem:[%s6320_s1 + $0xbe0] ss:$8 sps:$4 sm:$0xff]  }
 0x160   :  { %3036 = vmatpush1.bf16.msra.mxu0 %v4671_v52  ;;  %3360 = vmatprep.subr.bf16.mxu1 %v4779_v26  ;;  %v4766_v52 = vld [vmem:[%s6320_s1 + $0xbe4] ss:$8 sps:$4 sm:$0xff]  }
 0x161   :  { %3037 = vmatprep.subr.bf16.mxu0 %v4676_v53  ;;  %v4798_v53 = vld [vmem:[%s6322_s3 + $0x70] ss:$8 sps:$4 sm:$0xff]  }
 0x162   :  { %3140 = vmatmul.mubr.bf16.vlgmr.msra.gmra.mrb[4].mxu1 %v4776_v56  ;;  %v4772_v56 = vld [vmem:[%s6320_s1 + $0xbf4] ss:$8 sps:$4 sm:$0xff]  }
 0x163   :  { %3361 = vmatpush1.bf16.msra.mxu1 %v4777_v25 }
 0x164   :  { %3038 = vmatpush1.bf16.msra.mxu0 %v4674_v55  ;;  %3362 = vmatprep.subr.bf16.mxu1 %v4782_v28  ;;  %v4803_v55 = vld [vmem:[%s6322_s3 + $0x84] ss:$8 sps:$4 sm:$0xff]  }
 0x165   :  { %3039 = vmatprep.subr.bf16.mxu0 %v4679_v57  ;;  %v4801_v57 = vld [vmem:[%s6322_s3 + $0x80] ss:$8 sps:$4 sm:$0xff]  }
 0x167   :  { %3363 = vmatpush1.bf16.msra.mxu1 %v4780_v30 }
 0x168   :  { %3040 = vmatpush1.bf16.msra.mxu0 %v4677_v58  ;;  %3364 = vmatprep.subr.bf16.mxu1 %v4785_v31  ;;  %v4770_v58 = vld [vmem:[%s6320_s1 + $0xbf0] ss:$8 sps:$4 sm:$0xff]  }
 0x169   :  { %3041 = vmatprep.subr.bf16.mxu0 %v4682_v59  ;;  %v4806_v59 = vld [vmem:[%s6322_s3 + $0x94] ss:$8 sps:$4 sm:$0xff]  }
 0x16b   :  { %3365 = vmatpush1.bf16.msra.mxu1 %v4783_v34 }
 0x16c   :  { %3042 = vmatpush1.bf16.msra.mxu0 %v4680_v60  ;;  %3366 = vmatprep.subr.bf16.mxu1 %v4788_v35  ;;  %v4773_v60 = vld [vmem:[%s6321_s0 + $0x58] ss:$100 sps:$4 sm:$0xff]  }
 0x16d   :  { %3043 = vmatprep.subr.bf16.mxu0 %v4685_v61  ;;  %v4804_v61 = vld [vmem:[%s6322_s3 + $0x90] ss:$8 sps:$4 sm:$0xff]  }
 0x16f   :  { %3367 = vmatpush1.bf16.msra.mxu1 %v4786_v38 }
 0x170   :  { %3044 = vmatpush1.bf16.msra.mxu0 %v4683_v62  ;;  %3368 = vmatprep.subr.bf16.mxu1 %v4791_v39  ;;  %v4809_v62 = vld [vmem:[%s6322_s3 + $0xa4] ss:$8 sps:$4 sm:$0xff]  }
 0x171   :  { %3045 = vmatprep.subr.bf16.mxu0 %v4688_v63  ;;  %v4807_v63 = vld [vmem:[%s6322_s3 + $0xa0] ss:$8 sps:$4 sm:$0xff]  }
 0x173   :  { %3369 = vmatpush1.bf16.msra.mxu1 %v4789_v43 }
 0x174   :  { %3046 = vmatpush1.bf16.msra.mxu0 %v4686_v0  ;;  %3370 = vmatprep.subr.bf16.mxu1 %v4794_v44  ;;  %v4812_v0 = vld [vmem:[%s6322_s3 + $0xb4] ss:$8 sps:$4 sm:$0xff]  }
 0x175   :  { %3047 = vmatprep.subr.bf16.mxu0 %v4691_v1  ;;  %v4810_v1 = vld [vmem:[%s6322_s3 + $0xb0] ss:$8 sps:$4 sm:$0xff]  }
 0x177   :  { %3371 = vmatpush1.bf16.msra.mxu1 %v4792_v45 }
 0x178   :  { %3048 = vmatpush1.bf16.msra.mxu0 %v4689_v2  ;;  %3372 = vmatprep.subr.bf16.mxu1 %v4797_v47  ;;  %v4815_v2 = vld [vmem:[%s6322_s3 + $0xc4] ss:$8 sps:$4 sm:$0xff]  }
 0x179   :  { %3049 = vmatprep.subr.bf16.mxu0 %v4694_v3  ;;  %v4813_v3 = vld [vmem:[%s6322_s3 + $0xc0] ss:$8 sps:$4 sm:$0xff]  }
 0x17b   :  { %3373 = vmatpush1.bf16.msra.mxu1 %v4795_v49  ;;  %v4827_v49 = vld [vmem:[%s6323_s5 + $0x48] sm:$0xff]  }
 0x17c   :  { %3050 = vmatpush1.bf16.msra.mxu0 %v4692_v4  ;;  %3374 = vmatprep.subr.bf16.mxu1 %v4800_v51  ;;  %v4818_v4 = vld [vmem:[%s6322_s3 + $0xd4] ss:$8 sps:$4 sm:$0xff]  }
 0x17d   :  { %3051 = vmatprep.subr.bf16.mxu0 %v4697_v5  ;;  %v4829_v51 = vld [vmem:[%s6323_s5 + $0x50] sm:$0xff]  }
 0x17f   :  { %3375 = vmatpush1.bf16.msra.mxu1 %v4798_v53  ;;  %v4831_v53 = vld [vmem:[%s6323_s5 + $0x58] sm:$0xff]  }
 0x180   :  { %3052 = vmatpush1.bf16.msra.mxu0 %v4695_v6  ;;  %3376 = vmatprep.subr.bf16.mxu1 %v4803_v55  ;;  %v4816_v6 = vld [vmem:[%s6322_s3 + $0xd0] ss:$8 sps:$4 sm:$0xff]   ;;  %v4833_v55 = vld [vmem:[%s6323_s5 + $0x60] sm:$0xff]  }
 0x181   :  { %3064 = vmatprep.subr.bf16.mxu0 %v4703_v7 }
 0x183   :  { %3054 = vmatmul.mubr.bf16.vlgmr.msra.gmra.mrb[0].mxu0 %v4698_v8  ;;  %3377 = vmatpush1.bf16.msra.mxu1 %v4801_v57  ;;  %v4835_v57 = vld [vmem:[%s6323_s5 + $0x68] sm:$0xff]  }
 0x184   :  { %3065 = vmatpush1.bf16.msra.mxu0 %v4701_v9  ;;  %3096 = vmatprep.mubr.bf16.mxu0 %v4775_v10  ;;  %v4821_v10 = vld [vmem:[%s6322_s3 + $0xe4] ss:$8 sps:$4 sm:$0xff]  }
 0x185   :  { %3066 = vmatprep.subr.bf16.mxu0 %v4706_v11  ;;  %3378 = vmatprep.subr.bf16.mxu1 %v4806_v59  ;;  %v4819_v11 = vld [vmem:[%s6322_s3 + $0xe0] ss:$8 sps:$4 sm:$0xff]   ;;  %v4837_v59 = vld [vmem:[%s6323_s5 + $0x70] sm:$0xff]  }
 0x187   :  { %3379 = vmatpush1.bf16.msra.mxu1 %v4804_v61  ;;  %v4839_v61 = vld [vmem:[%s6323_s5 + $0x78] sm:$0xff]  }
 0x188   :  { %3067 = vmatpush1.bf16.msra.mxu0 %v4704_v12  ;;  %3380 = vmatprep.subr.bf16.mxu1 %v4809_v62  ;;  %v4824_v12 = vld [vmem:[%s6322_s3 + $0xf4] ss:$8 sps:$4 sm:$0xff]  }
 0x189   :  { %3068 = vmatprep.subr.bf16.mxu0 %v4709_v13  ;;  %v4822_v13 = vld [vmem:[%s6322_s3 + $0xf0] ss:$8 sps:$4 sm:$0xff]  }
 0x18a   :  { %v4840_v62 = vld [vmem:[%s6323_s5 + $0x38] sm:$0xff]  }
 0x18b   :  { %3381 = vmatpush1.bf16.msra.mxu1 %v4807_v63  ;;  %v3188_v63 = vld [vmem:[%s6325_s4] sm:$0x3] }
 0x18c   :  { %3069 = vmatpush1.bf16.msra.mxu0 %v4707_v14  ;;  %3382 = vmatprep.subr.bf16.mxu1 %v4812_v0  ;;  %v4825_v14 = vld [vmem:[%s6323_s5 + $0x40] sm:$0xff]  }
 0x18d   :  { %3070 = vmatprep.subr.bf16.mxu0 %v4712_v15 }
 0x18f   :  { %3383 = vmatpush1.bf16.msra.mxu1 %v4810_v1 }
 0x190   :  { %3071 = vmatpush1.bf16.msra.mxu0 %v4710_v16  ;;  %3384 = vmatprep.subr.bf16.mxu1 %v4815_v2 }
 0x191   :  { %3072 = vmatprep.subr.bf16.mxu0 %v4715_v17 }
 0x193   :  { %3385 = vmatpush1.bf16.msra.mxu1 %v4813_v3 }
 0x194   :  { %3073 = vmatpush1.bf16.msra.mxu0 %v4713_v18  ;;  %3386 = vmatprep.subr.bf16.mxu1 %v4818_v4 }
 0x195   :  { %3074 = vmatprep.subr.bf16.mxu0 %v4718_v19  ;;  %v455_v19 = vlaneseq }
 0x197   :  { %3387 = vmatpush1.bf16.msra.mxu1 %v4816_v6 }
 0x198   :  { %3075 = vmatpush1.bf16.msra.mxu0 %v4716_v20  ;;  %3388 = vmatprep.subr.bf16.mxu1 %v4821_v10  ;;  %v6256_v20 = vshrl.u32 %v455_v19, 7 }
 0x199   :  { %3076 = vmatprep.subr.bf16.mxu0 %v4721_v21 }
 0x19a   :  { %v457_v21 = vsub.s32 0, %v6256_v20 }
 0x19b   :  { %3389 = vmatpush1.bf16.msra.mxu1 %v4819_v11 }
 0x19c   :  { %3077 = vmatpush1.bf16.msra.mxu0 %v4719_v22  ;;  %3390 = vmatprep.subr.bf16.mxu1 %v4824_v12  ;;  %v453_v22 = vld [vmem:[%s6324_s2] sm:$0x3]  ;;  %v3193_v0 = vrot.slane %v3188_v63, %v457_v21 }
 0x19d   :  { %3078 = vmatprep.subr.bf16.mxu0 %v4724_v23  ;;  %v461_v23 = vsub.s32 1, %v6256_v20 }
 0x19f   :  { %3391 = vmatpush1.bf16.msra.mxu1 %v4822_v13  ;;  %v462_v25 = vrot.slane %v453_v22, %v461_v23  ;;  %v3197_v1 = vrot.slane %v3188_v63, %v461_v23 }
 0x1a0   :  { %3079 = vmatpush1.bf16.msra.mxu0 %v4722_v24  ;;  %4065 = vmatprep.subr.bf16.mxu1 %v4825_v14  ;;  %v458_v24 = vrot.slane %v453_v22, %v457_v21 }
 0x1a1   :  { %3080 = vmatprep.subr.bf16.mxu0 %v4730_v27 }
 0x1a4   :  { %3081 = vmatpush1.bf16.msra.mxu0 %v4728_v29 }
 0x1a5   :  { %3082 = vmatprep.subr.bf16.mxu0 %v4736_v32 }
 0x1a8   :  { %3083 = vmatpush1.bf16.msra.mxu0 %v4734_v33 }
 0x1a9   :  { %3084 = vmatprep.subr.bf16.mxu0 %v4742_v36 }
 0x1ac   :  { %3085 = vmatpush1.bf16.msra.mxu0 %v4740_v37 }
 0x1ad   :  { %3086 = vmatprep.subr.bf16.mxu0 %v4748_v40 }
 0x1b0   :  { %3087 = vmatpush1.bf16.msra.mxu0 %v4746_v41 }
 0x1b1   :  { %3088 = vmatprep.subr.bf16.mxu0 %v4754_v42 }
 0x1b4   :  { %3089 = vmatpush1.bf16.msra.mxu0 %v4752_v46 }
 0x1b5   :  { %3090 = vmatprep.subr.bf16.mxu0 %v4760_v48  ;;  %v4826_v48 = vld [vmem:[%s6323_s5] sm:$0xff]  }
 0x1b8   :  { %3091 = vmatpush1.bf16.msra.mxu0 %v4758_v50  ;;  %v4828_v50 = vld [vmem:[%s6323_s5 + $0x8] sm:$0xff]  }
 0x1b9   :  { %3092 = vmatprep.subr.bf16.mxu0 %v4766_v52  ;;  %v4830_v52 = vld [vmem:[%s6323_s5 + $0x10] sm:$0xff]  }
 0x1bc   :  { %3093 = vmatpush1.bf16.msra.mxu0 %v4764_v54  ;;  %v4832_v54 = vld [vmem:[%s6323_s5 + $0x18] sm:$0xff]  }
 0x1bd   :  { %3094 = vmatprep.subr.bf16.mxu0 %v4772_v56  ;;  %v4834_v56 = vld [vmem:[%s6323_s5 + $0x20] sm:$0xff]  }
 0x1c0   :  { %3095 = vmatpush1.bf16.msra.mxu0 %v4770_v58  ;;  %v4836_v58 = vld [vmem:[%s6323_s5 + $0x28] sm:$0xff]  }
 0x1c3   :  { %3097 = vmatmul.mubr.bf16.vlgmr.msra.gmra.mrb[0].mxu0 %v4773_v60  ;;  %v4838_v60 = vld [vmem:[%s6323_s5 + $0x30] sm:$0xff]  }
 0x215   :  { %v2797_v5 = vpop.f32.mrb[0].mxu1 }
 0x216   :  { %v2799_v7 = vpop.f32.mrb[1].mxu1  ;;  %v4087_v26 = vadd.f32 %v2797_v5, %v458_v24 }
 0x217   :  { %v2801_v8 = vpop.f32.mrb[2].mxu1  ;;  %v4090_v27 = vadd.f32 %v2799_v7, %v462_v25 }
 0x218   :  { %v2803_v9 = vpop.f32.mrb[3].mxu1  ;;  %v4093_v29 = vadd.f32 %v2801_v8, %v458_v24 }
 0x219   :  { %v4096_v32 = vadd.f32 %v2803_v9, %v462_v25 }
 0x235   :  { %v3141_v15 = vpop.f32.mrb[4].mxu1 }
 0x236   :  { %v3143_v16 = vpop.f32.mrb[5].mxu1 }
 0x237   :  { %v3145_v17 = vpop.f32.mrb[6].mxu1 }
 0x238   :  { %v3147_v18 = vpop.f32.mrb[7].mxu1 }
 0x296   :  { %v3098_v28 = vpop.f32.mrb[0].mxu0 }
 0x297   :  { %v4088_v30 = vadd.f32 %v4087_v26, %v3098_v28  ;;  %v3100_v31 = vpop.f32.mrb[1].mxu0 }
 0x298   :  { %v4091_v33 = vadd.f32 %v4090_v27, %v3100_v31  ;;  %v3102_v34 = vpop.f32.mrb[2].mxu0 }
 0x299   :  { %v4089_v35 = vadd.f32 %v4088_v30, %v3141_v15  ;;  %v4094_v36 = vadd.f32 %v4093_v29, %v3102_v34  ;;  %v3104_v37 = vpop.f32.mrb[3].mxu0 }
 0x29a   :  { %v4092_v38 = vadd.f32 %v4091_v33, %v3143_v16  ;;  %v4097_v39 = vadd.f32 %v4096_v32, %v3104_v37 }
 0x29b   :  { %v4095_v40 = vadd.f32 %v4094_v36, %v3145_v17  ;;  %v3150_v42 = vmax.f32 %v4089_v35, 0.0  ;;  %v4048_v17 = vld [vmem:[%s6326_s6] ss:$0 sm:$0xff] }
 0x29c   :  { %v4098_v41 = vadd.f32 %v4097_v39, %v3147_v18  ;;  %v3151_v44 = vmax.f32 %v4092_v38, 0.0 }
 0x29d   :  { %v3152_v43 = vmax.f32 %v4095_v40, 0.0 }
 0x29e   :  { %v3153_v45 = vmax.f32 %v4098_v41, 0.0 }
 0x29f   :  { %v3154_v46 = vpack.c.bf16 %v3152_v43, %v3150_v42 }
 0x2a0   :  { %v3155_v47 = vpack.c.bf16 %v3153_v45, %v3151_v44 }
 0x2a2   :  { %3392 = vmatprep.mubr.bf16.mxu1 %v3155_v47 }
 0x2a3   :  { %3393 = vmatmul.mubr.bf16.vlgmr.msra.gmra.mrb[8].mxu1 %v3154_v46 }
 0x2a4   :  { %4066 = vmatpush3.bf16.msra.mxu1 %v4826_v48 }
 0x2a5   :  { %4067 = vmatprep.subr.bf16.mxu1 %v4827_v49 }
 0x2a8   :  { %4068 = vmatpush3.bf16.msra.mxu1 %v4828_v50 }
 0x2a9   :  { %4069 = vmatprep.subr.bf16.mxu1 %v4829_v51 }
 0x2ac   :  { %4070 = vmatpush3.bf16.msra.mxu1 %v4830_v52 }
 0x2ad   :  { %4071 = vmatprep.subr.bf16.mxu1 %v4831_v53 }
 0x2b0   :  { %4072 = vmatpush3.bf16.msra.mxu1 %v4832_v54 }
 0x2b1   :  { %4073 = vmatprep.subr.bf16.mxu1 %v4833_v55 }
 0x2b4   :  { %4074 = vmatpush3.bf16.msra.mxu1 %v4834_v56 }
 0x2b5   :  { %4075 = vmatprep.subr.bf16.mxu1 %v4835_v57 }
 0x2b8   :  { %4076 = vmatpush3.bf16.msra.mxu1 %v4836_v58 }
 0x2b9   :  { %4077 = vmatprep.subr.bf16.mxu1 %v4837_v59 }
 0x2bc   :  { %4078 = vmatpush3.bf16.msra.mxu1 %v4838_v60 }
 0x2bd   :  { %4079 = vmatprep.subr.bf16.mxu1 %v4839_v61 }
 0x2c0   :  { %4080 = vmatpush3.bf16.msra.mxu1 %v4840_v62 }
 0x376   :  { %v3394_v2 = vpop.f32.mrb[8].mxu1 }
 0x377   :  { %v3395_v3 = vadd.f32 %v3394_v2, %v3193_v0  ;;  %v3396_v4 = vpop.f32.mrb[9].mxu1 }
 0x378   :  { %v3397_v5 = vadd.f32 %v3396_v4, %v3197_v1  ;;  %v3398_v6 = vpop.f32.mrb[10].mxu1 }
 0x379   :  { %v3399_v7 = vadd.f32 %v3398_v6, %v3193_v0  ;;  %v3400_v8 = vpop.f32.mrb[11].mxu1  ;;  %v3403_v10 = vmax.f32 %v3395_v3, 0.0 }
 0x37a   :  { %v3401_v9 = vadd.f32 %v3400_v8, %v3197_v1  ;;  %v3404_v12 = vmax.f32 %v3397_v5, 0.0 }
 0x37b   :  { %v3405_v11 = vmax.f32 %v3399_v7, 0.0 }
 0x37c   :  { %v3406_v13 = vmax.f32 %v3401_v9, 0.0 }
 0x37d   :  { %v3407_v14 = vpack.c.bf16 %v3405_v11, %v3403_v10 }
 0x37e   :  { %v3408_v15 = vpack.c.bf16 %v3406_v13, %v3404_v12 }
 0x380   :  { %3576 = vmatprep.mubr.bf16.mxu1 %v3408_v15 }
 0x381   :  { %3577 = vmatmul.mubr.bf16.vlgmr.msra.gmra.mrb[12].mxu1 %v3407_v14 }
 0x454   :  { %v4081_v16 = vpop.f32.mrb[12].mxu1 }
 0x455   :  { %v4082_v18 = vpop.f32.mrb[13].mxu1 }
 0x456   :  { %v4083_v19 = vadd.f32 %v4082_v18, %v4081_v16  ;;  %v4084_v20 = vpop.f32.mrb[14].mxu1 }
 0x457   :  { %v4085_v21 = vpop.f32.mrb[15].mxu1 }
 0x458   :  { %v3579_v22 = vadd.f32 %v4083_v19, %v4048_v17  ;;  %v4086_v23 = vadd.f32 %v4085_v21, %v4084_v20 }
 0x45a   :  { %3585 = vst [vmem:[%s6327_s7] sm:$0xff] %v3579_v22  ;;  %v3582_v24 = vadd.f32 %v4086_v23, %v4048_v17 }
 0x45c   :  { %3586 = vst [vmem:[%s6327_s7 + $0x8] sm:$0xff] %v3582_v24 }

</bundles_post_ra>
